<compile_context>
chip_gen: v6e
topology: v6e:2x2x1
jax: 0.10.0
libtpu: 0.0.40
codegen_flags: <defaults>
</compile_context>

<pallas_src>
import math
from functools import partial

import numpy as np
import jax
import jax.numpy as jnp
from jax.experimental import pallas as pl
from jax.experimental.pallas import tpu as pltpu


_MSSSIM_WEIGHTS = (0.0448, 0.2856, 0.3001, 0.2363, 0.1333)


# ----------------------------------------------------------------------------
# Static (trace-time) operator construction: Gaussian band matrices, pooling
# matrices, block-diagonal per-image H-direction operators.
# ----------------------------------------------------------------------------
def _gaussian_1d(window_size, sigma=1.5):
    g = np.array(
        [math.exp(-((x - window_size // 2) ** 2) / float(2 * sigma ** 2))
         for x in range(window_size)],
        dtype=np.float32,
    )
    return g / g.sum()


def _band_matrix(size_in, taps):
    """(size_in, size_out) matrix M with (x @ M)[o] = sum_k taps[k] * x[o + k]."""
    ws = len(taps)
    size_out = size_in - ws + 1
    m = np.zeros((size_in, size_out), np.float32)
    for o in range(size_out):
        m[o:o + ws, o] = taps
    return m


def _pool_matrix(size_in):
    """(size_in, size_in//2) matrix with (x @ M)[j] = 0.5*(x[2j] + x[2j+1])."""
    size_out = size_in // 2
    m = np.zeros((size_in, size_out), np.float32)
    for j in range(size_out):
        m[2 * j, j] = 0.5
        m[2 * j + 1, j] = 0.5
    return m


def _block_diag(block, reps):
    r, c = block.shape
    m = np.zeros((reps * r, reps * c), np.float32)
    for i in range(reps):
        m[i * r:(i + 1) * r, i * c:(i + 1) * c] = block
    return m


def _level_operators(N, C, H, W, window_size, levels):
    """Flat list of per-level numpy operator matrices, in kernel arg order."""
    nc = N * C
    mats = []
    d1, d2 = H, W
    for lvl in range(levels):
        ws = min(window_size, d1, d2)            # real_size, as in the reference
        g = _gaussian_1d(ws)
        # W-direction (lane axis) Gaussian band matrix: (D2, O2)
        band_w = _band_matrix(d2, g)
        # H-direction (sublane axis) operator, block-diagonal over the N*C
        # images stacked along the row axis: (NC*O1, NC*D1)
        band_h = _block_diag(_band_matrix(d1, g).T, nc)
        mats += [band_w, band_h]
        if lvl < levels - 1:
            pool_w = _pool_matrix(d2)                        # (D2, D2//2)
            pool_h = _block_diag(_pool_matrix(d1).T, nc)     # (NC*(D1//2), NC*D1)
            mats += [pool_w, pool_h]
        d1, d2 = d1 // 2, d2 // 2
    return mats


# ----------------------------------------------------------------------------
# Fused kernel: all pyramid levels, conv + pooling on the MXU, VMEM-resident.
# ----------------------------------------------------------------------------
def _msssim_kernel(levels, img1_ref, img2_ref, *refs):
    mat_refs = refs[:-2]
    ssim_ref, cs_ref = refs[-2], refs[-1]        # SMEM outputs, shape (levels,)

    a = img1_ref[...]                            # (NC*H, W) rows-stacked layout
    b = img2_ref[...]

    mi = 0
    for lvl in range(levels):
        band_w = mat_refs[mi][...]               # (D2, O2)
        band_h = mat_refs[mi + 1][...]           # (NC*O1, NC*D1)
        mi += 2

        # Data-dependent dynamic range L, recomputed per level exactly like the
        # reference (kept per-level for semantic fidelity).
        max1 = jnp.max(a)
        min1 = jnp.min(a)
        max_val = 1.0 + 254.0 * (max1 > 128.0).astype(jnp.float32)   # 255 or 1
        min_val = -1.0 * (min1 < -0.5).astype(jnp.float32)           # -1 or 0
        L = max_val - min_val
        c1 = (0.01 * L) ** 2
        c2 = (0.03 * L) ** 2

        def gconv(x):
            # Separable depthwise "valid" Gaussian conv as two MXU matmuls.
            y = jnp.dot(x, band_w, preferred_element_type=jnp.float32)
            return jnp.dot(band_h, y, preferred_element_type=jnp.float32)

        mu1 = gconv(a)
        mu2 = gconv(b)
        e11 = gconv(a * a)
        e22 = gconv(b * b)
        e12 = gconv(a * b)

        mu1_sq = mu1 * mu1
        mu2_sq = mu2 * mu2
        mu1_mu2 = mu1 * mu2
        sigma1_sq = e11 - mu1_sq
        sigma2_sq = e22 - mu2_sq
        sigma12 = e12 - mu1_mu2

        v1 = 2.0 * sigma12 + c2
        v2 = sigma1_sq + sigma2_sq + c2
        cs_ref[lvl] = jnp.mean(v1 / v2)
        ssim_map = ((2.0 * mu1_mu2 + c1) * v1) / ((mu1_sq + mu2_sq + c1) * v2)
        ssim_ref[lvl] = jnp.mean(ssim_map)

        if lvl < levels - 1:
            pool_w = mat_refs[mi][...]           # (D2, D2//2)
            pool_h = mat_refs[mi + 1][...]       # (NC*(D1//2), NC*D1)
            mi += 2
            # F.avg_pool2d(x, (2, 2)) as two matmuls; result is directly the
            # next level's rows-stacked image (stays in VMEM).
            a = jnp.dot(pool_h, jnp.dot(a, pool_w, preferred_element_type=jnp.float32),
                        preferred_element_type=jnp.float32)
            b = jnp.dot(pool_h, jnp.dot(b, pool_w, preferred_element_type=jnp.float32),
                        preferred_element_type=jnp.float32)


# ----------------------------------------------------------------------------
# Host-side wrapper.
# ----------------------------------------------------------------------------
@partial(jax.jit, static_argnames=("window_size", "normalize"))
def msssim_pallas(img1, img2, window_size=11, normalize=True):
    weights = jnp.asarray(_MSSSIM_WEIGHTS, jnp.float32)
    levels = len(_MSSSIM_WEIGHTS)

    N, C, H, W = img1.shape
    assert img2.shape == img1.shape
    assert H // (2 ** (levels - 1)) >= 1 and W // (2 ** (levels - 1)) >= 1, (
        "image too small for the 5-level MS-SSIM pyramid")
    nc = N * C

    mats = [jnp.asarray(m) for m in _level_operators(N, C, H, W, window_size, levels)]

    # Rows-stacked 2D layout (N*C*H, W): all matmuls inside the kernel are
    # plain 2D with a large M dimension; the reshape here is free (plain JAX).
    a2d = img1.astype(jnp.float32).reshape(nc * H, W)
    b2d = img2.astype(jnp.float32).reshape(nc * H, W)

    n_in = 2 + len(mats)
    # TODO(synk): for large images, tile H (with a window-size halo) over a
    # grid with dimension_semantics=("parallel",...) instead of holding the
    # whole level-0 image in VMEM (needed for v7x's 64 MiB VMEM / 2 TCs).
    ssim_vals, cs_vals = pl.pallas_call(
        partial(_msssim_kernel, levels),
        out_shape=(jax.ShapeDtypeStruct((levels,), jnp.float32),
                   jax.ShapeDtypeStruct((levels,), jnp.float32)),
        in_specs=[pl.BlockSpec(memory_space=pltpu.MemorySpace.VMEM)] * n_in,
        out_specs=(pl.BlockSpec(memory_space=pltpu.MemorySpace.SMEM),
                   pl.BlockSpec(memory_space=pltpu.MemorySpace.SMEM)),
    )(a2d, b2d, *mats)

    mssim = ssim_vals
    mcs = cs_vals
    if normalize:
        mssim = (mssim + 1.0) / 2.0
        mcs = (mcs + 1.0) / 2.0
    pow1 = mcs ** weights
    pow2 = mssim ** weights
    # NOTE: reproduces the reference combination exactly
    # (prod(pow1[:-1] * pow2[-1]), i.e. the well-known pytorch_msssim quirk).
    return jnp.prod(pow1[:-1] * pow2[-1])


class MSSSIM:
    def __init__(self, window_size=11, size_average=True, channel=3):
        self.window_size = window_size
        # TODO(synk): size_average=False (per-sample ssim vector) path is not
        # implemented; only the default mean-over-everything path is supported.
        self.size_average = size_average
        self.channel = channel

    def __call__(self, img1, img2):
        return 1.0 - msssim_pallas(img1, img2, window_size=self.window_size,
                                   normalize=True)


if __name__ == "__main__":
    key = jax.random.PRNGKey(0)
    k1, k2 = jax.random.split(key)
    # Spatial size 32 is the smallest for which the reference 5-level pyramid
    # is well defined.
    img1 = jax.random.normal(k1, (2, 3, 32, 32), dtype=jnp.float32)
    img2 = jax.random.normal(k2, (2, 3, 32, 32), dtype=jnp.float32)

    loss = MSSSIM(window_size=11, size_average=True, channel=3)(img1, img2)
    loss = jax.block_until_ready(loss)
    assert loss.shape == () and bool(jnp.isfinite(loss))
    print("KERNEL_OK")
</pallas_src>

<mosaic_0001>
module attributes {stable_mosaic.version = 11 : i64} {
  func.func @_msssim_kernel(%arg0: memref<192x32xf32, #tpu.memory_space<vmem>>, %arg1: memref<192x32xf32, #tpu.memory_space<vmem>>, %arg2: memref<32x22xf32, #tpu.memory_space<vmem>>, %arg3: memref<132x192xf32, #tpu.memory_space<vmem>>, %arg4: memref<32x16xf32, #tpu.memory_space<vmem>>, %arg5: memref<96x192xf32, #tpu.memory_space<vmem>>, %arg6: memref<16x6xf32, #tpu.memory_space<vmem>>, %arg7: memref<36x96xf32, #tpu.memory_space<vmem>>, %arg8: memref<16x8xf32, #tpu.memory_space<vmem>>, %arg9: memref<48x96xf32, #tpu.memory_space<vmem>>, %arg10: memref<8x1xf32, #tpu.memory_space<vmem>>, %arg11: memref<6x48xf32, #tpu.memory_space<vmem>>, %arg12: memref<8x4xf32, #tpu.memory_space<vmem>>, %arg13: memref<24x48xf32, #tpu.memory_space<vmem>>, %arg14: memref<4x1xf32, #tpu.memory_space<vmem>>, %arg15: memref<6x24xf32, #tpu.memory_space<vmem>>, %arg16: memref<4x2xf32, #tpu.memory_space<vmem>>, %arg17: memref<12x24xf32, #tpu.memory_space<vmem>>, %arg18: memref<2x1xf32, #tpu.memory_space<vmem>>, %arg19: memref<6x12xf32, #tpu.memory_space<vmem>>, %arg20: memref<5xf32, #tpu.memory_space<smem>>, %arg21: memref<5xf32, #tpu.memory_space<smem>>) attributes {dimension_semantics = [], scalar_prefetch = 0 : i64, scratch_operands = 0 : i64, tpu.core_type = #tpu.core_type<tc>} {
    %c0 = arith.constant 0 : index
    %c0_0 = arith.constant 0 : index
    %0 = vector.load %arg0[%c0, %c0_0] : memref<192x32xf32, #tpu.memory_space<vmem>>, vector<192x32xf32>
    %c0_1 = arith.constant 0 : index
    %c0_2 = arith.constant 0 : index
    %1 = vector.load %arg1[%c0_1, %c0_2] : memref<192x32xf32, #tpu.memory_space<vmem>>, vector<192x32xf32>
    %c0_3 = arith.constant 0 : index
    %c0_4 = arith.constant 0 : index
    %2 = vector.load %arg2[%c0_3, %c0_4] : memref<32x22xf32, #tpu.memory_space<vmem>>, vector<32x22xf32>
    %c0_5 = arith.constant 0 : index
    %c0_6 = arith.constant 0 : index
    %3 = vector.load %arg3[%c0_5, %c0_6] : memref<132x192xf32, #tpu.memory_space<vmem>>, vector<132x192xf32>
    %4 = vector.shape_cast %0 : vector<192x32xf32> to vector<1x192x32xf32>
    %cst = arith.constant dense<0xFF800000> : vector<1xf32>
    %5 = vector.multi_reduction <maximumf>, %4, %cst [1, 2] : vector<1x192x32xf32> to vector<1xf32>
    %6 = vector.shape_cast %5 : vector<1xf32> to vector<1x1x1xf32>
    %7 = vector.extract %6[0, 0, 0] : f32 from vector<1x1x1xf32>
    %8 = vector.shape_cast %0 : vector<192x32xf32> to vector<1x192x32xf32>
    %cst_7 = arith.constant dense<0x7F800000> : vector<1xf32>
    %9 = vector.multi_reduction <minimumf>, %8, %cst_7 [1, 2] : vector<1x192x32xf32> to vector<1xf32>
    %10 = vector.shape_cast %9 : vector<1xf32> to vector<1x1x1xf32>
    %11 = vector.extract %10[0, 0, 0] : f32 from vector<1x1x1xf32>
    %cst_8 = arith.constant 1.280000e+02 : f32
    %12 = arith.cmpf ogt, %7, %cst_8 : f32
    %13 = arith.extui %12 : i1 to i32
    %14 = arith.sitofp %13 : i32 to f32
    %cst_9 = arith.constant 2.540000e+02 : f32
    %15 = arith.mulf %cst_9, %14 : f32
    %cst_10 = arith.constant 1.000000e+00 : f32
    %16 = arith.addf %cst_10, %15 : f32
    %cst_11 = arith.constant -5.000000e-01 : f32
    %17 = arith.cmpf olt, %11, %cst_11 : f32
    %18 = arith.extui %17 : i1 to i32
    %19 = arith.sitofp %18 : i32 to f32
    %cst_12 = arith.constant -1.000000e+00 : f32
    %20 = arith.mulf %cst_12, %19 : f32
    %21 = arith.subf %16, %20 : f32
    %cst_13 = arith.constant 0.00999999977 : f32
    %22 = arith.mulf %cst_13, %21 : f32
    %23 = arith.mulf %22, %22 : f32
    %cst_14 = arith.constant 3.000000e-02 : f32
    %24 = arith.mulf %cst_14, %21 : f32
    %25 = arith.mulf %24, %24 : f32
    %cst_15 = arith.constant dense<0.000000e+00> : vector<192x22xf32>
    %26 = tpu.matmul %0, %2, %cst_15 {dimension_numbers = #tpu.dot_dimension_numbers<[1], [0], [0], [1], [0, 0, 1, 1], [], []>} : vector<192x32xf32>, vector<32x22xf32>, vector<192x22xf32> -> vector<192x22xf32>
    %cst_16 = arith.constant dense<0.000000e+00> : vector<132x22xf32>
    %27 = tpu.matmul %3, %26, %cst_16 {dimension_numbers = #tpu.dot_dimension_numbers<[1], [0], [0], [1], [0, 0, 1, 1], [], []>} : vector<132x192xf32>, vector<192x22xf32>, vector<132x22xf32> -> vector<132x22xf32>
    %cst_17 = arith.constant dense<0.000000e+00> : vector<192x22xf32>
    %28 = tpu.matmul %1, %2, %cst_17 {dimension_numbers = #tpu.dot_dimension_numbers<[1], [0], [0], [1], [0, 0, 1, 1], [], []>} : vector<192x32xf32>, vector<32x22xf32>, vector<192x22xf32> -> vector<192x22xf32>
    %cst_18 = arith.constant dense<0.000000e+00> : vector<132x22xf32>
    %29 = tpu.matmul %3, %28, %cst_18 {dimension_numbers = #tpu.dot_dimension_numbers<[1], [0], [0], [1], [0, 0, 1, 1], [], []>} : vector<132x192xf32>, vector<192x22xf32>, vector<132x22xf32> -> vector<132x22xf32>
    %30 = arith.mulf %0, %0 : vector<192x32xf32>
    %cst_19 = arith.constant dense<0.000000e+00> : vector<192x22xf32>
    %31 = tpu.matmul %30, %2, %cst_19 {dimension_numbers = #tpu.dot_dimension_numbers<[1], [0], [0], [1], [0, 0, 1, 1], [], []>} : vector<192x32xf32>, vector<32x22xf32>, vector<192x22xf32> -> vector<192x22xf32>
    %cst_20 = arith.constant dense<0.000000e+00> : vector<132x22xf32>
    %32 = tpu.matmul %3, %31, %cst_20 {dimension_numbers = #tpu.dot_dimension_numbers<[1], [0], [0], [1], [0, 0, 1, 1], [], []>} : vector<132x192xf32>, vector<192x22xf32>, vector<132x22xf32> -> vector<132x22xf32>
    %33 = arith.mulf %1, %1 : vector<192x32xf32>
    %cst_21 = arith.constant dense<0.000000e+00> : vector<192x22xf32>
    %34 = tpu.matmul %33, %2, %cst_21 {dimension_numbers = #tpu.dot_dimension_numbers<[1], [0], [0], [1], [0, 0, 1, 1], [], []>} : vector<192x32xf32>, vector<32x22xf32>, vector<192x22xf32> -> vector<192x22xf32>
    %cst_22 = arith.constant dense<0.000000e+00> : vector<132x22xf32>
    %35 = tpu.matmul %3, %34, %cst_22 {dimension_numbers = #tpu.dot_dimension_numbers<[1], [0], [0], [1], [0, 0, 1, 1], [], []>} : vector<132x192xf32>, vector<192x22xf32>, vector<132x22xf32> -> vector<132x22xf32>
    %36 = arith.mulf %0, %1 : vector<192x32xf32>
    %cst_23 = arith.constant dense<0.000000e+00> : vector<192x22xf32>
    %37 = tpu.matmul %36, %2, %cst_23 {dimension_numbers = #tpu.dot_dimension_numbers<[1], [0], [0], [1], [0, 0, 1, 1], [], []>} : vector<192x32xf32>, vector<32x22xf32>, vector<192x22xf32> -> vector<192x22xf32>
    %cst_24 = arith.constant dense<0.000000e+00> : vector<132x22xf32>
    %38 = tpu.matmul %3, %37, %cst_24 {dimension_numbers = #tpu.dot_dimension_numbers<[1], [0], [0], [1], [0, 0, 1, 1], [], []>} : vector<132x192xf32>, vector<192x22xf32>, vector<132x22xf32> -> vector<132x22xf32>
    %39 = arith.mulf %27, %27 : vector<132x22xf32>
    %40 = arith.mulf %29, %29 : vector<132x22xf32>
    %41 = arith.mulf %27, %29 : vector<132x22xf32>
    %42 = arith.subf %32, %39 : vector<132x22xf32>
    %43 = arith.subf %35, %40 : vector<132x22xf32>
    %44 = arith.subf %38, %41 : vector<132x22xf32>
    %cst_25 = arith.constant 2.000000e+00 : f32
    %45 = vector.broadcast %cst_25 : f32 to vector<132x22xf32>
    %46 = arith.mulf %45, %44 : vector<132x22xf32>
    %47 = vector.broadcast %25 : f32 to vector<132x22xf32>
    %48 = arith.addf %46, %47 : vector<132x22xf32>
    %49 = arith.addf %42, %43 : vector<132x22xf32>
    %50 = vector.broadcast %25 : f32 to vector<132x22xf32>
    %51 = arith.addf %49, %50 : vector<132x22xf32>
    %52 = arith.divf %48, %51 : vector<132x22xf32>
    %53 = vector.shape_cast %52 : vector<132x22xf32> to vector<1x132x22xf32>
    %cst_26 = arith.constant dense<0.000000e+00> : vector<1xf32>
    %54 = vector.multi_reduction <add>, %53, %cst_26 [1, 2] : vector<1x132x22xf32> to vector<1xf32>
    %55 = vector.shape_cast %54 : vector<1xf32> to vector<1x1x1xf32>
    %56 = vector.extract %55[0, 0, 0] : f32 from vector<1x1x1xf32>
    %cst_27 = arith.constant 2.904000e+03 : f32
    %57 = arith.divf %56, %cst_27 : f32
    %c0_28 = arith.constant 0 : index
    %58 = memref.load %arg21[%c0_28] : memref<5xf32, #tpu.memory_space<smem>>
    memref.store %57, %arg21[%c0_28] : memref<5xf32, #tpu.memory_space<smem>>
    %cst_29 = arith.constant 2.000000e+00 : f32
    %59 = vector.broadcast %cst_29 : f32 to vector<132x22xf32>
    %60 = arith.mulf %59, %41 : vector<132x22xf32>
    %61 = vector.broadcast %23 : f32 to vector<132x22xf32>
    %62 = arith.addf %60, %61 : vector<132x22xf32>
    %63 = arith.mulf %62, %48 : vector<132x22xf32>
    %64 = arith.addf %39, %40 : vector<132x22xf32>
    %65 = vector.broadcast %23 : f32 to vector<132x22xf32>
    %66 = arith.addf %64, %65 : vector<132x22xf32>
    %67 = arith.mulf %66, %51 : vector<132x22xf32>
    %68 = arith.divf %63, %67 : vector<132x22xf32>
    %69 = vector.shape_cast %68 : vector<132x22xf32> to vector<1x132x22xf32>
    %cst_30 = arith.constant dense<0.000000e+00> : vector<1xf32>
    %70 = vector.multi_reduction <add>, %69, %cst_30 [1, 2] : vector<1x132x22xf32> to vector<1xf32>
    %71 = vector.shape_cast %70 : vector<1xf32> to vector<1x1x1xf32>
    %72 = vector.extract %71[0, 0, 0] : f32 from vector<1x1x1xf32>
    %cst_31 = arith.constant 2.904000e+03 : f32
    %73 = arith.divf %72, %cst_31 : f32
    %c0_32 = arith.constant 0 : index
    %74 = memref.load %arg20[%c0_32] : memref<5xf32, #tpu.memory_space<smem>>
    memref.store %73, %arg20[%c0_32] : memref<5xf32, #tpu.memory_space<smem>>
    %c0_33 = arith.constant 0 : index
    %c0_34 = arith.constant 0 : index
    %75 = vector.load %arg4[%c0_33, %c0_34] : memref<32x16xf32, #tpu.memory_space<vmem>>, vector<32x16xf32>
    %c0_35 = arith.constant 0 : index
    %c0_36 = arith.constant 0 : index
    %76 = vector.load %arg5[%c0_35, %c0_36] : memref<96x192xf32, #tpu.memory_space<vmem>>, vector<96x192xf32>
    %cst_37 = arith.constant dense<0.000000e+00> : vector<192x16xf32>
    %77 = tpu.matmul %0, %75, %cst_37 {dimension_numbers = #tpu.dot_dimension_numbers<[1], [0], [0], [1], [0, 0, 1, 1], [], []>} : vector<192x32xf32>, vector<32x16xf32>, vector<192x16xf32> -> vector<192x16xf32>
    %cst_38 = arith.constant dense<0.000000e+00> : vector<96x16xf32>
    %78 = tpu.matmul %76, %77, %cst_38 {dimension_numbers = #tpu.dot_dimension_numbers<[1], [0], [0], [1], [0, 0, 1, 1], [], []>} : vector<96x192xf32>, vector<192x16xf32>, vector<96x16xf32> -> vector<96x16xf32>
    %cst_39 = arith.constant dense<0.000000e+00> : vector<192x16xf32>
    %79 = tpu.matmul %1, %75, %cst_39 {dimension_numbers = #tpu.dot_dimension_numbers<[1], [0], [0], [1], [0, 0, 1, 1], [], []>} : vector<192x32xf32>, vector<32x16xf32>, vector<192x16xf32> -> vector<192x16xf32>
    %cst_40 = arith.constant dense<0.000000e+00> : vector<96x16xf32>
    %80 = tpu.matmul %76, %79, %cst_40 {dimension_numbers = #tpu.dot_dimension_numbers<[1], [0], [0], [1], [0, 0, 1, 1], [], []>} : vector<96x192xf32>, vector<192x16xf32>, vector<96x16xf32> -> vector<96x16xf32>
    %c0_41 = arith.constant 0 : index
    %c0_42 = arith.constant 0 : index
    %81 = vector.load %arg6[%c0_41, %c0_42] : memref<16x6xf32, #tpu.memory_space<vmem>>, vector<16x6xf32>
    %c0_43 = arith.constant 0 : index
    %c0_44 = arith.constant 0 : index
    %82 = vector.load %arg7[%c0_43, %c0_44] : memref<36x96xf32, #tpu.memory_space<vmem>>, vector<36x96xf32>
    %83 = vector.shape_cast %78 : vector<96x16xf32> to vector<1x96x16xf32>
    %cst_45 = arith.constant dense<0xFF800000> : vector<1xf32>
    %84 = vector.multi_reduction <maximumf>, %83, %cst_45 [1, 2] : vector<1x96x16xf32> to vector<1xf32>
    %85 = vector.shape_cast %84 : vector<1xf32> to vector<1x1x1xf32>
    %86 = vector.extract %85[0, 0, 0] : f32 from vector<1x1x1xf32>
    %87 = vector.shape_cast %78 : vector<96x16xf32> to vector<1x96x16xf32>
    %cst_46 = arith.constant dense<0x7F800000> : vector<1xf32>
    %88 = vector.multi_reduction <minimumf>, %87, %cst_46 [1, 2] : vector<1x96x16xf32> to vector<1xf32>
    %89 = vector.shape_cast %88 : vector<1xf32> to vector<1x1x1xf32>
    %90 = vector.extract %89[0, 0, 0] : f32 from vector<1x1x1xf32>
    %cst_47 = arith.constant 1.280000e+02 : f32
    %91 = arith.cmpf ogt, %86, %cst_47 : f32
    %92 = arith.extui %91 : i1 to i32
    %93 = arith.sitofp %92 : i32 to f32
    %cst_48 = arith.constant 2.540000e+02 : f32
    %94 = arith.mulf %cst_48, %93 : f32
    %cst_49 = arith.constant 1.000000e+00 : f32
    %95 = arith.addf %cst_49, %94 : f32
    %cst_50 = arith.constant -5.000000e-01 : f32
    %96 = arith.cmpf olt, %90, %cst_50 : f32
    %97 = arith.extui %96 : i1 to i32
    %98 = arith.sitofp %97 : i32 to f32
    %cst_51 = arith.constant -1.000000e+00 : f32
    %99 = arith.mulf %cst_51, %98 : f32
    %100 = arith.subf %95, %99 : f32
    %cst_52 = arith.constant 0.00999999977 : f32
    %101 = arith.mulf %cst_52, %100 : f32
    %102 = arith.mulf %101, %101 : f32
    %cst_53 = arith.constant 3.000000e-02 : f32
    %103 = arith.mulf %cst_53, %100 : f32
    %104 = arith.mulf %103, %103 : f32
    %cst_54 = arith.constant dense<0.000000e+00> : vector<96x6xf32>
    %105 = tpu.matmul %78, %81, %cst_54 {dimension_numbers = #tpu.dot_dimension_numbers<[1], [0], [0], [1], [0, 0, 1, 1], [], []>} : vector<96x16xf32>, vector<16x6xf32>, vector<96x6xf32> -> vector<96x6xf32>
    %cst_55 = arith.constant dense<0.000000e+00> : vector<36x6xf32>
    %106 = tpu.matmul %82, %105, %cst_55 {dimension_numbers = #tpu.dot_dimension_numbers<[1], [0], [0], [1], [0, 0, 1, 1], [], []>} : vector<36x96xf32>, vector<96x6xf32>, vector<36x6xf32> -> vector<36x6xf32>
    %cst_56 = arith.constant dense<0.000000e+00> : vector<96x6xf32>
    %107 = tpu.matmul %80, %81, %cst_56 {dimension_numbers = #tpu.dot_dimension_numbers<[1], [0], [0], [1], [0, 0, 1, 1], [], []>} : vector<96x16xf32>, vector<16x6xf32>, vector<96x6xf32> -> vector<96x6xf32>
    %cst_57 = arith.constant dense<0.000000e+00> : vector<36x6xf32>
    %108 = tpu.matmul %82, %107, %cst_57 {dimension_numbers = #tpu.dot_dimension_numbers<[1], [0], [0], [1], [0, 0, 1, 1], [], []>} : vector<36x96xf32>, vector<96x6xf32>, vector<36x6xf32> -> vector<36x6xf32>
    %109 = arith.mulf %78, %78 : vector<96x16xf32>
    %cst_58 = arith.constant dense<0.000000e+00> : vector<96x6xf32>
    %110 = tpu.matmul %109, %81, %cst_58 {dimension_numbers = #tpu.dot_dimension_numbers<[1], [0], [0], [1], [0, 0, 1, 1], [], []>} : vector<96x16xf32>, vector<16x6xf32>, vector<96x6xf32> -> vector<96x6xf32>
    %cst_59 = arith.constant dense<0.000000e+00> : vector<36x6xf32>
    %111 = tpu.matmul %82, %110, %cst_59 {dimension_numbers = #tpu.dot_dimension_numbers<[1], [0], [0], [1], [0, 0, 1, 1], [], []>} : vector<36x96xf32>, vector<96x6xf32>, vector<36x6xf32> -> vector<36x6xf32>
    %112 = arith.mulf %80, %80 : vector<96x16xf32>
    %cst_60 = arith.constant dense<0.000000e+00> : vector<96x6xf32>
    %113 = tpu.matmul %112, %81, %cst_60 {dimension_numbers = #tpu.dot_dimension_numbers<[1], [0], [0], [1], [0, 0, 1, 1], [], []>} : vector<96x16xf32>, vector<16x6xf32>, vector<96x6xf32> -> vector<96x6xf32>
    %cst_61 = arith.constant dense<0.000000e+00> : vector<36x6xf32>
    %114 = tpu.matmul %82, %113, %cst_61 {dimension_numbers = #tpu.dot_dimension_numbers<[1], [0], [0], [1], [0, 0, 1, 1], [], []>} : vector<36x96xf32>, vector<96x6xf32>, vector<36x6xf32> -> vector<36x6xf32>
    %115 = arith.mulf %78, %80 : vector<96x16xf32>
    %cst_62 = arith.constant dense<0.000000e+00> : vector<96x6xf32>
    %116 = tpu.matmul %115, %81, %cst_62 {dimension_numbers = #tpu.dot_dimension_numbers<[1], [0], [0], [1], [0, 0, 1, 1], [], []>} : vector<96x16xf32>, vector<16x6xf32>, vector<96x6xf32> -> vector<96x6xf32>
    %cst_63 = arith.constant dense<0.000000e+00> : vector<36x6xf32>
    %117 = tpu.matmul %82, %116, %cst_63 {dimension_numbers = #tpu.dot_dimension_numbers<[1], [0], [0], [1], [0, 0, 1, 1], [], []>} : vector<36x96xf32>, vector<96x6xf32>, vector<36x6xf32> -> vector<36x6xf32>
    %118 = arith.mulf %106, %106 : vector<36x6xf32>
    %119 = arith.mulf %108, %108 : vector<36x6xf32>
    %120 = arith.mulf %106, %108 : vector<36x6xf32>
    %121 = arith.subf %111, %118 : vector<36x6xf32>
    %122 = arith.subf %114, %119 : vector<36x6xf32>
    %123 = arith.subf %117, %120 : vector<36x6xf32>
    %cst_64 = arith.constant 2.000000e+00 : f32
    %124 = vector.broadcast %cst_64 : f32 to vector<36x6xf32>
    %125 = arith.mulf %124, %123 : vector<36x6xf32>
    %126 = vector.broadcast %104 : f32 to vector<36x6xf32>
    %127 = arith.addf %125, %126 : vector<36x6xf32>
    %128 = arith.addf %121, %122 : vector<36x6xf32>
    %129 = vector.broadcast %104 : f32 to vector<36x6xf32>
    %130 = arith.addf %128, %129 : vector<36x6xf32>
    %131 = arith.divf %127, %130 : vector<36x6xf32>
    %132 = vector.shape_cast %131 : vector<36x6xf32> to vector<1x36x6xf32>
    %cst_65 = arith.constant dense<0.000000e+00> : vector<1xf32>
    %133 = vector.multi_reduction <add>, %132, %cst_65 [1, 2] : vector<1x36x6xf32> to vector<1xf32>
    %134 = vector.shape_cast %133 : vector<1xf32> to vector<1x1x1xf32>
    %135 = vector.extract %134[0, 0, 0] : f32 from vector<1x1x1xf32>
    %cst_66 = arith.constant 2.160000e+02 : f32
    %136 = arith.divf %135, %cst_66 : f32
    %c1 = arith.constant 1 : index
    %137 = memref.load %arg21[%c1] : memref<5xf32, #tpu.memory_space<smem>>
    memref.store %136, %arg21[%c1] : memref<5xf32, #tpu.memory_space<smem>>
    %cst_67 = arith.constant 2.000000e+00 : f32
    %138 = vector.broadcast %cst_67 : f32 to vector<36x6xf32>
    %139 = arith.mulf %138, %120 : vector<36x6xf32>
    %140 = vector.broadcast %102 : f32 to vector<36x6xf32>
    %141 = arith.addf %139, %140 : vector<36x6xf32>
    %142 = arith.mulf %141, %127 : vector<36x6xf32>
    %143 = arith.addf %118, %119 : vector<36x6xf32>
    %144 = vector.broadcast %102 : f32 to vector<36x6xf32>
    %145 = arith.addf %143, %144 : vector<36x6xf32>
    %146 = arith.mulf %145, %130 : vector<36x6xf32>
    %147 = arith.divf %142, %146 : vector<36x6xf32>
    %148 = vector.shape_cast %147 : vector<36x6xf32> to vector<1x36x6xf32>
    %cst_68 = arith.constant dense<0.000000e+00> : vector<1xf32>
    %149 = vector.multi_reduction <add>, %148, %cst_68 [1, 2] : vector<1x36x6xf32> to vector<1xf32>
    %150 = vector.shape_cast %149 : vector<1xf32> to vector<1x1x1xf32>
    %151 = vector.extract %150[0, 0, 0] : f32 from vector<1x1x1xf32>
    %cst_69 = arith.constant 2.160000e+02 : f32
    %152 = arith.divf %151, %cst_69 : f32
    %c1_70 = arith.constant 1 : index
    %153 = memref.load %arg20[%c1_70] : memref<5xf32, #tpu.memory_space<smem>>
    memref.store %152, %arg20[%c1_70] : memref<5xf32, #tpu.memory_space<smem>>
    %c0_71 = arith.constant 0 : index
    %c0_72 = arith.constant 0 : index
    %154 = vector.load %arg8[%c0_71, %c0_72] : memref<16x8xf32, #tpu.memory_space<vmem>>, vector<16x8xf32>
    %c0_73 = arith.constant 0 : index
    %c0_74 = arith.constant 0 : index
    %155 = vector.load %arg9[%c0_73, %c0_74] : memref<48x96xf32, #tpu.memory_space<vmem>>, vector<48x96xf32>
    %cst_75 = arith.constant dense<0.000000e+00> : vector<96x8xf32>
    %156 = tpu.matmul %78, %154, %cst_75 {dimension_numbers = #tpu.dot_dimension_numbers<[1], [0], [0], [1], [0, 0, 1, 1], [], []>} : vector<96x16xf32>, vector<16x8xf32>, vector<96x8xf32> -> vector<96x8xf32>
    %cst_76 = arith.constant dense<0.000000e+00> : vector<48x8xf32>
    %157 = tpu.matmul %155, %156, %cst_76 {dimension_numbers = #tpu.dot_dimension_numbers<[1], [0], [0], [1], [0, 0, 1, 1], [], []>} : vector<48x96xf32>, vector<96x8xf32>, vector<48x8xf32> -> vector<48x8xf32>
    %cst_77 = arith.constant dense<0.000000e+00> : vector<96x8xf32>
    %158 = tpu.matmul %80, %154, %cst_77 {dimension_numbers = #tpu.dot_dimension_numbers<[1], [0], [0], [1], [0, 0, 1, 1], [], []>} : vector<96x16xf32>, vector<16x8xf32>, vector<96x8xf32> -> vector<96x8xf32>
    %cst_78 = arith.constant dense<0.000000e+00> : vector<48x8xf32>
    %159 = tpu.matmul %155, %158, %cst_78 {dimension_numbers = #tpu.dot_dimension_numbers<[1], [0], [0], [1], [0, 0, 1, 1], [], []>} : vector<48x96xf32>, vector<96x8xf32>, vector<48x8xf32> -> vector<48x8xf32>
    %c0_79 = arith.constant 0 : index
    %c0_80 = arith.constant 0 : index
    %160 = vector.load %arg10[%c0_79, %c0_80] : memref<8x1xf32, #tpu.memory_space<vmem>>, vector<8x1xf32>
    %c0_81 = arith.constant 0 : index
    %c0_82 = arith.constant 0 : index
    %161 = vector.load %arg11[%c0_81, %c0_82] : memref<6x48xf32, #tpu.memory_space<vmem>>, vector<6x48xf32>
    %162 = vector.shape_cast %157 : vector<48x8xf32> to vector<1x48x8xf32>
    %cst_83 = arith.constant dense<0xFF800000> : vector<1xf32>
    %163 = vector.multi_reduction <maximumf>, %162, %cst_83 [1, 2] : vector<1x48x8xf32> to vector<1xf32>
    %164 = vector.shape_cast %163 : vector<1xf32> to vector<1x1x1xf32>
    %165 = vector.extract %164[0, 0, 0] : f32 from vector<1x1x1xf32>
    %166 = vector.shape_cast %157 : vector<48x8xf32> to vector<1x48x8xf32>
    %cst_84 = arith.constant dense<0x7F800000> : vector<1xf32>
    %167 = vector.multi_reduction <minimumf>, %166, %cst_84 [1, 2] : vector<1x48x8xf32> to vector<1xf32>
    %168 = vector.shape_cast %167 : vector<1xf32> to vector<1x1x1xf32>
    %169 = vector.extract %168[0, 0, 0] : f32 from vector<1x1x1xf32>
    %cst_85 = arith.constant 1.280000e+02 : f32
    %170 = arith.cmpf ogt, %165, %cst_85 : f32
    %171 = arith.extui %170 : i1 to i32
    %172 = arith.sitofp %171 : i32 to f32
    %cst_86 = arith.constant 2.540000e+02 : f32
    %173 = arith.mulf %cst_86, %172 : f32
    %cst_87 = arith.constant 1.000000e+00 : f32
    %174 = arith.addf %cst_87, %173 : f32
    %cst_88 = arith.constant -5.000000e-01 : f32
    %175 = arith.cmpf olt, %169, %cst_88 : f32
    %176 = arith.extui %175 : i1 to i32
    %177 = arith.sitofp %176 : i32 to f32
    %cst_89 = arith.constant -1.000000e+00 : f32
    %178 = arith.mulf %cst_89, %177 : f32
    %179 = arith.subf %174, %178 : f32
    %cst_90 = arith.constant 0.00999999977 : f32
    %180 = arith.mulf %cst_90, %179 : f32
    %181 = arith.mulf %180, %180 : f32
    %cst_91 = arith.constant 3.000000e-02 : f32
    %182 = arith.mulf %cst_91, %179 : f32
    %183 = arith.mulf %182, %182 : f32
    %cst_92 = arith.constant dense<0.000000e+00> : vector<48x1xf32>
    %184 = tpu.matmul %157, %160, %cst_92 {dimension_numbers = #tpu.dot_dimension_numbers<[1], [0], [0], [1], [0, 0, 1, 1], [], []>} : vector<48x8xf32>, vector<8x1xf32>, vector<48x1xf32> -> vector<48x1xf32>
    %cst_93 = arith.constant dense<0.000000e+00> : vector<6x1xf32>
    %185 = tpu.matmul %161, %184, %cst_93 {dimension_numbers = #tpu.dot_dimension_numbers<[1], [0], [0], [1], [0, 0, 1, 1], [], []>} : vector<6x48xf32>, vector<48x1xf32>, vector<6x1xf32> -> vector<6x1xf32>
    %cst_94 = arith.constant dense<0.000000e+00> : vector<48x1xf32>
    %186 = tpu.matmul %159, %160, %cst_94 {dimension_numbers = #tpu.dot_dimension_numbers<[1], [0], [0], [1], [0, 0, 1, 1], [], []>} : vector<48x8xf32>, vector<8x1xf32>, vector<48x1xf32> -> vector<48x1xf32>
    %cst_95 = arith.constant dense<0.000000e+00> : vector<6x1xf32>
    %187 = tpu.matmul %161, %186, %cst_95 {dimension_numbers = #tpu.dot_dimension_numbers<[1], [0], [0], [1], [0, 0, 1, 1], [], []>} : vector<6x48xf32>, vector<48x1xf32>, vector<6x1xf32> -> vector<6x1xf32>
    %188 = arith.mulf %157, %157 : vector<48x8xf32>
    %cst_96 = arith.constant dense<0.000000e+00> : vector<48x1xf32>
    %189 = tpu.matmul %188, %160, %cst_96 {dimension_numbers = #tpu.dot_dimension_numbers<[1], [0], [0], [1], [0, 0, 1, 1], [], []>} : vector<48x8xf32>, vector<8x1xf32>, vector<48x1xf32> -> vector<48x1xf32>
    %cst_97 = arith.constant dense<0.000000e+00> : vector<6x1xf32>
    %190 = tpu.matmul %161, %189, %cst_97 {dimension_numbers = #tpu.dot_dimension_numbers<[1], [0], [0], [1], [0, 0, 1, 1], [], []>} : vector<6x48xf32>, vector<48x1xf32>, vector<6x1xf32> -> vector<6x1xf32>
    %191 = arith.mulf %159, %159 : vector<48x8xf32>
    %cst_98 = arith.constant dense<0.000000e+00> : vector<48x1xf32>
    %192 = tpu.matmul %191, %160, %cst_98 {dimension_numbers = #tpu.dot_dimension_numbers<[1], [0], [0], [1], [0, 0, 1, 1], [], []>} : vector<48x8xf32>, vector<8x1xf32>, vector<48x1xf32> -> vector<48x1xf32>
    %cst_99 = arith.constant dense<0.000000e+00> : vector<6x1xf32>
    %193 = tpu.matmul %161, %192, %cst_99 {dimension_numbers = #tpu.dot_dimension_numbers<[1], [0], [0], [1], [0, 0, 1, 1], [], []>} : vector<6x48xf32>, vector<48x1xf32>, vector<6x1xf32> -> vector<6x1xf32>
    %194 = arith.mulf %157, %159 : vector<48x8xf32>
    %cst_100 = arith.constant dense<0.000000e+00> : vector<48x1xf32>
    %195 = tpu.matmul %194, %160, %cst_100 {dimension_numbers = #tpu.dot_dimension_numbers<[1], [0], [0], [1], [0, 0, 1, 1], [], []>} : vector<48x8xf32>, vector<8x1xf32>, vector<48x1xf32> -> vector<48x1xf32>
    %cst_101 = arith.constant dense<0.000000e+00> : vector<6x1xf32>
    %196 = tpu.matmul %161, %195, %cst_101 {dimension_numbers = #tpu.dot_dimension_numbers<[1], [0], [0], [1], [0, 0, 1, 1], [], []>} : vector<6x48xf32>, vector<48x1xf32>, vector<6x1xf32> -> vector<6x1xf32>
    %197 = arith.mulf %185, %185 : vector<6x1xf32>
    %198 = arith.mulf %187, %187 : vector<6x1xf32>
    %199 = arith.mulf %185, %187 : vector<6x1xf32>
    %200 = arith.subf %190, %197 : vector<6x1xf32>
    %201 = arith.subf %193, %198 : vector<6x1xf32>
    %202 = arith.subf %196, %199 : vector<6x1xf32>
    %cst_102 = arith.constant 2.000000e+00 : f32
    %203 = vector.broadcast %cst_102 : f32 to vector<6x1xf32>
    %204 = arith.mulf %203, %202 : vector<6x1xf32>
    %205 = vector.broadcast %183 : f32 to vector<6x1xf32>
    %206 = arith.addf %204, %205 : vector<6x1xf32>
    %207 = arith.addf %200, %201 : vector<6x1xf32>
    %208 = vector.broadcast %183 : f32 to vector<6x1xf32>
    %209 = arith.addf %207, %208 : vector<6x1xf32>
    %210 = arith.divf %206, %209 : vector<6x1xf32>
    %211 = vector.shape_cast %210 : vector<6x1xf32> to vector<1x6x1xf32>
    %cst_103 = arith.constant dense<0.000000e+00> : vector<1xf32>
    %212 = vector.multi_reduction <add>, %211, %cst_103 [1, 2] : vector<1x6x1xf32> to vector<1xf32>
    %213 = vector.shape_cast %212 : vector<1xf32> to vector<1x1x1xf32>
    %214 = vector.extract %213[0, 0, 0] : f32 from vector<1x1x1xf32>
    %cst_104 = arith.constant 6.000000e+00 : f32
    %215 = arith.divf %214, %cst_104 : f32
    %c2 = arith.constant 2 : index
    %216 = memref.load %arg21[%c2] : memref<5xf32, #tpu.memory_space<smem>>
    memref.store %215, %arg21[%c2] : memref<5xf32, #tpu.memory_space<smem>>
    %cst_105 = arith.constant 2.000000e+00 : f32
    %217 = vector.broadcast %cst_105 : f32 to vector<6x1xf32>
    %218 = arith.mulf %217, %199 : vector<6x1xf32>
    %219 = vector.broadcast %181 : f32 to vector<6x1xf32>
    %220 = arith.addf %218, %219 : vector<6x1xf32>
    %221 = arith.mulf %220, %206 : vector<6x1xf32>
    %222 = arith.addf %197, %198 : vector<6x1xf32>
    %223 = vector.broadcast %181 : f32 to vector<6x1xf32>
    %224 = arith.addf %222, %223 : vector<6x1xf32>
    %225 = arith.mulf %224, %209 : vector<6x1xf32>
    %226 = arith.divf %221, %225 : vector<6x1xf32>
    %227 = vector.shape_cast %226 : vector<6x1xf32> to vector<1x6x1xf32>
    %cst_106 = arith.constant dense<0.000000e+00> : vector<1xf32>
    %228 = vector.multi_reduction <add>, %227, %cst_106 [1, 2] : vector<1x6x1xf32> to vector<1xf32>
    %229 = vector.shape_cast %228 : vector<1xf32> to vector<1x1x1xf32>
    %230 = vector.extract %229[0, 0, 0] : f32 from vector<1x1x1xf32>
    %cst_107 = arith.constant 6.000000e+00 : f32
    %231 = arith.divf %230, %cst_107 : f32
    %c2_108 = arith.constant 2 : index
    %232 = memref.load %arg20[%c2_108] : memref<5xf32, #tpu.memory_space<smem>>
    memref.store %231, %arg20[%c2_108] : memref<5xf32, #tpu.memory_space<smem>>
    %c0_109 = arith.constant 0 : index
    %c0_110 = arith.constant 0 : index
    %233 = vector.load %arg12[%c0_109, %c0_110] : memref<8x4xf32, #tpu.memory_space<vmem>>, vector<8x4xf32>
    %c0_111 = arith.constant 0 : index
    %c0_112 = arith.constant 0 : index
    %234 = vector.load %arg13[%c0_111, %c0_112] : memref<24x48xf32, #tpu.memory_space<vmem>>, vector<24x48xf32>
    %cst_113 = arith.constant dense<0.000000e+00> : vector<48x4xf32>
    %235 = tpu.matmul %157, %233, %cst_113 {dimension_numbers = #tpu.dot_dimension_numbers<[1], [0], [0], [1], [0, 0, 1, 1], [], []>} : vector<48x8xf32>, vector<8x4xf32>, vector<48x4xf32> -> vector<48x4xf32>
    %cst_114 = arith.constant dense<0.000000e+00> : vector<24x4xf32>
    %236 = tpu.matmul %234, %235, %cst_114 {dimension_numbers = #tpu.dot_dimension_numbers<[1], [0], [0], [1], [0, 0, 1, 1], [], []>} : vector<24x48xf32>, vector<48x4xf32>, vector<24x4xf32> -> vector<24x4xf32>
    %cst_115 = arith.constant dense<0.000000e+00> : vector<48x4xf32>
    %237 = tpu.matmul %159, %233, %cst_115 {dimension_numbers = #tpu.dot_dimension_numbers<[1], [0], [0], [1], [0, 0, 1, 1], [], []>} : vector<48x8xf32>, vector<8x4xf32>, vector<48x4xf32> -> vector<48x4xf32>
    %cst_116 = arith.constant dense<0.000000e+00> : vector<24x4xf32>
    %238 = tpu.matmul %234, %237, %cst_116 {dimension_numbers = #tpu.dot_dimension_numbers<[1], [0], [0], [1], [0, 0, 1, 1], [], []>} : vector<24x48xf32>, vector<48x4xf32>, vector<24x4xf32> -> vector<24x4xf32>
    %c0_117 = arith.constant 0 : index
    %c0_118 = arith.constant 0 : index
    %239 = vector.load %arg14[%c0_117, %c0_118] : memref<4x1xf32, #tpu.memory_space<vmem>>, vector<4x1xf32>
    %c0_119 = arith.constant 0 : index
    %c0_120 = arith.constant 0 : index
    %240 = vector.load %arg15[%c0_119, %c0_120] : memref<6x24xf32, #tpu.memory_space<vmem>>, vector<6x24xf32>
    %241 = vector.shape_cast %236 : vector<24x4xf32> to vector<1x24x4xf32>
    %cst_121 = arith.constant dense<0xFF800000> : vector<1xf32>
    %242 = vector.multi_reduction <maximumf>, %241, %cst_121 [1, 2] : vector<1x24x4xf32> to vector<1xf32>
    %243 = vector.shape_cast %242 : vector<1xf32> to vector<1x1x1xf32>
    %244 = vector.extract %243[0, 0, 0] : f32 from vector<1x1x1xf32>
    %245 = vector.shape_cast %236 : vector<24x4xf32> to vector<1x24x4xf32>
    %cst_122 = arith.constant dense<0x7F800000> : vector<1xf32>
    %246 = vector.multi_reduction <minimumf>, %245, %cst_122 [1, 2] : vector<1x24x4xf32> to vector<1xf32>
    %247 = vector.shape_cast %246 : vector<1xf32> to vector<1x1x1xf32>
    %248 = vector.extract %247[0, 0, 0] : f32 from vector<1x1x1xf32>
    %cst_123 = arith.constant 1.280000e+02 : f32
    %249 = arith.cmpf ogt, %244, %cst_123 : f32
    %250 = arith.extui %249 : i1 to i32
    %251 = arith.sitofp %250 : i32 to f32
    %cst_124 = arith.constant 2.540000e+02 : f32
    %252 = arith.mulf %cst_124, %251 : f32
    %cst_125 = arith.constant 1.000000e+00 : f32
    %253 = arith.addf %cst_125, %252 : f32
    %cst_126 = arith.constant -5.000000e-01 : f32
    %254 = arith.cmpf olt, %248, %cst_126 : f32
    %255 = arith.extui %254 : i1 to i32
    %256 = arith.sitofp %255 : i32 to f32
    %cst_127 = arith.constant -1.000000e+00 : f32
    %257 = arith.mulf %cst_127, %256 : f32
    %258 = arith.subf %253, %257 : f32
    %cst_128 = arith.constant 0.00999999977 : f32
    %259 = arith.mulf %cst_128, %258 : f32
    %260 = arith.mulf %259, %259 : f32
    %cst_129 = arith.constant 3.000000e-02 : f32
    %261 = arith.mulf %cst_129, %258 : f32
    %262 = arith.mulf %261, %261 : f32
    %cst_130 = arith.constant dense<0.000000e+00> : vector<24x1xf32>
    %263 = tpu.matmul %236, %239, %cst_130 {dimension_numbers = #tpu.dot_dimension_numbers<[1], [0], [0], [1], [0, 0, 1, 1], [], []>} : vector<24x4xf32>, vector<4x1xf32>, vector<24x1xf32> -> vector<24x1xf32>
    %cst_131 = arith.constant dense<0.000000e+00> : vector<6x1xf32>
    %264 = tpu.matmul %240, %263, %cst_131 {dimension_numbers = #tpu.dot_dimension_numbers<[1], [0], [0], [1], [0, 0, 1, 1], [], []>} : vector<6x24xf32>, vector<24x1xf32>, vector<6x1xf32> -> vector<6x1xf32>
    %cst_132 = arith.constant dense<0.000000e+00> : vector<24x1xf32>
    %265 = tpu.matmul %238, %239, %cst_132 {dimension_numbers = #tpu.dot_dimension_numbers<[1], [0], [0], [1], [0, 0, 1, 1], [], []>} : vector<24x4xf32>, vector<4x1xf32>, vector<24x1xf32> -> vector<24x1xf32>
    %cst_133 = arith.constant dense<0.000000e+00> : vector<6x1xf32>
    %266 = tpu.matmul %240, %265, %cst_133 {dimension_numbers = #tpu.dot_dimension_numbers<[1], [0], [0], [1], [0, 0, 1, 1], [], []>} : vector<6x24xf32>, vector<24x1xf32>, vector<6x1xf32> -> vector<6x1xf32>
    %267 = arith.mulf %236, %236 : vector<24x4xf32>
    %cst_134 = arith.constant dense<0.000000e+00> : vector<24x1xf32>
    %268 = tpu.matmul %267, %239, %cst_134 {dimension_numbers = #tpu.dot_dimension_numbers<[1], [0], [0], [1], [0, 0, 1, 1], [], []>} : vector<24x4xf32>, vector<4x1xf32>, vector<24x1xf32> -> vector<24x1xf32>
    %cst_135 = arith.constant dense<0.000000e+00> : vector<6x1xf32>
    %269 = tpu.matmul %240, %268, %cst_135 {dimension_numbers = #tpu.dot_dimension_numbers<[1], [0], [0], [1], [0, 0, 1, 1], [], []>} : vector<6x24xf32>, vector<24x1xf32>, vector<6x1xf32> -> vector<6x1xf32>
    %270 = arith.mulf %238, %238 : vector<24x4xf32>
    %cst_136 = arith.constant dense<0.000000e+00> : vector<24x1xf32>
    %271 = tpu.matmul %270, %239, %cst_136 {dimension_numbers = #tpu.dot_dimension_numbers<[1], [0], [0], [1], [0, 0, 1, 1], [], []>} : vector<24x4xf32>, vector<4x1xf32>, vector<24x1xf32> -> vector<24x1xf32>
    %cst_137 = arith.constant dense<0.000000e+00> : vector<6x1xf32>
    %272 = tpu.matmul %240, %271, %cst_137 {dimension_numbers = #tpu.dot_dimension_numbers<[1], [0], [0], [1], [0, 0, 1, 1], [], []>} : vector<6x24xf32>, vector<24x1xf32>, vector<6x1xf32> -> vector<6x1xf32>
    %273 = arith.mulf %236, %238 : vector<24x4xf32>
    %cst_138 = arith.constant dense<0.000000e+00> : vector<24x1xf32>
    %274 = tpu.matmul %273, %239, %cst_138 {dimension_numbers = #tpu.dot_dimension_numbers<[1], [0], [0], [1], [0, 0, 1, 1], [], []>} : vector<24x4xf32>, vector<4x1xf32>, vector<24x1xf32> -> vector<24x1xf32>
    %cst_139 = arith.constant dense<0.000000e+00> : vector<6x1xf32>
    %275 = tpu.matmul %240, %274, %cst_139 {dimension_numbers = #tpu.dot_dimension_numbers<[1], [0], [0], [1], [0, 0, 1, 1], [], []>} : vector<6x24xf32>, vector<24x1xf32>, vector<6x1xf32> -> vector<6x1xf32>
    %276 = arith.mulf %264, %264 : vector<6x1xf32>
    %277 = arith.mulf %266, %266 : vector<6x1xf32>
    %278 = arith.mulf %264, %266 : vector<6x1xf32>
    %279 = arith.subf %269, %276 : vector<6x1xf32>
    %280 = arith.subf %272, %277 : vector<6x1xf32>
    %281 = arith.subf %275, %278 : vector<6x1xf32>
    %cst_140 = arith.constant 2.000000e+00 : f32
    %282 = vector.broadcast %cst_140 : f32 to vector<6x1xf32>
    %283 = arith.mulf %282, %281 : vector<6x1xf32>
    %284 = vector.broadcast %262 : f32 to vector<6x1xf32>
    %285 = arith.addf %283, %284 : vector<6x1xf32>
    %286 = arith.addf %279, %280 : vector<6x1xf32>
    %287 = vector.broadcast %262 : f32 to vector<6x1xf32>
    %288 = arith.addf %286, %287 : vector<6x1xf32>
    %289 = arith.divf %285, %288 : vector<6x1xf32>
    %290 = vector.shape_cast %289 : vector<6x1xf32> to vector<1x6x1xf32>
    %cst_141 = arith.constant dense<0.000000e+00> : vector<1xf32>
    %291 = vector.multi_reduction <add>, %290, %cst_141 [1, 2] : vector<1x6x1xf32> to vector<1xf32>
    %292 = vector.shape_cast %291 : vector<1xf32> to vector<1x1x1xf32>
    %293 = vector.extract %292[0, 0, 0] : f32 from vector<1x1x1xf32>
    %cst_142 = arith.constant 6.000000e+00 : f32
    %294 = arith.divf %293, %cst_142 : f32
    %c3 = arith.constant 3 : index
    %295 = memref.load %arg21[%c3] : memref<5xf32, #tpu.memory_space<smem>>
    memref.store %294, %arg21[%c3] : memref<5xf32, #tpu.memory_space<smem>>
    %cst_143 = arith.constant 2.000000e+00 : f32
    %296 = vector.broadcast %cst_143 : f32 to vector<6x1xf32>
    %297 = arith.mulf %296, %278 : vector<6x1xf32>
    %298 = vector.broadcast %260 : f32 to vector<6x1xf32>
    %299 = arith.addf %297, %298 : vector<6x1xf32>
    %300 = arith.mulf %299, %285 : vector<6x1xf32>
    %301 = arith.addf %276, %277 : vector<6x1xf32>
    %302 = vector.broadcast %260 : f32 to vector<6x1xf32>
    %303 = arith.addf %301, %302 : vector<6x1xf32>
    %304 = arith.mulf %303, %288 : vector<6x1xf32>
    %305 = arith.divf %300, %304 : vector<6x1xf32>
    %306 = vector.shape_cast %305 : vector<6x1xf32> to vector<1x6x1xf32>
    %cst_144 = arith.constant dense<0.000000e+00> : vector<1xf32>
    %307 = vector.multi_reduction <add>, %306, %cst_144 [1, 2] : vector<1x6x1xf32> to vector<1xf32>
    %308 = vector.shape_cast %307 : vector<1xf32> to vector<1x1x1xf32>
    %309 = vector.extract %308[0, 0, 0] : f32 from vector<1x1x1xf32>
    %cst_145 = arith.constant 6.000000e+00 : f32
    %310 = arith.divf %309, %cst_145 : f32
    %c3_146 = arith.constant 3 : index
    %311 = memref.load %arg20[%c3_146] : memref<5xf32, #tpu.memory_space<smem>>
    memref.store %310, %arg20[%c3_146] : memref<5xf32, #tpu.memory_space<smem>>
    %c0_147 = arith.constant 0 : index
    %c0_148 = arith.constant 0 : index
    %312 = vector.load %arg16[%c0_147, %c0_148] : memref<4x2xf32, #tpu.memory_space<vmem>>, vector<4x2xf32>
    %c0_149 = arith.constant 0 : index
    %c0_150 = arith.constant 0 : index
    %313 = vector.load %arg17[%c0_149, %c0_150] : memref<12x24xf32, #tpu.memory_space<vmem>>, vector<12x24xf32>
    %cst_151 = arith.constant dense<0.000000e+00> : vector<24x2xf32>
    %314 = tpu.matmul %236, %312, %cst_151 {dimension_numbers = #tpu.dot_dimension_numbers<[1], [0], [0], [1], [0, 0, 1, 1], [], []>} : vector<24x4xf32>, vector<4x2xf32>, vector<24x2xf32> -> vector<24x2xf32>
    %cst_152 = arith.constant dense<0.000000e+00> : vector<12x2xf32>
    %315 = tpu.matmul %313, %314, %cst_152 {dimension_numbers = #tpu.dot_dimension_numbers<[1], [0], [0], [1], [0, 0, 1, 1], [], []>} : vector<12x24xf32>, vector<24x2xf32>, vector<12x2xf32> -> vector<12x2xf32>
    %cst_153 = arith.constant dense<0.000000e+00> : vector<24x2xf32>
    %316 = tpu.matmul %238, %312, %cst_153 {dimension_numbers = #tpu.dot_dimension_numbers<[1], [0], [0], [1], [0, 0, 1, 1], [], []>} : vector<24x4xf32>, vector<4x2xf32>, vector<24x2xf32> -> vector<24x2xf32>
    %cst_154 = arith.constant dense<0.000000e+00> : vector<12x2xf32>
    %317 = tpu.matmul %313, %316, %cst_154 {dimension_numbers = #tpu.dot_dimension_numbers<[1], [0], [0], [1], [0, 0, 1, 1], [], []>} : vector<12x24xf32>, vector<24x2xf32>, vector<12x2xf32> -> vector<12x2xf32>
    %c0_155 = arith.constant 0 : index
    %c0_156 = arith.constant 0 : index
    %318 = vector.load %arg18[%c0_155, %c0_156] : memref<2x1xf32, #tpu.memory_space<vmem>>, vector<2x1xf32>
    %c0_157 = arith.constant 0 : index
    %c0_158 = arith.constant 0 : index
    %319 = vector.load %arg19[%c0_157, %c0_158] : memref<6x12xf32, #tpu.memory_space<vmem>>, vector<6x12xf32>
    %320 = vector.shape_cast %315 : vector<12x2xf32> to vector<1x12x2xf32>
    %cst_159 = arith.constant dense<0xFF800000> : vector<1xf32>
    %321 = vector.multi_reduction <maximumf>, %320, %cst_159 [1, 2] : vector<1x12x2xf32> to vector<1xf32>
    %322 = vector.shape_cast %321 : vector<1xf32> to vector<1x1x1xf32>
    %323 = vector.extract %322[0, 0, 0] : f32 from vector<1x1x1xf32>
    %324 = vector.shape_cast %315 : vector<12x2xf32> to vector<1x12x2xf32>
    %cst_160 = arith.constant dense<0x7F800000> : vector<1xf32>
    %325 = vector.multi_reduction <minimumf>, %324, %cst_160 [1, 2] : vector<1x12x2xf32> to vector<1xf32>
    %326 = vector.shape_cast %325 : vector<1xf32> to vector<1x1x1xf32>
    %327 = vector.extract %326[0, 0, 0] : f32 from vector<1x1x1xf32>
    %cst_161 = arith.constant 1.280000e+02 : f32
    %328 = arith.cmpf ogt, %323, %cst_161 : f32
    %329 = arith.extui %328 : i1 to i32
    %330 = arith.sitofp %329 : i32 to f32
    %cst_162 = arith.constant 2.540000e+02 : f32
    %331 = arith.mulf %cst_162, %330 : f32
    %cst_163 = arith.constant 1.000000e+00 : f32
    %332 = arith.addf %cst_163, %331 : f32
    %cst_164 = arith.constant -5.000000e-01 : f32
    %333 = arith.cmpf olt, %327, %cst_164 : f32
    %334 = arith.extui %333 : i1 to i32
    %335 = arith.sitofp %334 : i32 to f32
    %cst_165 = arith.constant -1.000000e+00 : f32
    %336 = arith.mulf %cst_165, %335 : f32
    %337 = arith.subf %332, %336 : f32
    %cst_166 = arith.constant 0.00999999977 : f32
    %338 = arith.mulf %cst_166, %337 : f32
    %339 = arith.mulf %338, %338 : f32
    %cst_167 = arith.constant 3.000000e-02 : f32
    %340 = arith.mulf %cst_167, %337 : f32
    %341 = arith.mulf %340, %340 : f32
    %cst_168 = arith.constant dense<0.000000e+00> : vector<12x1xf32>
    %342 = tpu.matmul %315, %318, %cst_168 {dimension_numbers = #tpu.dot_dimension_numbers<[1], [0], [0], [1], [0, 0, 1, 1], [], []>} : vector<12x2xf32>, vector<2x1xf32>, vector<12x1xf32> -> vector<12x1xf32>
    %cst_169 = arith.constant dense<0.000000e+00> : vector<6x1xf32>
    %343 = tpu.matmul %319, %342, %cst_169 {dimension_numbers = #tpu.dot_dimension_numbers<[1], [0], [0], [1], [0, 0, 1, 1], [], []>} : vector<6x12xf32>, vector<12x1xf32>, vector<6x1xf32> -> vector<6x1xf32>
    %cst_170 = arith.constant dense<0.000000e+00> : vector<12x1xf32>
    %344 = tpu.matmul %317, %318, %cst_170 {dimension_numbers = #tpu.dot_dimension_numbers<[1], [0], [0], [1], [0, 0, 1, 1], [], []>} : vector<12x2xf32>, vector<2x1xf32>, vector<12x1xf32> -> vector<12x1xf32>
    %cst_171 = arith.constant dense<0.000000e+00> : vector<6x1xf32>
    %345 = tpu.matmul %319, %344, %cst_171 {dimension_numbers = #tpu.dot_dimension_numbers<[1], [0], [0], [1], [0, 0, 1, 1], [], []>} : vector<6x12xf32>, vector<12x1xf32>, vector<6x1xf32> -> vector<6x1xf32>
    %346 = arith.mulf %315, %315 : vector<12x2xf32>
    %cst_172 = arith.constant dense<0.000000e+00> : vector<12x1xf32>
    %347 = tpu.matmul %346, %318, %cst_172 {dimension_numbers = #tpu.dot_dimension_numbers<[1], [0], [0], [1], [0, 0, 1, 1], [], []>} : vector<12x2xf32>, vector<2x1xf32>, vector<12x1xf32> -> vector<12x1xf32>
    %cst_173 = arith.constant dense<0.000000e+00> : vector<6x1xf32>
    %348 = tpu.matmul %319, %347, %cst_173 {dimension_numbers = #tpu.dot_dimension_numbers<[1], [0], [0], [1], [0, 0, 1, 1], [], []>} : vector<6x12xf32>, vector<12x1xf32>, vector<6x1xf32> -> vector<6x1xf32>
    %349 = arith.mulf %317, %317 : vector<12x2xf32>
    %cst_174 = arith.constant dense<0.000000e+00> : vector<12x1xf32>
    %350 = tpu.matmul %349, %318, %cst_174 {dimension_numbers = #tpu.dot_dimension_numbers<[1], [0], [0], [1], [0, 0, 1, 1], [], []>} : vector<12x2xf32>, vector<2x1xf32>, vector<12x1xf32> -> vector<12x1xf32>
    %cst_175 = arith.constant dense<0.000000e+00> : vector<6x1xf32>
    %351 = tpu.matmul %319, %350, %cst_175 {dimension_numbers = #tpu.dot_dimension_numbers<[1], [0], [0], [1], [0, 0, 1, 1], [], []>} : vector<6x12xf32>, vector<12x1xf32>, vector<6x1xf32> -> vector<6x1xf32>
    %352 = arith.mulf %315, %317 : vector<12x2xf32>
    %cst_176 = arith.constant dense<0.000000e+00> : vector<12x1xf32>
    %353 = tpu.matmul %352, %318, %cst_176 {dimension_numbers = #tpu.dot_dimension_numbers<[1], [0], [0], [1], [0, 0, 1, 1], [], []>} : vector<12x2xf32>, vector<2x1xf32>, vector<12x1xf32> -> vector<12x1xf32>
    %cst_177 = arith.constant dense<0.000000e+00> : vector<6x1xf32>
    %354 = tpu.matmul %319, %353, %cst_177 {dimension_numbers = #tpu.dot_dimension_numbers<[1], [0], [0], [1], [0, 0, 1, 1], [], []>} : vector<6x12xf32>, vector<12x1xf32>, vector<6x1xf32> -> vector<6x1xf32>
    %355 = arith.mulf %343, %343 : vector<6x1xf32>
    %356 = arith.mulf %345, %345 : vector<6x1xf32>
    %357 = arith.mulf %343, %345 : vector<6x1xf32>
    %358 = arith.subf %348, %355 : vector<6x1xf32>
    %359 = arith.subf %351, %356 : vector<6x1xf32>
    %360 = arith.subf %354, %357 : vector<6x1xf32>
    %cst_178 = arith.constant 2.000000e+00 : f32
    %361 = vector.broadcast %cst_178 : f32 to vector<6x1xf32>
    %362 = arith.mulf %361, %360 : vector<6x1xf32>
    %363 = vector.broadcast %341 : f32 to vector<6x1xf32>
    %364 = arith.addf %362, %363 : vector<6x1xf32>
    %365 = arith.addf %358, %359 : vector<6x1xf32>
    %366 = vector.broadcast %341 : f32 to vector<6x1xf32>
    %367 = arith.addf %365, %366 : vector<6x1xf32>
    %368 = arith.divf %364, %367 : vector<6x1xf32>
    %369 = vector.shape_cast %368 : vector<6x1xf32> to vector<1x6x1xf32>
    %cst_179 = arith.constant dense<0.000000e+00> : vector<1xf32>
    %370 = vector.multi_reduction <add>, %369, %cst_179 [1, 2] : vector<1x6x1xf32> to vector<1xf32>
    %371 = vector.shape_cast %370 : vector<1xf32> to vector<1x1x1xf32>
    %372 = vector.extract %371[0, 0, 0] : f32 from vector<1x1x1xf32>
    %cst_180 = arith.constant 6.000000e+00 : f32
    %373 = arith.divf %372, %cst_180 : f32
    %c4 = arith.constant 4 : index
    %374 = memref.load %arg21[%c4] : memref<5xf32, #tpu.memory_space<smem>>
    memref.store %373, %arg21[%c4] : memref<5xf32, #tpu.memory_space<smem>>
    %cst_181 = arith.constant 2.000000e+00 : f32
    %375 = vector.broadcast %cst_181 : f32 to vector<6x1xf32>
    %376 = arith.mulf %375, %357 : vector<6x1xf32>
    %377 = vector.broadcast %339 : f32 to vector<6x1xf32>
    %378 = arith.addf %376, %377 : vector<6x1xf32>
    %379 = arith.mulf %378, %364 : vector<6x1xf32>
    %380 = arith.addf %355, %356 : vector<6x1xf32>
    %381 = vector.broadcast %339 : f32 to vector<6x1xf32>
    %382 = arith.addf %380, %381 : vector<6x1xf32>
    %383 = arith.mulf %382, %367 : vector<6x1xf32>
    %384 = arith.divf %379, %383 : vector<6x1xf32>
    %385 = vector.shape_cast %384 : vector<6x1xf32> to vector<1x6x1xf32>
    %cst_182 = arith.constant dense<0.000000e+00> : vector<1xf32>
    %386 = vector.multi_reduction <add>, %385, %cst_182 [1, 2] : vector<1x6x1xf32> to vector<1xf32>
    %387 = vector.shape_cast %386 : vector<1xf32> to vector<1x1x1xf32>
    %388 = vector.extract %387[0, 0, 0] : f32 from vector<1x1x1xf32>
    %cst_183 = arith.constant 6.000000e+00 : f32
    %389 = arith.divf %388, %cst_183 : f32
    %c4_184 = arith.constant 4 : index
    %390 = memref.load %arg20[%c4_184] : memref<5xf32, #tpu.memory_space<smem>>
    memref.store %389, %arg20[%c4_184] : memref<5xf32, #tpu.memory_space<smem>>
    return
  }
}

</mosaic_0001>

<bundles_post_ra>
// kernel: msssim_pallas.1
= control target key start
LH: loop header
LB: loop body
LE: loop exit
PB: predicated region body
PF: predicated region fallthrough
CT: control target
= control target key end

     0   :  { %s15859_s0 = inlined_call_operand.hbm [shape: f32[192,32], index: 0, kind: input, shape index: {}]   ;;  %s15860_s1 = inlined_call_operand.hbm [shape: f32[192,32], index: 1, kind: input, shape index: {}]   ;;  %s15861_s2 = inlined_call_operand.hbm [shape: f32[32,22], index: 2, kind: input, shape index: {}]   ;;  %s15862_s3 = inlined_call_operand.hbm [shape: f32[132,192], index: 3, kind: input, shape index: {}]   ;;  %s15863_s4 = inlined_call_operand.hbm [shape: f32[32,16], index: 4, kind: input, shape index: {}]   ;;  %s15864_s5 = inlined_call_operand.hbm [shape: f32[96,192], index: 5, kind: input, shape index: {}]   ;;  %s15865_s6 = inlined_call_operand.hbm [shape: f32[16,6], index: 6, kind: input, shape index: {}]   ;;  %s15866_s7 = inlined_call_operand.hbm [shape: f32[36,96], index: 7, kind: input, shape index: {}]   ;;  %s15867_s8 = inlined_call_operand.hbm [shape: f32[16,8], index: 8, kind: input, shape index: {}]   ;;  %s15868_s9 = inlined_call_operand.hbm [shape: f32[48,96], index: 9, kind: input, shape index: {}]   ;;  %s15869_s10 = inlined_call_operand.hbm [shape: f32[8,1], index: 10, kind: input, shape index: {}]   ;;  %s15870_s11 = inlined_call_operand.hbm [shape: f32[6,48], index: 11, kind: input, shape index: {}]   ;;  %s15871_s12 = inlined_call_operand.hbm [shape: f32[8,4], index: 12, kind: input, shape index: {}]   ;;  %s15872_s13 = inlined_call_operand.vmem [shape: f32[24,48], index: 13, kind: input, shape index: {}]   ;;  %s15873_s14 = inlined_call_operand.hbm [shape: f32[4,1], index: 14, kind: input, shape index: {}]   ;;  %s15874_s15 = inlined_call_operand.hbm [shape: f32[6,24], index: 15, kind: input, shape index: {}]   ;;  %s15875_s16 = inlined_call_operand.hbm [shape: f32[4,2], index: 16, kind: input, shape index: {}]   ;;  %s15876_s17 = inlined_call_operand.hbm [shape: f32[12,24], index: 17, kind: input, shape index: {}]   ;;  %s15877_s18 = inlined_call_operand.vmem [shape: f32[2,1], index: 18, kind: input, shape index: {}]   ;;  %s15878_s19 = inlined_call_operand.vmem [shape: f32[6,12], index: 19, kind: input, shape index: {}]   ;;  %s15879_s20 = inlined_call_operand.vmem [shape: f32[5], index: 20, kind: output, shape index: {0}]   ;;  %s15880_s21 = inlined_call_operand.vmem [shape: f32[5], index: 21, kind: output, shape index: {1}]  }
   0x1   :  { %16013 = sst [smem:[#allocation147_spill]] %s15859_s0 }
   0x2   :  { %16014 = sst [smem:[#allocation148_spill]] %s15860_s1 }
   0x3   :  { %16015 = sst [smem:[#allocation149_spill]] %s15861_s2 }
   0x4   :  { %16016 = sst [smem:[#allocation150_spill]] %s15862_s3 }
   0x5   :  { %16017 = sst [smem:[#allocation151_spill]] %s15863_s4 }
   0x6   :  { %16018 = sst [smem:[#allocation152_spill]] %s15864_s5 }
   0x7   :  { %16019 = sst [smem:[#allocation153_spill]] %s15879_s20 }
   0x8   :  { %16020 = sst [smem:[#allocation154_spill]] %s15880_s21 }
   0x9   :  { %27 = vsyncpa [#allocation3], 0 }
   0xa   :  { %28 = vsyncpa [#allocation6], 0 }
   0xb   :  { %29 = vsyncpa [#allocation9], 0 }
   0xc   :  { %30 = vsyncpa [#allocation12], 0 }
   0xd   :  { %31 = vsyncpa [#allocation15], 0 }
   0xe   :  { %32 = vsyncpa [#allocation18], 0 }
   0xf   :  { %33 = vsyncpa [#allocation21], 0 }
  0x10   :  { %34 = vsyncpa [#allocation24], 0 }
  0x11   :  { %35 = vsyncpa [#allocation27], 0 }
  0x12   :  { %36 = vsyncpa [#allocation4], 0 }
  0x13   :  { %37 = vsyncpa [#allocation31], 0  ;;  %s12219_s2 = smov [#allocation5]   ;;  %s12220_s26 = smov [#allocation8]  }
  0x14   :  { %s55_s25 = sshll.u32 %s12219_s2, 4  ;;  %s79_s27 = sshll.u32 %s12220_s26, 4  ;;  %s56_s25 = int_to_ptr.vmem [resolvable:$true] %s55_s25  ;;  %s80_s27 = int_to_ptr.vmem [resolvable:$true] %s79_s27 }
  0x15   :  { %s11841_s3 = scalar_lea.vmem %s56_s25, 3072  ;;  %p11846_p1 = scmp.lt.s32.totalorder %s56_s25, %s56_s25 }
  0x16   :  { %p11842_p0 = scmp.ne.s32.totalorder %s56_s25, %s11841_s3  ;;  %p11847_p2 = scmp.lt.s32.totalorder %s11841_s3, %s11841_s3 }
  0x18   :  { %p11848_p3 = por %p11847_p2, %p11846_p1 }
  0x1a   :  { %p11849_p4 = pnand %p11848_p3, %p11842_p0 }
  0x1c   :  { %11852 = shalt.err (!%p11849_p4)
}
  0x1d   :  { %s12221_s28 = smov 128   ;;  %s12222_s29 = smov 8  }
  0x1e   :  { %s16021_s30 = sld [smem:[#allocation148_spill]]  ;;  %s11861_s5 = scalar_lea.vmem %s80_s27, 4352 }
  0x1f   :  { %p11862_p5 = scmp.ne.s32.totalorder %s80_s27, %s11861_s5  ;;  %p11866_p6 = scmp.lt.s32.totalorder %s80_s27, %s80_s27 }
  0x20   :  { %p11867_p7 = scmp.lt.s32.totalorder %s11861_s5, %s11861_s5 }
  0x22   :  { %p11868_p8 = por %p11867_p7, %p11866_p6 }
  0x24   :  { %61 = dma.hbm_to_vmem [thread:$0]  %s16021_s30, 3072, %s56_s25, [#allocation6], %s12221_s28, %s12221_s28, %s12222_s29  }
  0x25   :  { %p11869_p9 = pnand %p11868_p8, %p11862_p5 }
  0x27   :  { %11872 = shalt.err (!%p11869_p9)
}
  0x28   :  { %s12223_s22 = smov 256   ;;  %s12224_s23 = smov 16  }
  0x29   :  { %s16022_s2 = sld [smem:[#allocation150_spill]]  ;;  %s12225_s26 = smov [#allocation11]  }
  0x2a   :  { %s103_s3 = sshll.u32 %s12225_s26, 4  ;;  %s12226_s20 = smov [#allocation14]   ;;  %s104_s3 = int_to_ptr.vmem [resolvable:$true] %s103_s3 }
  0x2b   :  { %s127_s21 = sshll.u32 %s12226_s20, 4  ;;  %s11881_s25 = scalar_lea.vmem %s104_s3, 3072  ;;  %s128_s21 = int_to_ptr.vmem [resolvable:$true] %s127_s21 }
  0x2c   :  { %p11882_p10 = scmp.ne.s32.totalorder %s104_s3, %s11881_s25  ;;  %p11886_p11 = scmp.lt.s32.totalorder %s104_s3, %s104_s3 }
  0x2d   :  { %p11887_p12 = scmp.lt.s32.totalorder %s11881_s25, %s11881_s25 }
  0x2f   :  { %85 = dma.hbm_to_vmem [thread:$0]  %s16022_s2, 4352, %s80_s27, [#allocation9], %s12223_s22, %s12223_s22, %s12224_s23  }
  0x30   :  { %p11888_p13 = por %p11887_p12, %p11886_p11 }
  0x32   :  { %p11889_p0 = pnand %p11888_p13, %p11882_p10 }
  0x34   :  { %11892 = shalt.err (!%p11889_p0)
}
  0x35   :  { %s16023_s30 = sld [smem:[#allocation152_spill]]  ;;  %s11901_s5 = scalar_lea.vmem %s128_s21, 640 }
  0x36   :  { %p11902_p1 = scmp.ne.s32.totalorder %s128_s21, %s11901_s5  ;;  %p11906_p2 = scmp.lt.s32.totalorder %s128_s21, %s128_s21 }
  0x37   :  { %p11907_p3 = scmp.lt.s32.totalorder %s11901_s5, %s11901_s5 }
  0x39   :  { %p11908_p4 = por %p11907_p3, %p11906_p2 }
  0x3b   :  { %109 = dma.hbm_to_vmem [thread:$0]  %s16023_s30, 3072, %s104_s3, [#allocation12], %s12223_s22, %s12223_s22, %s12224_s23  }
  0x3c   :  { %p11909_p5 = pnand %p11908_p4, %p11902_p1 }
  0x3e   :  { %11912 = shalt.err (!%p11909_p5)
}
  0x3f   :  { %133 = dma.hbm_to_vmem [thread:$0]  %s15866_s7, 640, %s128_s21, [#allocation15], %s12221_s28, %s12221_s28, %s12222_s29  }
  0x40   :  { %s12227_s1 = smov [#allocation17]   ;;  %s12228_s2 = smov [#allocation20]  }
  0x41   :  { %s151_s24 = sshll.u32 %s12227_s1, 4  ;;  %s174_s26 = sshll.u32 %s12228_s2, 4  ;;  %s152_s24 = int_to_ptr.vmem [resolvable:$true] %s151_s24  ;;  %s175_s26 = int_to_ptr.vmem [resolvable:$true] %s174_s26 }
  0x42   :  { %s11921_s22 = scalar_lea.vmem %s152_s24, 768  ;;  %p11926_p7 = scmp.lt.s32.totalorder %s152_s24, %s152_s24 }
  0x43   :  { %p11922_p6 = scmp.ne.s32.totalorder %s152_s24, %s11921_s22  ;;  %p11927_p8 = scmp.lt.s32.totalorder %s11921_s22, %s11921_s22 }
  0x45   :  { %p11928_p9 = por %p11927_p8, %p11926_p7 }
  0x47   :  { %p11929_p10 = pnand %p11928_p9, %p11922_p6 }
  0x49   :  { %11932 = shalt.err (!%p11929_p10)
}
  0x4a   :  { %157 = dma.hbm_to_vmem [thread:$0]  %s15868_s9, 768, %s152_s24, [#allocation18], %s12221_s28, %s12221_s28, %s12222_s29  }
  0x4b   :  { %s11941_s7 = scalar_lea.vmem %s175_s26, 128  ;;  %p11946_p12 = scmp.lt.s32.totalorder %s175_s26, %s175_s26 }
  0x4c   :  { %p11942_p11 = scmp.ne.s32.totalorder %s175_s26, %s11941_s7  ;;  %p11947_p13 = scmp.lt.s32.totalorder %s11941_s7, %s11941_s7 }
  0x4e   :  { %p11948_p0 = por %p11947_p13, %p11946_p12 }
  0x50   :  { %p11949_p1 = pnand %p11948_p0, %p11942_p11 }
  0x52   :  { %11952 = shalt.err (!%p11949_p1)
}
  0x53   :  { %177 = dma.hbm_to_vmem [thread:$0]  %s15870_s11, 128, %s175_s26, [#allocation21]  }
  0x54   :  { %s12229_s0 = smov [#allocation23]   ;;  %s12230_s30 = smov [#allocation26]  }
  0x55   :  { %s196_s4 = sshll.u32 %s12229_s0, 4  ;;  %s216_s5 = sshll.u32 %s12230_s30, 4  ;;  %s197_s4 = int_to_ptr.vmem [resolvable:$true] %s196_s4  ;;  %s217_s5 = int_to_ptr.vmem [resolvable:$true] %s216_s5 }
  0x56   :  { %s11961_s20 = scalar_lea.vmem %s197_s4, 64  ;;  %p11966_p3 = scmp.lt.s32.totalorder %s197_s4, %s197_s4 }
  0x57   :  { %p11962_p2 = scmp.ne.s32.totalorder %s197_s4, %s11961_s20  ;;  %p11967_p4 = scmp.lt.s32.totalorder %s11961_s20, %s11961_s20 }
  0x59   :  { %p11968_p5 = por %p11967_p4, %p11966_p3 }
  0x5b   :  { %p11969_p6 = pnand %p11968_p5, %p11962_p2 }
  0x5d   :  { %11972 = shalt.err (!%p11969_p6)
}
  0x5e   :  { %199 = dma.hbm_to_vmem [thread:$0]  %s15873_s14, 64, %s197_s4, [#allocation24]  }
  0x5f   :  { %s11981_s1 = scalar_lea.vmem %s217_s5, 64  ;;  %p11986_p8 = scmp.lt.s32.totalorder %s217_s5, %s217_s5 }
  0x60   :  { %p11982_p7 = scmp.ne.s32.totalorder %s217_s5, %s11981_s1  ;;  %p11987_p9 = scmp.lt.s32.totalorder %s11981_s1, %s11981_s1 }
  0x62   :  { %p11988_p10 = por %p11987_p9, %p11986_p8 }
  0x64   :  { %p11989_p11 = pnand %p11988_p10, %p11982_p7 }
  0x66   :  { %11992 = shalt.err (!%p11989_p11)
}
  0x67   :  { %219 = dma.hbm_to_vmem [thread:$0]  %s15875_s16, 64, %s217_s5, [#allocation27]  }
  0x68   :  { %s12231_s2 = smov [#allocation2]   ;;  %s12232_s22 = smov [#allocation7]  }
  0x69   :  { %s43_s26 = sshll.u32 %s12231_s2, 4  ;;  %s67_s23 = sshll.u32 %s12232_s22, 4  ;;  %s44_s26 = int_to_ptr.vmem [resolvable:$true] %s43_s26  ;;  %s68_s23 = int_to_ptr.vmem [resolvable:$true] %s67_s23 }
  0x6a   :  { %s12001_s3 = scalar_lea.vmem %s44_s26, 3072  ;;  %p12006_p13 = scmp.lt.s32.totalorder %s44_s26, %s44_s26 }
  0x6b   :  { %p12002_p12 = scmp.ne.s32.totalorder %s44_s26, %s12001_s3  ;;  %p12007_p0 = scmp.lt.s32.totalorder %s12001_s3, %s12001_s3 }
  0x6d   :  { %p12008_p1 = por %p12007_p0, %p12006_p13 }
  0x6f   :  { %p12009_p2 = pnand %p12008_p1, %p12002_p12 }
  0x71   :  { %12012 = shalt.err (!%p12009_p2)
}
  0x72   :  { %s16024_s21 = sld [smem:[#allocation147_spill]]  ;;  %s12021_s16 = scalar_lea.vmem %s68_s23, 512 }
  0x73   :  { %p12022_p3 = scmp.ne.s32.totalorder %s68_s23, %s12021_s16  ;;  %p12026_p4 = scmp.lt.s32.totalorder %s68_s23, %s68_s23 }
  0x74   :  { %p12027_p5 = scmp.lt.s32.totalorder %s12021_s16, %s12021_s16 }
  0x76   :  { %p12028_p6 = por %p12027_p5, %p12026_p4 }
  0x78   :  { %49 = dma.hbm_to_vmem [thread:$0]  %s16024_s21, 3072, %s44_s26, [#allocation3], %s12221_s28, %s12221_s28, %s12222_s29  }
  0x79   :  { %p12029_p7 = pnand %p12028_p6, %p12022_p3 }
  0x7b   :  { %12032 = shalt.err (!%p12029_p7)
}
  0x7c   :  { %s16025_s4 = sld [smem:[#allocation149_spill]]  ;;  %s12233_s30 = smov [#allocation10]  }
  0x7d   :  { %s91_s5 = sshll.u32 %s12233_s30, 4  ;;  %s12234_s20 = smov [#allocation13]   ;;  %s92_s5 = int_to_ptr.vmem [resolvable:$true] %s91_s5 }
  0x7e   :  { %s115_s9 = sshll.u32 %s12234_s20, 4  ;;  %s12041_s27 = scalar_lea.vmem %s92_s5, 512  ;;  %s116_s9 = int_to_ptr.vmem [resolvable:$true] %s115_s9 }
  0x7f   :  { %p12042_p8 = scmp.ne.s32.totalorder %s92_s5, %s12041_s27  ;;  %p12046_p9 = scmp.lt.s32.totalorder %s92_s5, %s92_s5 }
  0x80   :  { %p12047_p10 = scmp.lt.s32.totalorder %s12041_s27, %s12041_s27 }
  0x82   :  { %73 = dma.hbm_to_vmem [thread:$0]  %s16025_s4, 512, %s68_s23, [#allocation6], %s12221_s28, %s12221_s28, %s12222_s29  }
  0x83   :  { %p12048_p11 = por %p12047_p10, %p12046_p9 }
  0x85   :  { %p12049_p12 = pnand %p12048_p11, %p12042_p8 }
  0x87   :  { %12052 = shalt.err (!%p12049_p12)
}
  0x88   :  { %s16026_s24 = sld [smem:[#allocation151_spill]]  ;;  %s12061_s2 = scalar_lea.vmem %s116_s9, 256 }
  0x89   :  { %p12062_p13 = scmp.ne.s32.totalorder %s116_s9, %s12061_s2  ;;  %p12066_p0 = scmp.lt.s32.totalorder %s116_s9, %s116_s9 }
  0x8a   :  { %p12067_p1 = scmp.lt.s32.totalorder %s12061_s2, %s12061_s2 }
  0x8c   :  { %p12068_p2 = por %p12067_p1, %p12066_p0 }
  0x8e   :  { %97 = dma.hbm_to_vmem [thread:$0]  %s16026_s24, 512, %s92_s5, [#allocation9], %s12221_s28, %s12221_s28, %s12222_s29  }
  0x8f   :  { %p12069_p3 = pnand %p12068_p2, %p12062_p13 }
  0x91   :  { %12072 = shalt.err (!%p12069_p3)
}
  0x92   :  { %121 = dma.hbm_to_vmem [thread:$0]  %s15865_s6, 256, %s116_s9, [#allocation12], %s12221_s28, %s12221_s28, %s12222_s29  }
  0x93   :  { %s12235_s23 = smov [#allocation16]   ;;  %s12236_s14 = smov [#allocation19]  }
  0x94   :  { %s139_s3 = sshll.u32 %s12235_s23, 4  ;;  %s164_s7 = sshll.u32 %s12236_s14, 4  ;;  %s140_s3 = int_to_ptr.vmem [resolvable:$true] %s139_s3  ;;  %s165_s7 = int_to_ptr.vmem [resolvable:$true] %s164_s7 }
  0x95   :  { %s12081_s21 = scalar_lea.vmem %s140_s3, 256  ;;  %p12086_p5 = scmp.lt.s32.totalorder %s140_s3, %s140_s3 }
  0x96   :  { %p12082_p4 = scmp.ne.s32.totalorder %s140_s3, %s12081_s21  ;;  %p12087_p6 = scmp.lt.s32.totalorder %s12081_s21, %s12081_s21 }
  0x98   :  { %p12088_p7 = por %p12087_p6, %p12086_p5 }
  0x9a   :  { %p12089_p8 = pnand %p12088_p7, %p12082_p4 }
  0x9c   :  { %12092 = shalt.err (!%p12089_p8)
}
  0x9d   :  { %145 = dma.hbm_to_vmem [thread:$0]  %s15867_s8, 256, %s140_s3, [#allocation15], %s12221_s28, %s12221_s28, %s12222_s29  }
  0x9e   :  { %s12101_s6 = scalar_lea.vmem %s165_s7, 128  ;;  %p12106_p10 = scmp.lt.s32.totalorder %s165_s7, %s165_s7 }
  0x9f   :  { %p12102_p9 = scmp.ne.s32.totalorder %s165_s7, %s12101_s6  ;;  %p12107_p11 = scmp.lt.s32.totalorder %s12101_s6, %s12101_s6 }
  0xa1   :  { %p12108_p12 = por %p12107_p11, %p12106_p10 }
  0xa3   :  { %p12109_p13 = pnand %p12108_p12, %p12102_p9 }
  0xa5   :  { %12112 = shalt.err (!%p12109_p13)
}
  0xa6   :  { %167 = dma.hbm_to_vmem [thread:$0]  %s15869_s10, 128, %s165_s7, [#allocation18]  }
  0xa7   :  { %s12237_s30 = smov [#allocation22]   ;;  %s12238_s20 = smov [#allocation25]  }
  0xa8   :  { %s184_s5 = sshll.u32 %s12237_s30, 4  ;;  %s206_s9 = sshll.u32 %s12238_s20, 4  ;;  %s185_s5 = int_to_ptr.vmem [resolvable:$true] %s184_s5  ;;  %s207_s9 = int_to_ptr.vmem [resolvable:$true] %s206_s9 }
  0xa9   :  { %s12121_s27 = scalar_lea.vmem %s185_s5, 128  ;;  %p12126_p1 = scmp.lt.s32.totalorder %s185_s5, %s185_s5 }
  0xaa   :  { %p12122_p0 = scmp.ne.s32.totalorder %s185_s5, %s12121_s27  ;;  %p12127_p2 = scmp.lt.s32.totalorder %s12121_s27, %s12121_s27 }
  0xac   :  { %p12128_p3 = por %p12127_p2, %p12126_p1 }
  0xae   :  { %p12129_p4 = pnand %p12128_p3, %p12122_p0 }
  0xb0   :  { %12132 = shalt.err (!%p12129_p4)
}
  0xb1   :  { %187 = dma.hbm_to_vmem [thread:$0]  %s15871_s12, 128, %s185_s5, [#allocation21]  }
  0xb2   :  { %s12141_s11 = scalar_lea.vmem %s207_s9, 128  ;;  %p12146_p6 = scmp.lt.s32.totalorder %s207_s9, %s207_s9 }
  0xb3   :  { %p12142_p5 = scmp.ne.s32.totalorder %s207_s9, %s12141_s11  ;;  %p12147_p7 = scmp.lt.s32.totalorder %s12141_s11, %s12141_s11 }
  0xb5   :  { %p12148_p8 = por %p12147_p7, %p12146_p6 }
  0xb7   :  { %p12149_p9 = pnand %p12148_p8, %p12142_p5 }
  0xb9   :  { %12152 = shalt.err (!%p12149_p9)
}
  0xba   :  { %209 = dma.hbm_to_vmem [thread:$0]  %s15874_s15, 128, %s207_s9, [#allocation24]  }
  0xbb   :  { %s12239_s2 = smov [#allocation28]  }
  0xbc   :  { %s225_s26 = sshll.u32 %s12239_s2, 4  ;;  %s226_s26 = int_to_ptr.vmem [resolvable:$true] %s225_s26 }
  0xbd   :  { %s12161_s22 = scalar_lea.vmem %s226_s26, 256  ;;  %p12166_p11 = scmp.lt.s32.totalorder %s226_s26, %s226_s26 }
  0xbe   :  { %p12162_p10 = scmp.ne.s32.totalorder %s226_s26, %s12161_s22  ;;  %p12167_p12 = scmp.lt.s32.totalorder %s12161_s22, %s12161_s22 }
  0xc0   :  { %p12168_p13 = por %p12167_p12, %p12166_p11 }
  0xc2   :  { %p12169_p0 = pnand %p12168_p13, %p12162_p10 }
  0xc4   :  { %12172 = shalt.err (!%p12169_p0)
}
  0xc5   :  { %231 = dma.hbm_to_vmem [thread:$0]  %s15876_s17, 256, %s226_s26, [#allocation27], %s12221_s28, %s12221_s28, %s12222_s29  }
  0xc6   :  { %12197 = dma.done.wait [#allocation3], 3072  }
  0xc7   :  { %12198 = vsyncadd [#allocation3], 4294964224 }
  0xc8   :  { %12199 = dma.done.wait [#allocation6], 3584  }
  0xc9   :  { %12200 = vsyncadd [#allocation6], 4294963712 }
  0xca   :  { %12201 = dma.done.wait [#allocation9], 4864  }
  0xcb   :  { %12202 = vsyncadd [#allocation9], 4294962432 }
  0xcc   :  { %12203 = dma.done.wait [#allocation12], 3328  }
  0xcd   :  { %12204 = vsyncadd [#allocation12], 4294963968 }
  0xce   :  { %12205 = dma.done.wait [#allocation15], 896  }
  0xcf   :  { %12206 = vsyncadd [#allocation15], 4294966400 }
  0xd0   :  { %12207 = dma.done.wait [#allocation18], 896  }
  0xd1   :  { %12208 = vsyncadd [#allocation18], 4294966400 }
  0xd2   :  { %12209 = dma.done.wait [#allocation21], 256  }
  0xd3   :  { %12210 = vsyncadd [#allocation21], 4294967040 }
  0xd4   :  { %12211 = dma.done.wait [#allocation24], 192  }
  0xd5   :  { %12212 = vsyncadd [#allocation24], 4294967104 }
  0xd6   :  { %12213 = dma.done.wait [#allocation27], 320  }
  0xd7   :  { %12214 = vsyncadd [#allocation27], 4294966976  ;;  %vm373_vm0 = vcmask 261120   ;;  %v12432_v0 = vld [vmem:[#allocation7 + $0x18] sm:$0xff]  ;;  %v12434_v1 = vld [vmem:[#allocation7 + $0x10] sm:$0xff]  ;;  %v15881_v52 = vmov 0.0  }
  0xd8   :  { %10465 = vmatprep.subr.mxu0 %v12432_v0  ;;  %v12437_v2 = vld [vmem:[#allocation2] sm:$0xff]  ;;  %v12440_v3 = vld [vmem:[#allocation7 + $0x8] sm:$0xff]  ;;  %v12453_v6 = vld [vmem:[#allocation2 + $0x10] sm:$0xff]  ;;  %809 = vmatprep.subr.mxu1 %v15881_v52  ;;  %vm757_vm1 = vcmask 523264   ;;  %vm2864_vm2 = vcmask 179200   ;;  %vm2896_vm3 = vcmask 175104  }
  0xd9   :  { %10466 = vmatpush3.msra.mxu0 %v12432_v0  ;;  %10473 = vmatprep.mubr.msk.f32.mxu0 %vm373_vm0, %v12437_v2  ;;  %v12446_v4 = vld [vmem:[#allocation7] sm:$0xff]  ;;  %v12450_v5 = vld [vmem:[#allocation2 + $0x8] sm:$0xff]  ;;  %v12461_v7 = vld [vmem:[#allocation2 + $0x18] sm:$0xff]  ;;  %v374_v54 = vsel %vm373_vm0, %v12437_v2, -inf  ;;  %v376_v56 = vsel %vm373_vm0, %v12453_v6, -inf  ;;  %vm3788_vm4 = vcmask 130048  }
  0xda   :  { %10467 = vmatprep.subr.mxu0 %v12434_v1  ;;  %v12464_v8 = vld [vmem:[#allocation2 + $0x20] sm:$0xff]  ;;  %v12473_v9 = vld [vmem:[#allocation2 + $0x28] sm:$0xff]  ;;  %v12476_v10 = vld [vmem:[#allocation2 + $0x30] sm:$0xff]  ;;  %v375_v55 = vsel %vm373_vm0, %v12450_v5, -inf  ;;  %v377_v57 = vsel %vm373_vm0, %v12461_v7, -inf  ;;  %vm4028_vm5 = vcmask 785408  }
  0xdb   :  { %10468 = vmatpush3.msra.mxu0 %v12434_v1  ;;  %v12484_v11 = vld [vmem:[#allocation2 + $0x38] sm:$0xff]  ;;  %v12486_v12 = vld [vmem:[#allocation2 + $0x40] sm:$0xff]  ;;  %v12492_v13 = vld [vmem:[#allocation2 + $0x48] sm:$0xff]  ;;  %v378_v58 = vsel %vm373_vm0, %v12464_v8, -inf  ;;  %v380_v59 = vsel %vm373_vm0, %v12473_v9, -inf  ;;  %v382_v60 = vsel %vm373_vm0, %v12476_v10, -inf }
  0xdc   :  { %10469 = vmatprep.subr.mxu0 %v12440_v3  ;;  %v12494_v14 = vld [vmem:[#allocation2 + $0x50] sm:$0xff]  ;;  %v12500_v15 = vld [vmem:[#allocation2 + $0x58] sm:$0xff]  ;;  %v12502_v16 = vld [vmem:[#allocation2 + $0x60] sm:$0xff]  ;;  %v384_v61 = vsel %vm373_vm0, %v12484_v11, -inf  ;;  %v379_v62 = vmax.f32 %v374_v54, %v378_v58  ;;  %v381_v63 = vmax.f32 %v375_v55, %v380_v59  ;;  %vm12241_vm6 = vmmov 0  }
  0xdd   :  { %10470 = vmatpush3.msra.mxu0 %v12440_v3  ;;  %v12508_v17 = vld [vmem:[#allocation2 + $0x68] sm:$0xff]  ;;  %v12510_v18 = vld [vmem:[#allocation2 + $0x70] sm:$0xff]  ;;  %v12516_v19 = vld [vmem:[#allocation2 + $0x78] sm:$0xff]  ;;  %v394_v54 = vsel %vm373_vm0, %v12502_v16, -inf  ;;  %vm5235_vm7 = vcmask 48128   ;;  %vm5243_vm8 = vcmask 44032  }
  0xde   :  { %10471 = vmatprep.subr.mxu0 %v12446_v4  ;;  %v12518_v20 = vld [vmem:[#allocation2 + $0x80] sm:$0xff]  ;;  %v12524_v21 = vld [vmem:[#allocation2 + $0x88] sm:$0xff]  ;;  %v12526_v22 = vld [vmem:[#allocation2 + $0x90] sm:$0xff]  ;;  %v396_v55 = vsel %vm373_vm0, %v12508_v17, -inf  ;;  %vm5792_vm9 = vcmask 64512   ;;  %vm5960_vm10 = vcmask 392192  }
  0xdf   :  { %10472 = vmatpush3.msra.mxu0 %v12446_v4  ;;  %v12532_v23 = vld [vmem:[#allocation2 + $0x98] sm:$0xff]  ;;  %v12534_v24 = vld [vmem:[#allocation2 + $0xa0] sm:$0xff]  ;;  %v12540_v25 = vld [vmem:[#allocation2 + $0xa8] sm:$0xff]  ;;  %vm6797_vm11 = vcmask 5120   ;;  %vm7254_vm12 = vcmask 1043456   ;;  %vm7202_vm13 = vcmask 31744  }
  0xe0   :  { %10474 = vmatmul.mubr.msk.f32.vlgmr.msra.gmra.mxu0 %vm373_vm0, %v12450_v5  ;;  %10509 = vmatprep.subr.mxu0 %v12432_v0  ;;  %v12542_v26 = vld [vmem:[#allocation2 + $0xb0] sm:$0xff]  ;;  %v12548_v27 = vld [vmem:[#allocation2 + $0xb8] sm:$0xff]  ;;  %v12550_v28 = vld [vmem:[#allocation5] sm:$0xff]  ;;  %vm7338_vm14 = vcmask 195584   ;;  %vm8433_vm15 = vcmask 15360  }
  0xe1   :  { %10476 = vmatprep.mubr.msk.f32.mxu0 %vm373_vm0, %v12453_v6  ;;  %10510 = vmatpush3.msra.mxu0 %v12432_v0  ;;  %v12556_v29 = vld [vmem:[#allocation5 + $0x8] sm:$0xff]  ;;  %v12558_v30 = vld [vmem:[#allocation5 + $0x10] sm:$0xff]  ;;  %v12564_v31 = vld [vmem:[#allocation5 + $0x18] sm:$0xff] }
  0xe2   :  { %10511 = vmatprep.subr.mxu0 %v12434_v1  ;;  %16027 = vst [vmem:[#allocation43_spill] sm:$0xff] %v12556_v29  ;;  %16028 = vst [vmem:[#allocation44_spill] sm:$0xff] %v12558_v30  ;;  %v12566_v32 = vld [vmem:[#allocation5 + $0x20] sm:$0xff]  ;;  %v12572_v33 = vld [vmem:[#allocation5 + $0x28] sm:$0xff] }
  0xe3   :  { %10512 = vmatpush3.msra.mxu0 %v12434_v1  ;;  %16029 = vst [vmem:[#allocation45_spill] sm:$0xff] %v12564_v31  ;;  %16030 = vst [vmem:[#allocation46_spill] sm:$0xff] %v12566_v32  ;;  %v12574_v34 = vld [vmem:[#allocation5 + $0x30] sm:$0xff]  ;;  %v12580_v35 = vld [vmem:[#allocation5 + $0x38] sm:$0xff] }
  0xe4   :  { %10477 = vmatmul.mubr.msk.f32.gmra.mxu0 %vm373_vm0, %v12461_v7  ;;  %10513 = vmatprep.subr.mxu0 %v12440_v3  ;;  %16031 = vst [vmem:[#allocation47_spill] sm:$0xff] %v12572_v33  ;;  %16032 = vst [vmem:[#allocation48_spill] sm:$0xff] %v12574_v34  ;;  %v12582_v36 = vld [vmem:[#allocation5 + $0x40] sm:$0xff]  ;;  %v12588_v37 = vld [vmem:[#allocation5 + $0x48] sm:$0xff] }
  0xe5   :  { %10479 = vmatprep.mubr.msk.f32.mxu0 %vm373_vm0, %v12464_v8  ;;  %10514 = vmatpush3.msra.mxu0 %v12440_v3  ;;  %16033 = vst [vmem:[#allocation49_spill] sm:$0xff] %v12580_v35  ;;  %16034 = vst [vmem:[#allocation50_spill] sm:$0xff] %v12582_v36  ;;  %v12590_v38 = vld [vmem:[#allocation5 + $0x50] sm:$0xff]  ;;  %v12596_v39 = vld [vmem:[#allocation5 + $0x58] sm:$0xff] }
  0xe6   :  { %10515 = vmatprep.subr.mxu0 %v12446_v4  ;;  %16035 = vst [vmem:[#allocation51_spill] sm:$0xff] %v12588_v37  ;;  %16036 = vst [vmem:[#allocation52_spill] sm:$0xff] %v12590_v38  ;;  %v12598_v40 = vld [vmem:[#allocation5 + $0x60] sm:$0xff]  ;;  %v12604_v41 = vld [vmem:[#allocation5 + $0x68] sm:$0xff] }
  0xe7   :  { %10516 = vmatpush3.msra.mxu0 %v12446_v4  ;;  %16037 = vst [vmem:[#allocation53_spill] sm:$0xff] %v12596_v39  ;;  %16038 = vst [vmem:[#allocation54_spill] sm:$0xff] %v12598_v40  ;;  %v12606_v42 = vld [vmem:[#allocation5 + $0x70] sm:$0xff]  ;;  %v12612_v43 = vld [vmem:[#allocation5 + $0x78] sm:$0xff] }
  0xe8   :  { %10480 = vmatmul.mubr.msk.f32.gmra.mxu0 %vm373_vm0, %v12473_v9  ;;  %16039 = vst [vmem:[#allocation55_spill] sm:$0xff] %v12604_v41  ;;  %16040 = vst [vmem:[#allocation56_spill] sm:$0xff] %v12606_v42  ;;  %v12614_v44 = vld [vmem:[#allocation5 + $0x80] sm:$0xff]  ;;  %v12620_v45 = vld [vmem:[#allocation5 + $0x88] sm:$0xff]  ;;  %1216 = vmatprep.subr.mxu0 %v15881_v52  ;;  %v383_v52 = vmax.f32 %v376_v56, %v382_v60  ;;  %v398_v56 = vsel %vm373_vm0, %v12510_v18, -inf }
  0xe9   :  { %10482 = vmatprep.mubr.msk.f32.mxu0 %vm373_vm0, %v12476_v10  ;;  %16041 = vst [vmem:[#allocation57_spill] sm:$0xff] %v12612_v43  ;;  %16042 = vst [vmem:[#allocation58_spill] sm:$0xff] %v12614_v44  ;;  %v12622_v46 = vld [vmem:[#allocation5 + $0x90] sm:$0xff]  ;;  %v12628_v47 = vld [vmem:[#allocation5 + $0x98] sm:$0xff] }
  0xea   :  { %16043 = vst [vmem:[#allocation59_spill] sm:$0xff] %v12620_v45  ;;  %16044 = vst [vmem:[#allocation60_spill] sm:$0xff] %v12622_v46  ;;  %v12630_v48 = vld [vmem:[#allocation5 + $0xa0] sm:$0xff]  ;;  %v12636_v49 = vld [vmem:[#allocation5 + $0xa8] sm:$0xff] }
  0xeb   :  { %16045 = vst [vmem:[#allocation61_spill] sm:$0xff] %v12628_v47  ;;  %16046 = vst [vmem:[#allocation62_spill] sm:$0xff] %v12630_v48  ;;  %v12638_v50 = vld [vmem:[#allocation5 + $0xb0] sm:$0xff]  ;;  %v12644_v51 = vld [vmem:[#allocation5 + $0xb8] sm:$0xff] }
  0xec   :  { %10483 = vmatmul.mubr.msk.f32.gmra.mxu0 %vm373_vm0, %v12484_v11  ;;  %16047 = vst [vmem:[#allocation63_spill] sm:$0xff] %v12636_v49  ;;  %16048 = vst [vmem:[#allocation64_spill] sm:$0xff] %v12638_v50  ;;  %v12650_v53 = vld [vmem:[#allocation8 + $0x8] sm:$0xff] }
  0xed   :  { %10485 = vmatprep.mubr.msk.f32.mxu0 %vm373_vm0, %v12486_v12  ;;  %16049 = vst [vmem:[#allocation65_spill] sm:$0xff] %v12644_v51  ;;  %16050 = vst [vmem:[#allocation66_spill] sm:$0xff] %v12650_v53  ;;  %9371 = vmatprep.mubr.msk.f32.mxu1 %vm757_vm1, %v12650_v53 }
  0xf0   :  { %10486 = vmatmul.mubr.msk.f32.gmra.mxu0 %vm373_vm0, %v12492_v13 }
  0xf1   :  { %10488 = vmatprep.mubr.msk.f32.mxu0 %vm373_vm0, %v12494_v14 }
  0xf4   :  { %10489 = vmatmul.mubr.msk.f32.gmra.mxu0 %vm373_vm0, %v12500_v15 }
  0xf5   :  { %10491 = vmatprep.mubr.msk.f32.mxu0 %vm373_vm0, %v12502_v16 }
  0xf8   :  { %10492 = vmatmul.mubr.msk.f32.gmra.mxu0 %vm373_vm0, %v12508_v17 }
  0xf9   :  { %10494 = vmatprep.mubr.msk.f32.mxu0 %vm373_vm0, %v12510_v18 }
  0xfc   :  { %10495 = vmatmul.mubr.msk.f32.gmra.mxu0 %vm373_vm0, %v12516_v19 }
  0xfd   :  { %10497 = vmatprep.mubr.msk.f32.mxu0 %vm373_vm0, %v12518_v20 }
 0x100   :  { %10498 = vmatmul.mubr.msk.f32.gmra.mxu0 %vm373_vm0, %v12524_v21 }
 0x101   :  { %10500 = vmatprep.mubr.msk.f32.mxu0 %vm373_vm0, %v12526_v22 }
 0x104   :  { %10501 = vmatmul.mubr.msk.f32.gmra.mxu0 %vm373_vm0, %v12532_v23 }
 0x105   :  { %10503 = vmatprep.mubr.msk.f32.mxu0 %vm373_vm0, %v12534_v24 }
 0x108   :  { %10504 = vmatmul.mubr.msk.f32.gmra.mxu0 %vm373_vm0, %v12540_v25 }
 0x109   :  { %10506 = vmatprep.mubr.msk.f32.mxu0 %vm373_vm0, %v12542_v26 }
 0x10c   :  { %10507 = vmatmul.mubr.msk.f32.gmra.mxu0 %vm373_vm0, %v12548_v27 }
 0x10d   :  { %10517 = vmatprep.mubr.msk.f32.mxu0 %vm373_vm0, %v12550_v28 }
 0x110   :  { %10518 = vmatmul.mubr.msk.f32.vlgmr.msra.gmra.mxu0 %vm373_vm0, %v12556_v29 }
 0x111   :  { %10520 = vmatprep.mubr.msk.f32.mxu0 %vm373_vm0, %v12558_v30  ;;  %v12918_v30 = vld [vmem:[#allocation8 + $0xc8] sm:$0xff] }
 0x114   :  { %10521 = vmatmul.mubr.msk.f32.gmra.mxu0 %vm373_vm0, %v12564_v31  ;;  %v12908_v31 = vld [vmem:[#allocation8 + $0xb8] sm:$0xff] }
 0x115   :  { %10523 = vmatprep.mubr.msk.f32.mxu0 %vm373_vm0, %v12566_v32 }
 0x118   :  { %10524 = vmatmul.mubr.msk.f32.gmra.mxu0 %vm373_vm0, %v12572_v33  ;;  %v12899_v33 = vld [vmem:[#allocation8 + $0xa8] sm:$0xff] }
 0x119   :  { %10526 = vmatprep.mubr.msk.f32.mxu0 %vm373_vm0, %v12574_v34  ;;  %v12889_v34 = vld [vmem:[#allocation8 + $0x98] sm:$0xff] }
 0x11c   :  { %10527 = vmatmul.mubr.msk.f32.gmra.mxu0 %vm373_vm0, %v12580_v35  ;;  %v12878_v35 = vld [vmem:[#allocation8 + $0x88] sm:$0xff] }
 0x11d   :  { %10529 = vmatprep.mubr.msk.f32.mxu0 %vm373_vm0, %v12582_v36  ;;  %v12867_v36 = vld [vmem:[#allocation8 + $0x78] sm:$0xff] }
 0x120   :  { %10530 = vmatmul.mubr.msk.f32.gmra.mxu0 %vm373_vm0, %v12588_v37 }
 0x121   :  { %10532 = vmatprep.mubr.msk.f32.mxu0 %vm373_vm0, %v12590_v38 }
 0x124   :  { %10533 = vmatmul.mubr.msk.f32.gmra.mxu0 %vm373_vm0, %v12596_v39 }
 0x125   :  { %10535 = vmatprep.mubr.msk.f32.mxu0 %vm373_vm0, %v12598_v40 }
 0x128   :  { %10536 = vmatmul.mubr.msk.f32.gmra.mxu0 %vm373_vm0, %v12604_v41 }
 0x129   :  { %10538 = vmatprep.mubr.msk.f32.mxu0 %vm373_vm0, %v12606_v42 }
 0x12c   :  { %10539 = vmatmul.mubr.msk.f32.gmra.mxu0 %vm373_vm0, %v12612_v43 }
 0x12d   :  { %10541 = vmatprep.mubr.msk.f32.mxu0 %vm373_vm0, %v12614_v44 }
 0x130   :  { %10542 = vmatmul.mubr.msk.f32.gmra.mxu0 %vm373_vm0, %v12620_v45 }
 0x131   :  { %10544 = vmatprep.mubr.msk.f32.mxu0 %vm373_vm0, %v12622_v46 }
 0x134   :  { %10545 = vmatmul.mubr.msk.f32.gmra.mxu0 %vm373_vm0, %v12628_v47  ;;  %v392_v47 = vsel %vm373_vm0, %v12500_v15, -inf }
 0x135   :  { %10547 = vmatprep.mubr.msk.f32.mxu0 %vm373_vm0, %v12630_v48  ;;  %v390_v48 = vsel %vm373_vm0, %v12494_v14, -inf }
 0x136   :  { %v391_v44 = vmax.f32 %v383_v52, %v390_v48  ;;  %v402_v48 = vsel %vm373_vm0, %v12518_v20, -inf }
 0x138   :  { %10548 = vmatmul.mubr.msk.f32.gmra.mxu0 %vm373_vm0, %v12636_v49  ;;  %v388_v49 = vsel %vm373_vm0, %v12492_v13, -inf  ;;  %v399_v60 = vmax.f32 %v391_v44, %v398_v56  ;;  %v410_v44 = vsel %vm373_vm0, %v12534_v24, -inf }
 0x139   :  { %10550 = vmatprep.mubr.msk.f32.mxu0 %vm373_vm0, %v12638_v50  ;;  %v386_v50 = vsel %vm373_vm0, %v12486_v12, -inf  ;;  %v389_v45 = vmax.f32 %v381_v63, %v388_v49  ;;  %v406_v49 = vsel %vm373_vm0, %v12526_v22, -inf }
 0x13a   :  { %v387_v46 = vmax.f32 %v379_v62, %v386_v50  ;;  %v408_v50 = vsel %vm373_vm0, %v12532_v23, -inf  ;;  %v407_v62 = vmax.f32 %v399_v60, %v406_v49  ;;  %v432_v60 = vsel %vm373_vm0, %v12453_v6, inf }
 0x13b   :  { %v397_v59 = vmax.f32 %v389_v45, %v396_v55  ;;  %v414_v45 = vsel %vm373_vm0, %v12542_v26, -inf  ;;  %v434_v49 = vsel %vm373_vm0, %v12464_v8, inf }
 0x13c   :  { %10551 = vmatmul.mubr.msk.f32.gmra.mxu0 %vm373_vm0, %v12644_v51  ;;  %v385_v51 = vmax.f32 %v377_v57, %v384_v61  ;;  %v400_v57 = vsel %vm373_vm0, %v12516_v19, -inf  ;;  %v395_v58 = vmax.f32 %v387_v46, %v394_v54  ;;  %v416_v46 = vsel %vm373_vm0, %v12548_v27, -inf }
 0x13d   :  { %9412 = vmatprep.mubr.msk.f32.mxu0 %vm757_vm1, %v12650_v53  ;;  %v415_v56 = vmax.f32 %v407_v62, %v414_v45  ;;  %v438_v62 = vsel %vm373_vm0, %v12476_v10, inf }
 0x13e   :  { %v393_v43 = vmax.f32 %v385_v51, %v392_v47  ;;  %v404_v47 = vsel %vm373_vm0, %v12524_v21, -inf  ;;  %v403_v51 = vmax.f32 %v395_v58, %v402_v48  ;;  %v430_v58 = vsel %vm373_vm0, %v12437_v2, inf }
 0x13f   :  { %v405_v52 = vmax.f32 %v397_v59, %v404_v47  ;;  %v431_v59 = vsel %vm373_vm0, %v12450_v5, inf }
 0x140   :  { %v401_v61 = vmax.f32 %v393_v43, %v400_v57  ;;  %v412_v43 = vsel %vm373_vm0, %v12540_v25, -inf  ;;  %v411_v54 = vmax.f32 %v403_v51, %v410_v44  ;;  %v435_v51 = vmin.f32 %v430_v58, %v434_v49 }
 0x141   :  { %v413_v55 = vmax.f32 %v405_v52, %v412_v43  ;;  %v439_v43 = vmin.f32 %v432_v60, %v438_v62  ;;  %v450_v60 = vsel %vm373_vm0, %v12502_v16, inf }
 0x142   :  { %v409_v63 = vmax.f32 %v401_v61, %v408_v50  ;;  %v433_v61 = vsel %vm373_vm0, %v12461_v7, inf  ;;  %v436_v50 = vsel %vm373_vm0, %v12473_v9, inf }
 0x143   :  { %v418_v48 = vmax.f32 %v411_v54, %v413_v55  ;;  %v437_v52 = vmin.f32 %v431_v59, %v436_v50  ;;  %v444_v55 = vsel %vm373_vm0, %v12492_v13, inf  ;;  %v456_v50 = vsel %vm373_vm0, %v12516_v19, inf }
 0x144   :  { %v417_v57 = vmax.f32 %v409_v63, %v416_v46  ;;  %v440_v63 = vsel %vm373_vm0, %v12484_v11, inf  ;;  %v442_v46 = vsel %vm373_vm0, %v12486_v12, inf }
 0x145   :  { %v441_v45 = vmin.f32 %v433_v61, %v440_v63  ;;  %v443_v54 = vmin.f32 %v435_v51, %v442_v46  ;;  %v445_v58 = vmin.f32 %v437_v52, %v444_v55  ;;  %v458_v52 = vsel %vm373_vm0, %v12518_v20, inf }
 0x146   :  { %v419_v47 = vmax.f32 %v415_v56, %v417_v57  ;;  %v446_v56 = vsel %vm373_vm0, %v12494_v14, inf  ;;  %v448_v57 = vsel %vm373_vm0, %v12500_v15, inf  ;;  %v464_v46 = vsel %vm373_vm0, %v12532_v23, inf }
 0x147   :  { %v447_v59 = vmin.f32 %v439_v43, %v446_v56  ;;  %v449_v49 = vmin.f32 %v441_v45, %v448_v57  ;;  %v451_v61 = vmin.f32 %v443_v54, %v450_v60  ;;  %v460_v43 = vsel %vm373_vm0, %v12524_v21, inf }
 0x148   :  { %v420_v44 = vmax.f32 %v418_v48, %v419_v47  ;;  %v452_v48 = vsel %vm373_vm0, %v12508_v17, inf  ;;  %v454_v47 = vsel %vm373_vm0, %v12510_v18, inf  ;;  %v462_v45 = vsel %vm373_vm0, %v12526_v22, inf }
 0x149   :  { %v453_v51 = vmin.f32 %v445_v58, %v452_v48  ;;  %v455_v62 = vmin.f32 %v447_v59, %v454_v47  ;;  %v457_v63 = vmin.f32 %v449_v49, %v456_v50  ;;  %v466_v57 = vsel %vm373_vm0, %v12534_v24, inf }
 0x14a   :  { %421 = vmax.xlane.f32.xlu0 %v420_v44  ;;  %v459_v44 = vmin.f32 %v451_v61, %v458_v52  ;;  %v468_v59 = vsel %vm373_vm0, %v12540_v25, inf  ;;  %v470_v49 = vsel %vm373_vm0, %v12542_v26, inf  ;;  %v472_v60 = vsel %vm373_vm0, %v12548_v27, inf }
 0x14b   :  { %v461_v54 = vmin.f32 %v453_v51, %v460_v43  ;;  %v463_v55 = vmin.f32 %v455_v62, %v462_v45  ;;  %v465_v56 = vmin.f32 %v457_v63, %v464_v46 }
 0x14c   :  { %v467_v58 = vmin.f32 %v459_v44, %v466_v57 }
 0x14d   :  { %v469_v61 = vmin.f32 %v461_v54, %v468_v59  ;;  %v471_v48 = vmin.f32 %v463_v55, %v470_v49  ;;  %v473_v47 = vmin.f32 %v465_v56, %v472_v60 }
 0x14f   :  { %v474_v50 = vmin.f32 %v467_v58, %v469_v61  ;;  %v475_v51 = vmin.f32 %v471_v48, %v473_v47  ;;  %v16051_v58 = vmov 0.0  }
 0x151   :  { %v476_v62 = vmin.f32 %v474_v50, %v475_v51 }
 0x153   :  { %477 = vmin.xlane.f32.xlu0 %v476_v62 }
 0x1a0   :  { %v10475_v63 = vpop.f32.mrf.mxu0 }
 0x1a2   :  { %v638_v52 = vpop.f32.mrf.mxu0 }
 0x1a4   :  { %v10478_v43 = vpop.f32.mrf.mxu0 }
 0x1a6   :  { %v648_v44 = vpop.f32.mrf.mxu0 }
 0x1a8   :  { %v10481_v45 = vpop.f32.mrf.mxu0 }
 0x1aa   :  { %v658_v46 = vpop.f32.mrf.mxu0 }
 0x1ac   :  { %v10484_v57 = vpop.f32.mrf.mxu0 }
 0x1ae   :  { %v668_v42 = vpop.f32.mrf.mxu0 }
 0x1b0   :  { %v10487_v41 = vpop.f32.mrf.mxu0 }
 0x1b2   :  { %v678_v40 = vpop.f32.mrf.mxu0 }
 0x1b4   :  { %v10490_v39 = vpop.f32.mrf.mxu0 }
 0x1b6   :  { %v688_v38 = vpop.f32.mrf.mxu0 }
 0x1b8   :  { %v10493_v37 = vpop.f32.mrf.mxu0 }
 0x1ba   :  { %v698_v54 = vpop.f32.mrf.mxu0 }
 0x1bc   :  { %v10496_v55 = vpop.f32.mrf.mxu0 }
 0x1bd   :  { %810 = vmatpush1.msra.mxu1 %v10496_v55  ;;  %v12795_v55 = vld [vmem:[#allocation8 + $0x18] sm:$0xff] }
 0x1be   :  { %v708_v56 = vpop.f32.mrf.mxu0  ;;  %811 = vmatprep.subr.mxu1 %v16051_v58 }
 0x1bf   :  { %812 = vmatpush1.msra.mxu1 %v708_v56 }
 0x1c0   :  { %v10499_v59 = vpop.f32.mrf.mxu0  ;;  %813 = vmatprep.subr.mxu1 %v16051_v58 }
 0x1c1   :  { %814 = vmatpush1.msra.mxu1 %v10493_v37 }
 0x1c2   :  { %v12754_v49 = vpop.f32.mrf.mxu0  ;;  %815 = vmatprep.subr.mxu1 %v16051_v58 }
 0x1c3   :  { %816 = vmatpush1.msra.mxu1 %v698_v54 }
 0x1c4   :  { %v10502_v60 = vpop.f32.mrf.mxu0  ;;  %817 = vmatprep.subr.mxu1 %v16051_v58 }
 0x1c5   :  { %818 = vmatpush1.msra.mxu1 %v10490_v39 }
 0x1c6   :  { %v728_v61 = vpop.f32.mrf.mxu0  ;;  %819 = vmatprep.subr.mxu1 %v16051_v58 }
 0x1c7   :  { %820 = vmatpush1.msra.mxu1 %v688_v38 }
 0x1c8   :  { %v10505_v48 = vpop.f32.mrf.mxu0  ;;  %821 = vmatprep.subr.mxu1 %v16051_v58 }
 0x1c9   :  { %822 = vmatpush1.msra.mxu1 %v10487_v41 }
 0x1ca   :  { %v738_v47 = vpop.f32.mrf.mxu0  ;;  %823 = vmatprep.subr.mxu1 %v16051_v58 }
 0x1cb   :  { %824 = vmatpush1.msra.mxu1 %v678_v40 }
 0x1cc   :  { %v10508_v37 = vpop.f32.mrf.mxu0  ;;  %825 = vmatprep.subr.mxu1 %v16051_v58 }
 0x1cd   :  { %826 = vmatpush1.msra.mxu1 %v10484_v57  ;;  %v12792_v57 = vld [vmem:[#allocation8] sm:$0xff] }
 0x1ce   :  { %v748_v50 = vpop.f32.mrf.mxu0  ;;  %827 = vmatprep.subr.mxu1 %v16051_v58 }
 0x1cf   :  { %828 = vmatpush1.msra.mxu1 %v668_v42 }
 0x1d0   :  { %829 = vmatprep.subr.mxu1 %v16051_v58  ;;  %v12764_v39 = vpop.f32.mrf.mxu0 }
 0x1d1   :  { %830 = vmatpush1.msra.mxu1 %v10481_v45 }
 0x1d2   :  { %831 = vmatprep.subr.mxu1 %v16051_v58  ;;  %v12767_v38 = vpop.f32.mrf.mxu0 }
 0x1d3   :  { %832 = vmatpush1.msra.mxu1 %v658_v46 }
 0x1d4   :  { %833 = vmatprep.subr.mxu1 %v16051_v58  ;;  %v12770_v40 = vpop.f32.mrf.mxu0 }
 0x1d5   :  { %834 = vmatpush1.msra.mxu1 %v10478_v43 }
 0x1d6   :  { %835 = vmatprep.subr.mxu1 %v16051_v58  ;;  %v12773_v41 = vpop.f32.mrf.mxu0 }
 0x1d7   :  { %836 = vmatpush1.msra.mxu1 %v648_v44 }
 0x1d8   :  { %837 = vmatprep.subr.mxu1 %v16051_v58  ;;  %v12776_v42 = vpop.f32.mrf.mxu0 }
 0x1d9   :  { %838 = vmatpush1.msra.mxu1 %v10475_v63 }
 0x1da   :  { %839 = vmatprep.subr.mxu1 %v16051_v58  ;;  %v12779_v51 = vpop.f32.mrf.mxu0 }
 0x1db   :  { %840 = vmatpush1.msra.mxu1 %v638_v52 }
 0x1dc   :  { %857 = vmatprep.subr.mxu1 %v16051_v58  ;;  %v12782_v62 = vpop.f32.mrf.mxu0 }
 0x1dd   :  { %858 = vmatpush2.msra.mxu1 %v10508_v37 }
 0x1de   :  { %859 = vmatprep.subr.mxu1 %v16051_v58  ;;  %v12785_v43 = vpop.f32.mrf.mxu0 }
 0x1df   :  { %860 = vmatpush2.msra.mxu1 %v748_v50  ;;  %v12828_v50 = vld [vmem:[#allocation8 + $0x30] sm:$0xff] }
 0x1e0   :  { %861 = vmatprep.subr.mxu1 %v16051_v58  ;;  %v10531_v44 = vpop.f32.mrf.mxu0 }
 0x1e1   :  { %862 = vmatpush2.msra.mxu1 %v10505_v48  ;;  %v12815_v48 = vld [vmem:[#allocation8 + $0x20] sm:$0xff] }
 0x1e2   :  { %863 = vmatprep.subr.mxu1 %v16051_v58  ;;  %v1137_v63 = vpop.f32.mrf.mxu0 }
 0x1e3   :  { %864 = vmatpush2.msra.mxu1 %v738_v47  ;;  %v12818_v47 = vld [vmem:[#allocation8 + $0x38] sm:$0xff] }
 0x1e4   :  { %865 = vmatprep.subr.mxu1 %v16051_v58  ;;  %v10534_v52 = vpop.f32.mrf.mxu0 }
 0x1e5   :  { %866 = vmatpush2.msra.mxu1 %v10502_v60  ;;  %v12802_v60 = vld [vmem:[#allocation8 + $0x10] sm:$0xff] }
 0x1e6   :  { %867 = vmatprep.subr.mxu1 %v16051_v58  ;;  %v1147_v45 = vpop.f32.mrf.mxu0 }
 0x1e7   :  { %868 = vmatpush2.msra.mxu1 %v728_v61  ;;  %v12805_v61 = vld [vmem:[#allocation8 + $0x28] sm:$0xff] }
 0x1e8   :  { %869 = vmatprep.subr.mxu1 %v16051_v58  ;;  %v10537_v46 = vpop.f32.mrf.mxu0 }
 0x1e9   :  { %870 = vmatpush2.msra.mxu1 %v10499_v59 }
 0x1ea   :  { %871 = vmatprep.subr.mxu1 %v16051_v58  ;;  %v1157_v54 = vpop.f32.mrf.mxu0 }
 0x1eb   :  { %872 = vmatpush2.msra.mxu1 %v12754_v49 }
 0x1ec   :  { %874 = vmatmul.mubr.f32.vlgmr.msra.gmra.mxu1 %v12792_v57  ;;  %v10540_v56 = vpop.f32.mrf.mxu0  ;;  %10553 = vmatprep.subr.mxu1 %v12432_v0 }
 0x1ed   :  { %1217 = vmatpush1.msra.mxu0 %v10540_v56  ;;  %9372 = vmatprep.mubr.msk.f32.mxu1 %vm757_vm1, %v12795_v55  ;;  %v12844_v56 = vld [vmem:[#allocation8 + $0x58] sm:$0xff] }
 0x1ee   :  { %v1167_v59 = vpop.f32.mrf.mxu0  ;;  %1218 = vmatprep.subr.mxu0 %v16051_v58  ;;  %10554 = vmatpush3.msra.mxu1 %v12432_v0 }
 0x1ef   :  { %1219 = vmatpush1.msra.mxu0 %v1167_v59  ;;  %10555 = vmatprep.subr.mxu1 %v12434_v1  ;;  %v12856_v59 = vld [vmem:[#allocation8 + $0x68] sm:$0xff] }
 0x1f0   :  { %879 = vmatmul.mubr.f32.gmra.mxu1 %v12802_v60  ;;  %1220 = vmatprep.subr.mxu0 %v16051_v58  ;;  %v12811_v49 = vpop.f32.mrf.mxu0 }
 0x1f1   :  { %1221 = vmatpush1.msra.mxu0 %v10537_v46  ;;  %9373 = vmatprep.mubr.msk.f32.mxu1 %vm757_vm1, %v12805_v61  ;;  %v12831_v46 = vld [vmem:[#allocation8 + $0x48] sm:$0xff] }
 0x1f2   :  { %1222 = vmatprep.subr.mxu0 %v16051_v58  ;;  %10556 = vmatpush3.msra.mxu1 %v12434_v1  ;;  %v12824_v37 = vpop.f32.mrf.mxu0 }
 0x1f3   :  { %1223 = vmatpush1.msra.mxu0 %v1157_v54  ;;  %10557 = vmatprep.subr.mxu1 %v12440_v3 }
 0x1f4   :  { %884 = vmatmul.mubr.f32.gmra.mxu1 %v12815_v48  ;;  %1224 = vmatprep.subr.mxu0 %v16051_v58  ;;  %v12837_v54 = vpop.f32.mrf.mxu0 }
 0x1f5   :  { %1225 = vmatpush1.msra.mxu0 %v10534_v52  ;;  %9374 = vmatprep.mubr.msk.f32.mxu1 %vm757_vm1, %v12818_v47  ;;  %v12841_v52 = vld [vmem:[#allocation8 + $0x40] sm:$0xff] }
 0x1f6   :  { %1226 = vmatprep.subr.mxu0 %v16051_v58  ;;  %10558 = vmatpush3.msra.mxu1 %v12440_v3 }
 0x1f7   :  { %1227 = vmatpush1.msra.mxu0 %v1147_v45  ;;  %10559 = vmatprep.subr.mxu1 %v12446_v4  ;;  %v1187_v45 = vpop.f32.mrf.mxu0 }
 0x1f8   :  { %889 = vmatmul.mubr.f32.gmra.mxu1 %v12828_v50  ;;  %1228 = vmatprep.subr.mxu0 %v16051_v58 }
 0x1f9   :  { %1229 = vmatpush1.msra.mxu0 %v10531_v44  ;;  %9375 = vmatprep.mubr.msk.f32.mxu1 %vm757_vm1, %v12831_v46  ;;  %v12853_v44 = vld [vmem:[#allocation8 + $0x50] sm:$0xff] }
 0x1fa   :  { %1230 = vmatprep.subr.mxu0 %v16051_v58  ;;  %10560 = vmatpush3.msra.mxu1 %v12446_v4 }
 0x1fb   :  { %1231 = vmatpush1.msra.mxu0 %v1137_v63  ;;  %1647 = vmatprep.subr.mxu1 %v16051_v58  ;;  %v10549_v63 = vpop.f32.mrf.mxu0 }
 0x1fc   :  { %894 = vmatmul.mubr.f32.gmra.mxu1 %v12841_v52  ;;  %1232 = vmatprep.subr.mxu0 %v16051_v58 }
 0x1fd   :  { %1233 = vmatpush1.msra.mxu0 %v12782_v62  ;;  %9376 = vmatprep.mubr.msk.f32.mxu1 %vm757_vm1, %v12844_v56  ;;  %v12864_v62 = vld [vmem:[#allocation8 + $0x60] sm:$0xff] }
 0x1fe   :  { %1234 = vmatprep.subr.mxu0 %v16051_v58 }
 0x1ff   :  { %1235 = vmatpush1.msra.mxu0 %v12785_v43  ;;  %v1197_v43 = vpop.f32.mrf.mxu0 }
 0x200   :  { %899 = vmatmul.mubr.f32.gmra.mxu1 %v12853_v44  ;;  %1236 = vmatprep.subr.mxu0 %v16051_v58 }
 0x201   :  { %1237 = vmatpush1.msra.mxu0 %v12776_v42  ;;  %9377 = vmatprep.mubr.msk.f32.mxu1 %vm757_vm1, %v12856_v59  ;;  %v12875_v42 = vld [vmem:[#allocation8 + $0x70] sm:$0xff] }
 0x202   :  { %1238 = vmatprep.subr.mxu0 %v16051_v58 }
 0x203   :  { %1239 = vmatpush1.msra.mxu0 %v12779_v51  ;;  %v10552_v51 = vpop.f32.mrf.mxu0 }
 0x204   :  { %904 = vmatmul.mubr.f32.gmra.mxu1 %v12864_v62  ;;  %1240 = vmatprep.subr.mxu0 %v16051_v58 }
 0x205   :  { %1241 = vmatpush1.msra.mxu0 %v12770_v40  ;;  %9378 = vmatprep.mubr.msk.f32.mxu1 %vm757_vm1, %v12867_v36  ;;  %v12886_v40 = vld [vmem:[#allocation8 + $0x80] sm:$0xff] }
 0x206   :  { %1242 = vmatprep.subr.mxu0 %v16051_v58 }
 0x207   :  { %1243 = vmatpush1.msra.mxu0 %v12773_v41  ;;  %v1207_v41 = vpop.f32.mrf.mxu0 }
 0x208   :  { %909 = vmatmul.mubr.f32.gmra.mxu1 %v12875_v42  ;;  %1244 = vmatprep.subr.mxu0 %v16051_v58 }
 0x209   :  { %1245 = vmatpush1.msra.mxu0 %v12764_v39  ;;  %9379 = vmatprep.mubr.msk.f32.mxu1 %vm757_vm1, %v12878_v35  ;;  %v12896_v39 = vld [vmem:[#allocation8 + $0x90] sm:$0xff] }
 0x20a   :  { %1246 = vmatprep.subr.mxu0 %v16051_v58 }
 0x20b   :  { %1247 = vmatpush1.msra.mxu0 %v12767_v38  ;;  %v422_v38 = vpop.xlane.xlu0 %421 }
 0x20c   :  { %914 = vmatmul.mubr.f32.gmra.mxu1 %v12886_v40  ;;  %1264 = vmatprep.subr.mxu0 %v16051_v58  ;;  %v423_v32 = vrot.slane %v422_v38, 4 }
 0x20d   :  { %1265 = vmatpush2.msra.mxu0 %v10552_v51  ;;  %9380 = vmatprep.mubr.msk.f32.mxu1 %vm757_vm1, %v12889_v34  ;;  %v12905_v51 = vld [vmem:[#allocation8 + $0xa0] sm:$0xff] }
 0x20e   :  { %1266 = vmatprep.subr.mxu0 %v16051_v58  ;;  %v424_v53 = vmax.f32 %v422_v38, %v423_v32  ;;  %v12925_v32 = vld [vmem:[#allocation8 + $0xc0] sm:$0xff] }
 0x20f   :  { %1267 = vmatpush2.msra.mxu0 %v1207_v41 }
 0x210   :  { %919 = vmatmul.mubr.f32.gmra.mxu1 %v12896_v39  ;;  %1268 = vmatprep.subr.mxu0 %v16051_v58  ;;  %v425_v41 = vrot.slane %v424_v53, 2 }
 0x211   :  { %1269 = vmatpush2.msra.mxu0 %v10549_v63  ;;  %9381 = vmatprep.mubr.msk.f32.mxu1 %vm757_vm1, %v12899_v33  ;;  %v12915_v63 = vld [vmem:[#allocation8 + $0xb0] sm:$0xff] }
 0x212   :  { %1270 = vmatprep.subr.mxu0 %v16051_v58  ;;  %v426_v29 = vmax.f32 %v424_v53, %v425_v41  ;;  %v478_v53 = vpop.xlane.xlu0 %477  ;;  %v12939_v41 = vld [vmem:[#allocation8 + $0xe8] sm:$0xff] }
 0x213   :  { %1271 = vmatpush2.msra.mxu0 %v1197_v43  ;;  %v12928_v43 = vld [vmem:[#allocation8 + $0xd8] sm:$0xff]  ;;  %v479_v38 = vrot.slane %v478_v53, 4 }
 0x214   :  { %924 = vmatmul.mubr.f32.gmra.mxu1 %v12905_v51  ;;  %1272 = vmatprep.subr.mxu0 %v16051_v58 }
 0x215   :  { %1273 = vmatpush2.msra.mxu0 %v12837_v54  ;;  %9382 = vmatprep.mubr.msk.f32.mxu1 %vm757_vm1, %v12908_v31  ;;  %v427_v54 = vrot.slane %v426_v29, 1 }
 0x216   :  { %1274 = vmatprep.subr.mxu0 %v16051_v58 }
 0x217   :  { %1275 = vmatpush2.msra.mxu0 %v1187_v45  ;;  %v428_v45 = vmax.f32 %v426_v29, %v427_v54  ;;  %v480_v29 = vmin.f32 %v478_v53, %v479_v38  ;;  %v12963_v54 = vld [vmem:[#allocation8 + $0x108] sm:$0xf]  ;;  %v1366_v53 = vmul.f32 %v12437_v2, %v12437_v2  ;;  %v1368_v2 = vmul.f32 %v12453_v6, %v12453_v6  ;;  %v16052_v38 = vld [vmem:[#allocation43_spill] sm:$0xff] }
 0x218   :  { %929 = vmatmul.mubr.f32.gmra.mxu1 %v12915_v63  ;;  %1276 = vmatprep.subr.mxu0 %v16051_v58  ;;  %v1371_v6 = vmul.f32 %v12473_v9, %v12473_v9  ;;  %v1374_v9 = vmul.f32 %v12486_v12, %v12486_v12  ;;  %v1377_v12 = vmul.f32 %v12500_v15, %v12500_v15 }
 0x219   :  { %1277 = vmatpush2.msra.mxu0 %v12811_v49  ;;  %9383 = vmatprep.mubr.msk.f32.mxu1 %vm757_vm1, %v12918_v30  ;;  %v12937_v49 = vld [vmem:[#allocation8 + $0xd0] sm:$0xff]  ;;  %11582 = vpush %v428_v45  ;;  %v12973_v45 = vld [vmem:[#allocation8 + $0x100] sm:$0xf]  ;;  %v1380_v15 = vmul.f32 %v12510_v18, %v12510_v18  ;;  %v1383_v18 = vmul.f32 %v12524_v21, %v12524_v21 }
 0x21a   :  { %1278 = vmatprep.subr.mxu0 %v16051_v58  ;;  %v1386_v21 = vmul.f32 %v12534_v24, %v12534_v24  ;;  %v1389_v24 = vmul.f32 %v12548_v27, %v12548_v27 }
 0x21b   :  { %1279 = vmatpush2.msra.mxu0 %v12824_v37  ;;  %v12951_v37 = vld [vmem:[#allocation8 + $0xf8] sm:$0xff] }
 0x21c   :  { %934 = vmatmul.mubr.f32.gmra.mxu1 %v12925_v32  ;;  %1281 = vmatmul.mubr.f32.vlgmr.msra.gmra.mxu0 %v12792_v57  ;;  %v12949_v57 = vld [vmem:[#allocation8 + $0xe0] sm:$0xff] }
 0x21d   :  { %9384 = vmatprep.mubr.msk.f32.mxu1 %vm757_vm1, %v12928_v43  ;;  %9413 = vmatprep.mubr.msk.f32.mxu0 %vm757_vm1, %v12795_v55  ;;  %v481_v55 = vrot.slane %v480_v29, 2 }
 0x21e   :  { %10597 = vmatprep.subr.mxu0 %v12432_v0 }
 0x21f   :  { %10598 = vmatpush3.msra.mxu0 %v12432_v0  ;;  %v482_v0 = vmin.f32 %v480_v29, %v481_v55  ;;  %v1798_v29 = vmul.f32 %v16052_v38, %v16052_v38  ;;  %v16054_v55 = vld [vmem:[#allocation66_spill] sm:$0xff] }
 0x220   :  { %939 = vmatmul.mubr.f32.gmra.mxu1 %v12937_v49  ;;  %1286 = vmatmul.mubr.f32.gmra.mxu0 %v12802_v60  ;;  %v12961_v60 = vld [vmem:[#allocation8 + $0xf0] sm:$0xff] }
 0x221   :  { %9385 = vmatprep.mubr.msk.f32.mxu1 %vm757_vm1, %v12939_v41  ;;  %9414 = vmatprep.mubr.msk.f32.mxu0 %vm757_vm1, %v12805_v61  ;;  %v483_v61 = vrot.slane %v482_v0, 1 }
 0x222   :  { %10599 = vmatprep.subr.mxu0 %v12434_v1 }
 0x223   :  { %10600 = vmatpush3.msra.mxu0 %v12434_v1  ;;  %v484_v1 = vmin.f32 %v482_v0, %v483_v61  ;;  %v16056_v61 = vld [vmem:[#allocation46_spill] sm:$0xff] }
 0x224   :  { %944 = vmatmul.mubr.f32.gmra.mxu1 %v12949_v57  ;;  %1291 = vmatmul.mubr.f32.gmra.mxu0 %v12815_v48 }
 0x225   :  { %9386 = vmatprep.mubr.msk.f32.mxu1 %vm757_vm1, %v12951_v37  ;;  %9415 = vmatprep.mubr.msk.f32.mxu0 %vm757_vm1, %v12818_v47  ;;  %11584 = vpush %v484_v1  ;;  %v1801_v1 = vmul.f32 %v16056_v61, %v16056_v61 }
 0x226   :  { %10601 = vmatprep.subr.mxu0 %v12440_v3 }
 0x227   :  { %10602 = vmatpush3.msra.mxu0 %v12440_v3  ;;  %v1367_v3 = vmul.f32 %v12450_v5, %v12450_v5  ;;  %v1370_v5 = vmul.f32 %v12464_v8, %v12464_v8  ;;  %v1373_v8 = vmul.f32 %v12484_v11, %v12484_v11  ;;  %v1376_v11 = vmul.f32 %v12494_v14, %v12494_v14 }
 0x228   :  { %949 = vmatmul.mubr.f32.gmra.mxu1 %v12961_v60  ;;  %1296 = vmatmul.mubr.f32.gmra.mxu0 %v12828_v50  ;;  %v1379_v14 = vmul.f32 %v12508_v17, %v12508_v17  ;;  %v1382_v17 = vmul.f32 %v12518_v20, %v12518_v20  ;;  %v1385_v20 = vmul.f32 %v12532_v23, %v12532_v23 }
 0x229   :  { %9387 = vmatprep.mubr.msk.f32.mxu1 %vm757_vm1, %v12963_v54  ;;  %9416 = vmatprep.mubr.msk.f32.mxu0 %vm757_vm1, %v12831_v46  ;;  %v1388_v23 = vmul.f32 %v12542_v26, %v12542_v26  ;;  %v16053_v26 = vld [vmem:[#allocation44_spill] sm:$0xff] }
 0x22a   :  { %10603 = vmatprep.subr.mxu0 %v12446_v4  ;;  %v1799_v27 = vmul.f32 %v16053_v26, %v16053_v26 }
 0x22b   :  { %10604 = vmatpush3.msra.mxu0 %v12446_v4  ;;  %v1369_v4 = vmul.f32 %v12461_v7, %v12461_v7  ;;  %v1372_v7 = vmul.f32 %v12476_v10, %v12476_v10  ;;  %v1375_v10 = vmul.f32 %v12492_v13, %v12492_v13  ;;  %v1378_v13 = vmul.f32 %v12502_v16, %v12502_v16 }
 0x22c   :  { %954 = vmatmul.mubr.f32.gmra.mxu1 %v12973_v45  ;;  %1301 = vmatmul.mubr.f32.gmra.mxu0 %v12841_v52  ;;  %v1381_v16 = vmul.f32 %v12516_v19, %v12516_v19  ;;  %v1384_v19 = vmul.f32 %v12526_v22, %v12526_v22  ;;  %v1387_v22 = vmul.f32 %v12540_v25, %v12540_v25 }
 0x22d   :  { %9417 = vmatprep.mubr.msk.f32.mxu0 %vm757_vm1, %v12844_v56  ;;  %10561 = vmatprep.mubr.msk.f32.mxu1 %vm373_vm0, %v1366_v53  ;;  %v1797_v25 = vmul.f32 %v12550_v28, %v12550_v28  ;;  %v16055_v28 = vld [vmem:[#allocation45_spill] sm:$0xff]  ;;  %v16057_v53 = vld [vmem:[#allocation47_spill] sm:$0xff] }
 0x22e   :  { %2078 = vmatprep.subr.mxu0 %v16051_v58  ;;  %v1800_v0 = vmul.f32 %v16055_v28, %v16055_v28 }
 0x230   :  { %1306 = vmatmul.mubr.f32.gmra.mxu0 %v12853_v44  ;;  %10562 = vmatmul.mubr.msk.f32.vlgmr.msra.gmra.mxu1 %vm373_vm0, %v1367_v3  ;;  %v1802_v3 = vmul.f32 %v16057_v53, %v16057_v53 }
 0x231   :  { %9418 = vmatprep.mubr.msk.f32.mxu0 %vm757_vm1, %v12856_v59  ;;  %10564 = vmatprep.mubr.msk.f32.mxu1 %vm373_vm0, %v1368_v2  ;;  %v16058_v2 = vld [vmem:[#allocation48_spill] sm:$0xff] }
 0x234   :  { %1311 = vmatmul.mubr.f32.gmra.mxu0 %v12864_v62  ;;  %10565 = vmatmul.mubr.msk.f32.gmra.mxu1 %vm373_vm0, %v1369_v4  ;;  %v1803_v4 = vmul.f32 %v16058_v2, %v16058_v2 }
 0x235   :  { %9419 = vmatprep.mubr.msk.f32.mxu0 %vm757_vm1, %v12867_v36  ;;  %10567 = vmatprep.mubr.msk.f32.mxu1 %vm373_vm0, %v1370_v5  ;;  %v16059_v5 = vld [vmem:[#allocation49_spill] sm:$0xff] }
 0x238   :  { %1316 = vmatmul.mubr.f32.gmra.mxu0 %v12875_v42  ;;  %10568 = vmatmul.mubr.msk.f32.gmra.mxu1 %vm373_vm0, %v1371_v6  ;;  %v1804_v6 = vmul.f32 %v16059_v5, %v16059_v5 }
 0x239   :  { %9420 = vmatprep.mubr.msk.f32.mxu0 %vm757_vm1, %v12878_v35  ;;  %10570 = vmatprep.mubr.msk.f32.mxu1 %vm373_vm0, %v1372_v7  ;;  %v16060_v7 = vld [vmem:[#allocation50_spill] sm:$0xff] }
 0x23c   :  { %1321 = vmatmul.mubr.f32.gmra.mxu0 %v12886_v40  ;;  %10571 = vmatmul.mubr.msk.f32.gmra.mxu1 %vm373_vm0, %v1373_v8  ;;  %v1805_v8 = vmul.f32 %v16060_v7, %v16060_v7 }
 0x23d   :  { %9421 = vmatprep.mubr.msk.f32.mxu0 %vm757_vm1, %v12889_v34  ;;  %10573 = vmatprep.mubr.msk.f32.mxu1 %vm373_vm0, %v1374_v9  ;;  %v16061_v9 = vld [vmem:[#allocation51_spill] sm:$0xff] }
 0x240   :  { %1326 = vmatmul.mubr.f32.gmra.mxu0 %v12896_v39  ;;  %10574 = vmatmul.mubr.msk.f32.gmra.mxu1 %vm373_vm0, %v1375_v10  ;;  %v1806_v10 = vmul.f32 %v16061_v9, %v16061_v9 }
 0x241   :  { %9422 = vmatprep.mubr.msk.f32.mxu0 %vm757_vm1, %v12899_v33  ;;  %10576 = vmatprep.mubr.msk.f32.mxu1 %vm373_vm0, %v1376_v11  ;;  %v16062_v11 = vld [vmem:[#allocation52_spill] sm:$0xff] }
 0x244   :  { %1331 = vmatmul.mubr.f32.gmra.mxu0 %v12905_v51  ;;  %10577 = vmatmul.mubr.msk.f32.gmra.mxu1 %vm373_vm0, %v1377_v12  ;;  %v1807_v12 = vmul.f32 %v16062_v11, %v16062_v11 }
 0x245   :  { %9423 = vmatprep.mubr.msk.f32.mxu0 %vm757_vm1, %v12908_v31  ;;  %10579 = vmatprep.mubr.msk.f32.mxu1 %vm373_vm0, %v1378_v13  ;;  %v16063_v13 = vld [vmem:[#allocation53_spill] sm:$0xff] }
 0x248   :  { %1336 = vmatmul.mubr.f32.gmra.mxu0 %v12915_v63  ;;  %10580 = vmatmul.mubr.msk.f32.gmra.mxu1 %vm373_vm0, %v1379_v14  ;;  %v1808_v14 = vmul.f32 %v16063_v13, %v16063_v13 }
 0x249   :  { %9424 = vmatprep.mubr.msk.f32.mxu0 %vm757_vm1, %v12918_v30  ;;  %10582 = vmatprep.mubr.msk.f32.mxu1 %vm373_vm0, %v1380_v15  ;;  %v16064_v15 = vld [vmem:[#allocation54_spill] sm:$0xff] }
 0x24a   :  { %s11583_s15 = spop %11582 }
 0x24b   :  { %p486_p1 = scmp.gt.f32.partialorder %s11583_s15, 128.0 }
 0x24c   :  { %1341 = vmatmul.mubr.f32.gmra.mxu0 %v12925_v32  ;;  %10583 = vmatmul.mubr.msk.f32.gmra.mxu1 %vm373_vm0, %v1381_v16  ;;  %v1809_v16 = vmul.f32 %v16064_v15, %v16064_v15 }
 0x24d   :  { %9425 = vmatprep.mubr.msk.f32.mxu0 %vm757_vm1, %v12928_v43  ;;  %10585 = vmatprep.mubr.msk.f32.mxu1 %vm373_vm0, %v1382_v17  ;;  %v16065_v17 = vld [vmem:[#allocation55_spill] sm:$0xff]  ;;  %s487_s28 = scalar_select %p486_p1, 1, 0 }
 0x24f   :  { %s488_s29 = scvt.s32.f32 %s487_s28 }
 0x250   :  { %1346 = vmatmul.mubr.f32.gmra.mxu0 %v12937_v49  ;;  %10586 = vmatmul.mubr.msk.f32.gmra.mxu1 %vm373_vm0, %v1383_v18  ;;  %v1810_v18 = vmul.f32 %v16065_v17, %v16065_v17 }
 0x251   :  { %9426 = vmatprep.mubr.msk.f32.mxu0 %vm757_vm1, %v12939_v41  ;;  %10588 = vmatprep.mubr.msk.f32.mxu1 %vm373_vm0, %v1384_v19  ;;  %v16066_v19 = vld [vmem:[#allocation56_spill] sm:$0xff]  ;;  %s489_s14 = smul.f32 254.0, %s488_s29 }
 0x253   :  { %s490_s21 = sadd.f32 1.0, %s489_s14 }
 0x254   :  { %1351 = vmatmul.mubr.f32.gmra.mxu0 %v12949_v57  ;;  %10589 = vmatmul.mubr.msk.f32.gmra.mxu1 %vm373_vm0, %v1385_v20  ;;  %v1811_v20 = vmul.f32 %v16066_v19, %v16066_v19 }
 0x255   :  { %9427 = vmatprep.mubr.msk.f32.mxu0 %vm757_vm1, %v12951_v37  ;;  %10591 = vmatprep.mubr.msk.f32.mxu1 %vm373_vm0, %v1386_v21  ;;  %v16067_v21 = vld [vmem:[#allocation57_spill] sm:$0xff] }
 0x256   :  { %s11585_s17 = spop %11584 }
 0x257   :  { %p491_p2 = scmp.lt.f32.partialorder %s11585_s17, -0.5 }
 0x258   :  { %1356 = vmatmul.mubr.f32.gmra.mxu0 %v12961_v60  ;;  %10592 = vmatmul.mubr.msk.f32.gmra.mxu1 %vm373_vm0, %v1387_v22  ;;  %v1812_v22 = vmul.f32 %v16067_v21, %v16067_v21 }
 0x259   :  { %9428 = vmatprep.mubr.msk.f32.mxu0 %vm757_vm1, %v12963_v54  ;;  %10594 = vmatprep.mubr.msk.f32.mxu1 %vm373_vm0, %v1388_v23  ;;  %v16068_v23 = vld [vmem:[#allocation58_spill] sm:$0xff]  ;;  %s492_s3 = scalar_select %p491_p2, 1, 0 }
 0x25b   :  { %s493_s7 = scvt.s32.f32 %s492_s3 }
 0x25c   :  { %1361 = vmatmul.mubr.f32.gmra.mxu0 %v12973_v45  ;;  %10595 = vmatmul.mubr.msk.f32.gmra.mxu1 %vm373_vm0, %v1389_v24  ;;  %v1813_v24 = vmul.f32 %v16068_v23, %v16068_v23 }
 0x25d   :  { %10605 = vmatprep.mubr.msk.f32.mxu0 %vm373_vm0, %v1797_v25  ;;  %9453 = vmatprep.mubr.msk.f32.mxu1 %vm757_vm1, %v16054_v55  ;;  %v16069_v25 = vld [vmem:[#allocation59_spill] sm:$0xff]  ;;  %s494_s16 = smul.f32 -1.0, %s493_s7 }
 0x25e   :  { %v1814_v38 = vmul.f32 %v16069_v25, %v16069_v25 }
 0x25f   :  { %s495_s25 = ssub.f32 %s490_s21, %s494_s16 }
 0x260   :  { %10606 = vmatmul.mubr.msk.f32.vlgmr.msra.gmra.mxu0 %vm373_vm0, %v1798_v29  ;;  %v16070_v29 = vld [vmem:[#allocation60_spill] sm:$0xff] }
 0x261   :  { %10608 = vmatprep.mubr.msk.f32.mxu0 %vm373_vm0, %v1799_v27  ;;  %v1815_v26 = vmul.f32 %v16070_v29, %v16070_v29  ;;  %v16071_v27 = vld [vmem:[#allocation61_spill] sm:$0xff]  ;;  %s496_s6 = smul.f32 0.01, %s495_s25 }
 0x262   :  { %v1816_v28 = vmul.f32 %v16071_v27, %v16071_v27  ;;  %s498_s0 = smul.f32 0.03, %s495_s25 }
 0x263   :  { %s497_s4 = smul.f32 %s496_s6, %s496_s6 }
 0x264   :  { %10609 = vmatmul.mubr.msk.f32.gmra.mxu0 %vm373_vm0, %v1800_v0  ;;  %v16072_v0 = vld [vmem:[#allocation62_spill] sm:$0xff]  ;;  %s499_s30 = smul.f32 %s498_s0, %s498_s0 }
 0x265   :  { %10611 = vmatprep.mubr.msk.f32.mxu0 %vm373_vm0, %v1801_v1  ;;  %v1817_v61 = vmul.f32 %v16072_v0, %v16072_v0  ;;  %v16073_v1 = vld [vmem:[#allocation63_spill] sm:$0xff] }
 0x266   :  { %v1818_v53 = vmul.f32 %v16073_v1, %v16073_v1 }
 0x268   :  { %10612 = vmatmul.mubr.msk.f32.gmra.mxu0 %vm373_vm0, %v1802_v3  ;;  %v16074_v3 = vld [vmem:[#allocation64_spill] sm:$0xff] }
 0x269   :  { %10614 = vmatprep.mubr.msk.f32.mxu0 %vm373_vm0, %v1803_v4  ;;  %v1819_v2 = vmul.f32 %v16074_v3, %v16074_v3  ;;  %v16075_v4 = vld [vmem:[#allocation65_spill] sm:$0xff] }
 0x26a   :  { %v1820_v5 = vmul.f32 %v16075_v4, %v16075_v4 }
 0x26c   :  { %10615 = vmatmul.mubr.msk.f32.gmra.mxu0 %vm373_vm0, %v1804_v6 }
 0x26d   :  { %10617 = vmatprep.mubr.msk.f32.mxu0 %vm373_vm0, %v1805_v8 }
 0x270   :  { %10618 = vmatmul.mubr.msk.f32.gmra.mxu0 %vm373_vm0, %v1806_v10 }
 0x271   :  { %10620 = vmatprep.mubr.msk.f32.mxu0 %vm373_vm0, %v1807_v12 }
 0x274   :  { %10621 = vmatmul.mubr.msk.f32.gmra.mxu0 %vm373_vm0, %v1808_v14 }
 0x275   :  { %10623 = vmatprep.mubr.msk.f32.mxu0 %vm373_vm0, %v1809_v16 }
 0x278   :  { %10624 = vmatmul.mubr.msk.f32.gmra.mxu0 %vm373_vm0, %v1810_v18 }
 0x279   :  { %10626 = vmatprep.mubr.msk.f32.mxu0 %vm373_vm0, %v1811_v20 }
 0x27c   :  { %10627 = vmatmul.mubr.msk.f32.gmra.mxu0 %vm373_vm0, %v1812_v22 }
 0x27d   :  { %10629 = vmatprep.mubr.msk.f32.mxu0 %vm373_vm0, %v1813_v24 }
 0x280   :  { %10630 = vmatmul.mubr.msk.f32.gmra.mxu0 %vm373_vm0, %v1814_v38 }
 0x281   :  { %10632 = vmatprep.mubr.msk.f32.mxu0 %vm373_vm0, %v1815_v26 }
 0x284   :  { %10633 = vmatmul.mubr.msk.f32.gmra.mxu0 %vm373_vm0, %v1816_v28 }
 0x285   :  { %10635 = vmatprep.mubr.msk.f32.mxu0 %vm373_vm0, %v1817_v61 }
 0x288   :  { %10636 = vmatmul.mubr.msk.f32.gmra.mxu0 %vm373_vm0, %v1818_v53 }
 0x289   :  { %10638 = vmatprep.mubr.msk.f32.mxu0 %vm373_vm0, %v1819_v2 }
 0x28c   :  { %10639 = vmatmul.mubr.msk.f32.gmra.mxu0 %vm373_vm0, %v1820_v5 }
 0x28d   :  { %9494 = vmatprep.mubr.msk.f32.mxu0 %vm757_vm1, %v16054_v55 }
 0x2ac   :  { %v875_v6 = vpop.f32.mrf.mxu1 }
 0x2ad   :  { %v13178_v0 = vmul.f32 %v875_v6, %v875_v6 }
 0x2ae   :  { %v877_v7 = vpop.f32.mrf.mxu1 }
 0x2b0   :  { %v880_v8 = vpop.f32.mrf.mxu1 }
 0x2b1   :  { %v13190_v7 = vmul.f32 %v880_v8, %v880_v8 }
 0x2b2   :  { %v882_v9 = vpop.f32.mrf.mxu1 }
 0x2b4   :  { %v885_v10 = vpop.f32.mrf.mxu1 }
 0x2b6   :  { %v887_v11 = vpop.f32.mrf.mxu1 }
 0x2b8   :  { %v890_v12 = vpop.f32.mrf.mxu1 }
 0x2ba   :  { %v892_v13 = vpop.f32.mrf.mxu1 }
 0x2bc   :  { %v895_v14 = vpop.f32.mrf.mxu1 }
 0x2be   :  { %v897_v15 = vpop.f32.mrf.mxu1 }
 0x2c0   :  { %v900_v16 = vpop.f32.mrf.mxu1 }
 0x2c2   :  { %v902_v17 = vpop.f32.mrf.mxu1 }
 0x2c4   :  { %v13164_v18 = vpop.f32.mrf.mxu1 }
 0x2c6   :  { %v907_v19 = vpop.f32.mrf.mxu1 }
 0x2c8   :  { %v13166_v20 = vpop.f32.mrf.mxu1 }
 0x2ca   :  { %v912_v21 = vpop.f32.mrf.mxu1 }
 0x2cb   :  { %v13202_v21 = vmul.f32 %v885_v10, %v885_v10 }
 0x2cc   :  { %v13168_v22 = vpop.f32.mrf.mxu1 }
 0x2ce   :  { %v917_v55 = vpop.f32.mrf.mxu1 }
 0x2d0   :  { %v13170_v23 = vpop.f32.mrf.mxu1 }
 0x2d2   :  { %v922_v24 = vpop.f32.mrf.mxu1 }
 0x2d4   :  { %v13172_v25 = vpop.f32.mrf.mxu1 }
 0x2d6   :  { %v927_v38 = vpop.f32.mrf.mxu1 }
 0x2d8   :  { %v13174_v29 = vpop.f32.mrf.mxu1 }
 0x2da   :  { %v932_v26 = vpop.f32.mrf.mxu1 }
 0x2dc   :  { %v13176_v27 = vpop.f32.mrf.mxu1  ;;  %v1282_v28 = vpop.f32.mrf.mxu0 }
 0x2dd   :  { %v13180_v61 = vmul.f32 %v1282_v28, %v1282_v28  ;;  %v13182_v1 = vmul.f32 %v1282_v28, %v875_v6 }
 0x2de   :  { %v937_v53 = vpop.f32.mrf.mxu1  ;;  %v1284_v3 = vpop.f32.mrf.mxu0 }
 0x2df   :  { %16076 = vst [vmem:[#allocation43_spill] sm:$0xff] %v13180_v61  ;;  %16077 = vst [vmem:[#allocation44_spill] sm:$0xff] %v13182_v1  ;;  %v13186_v2 = vadd.f32 %v13180_v61, %v13178_v0  ;;  %v13214_v3 = vmul.f32 %v890_v12, %v890_v12 }
 0x2e0   :  { %v13188_v4 = vpop.f32.mrf.mxu1  ;;  %v1287_v5 = vpop.f32.mrf.mxu0 }
 0x2e1   :  { %16078 = vst [vmem:[#allocation66_spill] sm:$0xff] %v13186_v2  ;;  %v13192_v9 = vmul.f32 %v1287_v5, %v1287_v5  ;;  %v13194_v11 = vmul.f32 %v1287_v5, %v880_v8  ;;  %16085 = vst [vmem:[#allocation51_spill] sm:$0xff] %v13214_v3 }
 0x2e2   :  { %v942_v13 = vpop.f32.mrf.mxu1  ;;  %v1289_v15 = vpop.f32.mrf.mxu0 }
 0x2e3   :  { %16079 = vst [vmem:[#allocation45_spill] sm:$0xff] %v13192_v9  ;;  %16080 = vst [vmem:[#allocation46_spill] sm:$0xff] %v13194_v11  ;;  %v13198_v6 = vadd.f32 %v13192_v9, %v13190_v7 }
 0x2e4   :  { %v13200_v17 = vpop.f32.mrf.mxu1  ;;  %v1292_v19 = vpop.f32.mrf.mxu0 }
 0x2e5   :  { %16081 = vst [vmem:[#allocation47_spill] sm:$0xff] %v13198_v6  ;;  %v13204_v55 = vmul.f32 %v1292_v19, %v1292_v19  ;;  %v13206_v24 = vmul.f32 %v1292_v19, %v885_v10 }
 0x2e6   :  { %v947_v38 = vpop.f32.mrf.mxu1  ;;  %v1294_v26 = vpop.f32.mrf.mxu0 }
 0x2e7   :  { %16082 = vst [vmem:[#allocation48_spill] sm:$0xff] %v13204_v55  ;;  %16083 = vst [vmem:[#allocation49_spill] sm:$0xff] %v13206_v24  ;;  %v13210_v8 = vadd.f32 %v13204_v55, %v13202_v21  ;;  %v13226_v26 = vmul.f32 %v895_v14, %v895_v14 }
 0x2e8   :  { %v13212_v28 = vpop.f32.mrf.mxu1  ;;  %v1297_v53 = vpop.f32.mrf.mxu0 }
 0x2e9   :  { %16084 = vst [vmem:[#allocation50_spill] sm:$0xff] %v13210_v8  ;;  %v13216_v5 = vmul.f32 %v1297_v53, %v1297_v53  ;;  %v13218_v13 = vmul.f32 %v1297_v53, %v890_v12  ;;  %16089 = vst [vmem:[#allocation55_spill] sm:$0xff] %v13226_v26 }
 0x2ea   :  { %v952_v15 = vpop.f32.mrf.mxu1  ;;  %v1299_v11 = vpop.f32.mrf.mxu0 }
 0x2eb   :  { %16086 = vst [vmem:[#allocation52_spill] sm:$0xff] %v13216_v5  ;;  %16087 = vst [vmem:[#allocation53_spill] sm:$0xff] %v13218_v13  ;;  %v13222_v10 = vadd.f32 %v13216_v5, %v13214_v3  ;;  %v13238_v15 = vmul.f32 %v900_v16, %v900_v16 }
 0x2ec   :  { %v13224_v19 = vpop.f32.mrf.mxu1  ;;  %v1302_v38 = vpop.f32.mrf.mxu0 }
 0x2ed   :  { %16088 = vst [vmem:[#allocation54_spill] sm:$0xff] %v13222_v10  ;;  %v13228_v24 = vmul.f32 %v1302_v38, %v1302_v38  ;;  %v13230_v1 = vmul.f32 %v1302_v38, %v895_v14  ;;  %16093 = vst [vmem:[#allocation59_spill] sm:$0xff] %v13238_v15  ;;  %v13254_v38 = vmul.f32 %v13164_v18, %v13164_v18 }
 0x2ee   :  { %v957_v8 = vpop.f32.mrf.mxu1  ;;  %v1304_v55 = vpop.f32.mrf.mxu0 }
 0x2ef   :  { %16090 = vst [vmem:[#allocation56_spill] sm:$0xff] %v13228_v24  ;;  %16091 = vst [vmem:[#allocation57_spill] sm:$0xff] %v13230_v1  ;;  %v13234_v12 = vadd.f32 %v13228_v24, %v13226_v26 }
 0x2f0   :  { %v1307_v11 = vpop.f32.mrf.mxu0  ;;  %v13236_v53 = vpop.f32.mrf.mxu1  ;;  %16097 = vst [vmem:[#allocation63_spill] sm:$0xff] %v13254_v38 }
 0x2f1   :  { %16092 = vst [vmem:[#allocation58_spill] sm:$0xff] %v13234_v12  ;;  %v13240_v13 = vmul.f32 %v1307_v11, %v1307_v11  ;;  %v13242_v10 = vmul.f32 %v1307_v11, %v900_v16 }
 0x2f2   :  { %v1309_v5 = vpop.f32.mrf.mxu0  ;;  %v13244_v6 = vpop.f32.mrf.mxu1 }
 0x2f3   :  { %16094 = vst [vmem:[#allocation60_spill] sm:$0xff] %v13240_v13  ;;  %16095 = vst [vmem:[#allocation61_spill] sm:$0xff] %v13242_v10  ;;  %v13248_v14 = vadd.f32 %v13240_v13, %v13238_v15  ;;  %v13271_v13 = vmul.f32 %v13166_v20, %v13166_v20 }
 0x2f4   :  { %v1312_v55 = vpop.f32.mrf.mxu0  ;;  %v13250_v8 = vpop.f32.mrf.mxu1 }
 0x2f5   :  { %16096 = vst [vmem:[#allocation62_spill] sm:$0xff] %v13248_v14  ;;  %v13256_v1 = vmul.f32 %v1312_v55, %v1312_v55  ;;  %v13259_v12 = vmul.f32 %v1312_v55, %v13164_v18  ;;  %16101 = vst [vmem:[#allocation68_spill] sm:$0xff] %v13271_v13 }
 0x2f6   :  { %v1314_v16 = vpop.f32.mrf.mxu0  ;;  %v13261_v5 = vpop.f32.mrf.mxu1 }
 0x2f7   :  { %16098 = vst [vmem:[#allocation64_spill] sm:$0xff] %v13256_v1  ;;  %16099 = vst [vmem:[#allocation65_spill] sm:$0xff] %v13259_v12  ;;  %v13265_v11 = vadd.f32 %v13256_v1, %v13254_v38  ;;  %v13288_v1 = vmul.f32 %v13168_v22, %v13168_v22 }
 0x2f8   :  { %v1317_v10 = vpop.f32.mrf.mxu0  ;;  %v13267_v14 = vpop.f32.mrf.mxu1 }
 0x2f9   :  { %16100 = vst [vmem:[#allocation67_spill] sm:$0xff] %v13265_v11  ;;  %v13273_v24 = vmul.f32 %v1317_v10, %v1317_v10  ;;  %v13276_v9 = vmul.f32 %v1317_v10, %v13166_v20  ;;  %16105 = vst [vmem:[#allocation72_spill] sm:$0xff] %v13288_v1 }
 0x2fa   :  { %v1319_v18 = vpop.f32.mrf.mxu0  ;;  %v13278_v55 = vpop.f32.mrf.mxu1 }
 0x2fb   :  { %16102 = vst [vmem:[#allocation69_spill] sm:$0xff] %v13273_v24  ;;  %16103 = vst [vmem:[#allocation70_spill] sm:$0xff] %v13276_v9  ;;  %v13282_v16 = vadd.f32 %v13273_v24, %v13271_v13  ;;  %v13303_v24 = vmul.f32 %v13170_v23, %v13170_v23 }
 0x2fc   :  { %v1322_v12 = vpop.f32.mrf.mxu0  ;;  %v13284_v11 = vpop.f32.mrf.mxu1 }
 0x2fd   :  { %16104 = vst [vmem:[#allocation71_spill] sm:$0xff] %v13282_v16  ;;  %v13290_v2 = vmul.f32 %v1322_v12, %v1322_v12  ;;  %v13293_v61 = vmul.f32 %v1322_v12, %v13168_v22  ;;  %16109 = vst [vmem:[#allocation76_spill] sm:$0xff] %v13303_v24 }
 0x2fe   :  { %v1324_v20 = vpop.f32.mrf.mxu0  ;;  %v13295_v10 = vpop.f32.mrf.mxu1 }
 0x2ff   :  { %16106 = vst [vmem:[#allocation73_spill] sm:$0xff] %v13290_v2  ;;  %16107 = vst [vmem:[#allocation74_spill] sm:$0xff] %v13293_v61  ;;  %v13299_v18 = vadd.f32 %v13290_v2, %v13288_v1 }
 0x300   :  { %v1327_v9 = vpop.f32.mrf.mxu0  ;;  %v10575_v16 = vpop.f32.mrf.mxu1 }
 0x301   :  { %16108 = vst [vmem:[#allocation75_spill] sm:$0xff] %v13299_v18  ;;  %v13305_v13 = vmul.f32 %v1327_v9, %v1327_v9  ;;  %v13308_v38 = vmul.f32 %v1327_v9, %v13170_v23  ;;  %v13316_v18 = vmul.f32 %v13172_v25, %v13172_v25 }
 0x302   :  { %v1329_v22 = vpop.f32.mrf.mxu0  ;;  %v1568_v12 = vpop.f32.mrf.mxu1 }
 0x303   :  { %16110 = vst [vmem:[#allocation77_spill] sm:$0xff] %v13305_v13  ;;  %16111 = vst [vmem:[#allocation78_spill] sm:$0xff] %v13308_v38  ;;  %v13312_v20 = vadd.f32 %v13305_v13, %v13303_v24 }
 0x304   :  { %v1332_v61 = vpop.f32.mrf.mxu0  ;;  %v10578_v2 = vpop.f32.mrf.mxu1  ;;  %16113 = vst [vmem:[#allocation80_spill] sm:$0xff] %v13316_v18 }
 0x305   :  { %16112 = vst [vmem:[#allocation79_spill] sm:$0xff] %v13312_v20  ;;  %v13318_v1 = vmul.f32 %v1332_v61, %v1332_v61  ;;  %v13321_v15 = vmul.f32 %v1332_v61, %v13172_v25  ;;  %v13329_v20 = vmul.f32 %v13174_v29, %v13174_v29 }
 0x306   :  { %v1334_v26 = vpop.f32.mrf.mxu0  ;;  %v1578_v23 = vpop.f32.mrf.mxu1 }
 0x307   :  { %16114 = vst [vmem:[#allocation81_spill] sm:$0xff] %v13318_v1  ;;  %16115 = vst [vmem:[#allocation82_spill] sm:$0xff] %v13321_v15  ;;  %v13325_v9 = vadd.f32 %v13318_v1, %v13316_v18 }
 0x308   :  { %v1337_v22 = vpop.f32.mrf.mxu0  ;;  %v10581_v38 = vpop.f32.mrf.mxu1 }
 0x309   :  { %16116 = vst [vmem:[#allocation83_spill] sm:$0xff] %v13325_v9  ;;  %v13331_v13 = vmul.f32 %v1337_v22, %v1337_v22  ;;  %v13334_v24 = vmul.f32 %v1337_v22, %v13174_v29  ;;  %v13342_v9 = vmul.f32 %v13176_v27, %v13176_v27 }
 0x30a   :  { %v1339_v3 = vpop.f32.mrf.mxu0  ;;  %v1588_v25 = vpop.f32.mrf.mxu1 }
 0x30b   :  { %16117 = vst [vmem:[#allocation84_spill] sm:$0xff] %v13331_v13  ;;  %16118 = vst [vmem:[#allocation85_spill] sm:$0xff] %v13334_v24  ;;  %v13338_v61 = vadd.f32 %v13331_v13, %v13329_v20 }
 0x30c   :  { %v1342_v26 = vpop.f32.mrf.mxu0  ;;  %v10584_v15 = vpop.f32.mrf.mxu1 }
 0x30d   :  { %16119 = vst [vmem:[#allocation86_spill] sm:$0xff] %v13338_v61  ;;  %v13344_v1 = vmul.f32 %v1342_v26, %v1342_v26  ;;  %v13347_v18 = vmul.f32 %v1342_v26, %v13176_v27  ;;  %1648 = vmatpush1.msra.mxu1 %v10584_v15  ;;  %v13357_v61 = vmul.f32 %v13188_v4, %v13188_v4 }
 0x30e   :  { %v1344_v29 = vpop.f32.mrf.mxu0  ;;  %v1598_v22 = vpop.f32.mrf.mxu1  ;;  %1649 = vmatprep.subr.mxu1 %v16051_v58 }
 0x30f   :  { %16120 = vst [vmem:[#allocation87_spill] sm:$0xff] %v13347_v18  ;;  %v13352_v3 = vadd.f32 %v13344_v1, %v13342_v9  ;;  %1650 = vmatpush1.msra.mxu1 %v1598_v22  ;;  %v13374_v18 = vmul.f32 %v13200_v17, %v13200_v17 }
 0x310   :  { %v1347_v24 = vpop.f32.mrf.mxu0  ;;  %1651 = vmatprep.subr.mxu1 %v16051_v58  ;;  %v13365_v26 = vpop.f32.mrf.mxu1 }
 0x311   :  { %v13359_v13 = vmul.f32 %v1347_v24, %v1347_v24  ;;  %v13362_v27 = vmul.f32 %v1347_v24, %v13188_v4  ;;  %1652 = vmatpush1.msra.mxu1 %v10581_v38 }
 0x312   :  { %v1349_v15 = vpop.f32.mrf.mxu0  ;;  %1653 = vmatprep.subr.mxu1 %v16051_v58 }
 0x313   :  { %16121 = vst [vmem:[#allocation88_spill] sm:$0xff] %v13362_v27  ;;  %v13369_v29 = vadd.f32 %v13359_v13, %v13357_v61  ;;  %1654 = vmatpush1.msra.mxu1 %v1588_v25  ;;  %v13382_v15 = vpop.f32.mrf.mxu1 }
 0x314   :  { %v1352_v22 = vpop.f32.mrf.mxu0  ;;  %1655 = vmatprep.subr.mxu1 %v16051_v58 }
 0x315   :  { %16122 = vst [vmem:[#allocation89_spill] sm:$0xff] %v13369_v29  ;;  %v13376_v4 = vmul.f32 %v1352_v22, %v1352_v22  ;;  %v13379_v24 = vmul.f32 %v1352_v22, %v13200_v17  ;;  %1656 = vmatpush1.msra.mxu1 %v10578_v2  ;;  %v13391_v29 = vmul.f32 %v13212_v28, %v13212_v28 }
 0x316   :  { %v1354_v38 = vpop.f32.mrf.mxu0  ;;  %1657 = vmatprep.subr.mxu1 %v16051_v58 }
 0x317   :  { %16123 = vst [vmem:[#allocation90_spill] sm:$0xff] %v13376_v4  ;;  %16124 = vst [vmem:[#allocation91_spill] sm:$0xff] %v13379_v24  ;;  %v13386_v25 = vadd.f32 %v13376_v4, %v13374_v18  ;;  %1658 = vmatpush1.msra.mxu1 %v1578_v23  ;;  %v10590_v38 = vpop.f32.mrf.mxu1 }
 0x318   :  { %v1357_v27 = vpop.f32.mrf.mxu0  ;;  %1659 = vmatprep.subr.mxu1 %v16051_v58 }
 0x319   :  { %16125 = vst [vmem:[#allocation92_spill] sm:$0xff] %v13386_v25  ;;  %v13393_v17 = vmul.f32 %v1357_v27, %v1357_v27  ;;  %v13396_v2 = vmul.f32 %v1357_v27, %v13212_v28  ;;  %1660 = vmatpush1.msra.mxu1 %v10575_v16  ;;  %v13406_v25 = vmul.f32 %v13224_v19, %v13224_v19  ;;  %v1618_v27 = vpop.f32.mrf.mxu1 }
 0x31a   :  { %v1359_v22 = vpop.f32.mrf.mxu0  ;;  %1661 = vmatprep.subr.mxu1 %v16051_v58 }
 0x31b   :  { %16126 = vst [vmem:[#allocation93_spill] sm:$0xff] %v13393_v17  ;;  %16127 = vst [vmem:[#allocation94_spill] sm:$0xff] %v13396_v2  ;;  %v13401_v23 = vadd.f32 %v13393_v17, %v13391_v29  ;;  %1662 = vmatpush1.msra.mxu1 %v1568_v12 }
 0x31c   :  { %v1362_v24 = vpop.f32.mrf.mxu0  ;;  %1663 = vmatprep.subr.mxu1 %v16051_v58 }
 0x31d   :  { %16128 = vst [vmem:[#allocation95_spill] sm:$0xff] %v13401_v23  ;;  %v13408_v4 = vmul.f32 %v1362_v24, %v1362_v24  ;;  %v13411_v28 = vmul.f32 %v1362_v24, %v13224_v19  ;;  %1664 = vmatpush1.msra.mxu1 %v13284_v11  ;;  %v10593_v11 = vpop.f32.mrf.mxu1  ;;  %v13461_v23 = vld [vmem:[#allocation8 + $0x18] sm:$0xff] }
 0x31e   :  { %v1364_v16 = vpop.f32.mrf.mxu0  ;;  %1665 = vmatprep.subr.mxu1 %v16051_v58 }
 0x31f   :  { %16129 = vst [vmem:[#allocation96_spill] sm:$0xff] %v13408_v4  ;;  %16130 = vst [vmem:[#allocation97_spill] sm:$0xff] %v13411_v28  ;;  %v13417_v12 = vadd.f32 %v13408_v4, %v13406_v25  ;;  %1666 = vmatpush1.msra.mxu1 %v13295_v10  ;;  %v1628_v16 = vpop.f32.mrf.mxu1 }
 0x320   :  { %1667 = vmatprep.subr.mxu1 %v16051_v58  ;;  %v13421_v22 = vpop.f32.mrf.mxu0 }
 0x321   :  { %16131 = vst [vmem:[#allocation98_spill] sm:$0xff] %v13417_v12  ;;  %1668 = vmatpush1.msra.mxu1 %v13267_v14 }
 0x322   :  { %1669 = vmatprep.subr.mxu1 %v16051_v58  ;;  %v13425_v19 = vpop.f32.mrf.mxu0 }
 0x323   :  { %1670 = vmatpush1.msra.mxu1 %v13278_v55  ;;  %v10596_v55 = vpop.f32.mrf.mxu1 }
 0x324   :  { %1671 = vmatprep.subr.mxu1 %v16051_v58  ;;  %v13429_v24 = vpop.f32.mrf.mxu0 }
 0x325   :  { %1672 = vmatpush1.msra.mxu1 %v13250_v8  ;;  %v1638_v2 = vpop.f32.mrf.mxu1 }
 0x326   :  { %1673 = vmatprep.subr.mxu1 %v16051_v58  ;;  %v13433_v10 = vpop.f32.mrf.mxu0 }
 0x327   :  { %1674 = vmatpush1.msra.mxu1 %v13261_v5 }
 0x328   :  { %1675 = vmatprep.subr.mxu1 %v16051_v58  ;;  %v13437_v14 = vpop.f32.mrf.mxu0 }
 0x329   :  { %1676 = vmatpush1.msra.mxu1 %v13236_v53 }
 0x32a   :  { %1677 = vmatprep.subr.mxu1 %v16051_v58  ;;  %v13441_v28 = vpop.f32.mrf.mxu0 }
 0x32b   :  { %1678 = vmatpush1.msra.mxu1 %v13244_v6 }
 0x32c   :  { %1695 = vmatprep.subr.mxu1 %v16051_v58  ;;  %v13445_v8 = vpop.f32.mrf.mxu0 }
 0x32d   :  { %1696 = vmatpush2.msra.mxu1 %v10596_v55 }
 0x32e   :  { %1697 = vmatprep.subr.mxu1 %v16051_v58  ;;  %v13448_v5 = vpop.f32.mrf.mxu0 }
 0x32f   :  { %1698 = vmatpush2.msra.mxu1 %v1638_v2 }
 0x330   :  { %1699 = vmatprep.subr.mxu1 %v16051_v58  ;;  %v10619_v53 = vpop.f32.mrf.mxu0 }
 0x331   :  { %1700 = vmatpush2.msra.mxu1 %v10593_v11  ;;  %v13458_v11 = vld [vmem:[#allocation8] sm:$0xff] }
 0x332   :  { %1701 = vmatprep.subr.mxu1 %v16051_v58  ;;  %v1999_v12 = vpop.f32.mrf.mxu0 }
 0x333   :  { %1702 = vmatpush2.msra.mxu1 %v1628_v16 }
 0x334   :  { %1703 = vmatprep.subr.mxu1 %v16051_v58  ;;  %v10622_v6 = vpop.f32.mrf.mxu0 }
 0x335   :  { %1704 = vmatpush2.msra.mxu1 %v10590_v38  ;;  %v11748_v38 = vld [vmem:[#allocation7 + $0x18] sm:$0xff] }
 0x336   :  { %1705 = vmatprep.subr.mxu1 %v16051_v58  ;;  %v2009_v55 = vpop.f32.mrf.mxu0 }
 0x337   :  { %1706 = vmatpush2.msra.mxu1 %v1618_v27 }
 0x338   :  { %1707 = vmatprep.subr.mxu1 %v16051_v58  ;;  %v10625_v4 = vpop.f32.mrf.mxu0 }
 0x339   :  { %1708 = vmatpush2.msra.mxu1 %v13365_v26  ;;  %v11750_v26 = vld [vmem:[#allocation7 + $0x10] sm:$0xff] }
 0x33a   :  { %1709 = vmatprep.subr.mxu1 %v16051_v58  ;;  %v2019_v2 = vpop.f32.mrf.mxu0 }
 0x33b   :  { %1710 = vmatpush2.msra.mxu1 %v13382_v15  ;;  %v13466_v15 = vld [vmem:[#allocation8 + $0x10] sm:$0xff] }
 0x33c   :  { %1712 = vmatmul.mubr.f32.vlgmr.msra.gmra.mxu1 %v13458_v11  ;;  %v10628_v16 = vpop.f32.mrf.mxu0  ;;  %10641 = vmatprep.subr.mxu1 %v11748_v38 }
 0x33d   :  { %2079 = vmatpush1.msra.mxu0 %v10628_v16  ;;  %9454 = vmatprep.mubr.msk.f32.mxu1 %vm757_vm1, %v13461_v23  ;;  %v13472_v16 = vld [vmem:[#allocation8 + $0x28] sm:$0xff] }
 0x33e   :  { %v2029_v27 = vpop.f32.mrf.mxu0  ;;  %2080 = vmatprep.subr.mxu0 %v16051_v58  ;;  %10642 = vmatpush3.msra.mxu1 %v11748_v38  ;;  %v11753_v38 = vld [vmem:[#allocation7 + $0x8] sm:$0xff] }
 0x33f   :  { %2081 = vmatpush1.msra.mxu0 %v2029_v27  ;;  %10643 = vmatprep.subr.mxu1 %v11750_v26 }
 0x340   :  { %1717 = vmatmul.mubr.f32.gmra.mxu1 %v13466_v15  ;;  %2082 = vmatprep.subr.mxu0 %v16051_v58  ;;  %v13470_v17 = vpop.f32.mrf.mxu0 }
 0x341   :  { %2083 = vmatpush1.msra.mxu0 %v10625_v4  ;;  %9455 = vmatprep.mubr.msk.f32.mxu1 %vm757_vm1, %v13472_v16  ;;  %v11754_v4 = vld [vmem:[#allocation7] sm:$0xff] }
 0x342   :  { %2084 = vmatprep.subr.mxu0 %v16051_v58  ;;  %10644 = vmatpush3.msra.mxu1 %v11750_v26  ;;  %v13479_v27 = vpop.f32.mrf.mxu0  ;;  %v13658_v26 = vld [vmem:[#allocation5 + $0x40] sm:$0xff] }
 0x343   :  { %2085 = vmatpush1.msra.mxu0 %v2019_v2  ;;  %10645 = vmatprep.subr.mxu1 %v11753_v38  ;;  %16147 = vst [vmem:[#allocation114_spill] sm:$0xff] %v13658_v26 }
 0x344   :  { %1722 = vmatmul.mubr.f32.gmra.mxu1 %v12815_v48  ;;  %2086 = vmatprep.subr.mxu0 %v16051_v58  ;;  %v10634_v2 = vpop.f32.mrf.mxu0 }
 0x345   :  { %2087 = vmatpush1.msra.mxu0 %v10622_v6  ;;  %9456 = vmatprep.mubr.msk.f32.mxu1 %vm757_vm1, %v12818_v47  ;;  %v13651_v6 = vld [vmem:[#allocation8 + $0x88] sm:$0xff] }
 0x346   :  { %2088 = vmatprep.subr.mxu0 %v16051_v58  ;;  %10646 = vmatpush3.msra.mxu1 %v11753_v38  ;;  %v2049_v48 = vpop.f32.mrf.mxu0  ;;  %16146 = vst [vmem:[#allocation113_spill] sm:$0xff] %v13651_v6 }
 0x347   :  { %2089 = vmatpush1.msra.mxu0 %v2009_v55  ;;  %10647 = vmatprep.subr.mxu1 %v11754_v4  ;;  %v13656_v55 = vld [vmem:[#allocation2 + $0x40] sm:$0xff] }
 0x348   :  { %1727 = vmatmul.mubr.f32.gmra.mxu1 %v12828_v50  ;;  %2090 = vmatprep.subr.mxu0 %v16051_v58  ;;  %v10637_v47 = vpop.f32.mrf.mxu0  ;;  %v2236_v38 = vmul.f32 %v13658_v26, %v13656_v55  ;;  %v13725_v26 = vld [vmem:[#allocation8 + $0xb0] sm:$0xff] }
 0x349   :  { %2091 = vmatpush1.msra.mxu0 %v10619_v53  ;;  %9457 = vmatprep.mubr.msk.f32.mxu1 %vm757_vm1, %v12831_v46  ;;  %16160 = vst [vmem:[#allocation127_spill] sm:$0xff] %v13725_v26 }
 0x34a   :  { %2092 = vmatprep.subr.mxu0 %v16051_v58  ;;  %10648 = vmatpush3.msra.mxu1 %v11754_v4  ;;  %v2059_v50 = vpop.f32.mrf.mxu0  ;;  %v13666_v4 = vld [vmem:[#allocation2 + $0x48] sm:$0xff] }
 0x34b   :  { %2093 = vmatpush1.msra.mxu0 %v1999_v12  ;;  %2509 = vmatprep.subr.mxu1 %v16051_v58 }
 0x34c   :  { %1732 = vmatmul.mubr.f32.gmra.mxu1 %v12841_v52  ;;  %2094 = vmatprep.subr.mxu0 %v16051_v58  ;;  %v10640_v46 = vpop.f32.mrf.mxu0  ;;  %v13574_v52 = vld [vmem:[#allocation5] sm:$0xff] }
 0x34d   :  { %2095 = vmatpush1.msra.mxu0 %v13445_v8  ;;  %9458 = vmatprep.mubr.msk.f32.mxu1 %vm757_vm1, %v12844_v56  ;;  %16132 = vst [vmem:[#allocation99_spill] sm:$0xff] %v13574_v52  ;;  %v13645_v8 = vld [vmem:[#allocation2 + $0x38] sm:$0xff] }
 0x34e   :  { %2096 = vmatprep.subr.mxu0 %v16051_v58 }
 0x34f   :  { %2097 = vmatpush1.msra.mxu0 %v13448_v5  ;;  %v13647_v5 = vld [vmem:[#allocation5 + $0x38] sm:$0xff] }
 0x350   :  { %1737 = vmatmul.mubr.f32.gmra.mxu1 %v12853_v44  ;;  %2098 = vmatprep.subr.mxu0 %v16051_v58  ;;  %v13578_v44 = vld [vmem:[#allocation2 + $0x8] sm:$0xff]  ;;  %16145 = vst [vmem:[#allocation112_spill] sm:$0xff] %v13647_v5  ;;  %v2235_v53 = vmul.f32 %v13647_v5, %v13645_v8  ;;  %v13731_v5 = vld [vmem:[#allocation5 + $0x78] sm:$0xff] }
 0x351   :  { %2099 = vmatpush1.msra.mxu0 %v13437_v14  ;;  %9459 = vmatprep.mubr.msk.f32.mxu1 %vm757_vm1, %v12856_v59  ;;  %v13580_v59 = vld [vmem:[#allocation5 + $0x8] sm:$0xff]  ;;  %v13641_v14 = vld [vmem:[#allocation8 + $0x70] sm:$0xff]  ;;  %16161 = vst [vmem:[#allocation128_spill] sm:$0xff] %v13731_v5 }
 0x352   :  { %2100 = vmatprep.subr.mxu0 %v16051_v58  ;;  %16133 = vst [vmem:[#allocation100_spill] sm:$0xff] %v13580_v59  ;;  %16144 = vst [vmem:[#allocation111_spill] sm:$0xff] %v13641_v14 }
 0x353   :  { %2101 = vmatpush1.msra.mxu0 %v13441_v28  ;;  %v13626_v28 = vld [vmem:[#allocation5 + $0x28] sm:$0xff] }
 0x354   :  { %1742 = vmatmul.mubr.f32.gmra.mxu1 %v12864_v62  ;;  %2102 = vmatprep.subr.mxu0 %v16051_v58  ;;  %v2229_v62 = vmul.f32 %v13580_v59, %v13578_v44  ;;  %16141 = vst [vmem:[#allocation108_spill] sm:$0xff] %v13626_v28  ;;  %v13763_v59 = vld [vmem:[#allocation5 + $0x90] sm:$0xff] }
 0x355   :  { %2103 = vmatpush1.msra.mxu0 %v13429_v24  ;;  %9460 = vmatprep.mubr.msk.f32.mxu1 %vm757_vm1, %v12867_v36  ;;  %v2069_v36 = vpop.f32.mrf.mxu0  ;;  %v13637_v24 = vld [vmem:[#allocation5 + $0x30] sm:$0xff]  ;;  %16167 = vst [vmem:[#allocation134_spill] sm:$0xff] %v13763_v59 }
 0x356   :  { %2104 = vmatprep.subr.mxu0 %v16051_v58  ;;  %16143 = vst [vmem:[#allocation110_spill] sm:$0xff] %v13637_v24 }
 0x357   :  { %2105 = vmatpush1.msra.mxu0 %v13433_v10 }
 0x358   :  { %1747 = vmatmul.mubr.f32.gmra.mxu1 %v12875_v42  ;;  %2106 = vmatprep.subr.mxu0 %v16051_v58  ;;  %v13585_v42 = vld [vmem:[#allocation8 + $0x40] sm:$0xff] }
 0x359   :  { %2107 = vmatpush1.msra.mxu0 %v13421_v22  ;;  %9461 = vmatprep.mubr.msk.f32.mxu1 %vm757_vm1, %v12878_v35  ;;  %v13572_v35 = vld [vmem:[#allocation2] sm:$0xff]  ;;  %v13630_v22 = vld [vmem:[#allocation8 + $0x78] sm:$0xff] }
 0x35a   :  { %2108 = vmatprep.subr.mxu0 %v16051_v58  ;;  %v2228_v56 = vmul.f32 %v13574_v52, %v13572_v35  ;;  %16142 = vst [vmem:[#allocation109_spill] sm:$0xff] %v13630_v22  ;;  %v13767_v52 = vld [vmem:[#allocation8 + $0xd0] sm:$0xff] }
 0x35b   :  { %2109 = vmatpush1.msra.mxu0 %v13425_v19  ;;  %v13635_v19 = vld [vmem:[#allocation2 + $0x30] sm:$0xff]  ;;  %16168 = vst [vmem:[#allocation135_spill] sm:$0xff] %v13767_v52 }
 0x35c   :  { %1752 = vmatmul.mubr.f32.gmra.mxu1 %v12886_v40  ;;  %2126 = vmatprep.subr.mxu0 %v16051_v58  ;;  %v13588_v40 = vld [vmem:[#allocation8 + $0x58] sm:$0xff]  ;;  %v2234_v10 = vmul.f32 %v13637_v24, %v13635_v19  ;;  %v13735_v24 = vld [vmem:[#allocation8 + $0xc8] sm:$0xff] }
 0x35d   :  { %2127 = vmatpush2.msra.mxu0 %v10640_v46  ;;  %9462 = vmatprep.mubr.msk.f32.mxu1 %vm757_vm1, %v12889_v34  ;;  %v13568_v34 = vld [vmem:[#allocation8 + $0x48] sm:$0xff]  ;;  %16134 = vst [vmem:[#allocation101_spill] sm:$0xff] %v13588_v40  ;;  %v13679_v46 = vld [vmem:[#allocation5 + $0x50] sm:$0xff]  ;;  %16162 = vst [vmem:[#allocation129_spill] sm:$0xff] %v13735_v24 }
 0x35e   :  { %2128 = vmatprep.subr.mxu0 %v16051_v58  ;;  %16151 = vst [vmem:[#allocation118_spill] sm:$0xff] %v13679_v46 }
 0x35f   :  { %2129 = vmatpush2.msra.mxu0 %v2069_v36 }
 0x360   :  { %1757 = vmatmul.mubr.f32.gmra.mxu1 %v12896_v39  ;;  %2130 = vmatprep.subr.mxu0 %v16051_v58  ;;  %v13593_v39 = vld [vmem:[#allocation2 + $0x10] sm:$0xff] }
 0x361   :  { %2131 = vmatpush2.msra.mxu0 %v10637_v47  ;;  %9463 = vmatprep.mubr.msk.f32.mxu1 %vm757_vm1, %v12899_v33  ;;  %v13563_v33 = vld [vmem:[#allocation8 + $0x30] sm:$0xff]  ;;  %v13672_v47 = vld [vmem:[#allocation8 + $0x98] sm:$0xff] }
 0x362   :  { %2132 = vmatprep.subr.mxu0 %v16051_v58  ;;  %16150 = vst [vmem:[#allocation117_spill] sm:$0xff] %v13672_v47 }
 0x363   :  { %2133 = vmatpush2.msra.mxu0 %v2059_v50  ;;  %v13677_v50 = vld [vmem:[#allocation2 + $0x50] sm:$0xff] }
 0x364   :  { %1762 = vmatmul.mubr.f32.gmra.mxu1 %v12905_v51  ;;  %2134 = vmatprep.subr.mxu0 %v16051_v58  ;;  %v13595_v51 = vld [vmem:[#allocation5 + $0x10] sm:$0xff]  ;;  %v2238_v36 = vmul.f32 %v13679_v46, %v13677_v50  ;;  %v13714_v46 = vld [vmem:[#allocation8 + $0xb8] sm:$0xff] }
 0x365   :  { %2135 = vmatpush2.msra.mxu0 %v10634_v2  ;;  %9464 = vmatprep.mubr.msk.f32.mxu1 %vm757_vm1, %v12908_v31  ;;  %v13558_v31 = vld [vmem:[#allocation8 + $0x38] sm:$0xff]  ;;  %16135 = vst [vmem:[#allocation102_spill] sm:$0xff] %v13595_v51  ;;  %v13668_v2 = vld [vmem:[#allocation5 + $0x48] sm:$0xff]  ;;  %16158 = vst [vmem:[#allocation125_spill] sm:$0xff] %v13714_v46 }
 0x366   :  { %2136 = vmatprep.subr.mxu0 %v16051_v58  ;;  %16149 = vst [vmem:[#allocation116_spill] sm:$0xff] %v13668_v2 }
 0x367   :  { %2137 = vmatpush2.msra.mxu0 %v2049_v48  ;;  %v2237_v48 = vmul.f32 %v13668_v2, %v13666_v4  ;;  %v13721_v2 = vld [vmem:[#allocation5 + $0x70] sm:$0xff] }
 0x368   :  { %1767 = vmatmul.mubr.f32.gmra.mxu1 %v12915_v63  ;;  %2138 = vmatprep.subr.mxu0 %v16051_v58  ;;  %v2230_v63 = vmul.f32 %v13595_v51, %v13593_v39  ;;  %16159 = vst [vmem:[#allocation126_spill] sm:$0xff] %v13721_v2  ;;  %v13756_v51 = vld [vmem:[#allocation8 + $0xd8] sm:$0xff] }
 0x369   :  { %2139 = vmatpush2.msra.mxu0 %v13470_v17  ;;  %9465 = vmatprep.mubr.msk.f32.mxu1 %vm757_vm1, %v12918_v30  ;;  %v13553_v30 = vld [vmem:[#allocation8 + $0x20] sm:$0xff]  ;;  %v13624_v17 = vld [vmem:[#allocation2 + $0x28] sm:$0xff]  ;;  %16166 = vst [vmem:[#allocation133_spill] sm:$0xff] %v13756_v51 }
 0x36a   :  { %2140 = vmatprep.subr.mxu0 %v16051_v58  ;;  %v2233_v12 = vmul.f32 %v13626_v28, %v13624_v17  ;;  %v13742_v28 = vld [vmem:[#allocation5 + $0x80] sm:$0xff] }
 0x36b   :  { %2141 = vmatpush2.msra.mxu0 %v13479_v27  ;;  %v13662_v27 = vld [vmem:[#allocation8 + $0x80] sm:$0xff]  ;;  %16163 = vst [vmem:[#allocation130_spill] sm:$0xff] %v13742_v28 }
 0x36c   :  { %1772 = vmatmul.mubr.f32.gmra.mxu1 %v12925_v32  ;;  %2143 = vmatmul.mubr.f32.vlgmr.msra.gmra.mxu0 %v13458_v11  ;;  %v13599_v32 = vld [vmem:[#allocation8 + $0x50] sm:$0xff]  ;;  %16148 = vst [vmem:[#allocation115_spill] sm:$0xff] %v13662_v27 }
 0x36d   :  { %9466 = vmatprep.mubr.msk.f32.mxu1 %vm757_vm1, %v12928_v43  ;;  %9495 = vmatprep.mubr.msk.f32.mxu0 %vm757_vm1, %v13461_v23  ;;  %16136 = vst [vmem:[#allocation103_spill] sm:$0xff] %v13599_v32  ;;  %v13603_v43 = vld [vmem:[#allocation2 + $0x18] sm:$0xff] }
 0x370   :  { %1777 = vmatmul.mubr.f32.gmra.mxu1 %v12937_v49  ;;  %2148 = vmatmul.mubr.f32.gmra.mxu0 %v13466_v15  ;;  %v13605_v49 = vld [vmem:[#allocation5 + $0x18] sm:$0xff] }
 0x371   :  { %9467 = vmatprep.mubr.msk.f32.mxu1 %vm757_vm1, %v12939_v41  ;;  %9496 = vmatprep.mubr.msk.f32.mxu0 %vm757_vm1, %v13472_v16  ;;  %16137 = vst [vmem:[#allocation104_spill] sm:$0xff] %v13605_v49  ;;  %v2231_v41 = vmul.f32 %v13605_v49, %v13603_v43  ;;  %v13752_v49 = vld [vmem:[#allocation5 + $0x88] sm:$0xff] }
 0x372   :  { %16165 = vst [vmem:[#allocation132_spill] sm:$0xff] %v13752_v49 }
 0x374   :  { %1782 = vmatmul.mubr.f32.gmra.mxu1 %v12949_v57  ;;  %2153 = vmatmul.mubr.f32.gmra.mxu0 %v13553_v30  ;;  %v13609_v57 = vld [vmem:[#allocation8 + $0x68] sm:$0xff] }
 0x375   :  { %9468 = vmatprep.mubr.msk.f32.mxu1 %vm757_vm1, %v12951_v37  ;;  %9497 = vmatprep.mubr.msk.f32.mxu0 %vm757_vm1, %v13558_v31  ;;  %16138 = vst [vmem:[#allocation105_spill] sm:$0xff] %v13609_v57  ;;  %v13614_v37 = vld [vmem:[#allocation2 + $0x20] sm:$0xff] }
 0x378   :  { %1787 = vmatmul.mubr.f32.gmra.mxu1 %v12961_v60  ;;  %2158 = vmatmul.mubr.f32.gmra.mxu0 %v13563_v33  ;;  %v13616_v60 = vld [vmem:[#allocation5 + $0x20] sm:$0xff] }
 0x379   :  { %9469 = vmatprep.mubr.msk.f32.mxu1 %vm757_vm1, %v12963_v54  ;;  %9498 = vmatprep.mubr.msk.f32.mxu0 %vm757_vm1, %v13568_v34  ;;  %16139 = vst [vmem:[#allocation106_spill] sm:$0xff] %v13616_v60  ;;  %v2232_v54 = vmul.f32 %v13616_v60, %v13614_v37  ;;  %v13746_v60 = vld [vmem:[#allocation8 + $0xc0] sm:$0xff] }
 0x37a   :  { %16164 = vst [vmem:[#allocation131_spill] sm:$0xff] %v13746_v60 }
 0x37c   :  { %1792 = vmatmul.mubr.f32.gmra.mxu1 %v12973_v45  ;;  %2163 = vmatmul.mubr.f32.gmra.mxu0 %v13585_v42  ;;  %v13620_v45 = vld [vmem:[#allocation8 + $0x60] sm:$0xff] }
 0x37d   :  { %9499 = vmatprep.mubr.msk.f32.mxu0 %vm757_vm1, %v13588_v40  ;;  %10649 = vmatprep.mubr.msk.f32.mxu1 %vm373_vm0, %v2228_v56  ;;  %16140 = vst [vmem:[#allocation107_spill] sm:$0xff] %v13620_v45  ;;  %v13683_v56 = vld [vmem:[#allocation8 + $0x90] sm:$0xff] }
 0x37e   :  { %16152 = vst [vmem:[#allocation119_spill] sm:$0xff] %v13683_v56 }
 0x380   :  { %2168 = vmatmul.mubr.f32.gmra.mxu0 %v13599_v32  ;;  %10650 = vmatmul.mubr.msk.f32.vlgmr.msra.gmra.mxu1 %vm373_vm0, %v2229_v62  ;;  %v13687_v62 = vld [vmem:[#allocation2 + $0x58] sm:$0xff] }
 0x381   :  { %9500 = vmatprep.mubr.msk.f32.mxu0 %vm757_vm1, %v13609_v57  ;;  %10652 = vmatprep.mubr.msk.f32.mxu1 %vm373_vm0, %v2230_v63  ;;  %v13689_v63 = vld [vmem:[#allocation5 + $0x58] sm:$0xff] }
 0x382   :  { %16153 = vst [vmem:[#allocation120_spill] sm:$0xff] %v13689_v63 }
 0x384   :  { %2173 = vmatmul.mubr.f32.gmra.mxu0 %v13620_v45  ;;  %10653 = vmatmul.mubr.msk.f32.gmra.mxu1 %vm373_vm0, %v2231_v41  ;;  %v2239_v41 = vmul.f32 %v13689_v63, %v13687_v62  ;;  %v13710_v63 = vld [vmem:[#allocation5 + $0x68] sm:$0xff] }
 0x385   :  { %9501 = vmatprep.mubr.msk.f32.mxu0 %vm757_vm1, %v13630_v22  ;;  %10655 = vmatprep.mubr.msk.f32.mxu1 %vm373_vm0, %v2232_v54  ;;  %v13693_v54 = vld [vmem:[#allocation8 + $0xa8] sm:$0xff]  ;;  %16157 = vst [vmem:[#allocation124_spill] sm:$0xff] %v13710_v63  ;;  %v16190_v22 = vld [vmem:[#allocation66_spill] sm:$0xff] }
 0x386   :  { %16154 = vst [vmem:[#allocation121_spill] sm:$0xff] %v13693_v54 }
 0x388   :  { %2178 = vmatmul.mubr.f32.gmra.mxu0 %v13641_v14  ;;  %10656 = vmatmul.mubr.msk.f32.gmra.mxu1 %vm373_vm0, %v2233_v12  ;;  %v13698_v12 = vld [vmem:[#allocation2 + $0x60] sm:$0xff] }
 0x389   :  { %9502 = vmatprep.mubr.msk.f32.mxu0 %vm757_vm1, %v13651_v6  ;;  %10658 = vmatprep.mubr.msk.f32.mxu1 %vm373_vm0, %v2234_v10  ;;  %v13700_v10 = vld [vmem:[#allocation5 + $0x60] sm:$0xff] }
 0x38a   :  { %16155 = vst [vmem:[#allocation122_spill] sm:$0xff] %v13700_v10 }
 0x38c   :  { %2183 = vmatmul.mubr.f32.gmra.mxu0 %v13662_v27  ;;  %10659 = vmatmul.mubr.msk.f32.gmra.mxu1 %vm373_vm0, %v2235_v53  ;;  %v2240_v53 = vmul.f32 %v13700_v10, %v13698_v12  ;;  %v13719_v10 = vld [vmem:[#allocation2 + $0x70] sm:$0xff] }
 0x38d   :  { %9503 = vmatprep.mubr.msk.f32.mxu0 %vm757_vm1, %v13672_v47  ;;  %10661 = vmatprep.mubr.msk.f32.mxu1 %vm373_vm0, %v2236_v38  ;;  %v13704_v38 = vld [vmem:[#allocation8 + $0xa0] sm:$0xff]  ;;  %v13947_v47 = vstv %s499_s30 }
 0x38e   :  { %16156 = vst [vmem:[#allocation123_spill] sm:$0xff] %v13704_v38 }
 0x390   :  { %2188 = vmatmul.mubr.f32.gmra.mxu0 %v13683_v56  ;;  %10662 = vmatmul.mubr.msk.f32.gmra.mxu1 %vm373_vm0, %v2237_v48  ;;  %v13708_v48 = vld [vmem:[#allocation2 + $0x68] sm:$0xff] }
 0x391   :  { %9504 = vmatprep.mubr.msk.f32.mxu0 %vm757_vm1, %v13693_v54  ;;  %10664 = vmatprep.mubr.msk.f32.mxu1 %vm373_vm0, %v2238_v36  ;;  %v2241_v36 = vmul.f32 %v13710_v63, %v13708_v48  ;;  %v13729_v63 = vld [vmem:[#allocation2 + $0x78] sm:$0xff] }
 0x392   :  { %v13811_v54 = vld [vmem:[#allocation5 + $0xb8] sm:$0xff] }
 0x393   :  { %16176 = vst [vmem:[#allocation143_spill] sm:$0xff] %v13811_v54 }
 0x394   :  { %2193 = vmatmul.mubr.f32.gmra.mxu0 %v13704_v38  ;;  %10665 = vmatmul.mubr.msk.f32.gmra.mxu1 %vm373_vm0, %v2239_v41  ;;  %v2242_v41 = vmul.f32 %v13721_v2, %v13719_v10  ;;  %v13740_v2 = vld [vmem:[#allocation2 + $0x80] sm:$0xff]  ;;  %v13809_v38 = vld [vmem:[#allocation2 + $0xb8] sm:$0xff] }
 0x395   :  { %9505 = vmatprep.mubr.msk.f32.mxu0 %vm757_vm1, %v13714_v46  ;;  %10667 = vmatprep.mubr.msk.f32.mxu1 %vm373_vm0, %v2240_v53  ;;  %v2243_v53 = vmul.f32 %v13731_v5, %v13729_v63  ;;  %v13750_v5 = vld [vmem:[#allocation2 + $0x88] sm:$0xff]  ;;  %v13794_v46 = vld [vmem:[#allocation8 + $0xe0] sm:$0xff] }
 0x396   :  { %16173 = vst [vmem:[#allocation140_spill] sm:$0xff] %v13794_v46 }
 0x398   :  { %2198 = vmatmul.mubr.f32.gmra.mxu0 %v13725_v26  ;;  %10668 = vmatmul.mubr.msk.f32.gmra.mxu1 %vm373_vm0, %v2241_v36  ;;  %v2244_v36 = vmul.f32 %v13742_v28, %v13740_v2  ;;  %v13761_v28 = vld [vmem:[#allocation2 + $0x90] sm:$0xff]  ;;  %v13790_v26 = vld [vmem:[#allocation5 + $0xa8] sm:$0xff] }
 0x399   :  { %9506 = vmatprep.mubr.msk.f32.mxu0 %vm757_vm1, %v13735_v24  ;;  %10670 = vmatprep.mubr.msk.f32.mxu1 %vm373_vm0, %v2242_v41  ;;  %v2245_v41 = vmul.f32 %v13752_v49, %v13750_v5  ;;  %v13771_v49 = vld [vmem:[#allocation2 + $0x98] sm:$0xff]  ;;  %v13784_v24 = vld [vmem:[#allocation5 + $0xa0] sm:$0xff]  ;;  %16172 = vst [vmem:[#allocation139_spill] sm:$0xff] %v13790_v26 }
 0x39a   :  { %16171 = vst [vmem:[#allocation138_spill] sm:$0xff] %v13784_v24 }
 0x39c   :  { %2203 = vmatmul.mubr.f32.gmra.mxu0 %v13746_v60  ;;  %10671 = vmatmul.mubr.msk.f32.gmra.mxu1 %vm373_vm0, %v2243_v53  ;;  %v2246_v53 = vmul.f32 %v13763_v59, %v13761_v28  ;;  %v13773_v60 = vld [vmem:[#allocation5 + $0x98] sm:$0xff]  ;;  %v13782_v59 = vld [vmem:[#allocation2 + $0xa0] sm:$0xff] }
 0x39d   :  { %9507 = vmatprep.mubr.msk.f32.mxu0 %vm757_vm1, %v13756_v51  ;;  %10673 = vmatprep.mubr.msk.f32.mxu1 %vm373_vm0, %v2244_v36  ;;  %16169 = vst [vmem:[#allocation136_spill] sm:$0xff] %v13773_v60  ;;  %v2247_v36 = vmul.f32 %v13773_v60, %v13771_v49  ;;  %v13777_v51 = vld [vmem:[#allocation8 + $0xe8] sm:$0xff] }
 0x39e   :  { %16170 = vst [vmem:[#allocation137_spill] sm:$0xff] %v13777_v51 }
 0x3a0   :  { %2208 = vmatmul.mubr.f32.gmra.mxu0 %v13767_v52  ;;  %10674 = vmatmul.mubr.msk.f32.gmra.mxu1 %vm373_vm0, %v2245_v41  ;;  %v2248_v41 = vmul.f32 %v13784_v24, %v13782_v59  ;;  %v13788_v52 = vld [vmem:[#allocation2 + $0xa8] sm:$0xff]  ;;  %v13803_v24 = vld [vmem:[#allocation2 + $0xb0] sm:$0xff] }
 0x3a1   :  { %9508 = vmatprep.mubr.msk.f32.mxu0 %vm757_vm1, %v13777_v51  ;;  %10676 = vmatprep.mubr.msk.f32.mxu1 %vm373_vm0, %v2246_v53  ;;  %v2249_v60 = vmul.f32 %v13790_v26, %v13788_v52  ;;  %v13798_v53 = vld [vmem:[#allocation8 + $0xf8] sm:$0xff]  ;;  %v13805_v51 = vld [vmem:[#allocation5 + $0xb0] sm:$0xff] }
 0x3a2   :  { %16174 = vst [vmem:[#allocation141_spill] sm:$0xff] %v13798_v53  ;;  %16175 = vst [vmem:[#allocation142_spill] sm:$0xff] %v13805_v51  ;;  %v2250_v26 = vmul.f32 %v13805_v51, %v13803_v24  ;;  %v13824_v51 = vld [vmem:[#allocation8 + $0x100] sm:$0xf] }
 0x3a3   :  { %16179 = vst [vmem:[#allocation146_spill] sm:$0xff] %v13824_v51 }
 0x3a4   :  { %2213 = vmatmul.mubr.f32.gmra.mxu0 %v13794_v46  ;;  %10677 = vmatmul.mubr.msk.f32.gmra.mxu1 %vm373_vm0, %v2247_v36  ;;  %v2251_v36 = vmul.f32 %v13811_v54, %v13809_v38  ;;  %v13815_v46 = vld [vmem:[#allocation8 + $0xf0] sm:$0xff]  ;;  %v11832_v54 = vld [vmem:[#allocation8 + $0x8] sm:$0xff] }
 0x3a5   :  { %9509 = vmatprep.mubr.msk.f32.mxu0 %vm757_vm1, %v13798_v53  ;;  %10679 = vmatprep.mubr.msk.f32.mxu1 %vm373_vm0, %v2248_v41  ;;  %16177 = vst [vmem:[#allocation144_spill] sm:$0xff] %v13815_v46  ;;  %v13819_v41 = vld [vmem:[#allocation8 + $0x108] sm:$0xf]  ;;  %v16188_v53 = vld [vmem:[#allocation43_spill] sm:$0xff] }
 0x3a6   :  { %16178 = vst [vmem:[#allocation145_spill] sm:$0xff] %v13819_v41 }
 0x3a8   :  { %2218 = vmatmul.mubr.f32.gmra.mxu0 %v13815_v46  ;;  %10680 = vmatmul.mubr.msk.f32.gmra.mxu1 %vm373_vm0, %v2249_v60  ;;  %v13831_v60 = vld [vmem:[#allocation10 + $0x18] sm:$0xff] }
 0x3a9   :  { %9510 = vmatprep.mubr.msk.f32.mxu0 %vm757_vm1, %v13819_v41  ;;  %10682 = vmatprep.mubr.msk.f32.mxu1 %vm373_vm0, %v2250_v26  ;;  %v13835_v41 = vld [vmem:[#allocation10 + $0x10] sm:$0xff]  ;;  %v13839_v26 = vld [vmem:[#allocation10 + $0x8] sm:$0xff] }
 0x3aa   :  { %10685 = vmatprep.subr.mxu0 %v13831_v60 }
 0x3ab   :  { %10686 = vmatpush3.msra.mxu0 %v13831_v60 }
 0x3ac   :  { %2223 = vmatmul.mubr.f32.gmra.mxu0 %v13824_v51  ;;  %10683 = vmatmul.mubr.msk.f32.gmra.mxu1 %vm373_vm0, %v2251_v36 }
 0x3ad   :  { %10693 = vmatprep.mubr.msk.f32.mxu0 %vm373_vm0, %v13572_v35  ;;  %9535 = vmatprep.mubr.msk.f32.mxu1 %vm757_vm1, %v11832_v54  ;;  %v13843_v35 = vld [vmem:[#allocation10] sm:$0xff] }
 0x3ae   :  { %10687 = vmatprep.subr.mxu0 %v13835_v41 }
 0x3af   :  { %10688 = vmatpush3.msra.mxu0 %v13835_v41 }
 0x3b0   :  { %10689 = vmatprep.subr.mxu0 %v13839_v26 }
 0x3b1   :  { %10690 = vmatpush3.msra.mxu0 %v13839_v26 }
 0x3b2   :  { %10691 = vmatprep.subr.mxu0 %v13843_v35 }
 0x3b3   :  { %10692 = vmatpush3.msra.mxu0 %v13843_v35 }
 0x3b4   :  { %10694 = vmatmul.mubr.msk.f32.vlgmr.msra.gmra.mxu0 %vm373_vm0, %v13578_v44  ;;  %3346 = vmatprep.subr.mxu0 %v16051_v58 }
 0x3b5   :  { %10696 = vmatprep.mubr.msk.f32.mxu0 %vm373_vm0, %v13593_v39 }
 0x3b8   :  { %10697 = vmatmul.mubr.msk.f32.gmra.mxu0 %vm373_vm0, %v13603_v43 }
 0x3b9   :  { %10699 = vmatprep.mubr.msk.f32.mxu0 %vm373_vm0, %v13614_v37 }
 0x3bc   :  { %10700 = vmatmul.mubr.msk.f32.gmra.mxu0 %vm373_vm0, %v13624_v17 }
 0x3bd   :  { %10702 = vmatprep.mubr.msk.f32.mxu0 %vm373_vm0, %v13635_v19 }
 0x3c0   :  { %10703 = vmatmul.mubr.msk.f32.gmra.mxu0 %vm373_vm0, %v13645_v8 }
 0x3c1   :  { %10705 = vmatprep.mubr.msk.f32.mxu0 %vm373_vm0, %v13656_v55 }
 0x3c4   :  { %10706 = vmatmul.mubr.msk.f32.gmra.mxu0 %vm373_vm0, %v13666_v4 }
 0x3c5   :  { %10708 = vmatprep.mubr.msk.f32.mxu0 %vm373_vm0, %v13677_v50  ;;  %v16180_v50 = vld [vmem:[#allocation51_spill] sm:$0xff] }
 0x3c8   :  { %10709 = vmatmul.mubr.msk.f32.gmra.mxu0 %vm373_vm0, %v13687_v62 }
 0x3c9   :  { %10711 = vmatprep.mubr.msk.f32.mxu0 %vm373_vm0, %v13698_v12  ;;  %v16182_v12 = vld [vmem:[#allocation59_spill] sm:$0xff] }
 0x3cc   :  { %10712 = vmatmul.mubr.msk.f32.gmra.mxu0 %vm373_vm0, %v13708_v48 }
 0x3cd   :  { %10714 = vmatprep.mubr.msk.f32.mxu0 %vm373_vm0, %v13719_v10 }
 0x3d0   :  { %10715 = vmatmul.mubr.msk.f32.gmra.mxu0 %vm373_vm0, %v13729_v63 }
 0x3d1   :  { %10717 = vmatprep.mubr.msk.f32.mxu0 %vm373_vm0, %v13740_v2 }
 0x3d4   :  { %10718 = vmatmul.mubr.msk.f32.gmra.mxu0 %vm373_vm0, %v13750_v5 }
 0x3d5   :  { %10720 = vmatprep.mubr.msk.f32.mxu0 %vm373_vm0, %v13761_v28 }
 0x3d8   :  { %10721 = vmatmul.mubr.msk.f32.gmra.mxu0 %vm373_vm0, %v13771_v49  ;;  %v16181_v49 = vld [vmem:[#allocation55_spill] sm:$0xff] }
 0x3d9   :  { %10723 = vmatprep.mubr.msk.f32.mxu0 %vm373_vm0, %v13782_v59 }
 0x3dc   :  { %10724 = vmatmul.mubr.msk.f32.gmra.mxu0 %vm373_vm0, %v13788_v52 }
 0x3dd   :  { %10726 = vmatprep.mubr.msk.f32.mxu0 %vm373_vm0, %v13803_v24  ;;  %v16183_v24 = vld [vmem:[#allocation63_spill] sm:$0xff] }
 0x3e0   :  { %10727 = vmatmul.mubr.msk.f32.gmra.mxu0 %vm373_vm0, %v13809_v38  ;;  %v16184_v38 = vld [vmem:[#allocation68_spill] sm:$0xff] }
 0x3fc   :  { %v13874_v44 = vpop.f32.mrf.mxu1 }
 0x3fd   :  { %v16189_v6 = vsub.f32 %v13874_v44, %v13178_v0  ;;  %v16194_v44 = vld [vmem:[#allocation47_spill] sm:$0xff] }
 0x3fe   :  { %v1715_v43 = vpop.f32.mrf.mxu1 }
 0x400   :  { %v13882_v37 = vpop.f32.mrf.mxu1 }
 0x401   :  { %v16193_v0 = vsub.f32 %v13882_v37, %v13190_v7 }
 0x402   :  { %v1720_v19 = vpop.f32.mrf.mxu1 }
 0x404   :  { %v13890_v8 = vpop.f32.mrf.mxu1 }
 0x405   :  { %v16197_v7 = vsub.f32 %v13890_v8, %v13202_v21 }
 0x406   :  { %v1725_v4 = vpop.f32.mrf.mxu1 }
 0x407   :  { %v16187_v4 = vld [vmem:[#allocation80_spill] sm:$0xff] }
 0x408   :  { %v13898_v2 = vpop.f32.mrf.mxu1 }
 0x409   :  { %v16201_v21 = vsub.f32 %v13898_v2, %v16180_v50 }
 0x40a   :  { %v1730_v62 = vpop.f32.mrf.mxu1 }
 0x40c   :  { %v13906_v28 = vpop.f32.mrf.mxu1 }
 0x40d   :  { %v16206_v2 = vsub.f32 %v13906_v28, %v16181_v49 }
 0x40e   :  { %v1735_v54 = vpop.f32.mrf.mxu1 }
 0x410   :  { %v13914_v59 = vpop.f32.mrf.mxu1 }
 0x411   :  { %v16211_v28 = vsub.f32 %v13914_v59, %v16182_v12 }
 0x412   :  { %v1740_v10 = vpop.f32.mrf.mxu1 }
 0x413   :  { %v16185_v10 = vld [vmem:[#allocation72_spill] sm:$0xff] }
 0x414   :  { %v13918_v48 = vpop.f32.mrf.mxu1 }
 0x415   :  { %v16216_v59 = vsub.f32 %v13918_v48, %v16183_v24 }
 0x416   :  { %v1745_v43 = vpop.f32.mrf.mxu1 }
 0x417   :  { %v16186_v43 = vld [vmem:[#allocation76_spill] sm:$0xff] }
 0x418   :  { %v13922_v19 = vpop.f32.mrf.mxu1 }
 0x419   :  { %v16221_v48 = vsub.f32 %v13922_v19, %v16184_v38 }
 0x41a   :  { %v1750_v62 = vpop.f32.mrf.mxu1 }
 0x41b   :  { %v13949_v62 = vstv %s497_s4 }
 0x41c   :  { %v13926_v54 = vpop.f32.mrf.mxu1  ;;  %v2982_v45 = vadd.f32 %v16190_v22, %v13949_v62 }
 0x41d   :  { %v16226_v19 = vsub.f32 %v13926_v54, %v16185_v10 }
 0x41e   :  { %v1755_v63 = vpop.f32.mrf.mxu1 }
 0x420   :  { %v13930_v5 = vpop.f32.mrf.mxu1 }
 0x421   :  { %v16231_v54 = vsub.f32 %v13930_v5, %v16186_v43 }
 0x422   :  { %v1760_v55 = vpop.f32.mrf.mxu1 }
 0x424   :  { %v13934_v17 = vpop.f32.mrf.mxu1 }
 0x426   :  { %v1765_v39 = vpop.f32.mrf.mxu1 }
 0x428   :  { %v13938_v51 = vpop.f32.mrf.mxu1 }
 0x42a   :  { %v1770_v52 = vpop.f32.mrf.mxu1 }
 0x42c   :  { %v13942_v46 = vpop.f32.mrf.mxu1  ;;  %v2144_v36 = vpop.f32.mrf.mxu0 }
 0x42d   :  { %v2727_v56 = vsub.f32 %v2144_v36, %v16188_v53  ;;  %v16191_v36 = vld [vmem:[#allocation45_spill] sm:$0xff] }
 0x42e   :  { %v1775_v39 = vpop.f32.mrf.mxu1  ;;  %v2146_v27 = vpop.f32.mrf.mxu0 }
 0x42f   :  { %v2796_v63 = vadd.f32 %v2727_v56, %v16189_v6 }
 0x430   :  { %v13954_v14 = vpop.f32.mrf.mxu1  ;;  %v2149_v52 = vpop.f32.mrf.mxu0 }
 0x431   :  { %v13959_v55 = vadd.f32 %v2796_v63, %v13947_v47  ;;  %v2728_v57 = vsub.f32 %v2149_v52, %v16191_v36  ;;  %v2983_v63 = vadd.f32 %v16194_v44, %v13949_v62  ;;  %v16195_v36 = vld [vmem:[#allocation48_spill] sm:$0xff] }
 0x432   :  { %v1780_v39 = vpop.f32.mrf.mxu1  ;;  %v2151_v27 = vpop.f32.mrf.mxu0 }
 0x433   :  { %v13965_v32 = vmul.f32 %v2982_v45, %v13959_v55  ;;  %v2797_v6 = vadd.f32 %v2728_v57, %v16193_v0  ;;  %11647 = vrcp.f32 %v13959_v55 }
 0x434   :  { %v13970_v56 = vpop.f32.mrf.mxu1  ;;  %v2154_v22 = vpop.f32.mrf.mxu0 }
 0x435   :  { %16192 = vst [vmem:[#allocation51_spill] sm:$0xff] %v13965_v32  ;;  %v13975_v40 = vadd.f32 %v2797_v6, %v13947_v47  ;;  %v2729_v39 = vsub.f32 %v2154_v22, %v16195_v36  ;;  %v16198_v6 = vld [vmem:[#allocation50_spill] sm:$0xff]  ;;  %v16199_v36 = vld [vmem:[#allocation52_spill] sm:$0xff] }
 0x436   :  { %v1785_v45 = vpop.f32.mrf.mxu1  ;;  %v2156_v27 = vpop.f32.mrf.mxu0  ;;  %v2984_v44 = vadd.f32 %v16198_v6, %v13949_v62 }
 0x437   :  { %v13981_v53 = vmul.f32 %v2983_v63, %v13975_v40  ;;  %v2798_v57 = vadd.f32 %v2729_v39, %v16197_v7 }
 0x438   :  { %v13986_v37 = vpop.f32.mrf.mxu1  ;;  %v2159_v0 = vpop.f32.mrf.mxu0 }
 0x439   :  { %16196 = vst [vmem:[#allocation55_spill] sm:$0xff] %v13981_v53  ;;  %v13991_v32 = vadd.f32 %v2798_v57, %v13947_v47  ;;  %v2730_v45 = vsub.f32 %v2159_v0, %v16199_v36  ;;  %v16202_v57 = vld [vmem:[#allocation54_spill] sm:$0xff]  ;;  %v16204_v36 = vld [vmem:[#allocation56_spill] sm:$0xff] }
 0x43a   :  { %v1790_v63 = vpop.f32.mrf.mxu1  ;;  %v2161_v27 = vpop.f32.mrf.mxu0  ;;  %v2985_v6 = vadd.f32 %v16202_v57, %v13949_v62  ;;  %v16209_v0 = vld [vmem:[#allocation60_spill] sm:$0xff] }
 0x43b   :  { %v13997_v52 = vmul.f32 %v2984_v44, %v13991_v32  ;;  %v2799_v8 = vadd.f32 %v2730_v45, %v16201_v21 }
 0x43c   :  { %v14002_v39 = vpop.f32.mrf.mxu1  ;;  %v2164_v7 = vpop.f32.mrf.mxu0 }
 0x43d   :  { %16200 = vst [vmem:[#allocation59_spill] sm:$0xff] %v13997_v52  ;;  %v14007_v53 = vadd.f32 %v2799_v8, %v13947_v47  ;;  %v2731_v63 = vsub.f32 %v2164_v7, %v16204_v36  ;;  %v16207_v8 = vld [vmem:[#allocation58_spill] sm:$0xff] }
 0x43e   :  { %v1795_v44 = vpop.f32.mrf.mxu1  ;;  %v2166_v27 = vpop.f32.mrf.mxu0  ;;  %v2986_v57 = vadd.f32 %v16207_v8, %v13949_v62 }
 0x43f   :  { %16203 = vst [vmem:[#allocation63_spill] sm:$0xff] %v14007_v53  ;;  %v14013_v22 = vmul.f32 %v2985_v6, %v14007_v53  ;;  %v2800_v50 = vadd.f32 %v2731_v63, %v16206_v2  ;;  %v16212_v2 = vld [vmem:[#allocation62_spill] sm:$0xff] }
 0x440   :  { %v2169_v45 = vpop.f32.mrf.mxu0  ;;  %v14018_v21 = vpop.f32.mrf.mxu1  ;;  %v2987_v8 = vadd.f32 %v16212_v2, %v13949_v62  ;;  %v16217_v2 = vld [vmem:[#allocation67_spill] sm:$0xff] }
 0x441   :  { %16205 = vst [vmem:[#allocation68_spill] sm:$0xff] %v14013_v22  ;;  %v14023_v52 = vadd.f32 %v2800_v50, %v13947_v47  ;;  %v2732_v7 = vsub.f32 %v2169_v45, %v16209_v0  ;;  %v16214_v0 = vld [vmem:[#allocation64_spill] sm:$0xff] }
 0x442   :  { %v2171_v36 = vpop.f32.mrf.mxu0  ;;  %v14026_v44 = vpop.f32.mrf.mxu1 }
 0x443   :  { %16208 = vst [vmem:[#allocation72_spill] sm:$0xff] %v14023_v52  ;;  %v14029_v6 = vmul.f32 %v2986_v57, %v14023_v52  ;;  %v2801_v49 = vadd.f32 %v2732_v7, %v16211_v28 }
 0x444   :  { %v2174_v63 = vpop.f32.mrf.mxu0  ;;  %v14034_v27 = vpop.f32.mrf.mxu1 }
 0x445   :  { %16210 = vst [vmem:[#allocation76_spill] sm:$0xff] %v14029_v6  ;;  %v14039_v50 = vadd.f32 %v2801_v49, %v13947_v47  ;;  %v2733_v45 = vsub.f32 %v2174_v63, %v16214_v0  ;;  %v2988_v6 = vadd.f32 %v16217_v2, %v13949_v62  ;;  %v16219_v63 = vld [vmem:[#allocation69_spill] sm:$0xff]  ;;  %v16222_v2 = vld [vmem:[#allocation71_spill] sm:$0xff] }
 0x446   :  { %v2176_v36 = vpop.f32.mrf.mxu0  ;;  %v14042_v22 = vpop.f32.mrf.mxu1 }
 0x447   :  { %16213 = vst [vmem:[#allocation80_spill] sm:$0xff] %v14039_v50  ;;  %v14045_v57 = vmul.f32 %v2987_v8, %v14039_v50  ;;  %v2802_v12 = vadd.f32 %v2733_v45, %v16216_v59 }
 0x448   :  { %v2179_v7 = vpop.f32.mrf.mxu0  ;;  %v14050_v28 = vpop.f32.mrf.mxu1 }
 0x449   :  { %16215 = vst [vmem:[#allocation43_spill] sm:$0xff] %v14045_v57  ;;  %v14055_v49 = vadd.f32 %v2802_v12, %v13947_v47  ;;  %v2734_v0 = vsub.f32 %v2179_v7, %v16219_v63  ;;  %v2989_v57 = vadd.f32 %v16222_v2, %v13949_v62  ;;  %v16224_v7 = vld [vmem:[#allocation73_spill] sm:$0xff]  ;;  %v16227_v2 = vld [vmem:[#allocation75_spill] sm:$0xff] }
 0x44a   :  { %v2181_v36 = vpop.f32.mrf.mxu0  ;;  %v14058_v52 = vpop.f32.mrf.mxu1 }
 0x44b   :  { %16218 = vst [vmem:[#allocation66_spill] sm:$0xff] %v14055_v49  ;;  %v14061_v8 = vmul.f32 %v2988_v6, %v14055_v49  ;;  %v2803_v24 = vadd.f32 %v2734_v0, %v16221_v48 }
 0x44c   :  { %v2184_v45 = vpop.f32.mrf.mxu0  ;;  %v14066_v59 = vpop.f32.mrf.mxu1 }
 0x44d   :  { %16220 = vst [vmem:[#allocation45_spill] sm:$0xff] %v14061_v8  ;;  %v14071_v12 = vadd.f32 %v2803_v24, %v13947_v47  ;;  %v2735_v63 = vsub.f32 %v2184_v45, %v16224_v7  ;;  %v2990_v8 = vadd.f32 %v16227_v2, %v13949_v62  ;;  %v16229_v45 = vld [vmem:[#allocation77_spill] sm:$0xff] }
 0x44e   :  { %v2186_v36 = vpop.f32.mrf.mxu0  ;;  %v14074_v50 = vpop.f32.mrf.mxu1 }
 0x44f   :  { %16223 = vst [vmem:[#allocation47_spill] sm:$0xff] %v14071_v12  ;;  %v14077_v6 = vmul.f32 %v2989_v57, %v14071_v12  ;;  %v2804_v38 = vadd.f32 %v2735_v63, %v16226_v19  ;;  %v16233_v12 = vld [vmem:[#allocation81_spill] sm:$0xff] }
 0x450   :  { %v2189_v0 = vpop.f32.mrf.mxu0  ;;  %v14082_v48 = vpop.f32.mrf.mxu1 }
 0x451   :  { %16225 = vst [vmem:[#allocation48_spill] sm:$0xff] %v14077_v6  ;;  %v14087_v24 = vadd.f32 %v2804_v38, %v13947_v47  ;;  %v2736_v7 = vsub.f32 %v2189_v0, %v16229_v45  ;;  %v16232_v6 = vld [vmem:[#allocation79_spill] sm:$0xff] }
 0x452   :  { %v2191_v36 = vpop.f32.mrf.mxu0  ;;  %v14090_v49 = vpop.f32.mrf.mxu1  ;;  %v2991_v2 = vadd.f32 %v16232_v6, %v13949_v62 }
 0x453   :  { %16228 = vst [vmem:[#allocation50_spill] sm:$0xff] %v14087_v24  ;;  %v14093_v57 = vmul.f32 %v2990_v8, %v14087_v24  ;;  %v2805_v10 = vadd.f32 %v2736_v7, %v16231_v54  ;;  %v16235_v8 = vsub.f32 %v13934_v17, %v16187_v4  ;;  %v16236_v54 = vld [vmem:[#allocation83_spill] sm:$0xff] }
 0x454   :  { %v2194_v63 = vpop.f32.mrf.mxu0  ;;  %v10666_v19 = vpop.f32.mrf.mxu1 }
 0x455   :  { %16230 = vst [vmem:[#allocation52_spill] sm:$0xff] %v14093_v57  ;;  %v14101_v38 = vadd.f32 %v2805_v10, %v13947_v47  ;;  %v2737_v0 = vsub.f32 %v2194_v63, %v16233_v12  ;;  %v2992_v57 = vadd.f32 %v16236_v54, %v13949_v62  ;;  %v16237_v10 = vld [vmem:[#allocation84_spill] sm:$0xff] }
 0x456   :  { %v2196_v45 = vpop.f32.mrf.mxu0  ;;  %v2440_v36 = vpop.f32.mrf.mxu1 }
 0x457   :  { %v14105_v53 = vmul.f32 %v2991_v2, %v14101_v38  ;;  %v2806_v5 = vadd.f32 %v2737_v0, %v16235_v8  ;;  %v16238_v2 = vsub.f32 %v13938_v51, %v13329_v20  ;;  %v16239_v8 = vld [vmem:[#allocation86_spill] sm:$0xff]  ;;  %v16240_v20 = vsub.f32 %v13942_v46, %v13342_v9 }
 0x458   :  { %v2199_v43 = vpop.f32.mrf.mxu0  ;;  %v10669_v7 = vpop.f32.mrf.mxu1  ;;  %v16241_v46 = vsub.f32 %v13954_v14, %v13357_v61  ;;  %v16244_v14 = vsub.f32 %v13970_v56, %v13374_v18  ;;  %v16247_v56 = vsub.f32 %v13986_v37, %v13391_v29 }
 0x459   :  { %16234 = vst [vmem:[#allocation54_spill] sm:$0xff] %v14105_v53  ;;  %v14113_v6 = vadd.f32 %v2806_v5, %v13947_v47  ;;  %v2738_v24 = vsub.f32 %v2199_v43, %v16237_v10  ;;  %v2993_v53 = vadd.f32 %v16239_v8, %v13949_v62  ;;  %v16243_v8 = vld [vmem:[#allocation90_spill] sm:$0xff] }
 0x45a   :  { %v2201_v12 = vpop.f32.mrf.mxu0  ;;  %v2450_v63 = vpop.f32.mrf.mxu1 }
 0x45b   :  { %v14117_v45 = vmul.f32 %v2992_v57, %v14113_v6  ;;  %v2807_v17 = vadd.f32 %v2738_v24, %v16238_v2  ;;  %v2994_v12 = vadd.f32 %v13352_v3, %v13949_v62 }
 0x45c   :  { %v2204_v4 = vpop.f32.mrf.mxu0  ;;  %v10672_v0 = vpop.f32.mrf.mxu1 }
 0x45d   :  { %v14125_v54 = vadd.f32 %v2807_v17, %v13947_v47  ;;  %v2739_v5 = vsub.f32 %v2204_v4, %v13344_v1  ;;  %2510 = vmatpush1.msra.mxu1 %v10672_v0  ;;  %v16242_v0 = vld [vmem:[#allocation89_spill] sm:$0xff] }
 0x45e   :  { %v2206_v43 = vpop.f32.mrf.mxu0  ;;  %v2460_v10 = vpop.f32.mrf.mxu1  ;;  %2511 = vmatprep.subr.mxu1 %v16051_v58 }
 0x45f   :  { %v14130_v57 = vmul.f32 %v2993_v53, %v14125_v54  ;;  %v2808_v51 = vadd.f32 %v2739_v5, %v16240_v20  ;;  %2512 = vmatpush1.msra.mxu1 %v2460_v10 }
 0x460   :  { %v2209_v24 = vpop.f32.mrf.mxu0  ;;  %2513 = vmatprep.subr.mxu1 %v16051_v58  ;;  %v14143_v53 = vpop.f32.mrf.mxu1 }
 0x461   :  { %v14139_v1 = vadd.f32 %v2808_v51, %v13947_v47  ;;  %v2740_v2 = vsub.f32 %v2209_v24, %v13359_v13  ;;  %2514 = vmatpush1.msra.mxu1 %v10669_v7  ;;  %v2995_v13 = vadd.f32 %v16242_v0, %v13949_v62  ;;  %v16245_v51 = vld [vmem:[#allocation92_spill] sm:$0xff] }
 0x462   :  { %v2211_v17 = vpop.f32.mrf.mxu0  ;;  %2515 = vmatprep.subr.mxu1 %v16051_v58  ;;  %v2470_v10 = vpop.f32.mrf.mxu1  ;;  %v2996_v24 = vadd.f32 %v16245_v51, %v13949_v62 }
 0x463   :  { %v14146_v9 = vmul.f32 %v2994_v12, %v14139_v1  ;;  %v2809_v4 = vadd.f32 %v2740_v2, %v16241_v46  ;;  %2516 = vmatpush1.msra.mxu1 %v2450_v63  ;;  %v16246_v12 = vld [vmem:[#allocation93_spill] sm:$0xff] }
 0x464   :  { %v2214_v3 = vpop.f32.mrf.mxu0  ;;  %2517 = vmatprep.subr.mxu1 %v16051_v58  ;;  %v10678_v46 = vpop.f32.mrf.mxu1 }
 0x465   :  { %v14155_v7 = vadd.f32 %v2809_v4, %v13947_v47  ;;  %v2741_v5 = vsub.f32 %v2214_v3, %v16243_v8  ;;  %2518 = vmatpush1.msra.mxu1 %v10666_v19  ;;  %v16248_v3 = vld [vmem:[#allocation95_spill] sm:$0xff] }
 0x466   :  { %v2216_v43 = vpop.f32.mrf.mxu0  ;;  %2519 = vmatprep.subr.mxu1 %v16051_v58  ;;  %v2997_v0 = vadd.f32 %v16248_v3, %v13949_v62  ;;  %v16268_v3 = vld [vmem:[#allocation133_spill] sm:$0xff] }
 0x467   :  { %v14160_v61 = vmul.f32 %v2995_v13, %v14155_v7  ;;  %v2810_v63 = vadd.f32 %v2741_v5, %v16244_v14  ;;  %2520 = vmatpush1.msra.mxu1 %v2440_v36  ;;  %v16249_v13 = vld [vmem:[#allocation96_spill] sm:$0xff]  ;;  %v2480_v5 = vpop.f32.mrf.mxu1  ;;  %v16251_v14 = vld [vmem:[#allocation98_spill] sm:$0xff] }
 0x468   :  { %v2219_v20 = vpop.f32.mrf.mxu0  ;;  %2521 = vmatprep.subr.mxu1 %v16051_v58 }
 0x469   :  { %v14169_v19 = vadd.f32 %v2810_v63, %v13947_v47  ;;  %v2742_v2 = vsub.f32 %v2219_v20, %v16246_v12  ;;  %2522 = vmatpush1.msra.mxu1 %v14082_v48  ;;  %v2998_v63 = vadd.f32 %v16251_v14, %v13949_v62  ;;  %v10681_v20 = vpop.f32.mrf.mxu1  ;;  %v16273_v14 = vld [vmem:[#allocation144_spill] sm:$0xff] }
 0x46a   :  { %v2221_v17 = vpop.f32.mrf.mxu0  ;;  %2523 = vmatprep.subr.mxu1 %v16051_v58 }
 0x46b   :  { %v14175_v18 = vmul.f32 %v2996_v24, %v14169_v19  ;;  %v2811_v36 = vadd.f32 %v2742_v2, %v16247_v56  ;;  %2524 = vmatpush1.msra.mxu1 %v14090_v49  ;;  %v16250_v49 = vsub.f32 %v14002_v39, %v13406_v25  ;;  %v2490_v25 = vpop.f32.mrf.mxu1  ;;  %v16264_v24 = vld [vmem:[#allocation125_spill] sm:$0xff]  ;;  %v16265_v17 = vld [vmem:[#allocation127_spill] sm:$0xff] }
 0x46c   :  { %v2224_v4 = vpop.f32.mrf.mxu0  ;;  %2525 = vmatprep.subr.mxu1 %v16051_v58 }
 0x46d   :  { %v14185_v48 = vadd.f32 %v2811_v36, %v13947_v47  ;;  %v2743_v8 = vsub.f32 %v2224_v4, %v16249_v13  ;;  %2526 = vmatpush1.msra.mxu1 %v14066_v59  ;;  %v10684_v39 = vpop.f32.mrf.mxu1  ;;  %v16267_v4 = vld [vmem:[#allocation131_spill] sm:$0xff] }
 0x46e   :  { %2527 = vmatprep.subr.mxu1 %v16051_v58  ;;  %v2226_v29 = vpop.f32.mrf.mxu0 }
 0x46f   :  { %v14191_v37 = vmul.f32 %v2997_v0, %v14185_v48  ;;  %v2812_v43 = vadd.f32 %v2743_v8, %v16250_v49  ;;  %2528 = vmatpush1.msra.mxu1 %v14074_v50  ;;  %v16262_v50 = vld [vmem:[#allocation121_spill] sm:$0xff]  ;;  %v16269_v8 = vld [vmem:[#allocation135_spill] sm:$0xff]  ;;  %v16271_v49 = vld [vmem:[#allocation140_spill] sm:$0xff] }
 0x470   :  { %2529 = vmatprep.subr.mxu1 %v16051_v58 }
 0x471   :  { %v14201_v59 = vadd.f32 %v2812_v43, %v13947_v47  ;;  %2530 = vmatpush1.msra.mxu1 %v14050_v28  ;;  %v16272_v43 = vld [vmem:[#allocation141_spill] sm:$0xff] }
 0x472   :  { %2531 = vmatprep.subr.mxu1 %v16051_v58 }
 0x473   :  { %v14206_v51 = vmul.f32 %v2998_v63, %v14201_v59  ;;  %2532 = vmatpush1.msra.mxu1 %v14058_v52  ;;  %v2500_v52 = vpop.f32.mrf.mxu1  ;;  %v16274_v63 = vld [vmem:[#allocation145_spill] sm:$0xff] }
 0x474   :  { %2533 = vmatprep.subr.mxu1 %v16051_v58 }
 0x475   :  { %2534 = vmatpush1.msra.mxu1 %v14034_v27  ;;  %v16261_v27 = vld [vmem:[#allocation119_spill] sm:$0xff] }
 0x476   :  { %2535 = vmatprep.subr.mxu1 %v16051_v58 }
 0x477   :  { %2536 = vmatpush1.msra.mxu1 %v14042_v22  ;;  %v16260_v22 = vld [vmem:[#allocation117_spill] sm:$0xff] }
 0x478   :  { %2537 = vmatprep.subr.mxu1 %v16051_v58 }
 0x479   :  { %2538 = vmatpush1.msra.mxu1 %v14018_v21 }
 0x47a   :  { %2539 = vmatprep.subr.mxu1 %v16051_v58 }
 0x47b   :  { %2540 = vmatpush1.msra.mxu1 %v14026_v44 }
 0x47c   :  { %2557 = vmatprep.subr.mxu1 %v16051_v58 }
 0x47d   :  { %2558 = vmatpush2.msra.mxu1 %v10684_v39  ;;  %v16277_v39 = vld [vmem:[#allocation100_spill] sm:$0xff] }
 0x47e   :  { %2559 = vmatprep.subr.mxu1 %v16051_v58 }
 0x47f   :  { %2560 = vmatpush2.msra.mxu1 %v2500_v52  ;;  %v16278_v52 = vld [vmem:[#allocation102_spill] sm:$0xff] }
 0x480   :  { %2561 = vmatprep.subr.mxu1 %v16051_v58 }
 0x481   :  { %2562 = vmatpush2.msra.mxu1 %v10681_v20  ;;  %v16275_v20 = vld [vmem:[#allocation146_spill] sm:$0xff] }
 0x482   :  { %2563 = vmatprep.subr.mxu1 %v16051_v58 }
 0x483   :  { %2564 = vmatpush2.msra.mxu1 %v2490_v25  ;;  %v16276_v25 = vld [vmem:[#allocation99_spill] sm:$0xff] }
 0x484   :  { %2565 = vmatprep.subr.mxu1 %v16051_v58 }
 0x485   :  { %2566 = vmatpush2.msra.mxu1 %v10678_v46  ;;  %v16266_v46 = vld [vmem:[#allocation129_spill] sm:$0xff] }
 0x486   :  { %2567 = vmatprep.subr.mxu1 %v16051_v58 }
 0x487   :  { %2568 = vmatpush2.msra.mxu1 %v2480_v5  ;;  %v16270_v5 = vld [vmem:[#allocation137_spill] sm:$0xff] }
 0x488   :  { %2569 = vmatprep.subr.mxu1 %v16051_v58 }
 0x489   :  { %2570 = vmatpush2.msra.mxu1 %v14143_v53 }
 0x48a   :  { %2571 = vmatprep.subr.mxu1 %v16051_v58 }
 0x48b   :  { %2572 = vmatpush2.msra.mxu1 %v2470_v10  ;;  %v16263_v10 = vld [vmem:[#allocation123_spill] sm:$0xff] }
 0x48c   :  { %2574 = vmatmul.mubr.f32.vlgmr.msra.gmra.mxu1 %v13458_v11  ;;  %10729 = vmatprep.subr.mxu1 %v13831_v60  ;;  %v16253_v11 = vld [vmem:[#allocation103_spill] sm:$0xff] }
 0x48d   :  { %9536 = vmatprep.mubr.msk.f32.mxu1 %vm757_vm1, %v13461_v23  ;;  %10730 = vmatpush3.msra.mxu1 %v13831_v60  ;;  %v16252_v23 = vld [vmem:[#allocation101_spill] sm:$0xff] }
 0x48e   :  { %10731 = vmatprep.subr.mxu1 %v13835_v41 }
 0x48f   :  { %10732 = vmatpush3.msra.mxu1 %v13835_v41  ;;  %v16258_v41 = vld [vmem:[#allocation113_spill] sm:$0xff] }
 0x490   :  { %2579 = vmatmul.mubr.f32.gmra.mxu1 %v13466_v15  ;;  %10733 = vmatprep.subr.mxu1 %v13839_v26  ;;  %v16254_v15 = vld [vmem:[#allocation105_spill] sm:$0xff] }
 0x491   :  { %9537 = vmatprep.mubr.msk.f32.mxu1 %vm757_vm1, %v13472_v16  ;;  %10734 = vmatpush3.msra.mxu1 %v13839_v26  ;;  %v14252_v16 = vpop.f32.mrf.mxu0 }
 0x492   :  { %10735 = vmatprep.subr.mxu1 %v13843_v35 }
 0x493   :  { %10736 = vmatpush3.msra.mxu1 %v13843_v35  ;;  %v16259_v35 = vld [vmem:[#allocation115_spill] sm:$0xff] }
 0x494   :  { %2584 = vmatmul.mubr.f32.gmra.mxu1 %v13553_v30  ;;  %v16255_v30 = vld [vmem:[#allocation107_spill] sm:$0xff] }
 0x495   :  { %9538 = vmatprep.mubr.msk.f32.mxu1 %vm757_vm1, %v13558_v31  ;;  %v16256_v31 = vld [vmem:[#allocation109_spill] sm:$0xff] }
 0x498   :  { %2589 = vmatmul.mubr.f32.gmra.mxu1 %v13563_v33  ;;  %v14257_v33 = vpop.f32.mrf.mxu0 }
 0x499   :  { %9539 = vmatprep.mubr.msk.f32.mxu1 %vm757_vm1, %v13568_v34 }
 0x49a   :  { %v14259_v34 = vpop.f32.mrf.mxu0 }
 0x49c   :  { %2594 = vmatmul.mubr.f32.gmra.mxu1 %v13585_v42  ;;  %v16257_v42 = vld [vmem:[#allocation111_spill] sm:$0xff]  ;;  %v14264_v60 = vpop.f32.mrf.mxu0 }
 0x49d   :  { %9540 = vmatprep.mubr.msk.f32.mxu1 %vm757_vm1, %v16252_v23 }
 0x49e   :  { %v10701_v26 = vpop.f32.mrf.mxu0 }
 0x4a0   :  { %2599 = vmatmul.mubr.f32.gmra.mxu1 %v16253_v11  ;;  %v3211_v21 = vpop.f32.mrf.mxu0  ;;  %v16279_v11 = vld [vmem:[#allocation104_spill] sm:$0xff] }
 0x4a1   :  { %9541 = vmatprep.mubr.msk.f32.mxu1 %vm757_vm1, %v16254_v15  ;;  %v16280_v15 = vld [vmem:[#allocation106_spill] sm:$0xff] }
 0x4a2   :  { %v10704_v44 = vpop.f32.mrf.mxu0 }
 0x4a4   :  { %2604 = vmatmul.mubr.f32.gmra.mxu1 %v16255_v30  ;;  %v3221_v28 = vpop.f32.mrf.mxu0 }
 0x4a5   :  { %9542 = vmatprep.mubr.msk.f32.mxu1 %vm757_vm1, %v16256_v31 }
 0x4a6   :  { %v10707_v53 = vpop.f32.mrf.mxu0 }
 0x4a8   :  { %2609 = vmatmul.mubr.f32.gmra.mxu1 %v16257_v42  ;;  %v3231_v12 = vpop.f32.mrf.mxu0  ;;  %v16281_v42 = vld [vmem:[#allocation108_spill] sm:$0xff] }
 0x4a9   :  { %9543 = vmatprep.mubr.msk.f32.mxu1 %vm757_vm1, %v16258_v41  ;;  %v16282_v41 = vld [vmem:[#allocation110_spill] sm:$0xff] }
 0x4aa   :  { %v10710_v2 = vpop.f32.mrf.mxu0 }
 0x4ac   :  { %2614 = vmatmul.mubr.f32.gmra.mxu1 %v16259_v35  ;;  %v3241_v56 = vpop.f32.mrf.mxu0 }
 0x4ad   :  { %9544 = vmatprep.mubr.msk.f32.mxu1 %vm757_vm1, %v16260_v22  ;;  %v16283_v22 = vld [vmem:[#allocation112_spill] sm:$0xff] }
 0x4ae   :  { %v10713_v36 = vpop.f32.mrf.mxu0 }
 0x4b0   :  { %2619 = vmatmul.mubr.f32.gmra.mxu1 %v16261_v27  ;;  %v3251_v0 = vpop.f32.mrf.mxu0  ;;  %v16286_v27 = vld [vmem:[#allocation118_spill] sm:$0xff] }
 0x4b1   :  { %9545 = vmatprep.mubr.msk.f32.mxu1 %vm757_vm1, %v16262_v50 }
 0x4b2   :  { %v10716_v13 = vpop.f32.mrf.mxu0 }
 0x4b3   :  { %3347 = vmatpush1.msra.mxu0 %v10716_v13  ;;  %v14376_v13 = vld [vmem:[#allocation11 + $0x20] sm:$0xff] }
 0x4b4   :  { %2624 = vmatmul.mubr.f32.gmra.mxu1 %v16263_v10  ;;  %v3261_v29 = vpop.f32.mrf.mxu0  ;;  %3348 = vmatprep.subr.mxu0 %v16051_v58  ;;  %v16291_v10 = vld [vmem:[#allocation128_spill] sm:$0xff] }
 0x4b5   :  { %9546 = vmatprep.mubr.msk.f32.mxu1 %vm757_vm1, %v16264_v24  ;;  %3349 = vmatpush1.msra.mxu0 %v3261_v29  ;;  %v16292_v24 = vld [vmem:[#allocation130_spill] sm:$0xff]  ;;  %v14383_v29 = vld [vmem:[#allocation11 + $0x38] sm:$0xff] }
 0x4b6   :  { %3350 = vmatprep.subr.mxu0 %v16051_v58  ;;  %v10719_v23 = vpop.f32.mrf.mxu0 }
 0x4b7   :  { %3351 = vmatpush1.msra.mxu0 %v10713_v36  ;;  %v14365_v36 = vld [vmem:[#allocation11 + $0x10] sm:$0xff] }
 0x4b8   :  { %2629 = vmatmul.mubr.f32.gmra.mxu1 %v16265_v17  ;;  %3352 = vmatprep.subr.mxu0 %v16051_v58  ;;  %v3271_v30 = vpop.f32.mrf.mxu0  ;;  %v16293_v17 = vld [vmem:[#allocation132_spill] sm:$0xff] }
 0x4b9   :  { %9547 = vmatprep.mubr.msk.f32.mxu1 %vm757_vm1, %v16266_v46  ;;  %3353 = vmatpush1.msra.mxu0 %v3251_v0  ;;  %v16294_v46 = vld [vmem:[#allocation134_spill] sm:$0xff] }
 0x4ba   :  { %3354 = vmatprep.subr.mxu0 %v16051_v58  ;;  %v10722_v31 = vpop.f32.mrf.mxu0  ;;  %v14372_v0 = vld [vmem:[#allocation11 + $0x28] sm:$0xff] }
 0x4bb   :  { %3355 = vmatpush1.msra.mxu0 %v10710_v2  ;;  %v14353_v2 = vld [vmem:[#allocation11] sm:$0xff] }
 0x4bc   :  { %2634 = vmatmul.mubr.f32.gmra.mxu1 %v16267_v4  ;;  %3356 = vmatprep.subr.mxu0 %v16051_v58  ;;  %v3281_v35 = vpop.f32.mrf.mxu0  ;;  %v16295_v4 = vld [vmem:[#allocation136_spill] sm:$0xff] }
 0x4bd   :  { %9548 = vmatprep.mubr.msk.f32.mxu1 %vm757_vm1, %v16268_v3  ;;  %3357 = vmatpush1.msra.mxu0 %v3241_v56  ;;  %v14361_v56 = vld [vmem:[#allocation11 + $0x18] sm:$0xff]  ;;  %v16296_v3 = vld [vmem:[#allocation138_spill] sm:$0xff] }
 0x4be   :  { %3358 = vmatprep.subr.mxu0 %v16051_v58 }
 0x4bf   :  { %3359 = vmatpush1.msra.mxu0 %v10707_v53  ;;  %v16290_v53 = vld [vmem:[#allocation126_spill] sm:$0xff] }
 0x4c0   :  { %2639 = vmatmul.mubr.f32.gmra.mxu1 %v16269_v8  ;;  %3360 = vmatprep.subr.mxu0 %v16051_v58  ;;  %v16297_v8 = vld [vmem:[#allocation139_spill] sm:$0xff] }
 0x4c1   :  { %9549 = vmatprep.mubr.msk.f32.mxu1 %vm757_vm1, %v16270_v5  ;;  %3361 = vmatpush1.msra.mxu0 %v3231_v12  ;;  %v3102_v12 = vld [vmem:[#allocation11 + $0x8] sm:$0xff] }
 0x4c2   :  { %3362 = vmatprep.subr.mxu0 %v16051_v58  ;;  %9576 = vmatprep.mubr.msk.f32.mxu0 %vm757_vm1, %v3102_v12  ;;  %v16298_v5 = vld [vmem:[#allocation142_spill] sm:$0xff] }
 0x4c3   :  { %3363 = vmatpush1.msra.mxu0 %v10704_v44 }
 0x4c4   :  { %2644 = vmatmul.mubr.f32.gmra.mxu1 %v16271_v49  ;;  %3364 = vmatprep.subr.mxu0 %v16051_v58  ;;  %v14387_v49 = vld [vmem:[#allocation11 + $0x30] sm:$0xff] }
 0x4c5   :  { %9550 = vmatprep.mubr.msk.f32.mxu1 %vm757_vm1, %v16272_v43  ;;  %3365 = vmatpush1.msra.mxu0 %v3221_v28  ;;  %v16289_v28 = vld [vmem:[#allocation124_spill] sm:$0xff]  ;;  %v16299_v43 = vld [vmem:[#allocation143_spill] sm:$0xff] }
 0x4c6   :  { %3366 = vmatprep.subr.mxu0 %v16051_v58 }
 0x4c7   :  { %3367 = vmatpush1.msra.mxu0 %v10701_v26  ;;  %v10725_v26 = vpop.f32.mrf.mxu0 }
 0x4c8   :  { %2649 = vmatmul.mubr.f32.gmra.mxu1 %v16273_v14  ;;  %3368 = vmatprep.subr.mxu0 %v16051_v58  ;;  %v14392_v14 = vld [vmem:[#allocation11 + $0x48] sm:$0xff] }
 0x4c9   :  { %9551 = vmatprep.mubr.msk.f32.mxu1 %vm757_vm1, %v16274_v63  ;;  %3369 = vmatpush1.msra.mxu0 %v3211_v21  ;;  %v16284_v21 = vld [vmem:[#allocation114_spill] sm:$0xff]  ;;  %v14396_v63 = vld [vmem:[#allocation11 + $0x40] sm:$0xff] }
 0x4ca   :  { %3370 = vmatprep.subr.mxu0 %v16051_v58 }
 0x4cb   :  { %3371 = vmatpush1.msra.mxu0 %v14259_v34  ;;  %v3291_v34 = vpop.f32.mrf.mxu0 }
 0x4cc   :  { %2654 = vmatmul.mubr.f32.gmra.mxu1 %v16275_v20  ;;  %3372 = vmatprep.subr.mxu0 %v16051_v58  ;;  %v14399_v20 = vld [vmem:[#allocation11 + $0x58] sm:$0xff] }
 0x4cd   :  { %10737 = vmatprep.mubr.msk.f32.mxu1 %vm373_vm0, %v16276_v25  ;;  %3373 = vmatpush1.msra.mxu0 %v14264_v60  ;;  %v10728_v44 = vpop.f32.mrf.mxu0  ;;  %v16285_v60 = vld [vmem:[#allocation116_spill] sm:$0xff]  ;;  %v14403_v25 = vld [vmem:[#allocation11 + $0x50] sm:$0xff] }
 0x4ce   :  { %3374 = vmatprep.subr.mxu0 %v16051_v58 }
 0x4cf   :  { %3375 = vmatpush1.msra.mxu0 %v14252_v16  ;;  %v3301_v50 = vpop.f32.mrf.mxu0  ;;  %v16287_v16 = vld [vmem:[#allocation120_spill] sm:$0xff] }
 0x4d0   :  { %10738 = vmatmul.mubr.msk.f32.vlgmr.msra.gmra.mxu1 %vm373_vm0, %v16277_v39  ;;  %3376 = vmatprep.subr.mxu0 %v16051_v58  ;;  %v14406_v39 = vld [vmem:[#allocation11 + $0x68] sm:$0xff] }
 0x4d1   :  { %10740 = vmatprep.mubr.msk.f32.mxu1 %vm373_vm0, %v16278_v52  ;;  %3377 = vmatpush1.msra.mxu0 %v14257_v33  ;;  %v16288_v33 = vld [vmem:[#allocation122_spill] sm:$0xff]  ;;  %v14410_v52 = vld [vmem:[#allocation11 + $0x60] sm:$0xff] }
 0x4d2   :  { %3394 = vmatprep.subr.mxu0 %v16051_v58 }
 0x4d3   :  { %3395 = vmatpush2.msra.mxu0 %v10728_v44 }
 0x4d4   :  { %10741 = vmatmul.mubr.msk.f32.gmra.mxu1 %vm373_vm0, %v16279_v11  ;;  %3396 = vmatprep.subr.mxu0 %v16051_v58  ;;  %v14417_v11 = vld [vmem:[#allocation11 + $0x70] sm:$0xff] }
 0x4d5   :  { %10743 = vmatprep.mubr.msk.f32.mxu1 %vm373_vm0, %v16280_v15  ;;  %3397 = vmatpush2.msra.mxu0 %v3301_v50  ;;  %v14420_v15 = vld [vmem:[#allocation11 + $0x88] sm:$0xff] }
 0x4d6   :  { %3398 = vmatprep.subr.mxu0 %v16051_v58 }
 0x4d7   :  { %3399 = vmatpush2.msra.mxu0 %v10725_v26  ;;  %v14441_v26 = vld [vmem:[#allocation11 + $0xb8] sm:$0xff] }
 0x4d8   :  { %10744 = vmatmul.mubr.msk.f32.gmra.mxu1 %vm373_vm0, %v16281_v42  ;;  %3400 = vmatprep.subr.mxu0 %v16051_v58  ;;  %v14431_v42 = vld [vmem:[#allocation11 + $0x90] sm:$0xff]  ;;  %16301 = vst [vmem:[#allocation58_spill] sm:$0xff] %v14441_v26 }
 0x4d9   :  { %10746 = vmatprep.mubr.msk.f32.mxu1 %vm373_vm0, %v16282_v41  ;;  %3401 = vmatpush2.msra.mxu0 %v3291_v34  ;;  %v14434_v41 = vld [vmem:[#allocation11 + $0xa8] sm:$0xff]  ;;  %v16304_v34 = vld [vmem:[#allocation55_spill] sm:$0xff] }
 0x4da   :  { %3402 = vmatprep.subr.mxu0 %v16051_v58 }
 0x4db   :  { %3403 = vmatpush2.msra.mxu0 %v10722_v31  ;;  %v14427_v31 = vld [vmem:[#allocation11 + $0x98] sm:$0xff] }
 0x4dc   :  { %10747 = vmatmul.mubr.msk.f32.gmra.mxu1 %vm373_vm0, %v16283_v22  ;;  %3404 = vmatprep.subr.mxu0 %v16051_v58  ;;  %v14443_v22 = vld [vmem:[#allocation11 + $0xb0] sm:$0xff] }
 0x4dd   :  { %10749 = vmatprep.mubr.msk.f32.mxu1 %vm373_vm0, %v16284_v21  ;;  %3405 = vmatpush2.msra.mxu0 %v3281_v35  ;;  %v14436_v35 = vld [vmem:[#allocation11 + $0xa0] sm:$0xff]  ;;  %16302 = vst [vmem:[#allocation60_spill] sm:$0xff] %v14443_v22  ;;  %v16303_v21 = vld [vmem:[#allocation51_spill] sm:$0xff] }
 0x4de   :  { %3406 = vmatprep.subr.mxu0 %v16051_v58  ;;  %16300 = vst [vmem:[#allocation56_spill] sm:$0xff] %v14436_v35  ;;  %11649 = vrcp.f32 %v16303_v21 }
 0x4df   :  { %3407 = vmatpush2.msra.mxu0 %v10719_v23  ;;  %v14413_v23 = vld [vmem:[#allocation11 + $0x78] sm:$0xff]  ;;  %11651 = vrcp.f32 %v13975_v40 }
 0x4e0   :  { %10750 = vmatmul.mubr.msk.f32.gmra.mxu1 %vm373_vm0, %v16285_v60  ;;  %3408 = vmatprep.subr.mxu0 %v16051_v58  ;;  %11653 = vrcp.f32 %v16304_v34  ;;  %v16305_v60 = vld [vmem:[#allocation44_spill] sm:$0xff]  ;;  %v16310_v34 = vld [vmem:[#allocation49_spill] sm:$0xff] }
 0x4e1   :  { %10752 = vmatprep.mubr.msk.f32.mxu1 %vm373_vm0, %v16286_v27  ;;  %3409 = vmatpush2.msra.mxu0 %v3271_v30  ;;  %v14424_v30 = vld [vmem:[#allocation11 + $0x80] sm:$0xff]  ;;  %v2913_v27 = vmul.f32 2.0, %v16305_v60  ;;  %11655 = vrcp.f32 %v13991_v32  ;;  %v16309_v32 = vld [vmem:[#allocation68_spill] sm:$0xff] }
 0x4e2   :  { %3411 = vmatmul.mubr.f32.vlgmr.msra.gmra.mxu0 %v14353_v2  ;;  %3656 = vmatprep.subr.mxu0 %v16051_v58 }
 0x4e3   :  { %9577 = vmatprep.mubr.msk.f32.mxu0 %vm757_vm1, %v14361_v56 }
 0x4e4   :  { %10753 = vmatmul.mubr.msk.f32.gmra.mxu1 %vm373_vm0, %v16287_v16 }
 0x4e5   :  { %10755 = vmatprep.mubr.msk.f32.mxu1 %vm373_vm0, %v16288_v33  ;;  %v16306_v33 = vld [vmem:[#allocation59_spill] sm:$0xff] }
 0x4e6   :  { %3416 = vmatmul.mubr.f32.gmra.mxu0 %v14365_v36  ;;  %11657 = vrcp.f32 %v16306_v33 }
 0x4e7   :  { %9578 = vmatprep.mubr.msk.f32.mxu0 %vm757_vm1, %v14372_v0 }
 0x4e8   :  { %10756 = vmatmul.mubr.msk.f32.gmra.mxu1 %vm373_vm0, %v16289_v28 }
 0x4e9   :  { %10758 = vmatprep.mubr.msk.f32.mxu1 %vm373_vm0, %v16290_v53  ;;  %v16307_v53 = vld [vmem:[#allocation46_spill] sm:$0xff] }
 0x4ea   :  { %3421 = vmatmul.mubr.f32.gmra.mxu0 %v14376_v13 }
 0x4eb   :  { %9579 = vmatprep.mubr.msk.f32.mxu0 %vm757_vm1, %v14383_v29 }
 0x4ec   :  { %10759 = vmatmul.mubr.msk.f32.gmra.mxu1 %vm373_vm0, %v16291_v10  ;;  %v2914_v10 = vmul.f32 2.0, %v16307_v53 }
 0x4ed   :  { %10761 = vmatprep.mubr.msk.f32.mxu1 %vm373_vm0, %v16292_v24  ;;  %v2931_v24 = vadd.f32 %v13949_v62, %v2913_v27 }
 0x4ee   :  { %3426 = vmatmul.mubr.f32.gmra.mxu0 %v14387_v49  ;;  %v2932_v21 = vadd.f32 %v13949_v62, %v2914_v10 }
 0x4ef   :  { %9580 = vmatprep.mubr.msk.f32.mxu0 %vm757_vm1, %v14392_v14 }
 0x4f0   :  { %10762 = vmatmul.mubr.msk.f32.gmra.mxu1 %vm373_vm0, %v16293_v17 }
 0x4f1   :  { %10764 = vmatprep.mubr.msk.f32.mxu1 %vm373_vm0, %v16294_v46  ;;  %v11648_v46 = vpop.eup %11647 }
 0x4f2   :  { %3431 = vmatmul.mubr.f32.gmra.mxu0 %v14396_v63 }
 0x4f3   :  { %9581 = vmatprep.mubr.msk.f32.mxu0 %vm757_vm1, %v14399_v20 }
 0x4f4   :  { %10765 = vmatmul.mubr.msk.f32.gmra.mxu1 %vm373_vm0, %v16295_v4 }
 0x4f5   :  { %10767 = vmatprep.mubr.msk.f32.mxu1 %vm373_vm0, %v16296_v3 }
 0x4f6   :  { %3436 = vmatmul.mubr.f32.gmra.mxu0 %v14403_v25 }
 0x4f7   :  { %9582 = vmatprep.mubr.msk.f32.mxu0 %vm757_vm1, %v14406_v39 }
 0x4f8   :  { %10768 = vmatmul.mubr.msk.f32.gmra.mxu1 %vm373_vm0, %v16297_v8 }
 0x4f9   :  { %10770 = vmatprep.mubr.msk.f32.mxu1 %vm373_vm0, %v16298_v5 }
 0x4fa   :  { %3441 = vmatmul.mubr.f32.gmra.mxu0 %v14410_v52 }
 0x4fb   :  { %9583 = vmatprep.mubr.msk.f32.mxu0 %vm757_vm1, %v14413_v23 }
 0x4fc   :  { %10771 = vmatmul.mubr.msk.f32.gmra.mxu1 %vm373_vm0, %v16299_v43  ;;  %v11650_v43 = vpop.eup %11649  ;;  %vm8435_vm0 = vcmask 11264  }
 0x4fe   :  { %3446 = vmatmul.mubr.f32.gmra.mxu0 %v14417_v11 }
 0x4ff   :  { %9584 = vmatprep.mubr.msk.f32.mxu0 %vm757_vm1, %v14420_v15 }
 0x502   :  { %3451 = vmatmul.mubr.f32.gmra.mxu0 %v14424_v30 }
 0x503   :  { %9585 = vmatprep.mubr.msk.f32.mxu0 %vm757_vm1, %v14427_v31 }
 0x506   :  { %3456 = vmatmul.mubr.f32.gmra.mxu0 %v14431_v42 }
 0x507   :  { %9586 = vmatprep.mubr.msk.f32.mxu0 %vm757_vm1, %v14434_v41 }
 0x50a   :  { %3461 = vmatmul.mubr.f32.gmra.mxu0 %v14436_v35 }
 0x50b   :  { %9587 = vmatprep.mubr.msk.f32.mxu0 %vm757_vm1, %v14441_v26 }
 0x50e   :  { %3466 = vmatmul.mubr.f32.gmra.mxu0 %v14443_v22 }
 0x50f   :  { %9612 = vmatprep.mubr.msk.f32.mxu0 %vm757_vm1, %v3102_v12  ;;  %v16308_v12 = vld [vmem:[#allocation63_spill] sm:$0xff] }
 0x510   :  { %11659 = vrcp.f32 %v16308_v12 }
 0x511   :  { %11661 = vrcp.f32 %v16309_v32  ;;  %v16314_v32 = vld [vmem:[#allocation80_spill] sm:$0xff] }
 0x54c   :  { %v2575_v44 = vpop.f32.mrf.mxu1 }
 0x54d   :  { %v2744_v50 = vsub.f32 %v2575_v44, %v16305_v60  ;;  %v2915_v44 = vmul.f32 2.0, %v16310_v34  ;;  %v16311_v60 = vld [vmem:[#allocation72_spill] sm:$0xff] }
 0x54e   :  { %v2577_v16 = vpop.f32.mrf.mxu1  ;;  %11663 = vrcp.f32 %v16311_v60 }
 0x54f   :  { %v2761_v28 = vmul.f32 2.0, %v2744_v50  ;;  %v2933_v10 = vadd.f32 %v13949_v62, %v2915_v44 }
 0x550   :  { %v2580_v55 = vpop.f32.mrf.mxu1 }
 0x551   :  { %v2779_v40 = vadd.f32 %v13947_v47, %v2761_v28  ;;  %v2745_v17 = vsub.f32 %v2580_v55, %v16307_v53  ;;  %v11652_v28 = vpop.eup %11651  ;;  %v16312_v55 = vld [vmem:[#allocation76_spill] sm:$0xff] }
 0x552   :  { %v2582_v4 = vpop.f32.mrf.mxu1  ;;  %11665 = vrcp.f32 %v16312_v55 }
 0x553   :  { %v2831_v3 = vmul.f32 %v11648_v46, %v2779_v40  ;;  %v2948_v8 = vmul.f32 %v2931_v24, %v2779_v40  ;;  %v2762_v5 = vmul.f32 2.0, %v2745_v17  ;;  %v11654_v17 = vpop.eup %11653  ;;  %v16313_v46 = vld [vmem:[#allocation53_spill] sm:$0xff]  ;;  %11667 = vrcp.f32 %v16314_v32 }
 0x554   :  { %v2585_v27 = vpop.f32.mrf.mxu1  ;;  %v2916_v4 = vmul.f32 2.0, %v16313_v46 }
 0x555   :  { %v3017_v50 = vmul.f32 %v11650_v43, %v2948_v8  ;;  %v2780_v16 = vadd.f32 %v13947_v47, %v2762_v5  ;;  %v2746_v33 = vsub.f32 %v2585_v27, %v16310_v34  ;;  %v2865_v8 = vsel %vm2864_vm2, %v2831_v3, 0.0 }
 0x556   :  { %v2587_v53 = vpop.f32.mrf.mxu1 }
 0x557   :  { %v2833_v24 = vmul.f32 %v11652_v28, %v2780_v16  ;;  %v2949_v12 = vmul.f32 %v2932_v21, %v2780_v16  ;;  %v2763_v40 = vmul.f32 2.0, %v2746_v33  ;;  %v11656_v28 = vpop.eup %11655  ;;  %v16315_v21 = vld [vmem:[#allocation43_spill] sm:$0xff]  ;;  %v3050_v16 = vsel %vm2864_vm2, %v3017_v50, 0.0 }
 0x558   :  { %v2590_v43 = vpop.f32.mrf.mxu1  ;;  %11669 = vrcp.f32 %v16315_v21  ;;  %v11658_v22 = vpop.eup %11657 }
 0x559   :  { %v2866_v5 = vsel %vm2864_vm2, %v2833_v24, 0.0  ;;  %v3019_v34 = vmul.f32 %v11654_v17, %v2949_v12  ;;  %v2781_v60 = vadd.f32 %v13947_v47, %v2763_v40  ;;  %v2747_v27 = vsub.f32 %v2590_v43, %v16313_v46  ;;  %v16316_v12 = vld [vmem:[#allocation57_spill] sm:$0xff]  ;;  %v16317_v40 = vld [vmem:[#allocation66_spill] sm:$0xff] }
 0x55a   :  { %v2867_v44 = vadd.f32 %v2866_v5, %v2865_v8  ;;  %v2592_v33 = vpop.f32.mrf.mxu1  ;;  %v2934_v24 = vadd.f32 %v13949_v62, %v2916_v4  ;;  %v2917_v17 = vmul.f32 2.0, %v16316_v12  ;;  %11671 = vrcp.f32 %v16317_v40  ;;  %v11660_v5 = vpop.eup %11659 }
 0x55b   :  { %v3051_v53 = vsel %vm2864_vm2, %v3019_v34, 0.0  ;;  %v2835_v55 = vmul.f32 %v11656_v28, %v2781_v60  ;;  %v2950_v32 = vmul.f32 %v2933_v10, %v2781_v60  ;;  %v2764_v3 = vmul.f32 2.0, %v2747_v27  ;;  %v16318_v34 = vld [vmem:[#allocation45_spill] sm:$0xff]  ;;  %v11662_v40 = vpop.eup %11661 }
 0x55c   :  { %v3052_v46 = vadd.f32 %v3051_v53, %v3050_v16  ;;  %v2595_v43 = vpop.f32.mrf.mxu1  ;;  %11673 = vrcp.f32 %v16318_v34  ;;  %v2935_v16 = vadd.f32 %v13949_v62, %v2917_v17  ;;  %v16319_v53 = vld [vmem:[#allocation61_spill] sm:$0xff] }
 0x55d   :  { %v2868_v21 = vsel %vm2864_vm2, %v2835_v55, 0.0  ;;  %v3021_v26 = vmul.f32 %v11658_v22, %v2950_v32  ;;  %v2782_v50 = vadd.f32 %v13947_v47, %v2764_v3  ;;  %v2748_v8 = vsub.f32 %v2595_v43, %v16316_v12  ;;  %v16320_v22 = vld [vmem:[#allocation47_spill] sm:$0xff]  ;;  %v11664_v12 = vpop.eup %11663 }
 0x55e   :  { %v2869_v10 = vadd.f32 %v2868_v21, %v2867_v44  ;;  %v2597_v60 = vpop.f32.mrf.mxu1  ;;  %v2918_v55 = vmul.f32 2.0, %v16319_v53  ;;  %11675 = vrcp.f32 %v16320_v22  ;;  %v16321_v21 = vld [vmem:[#allocation48_spill] sm:$0xff] }
 0x55f   :  { %v3053_v4 = vsel %vm2864_vm2, %v3021_v26, 0.0  ;;  %v2837_v27 = vmul.f32 %v11660_v5, %v2782_v50  ;;  %v2951_v28 = vmul.f32 %v2934_v24, %v2782_v50  ;;  %v2765_v33 = vmul.f32 2.0, %v2748_v8  ;;  %v11666_v22 = vpop.eup %11665 }
 0x560   :  { %v3054_v32 = vadd.f32 %v3053_v4, %v3052_v46  ;;  %v2600_v3 = vpop.f32.mrf.mxu1  ;;  %11677 = vrcp.f32 %v16321_v21  ;;  %v2936_v46 = vadd.f32 %v13949_v62, %v2918_v55  ;;  %v16322_v4 = vld [vmem:[#allocation65_spill] sm:$0xff] }
 0x561   :  { %v2870_v43 = vsel %vm2864_vm2, %v2837_v27, 0.0  ;;  %v3023_v34 = vmul.f32 %v11662_v40, %v2951_v28  ;;  %v2783_v44 = vadd.f32 %v13947_v47, %v2765_v33  ;;  %v2749_v26 = vsub.f32 %v2600_v3, %v16319_v53  ;;  %v16323_v27 = vld [vmem:[#allocation50_spill] sm:$0xff]  ;;  %v11668_v40 = vpop.eup %11667 }
 0x562   :  { %v2871_v24 = vadd.f32 %v2870_v43, %v2869_v10  ;;  %v2602_v50 = vpop.f32.mrf.mxu1  ;;  %v2919_v35 = vmul.f32 2.0, %v16322_v4  ;;  %11679 = vrcp.f32 %v16323_v27 }
 0x563   :  { %v3055_v17 = vsel %vm2864_vm2, %v3023_v34, 0.0  ;;  %v2839_v8 = vmul.f32 %v11664_v12, %v2783_v44  ;;  %v2952_v5 = vmul.f32 %v2935_v16, %v2783_v44  ;;  %v2766_v60 = vmul.f32 2.0, %v2749_v26  ;;  %v16324_v12 = vld [vmem:[#allocation52_spill] sm:$0xff] }
 0x564   :  { %v3056_v28 = vadd.f32 %v3055_v17, %v3054_v32  ;;  %v2605_v33 = vpop.f32.mrf.mxu1  ;;  %11681 = vrcp.f32 %v16324_v12  ;;  %v2937_v32 = vadd.f32 %v13949_v62, %v2919_v35  ;;  %v16325_v17 = vld [vmem:[#allocation70_spill] sm:$0xff] }
 0x565   :  { %v2872_v53 = vsel %vm2864_vm2, %v2839_v8, 0.0  ;;  %v3025_v3 = vmul.f32 %v11666_v22, %v2952_v5  ;;  %v2784_v10 = vadd.f32 %v13947_v47, %v2766_v60  ;;  %v2750_v43 = vsub.f32 %v2605_v33, %v16322_v4  ;;  %v11670_v44 = vpop.eup %11669  ;;  %v16327_v12 = vld [vmem:[#allocation74_spill] sm:$0xff] }
 0x566   :  { %v2873_v16 = vadd.f32 %v2872_v53, %v2871_v24  ;;  %v2607_v34 = vpop.f32.mrf.mxu1  ;;  %v2920_v27 = vmul.f32 2.0, %v16325_v17  ;;  %11683 = vrcp.f32 %v14101_v38  ;;  %v16326_v53 = vld [vmem:[#allocation54_spill] sm:$0xff] }
 0x567   :  { %v3057_v55 = vsel %vm2864_vm2, %v3025_v3, 0.0  ;;  %v2841_v26 = vmul.f32 %v11668_v40, %v2784_v10  ;;  %v2953_v21 = vmul.f32 %v2936_v46, %v2784_v10  ;;  %v2767_v50 = vmul.f32 2.0, %v2750_v43  ;;  %v11672_v60 = vpop.eup %11671 }
 0x568   :  { %v3058_v8 = vadd.f32 %v3057_v55, %v3056_v28  ;;  %v2610_v5 = vpop.f32.mrf.mxu1  ;;  %11685 = vrcp.f32 %v16326_v53  ;;  %v2938_v28 = vadd.f32 %v13949_v62, %v2920_v27  ;;  %v2921_v34 = vmul.f32 2.0, %v16327_v12 }
 0x569   :  { %v2874_v22 = vsel %vm2864_vm2, %v2841_v26, 0.0  ;;  %v3027_v4 = vmul.f32 %v11670_v44, %v2953_v21  ;;  %v2785_v24 = vadd.f32 %v13947_v47, %v2767_v50  ;;  %v2751_v33 = vsub.f32 %v2610_v5, %v16325_v17  ;;  %v11674_v3 = vpop.eup %11673 }
 0x56a   :  { %v2875_v46 = vadd.f32 %v2874_v22, %v2873_v16  ;;  %v2612_v40 = vpop.f32.mrf.mxu1  ;;  %11687 = vrcp.f32 %v14113_v6 }
 0x56b   :  { %v3059_v35 = vsel %vm2864_vm2, %v3027_v4, 0.0  ;;  %v2843_v10 = vmul.f32 %v11672_v60, %v2785_v24  ;;  %v2954_v43 = vmul.f32 %v2937_v32, %v2785_v24  ;;  %v2768_v38 = vmul.f32 2.0, %v2751_v33  ;;  %v11676_v26 = vpop.eup %11675  ;;  %v16328_v24 = vld [vmem:[#allocation78_spill] sm:$0xff] }
 0x56c   :  { %v3060_v44 = vadd.f32 %v3059_v35, %v3058_v8  ;;  %v2615_v55 = vpop.f32.mrf.mxu1  ;;  %11689 = vrcp.f32 %v14117_v45  ;;  %v2939_v8 = vadd.f32 %v13949_v62, %v2921_v34  ;;  %v2922_v33 = vmul.f32 2.0, %v16328_v24 }
 0x56d   :  { %v2876_v21 = vsel %vm2864_vm2, %v2843_v10, 0.0  ;;  %v3029_v50 = vmul.f32 %v11674_v3, %v2954_v43  ;;  %v2786_v16 = vadd.f32 %v13947_v47, %v2768_v38  ;;  %v2752_v17 = vsub.f32 %v2615_v55, %v16327_v12  ;;  %v11678_v60 = vpop.eup %11677 }
 0x56e   :  { %v2877_v32 = vadd.f32 %v2876_v21, %v2875_v46  ;;  %v2617_v5 = vpop.f32.mrf.mxu1  ;;  %11691 = vrcp.f32 %v14125_v54 }
 0x56f   :  { %v3061_v27 = vsel %vm2864_vm2, %v3029_v50, 0.0  ;;  %v2845_v22 = vmul.f32 %v11676_v26, %v2786_v16  ;;  %v2955_v4 = vmul.f32 %v2938_v28, %v2786_v16  ;;  %v2769_v6 = vmul.f32 2.0, %v2752_v17  ;;  %v11680_v3 = vpop.eup %11679  ;;  %v16329_v26 = vld [vmem:[#allocation82_spill] sm:$0xff] }
 0x570   :  { %v3062_v53 = vadd.f32 %v3061_v27, %v3060_v44  ;;  %v2620_v40 = vpop.f32.mrf.mxu1  ;;  %11693 = vrcp.f32 %v14130_v57  ;;  %v2940_v44 = vadd.f32 %v13949_v62, %v2922_v33  ;;  %v2923_v21 = vmul.f32 2.0, %v16329_v26 }
 0x571   :  { %v2878_v35 = vsel %vm2864_vm2, %v2845_v22, 0.0  ;;  %v3031_v45 = vmul.f32 %v11678_v60, %v2955_v4  ;;  %v2787_v46 = vadd.f32 %v13947_v47, %v2769_v6  ;;  %v2753_v10 = vsub.f32 %v2620_v40, %v16328_v24  ;;  %v11682_v28 = vpop.eup %11681 }
 0x572   :  { %v2879_v43 = vadd.f32 %v2878_v35, %v2877_v32  ;;  %v2622_v38 = vpop.f32.mrf.mxu1  ;;  %11695 = vrcp.f32 %v14139_v1  ;;  %v2941_v33 = vadd.f32 %v13949_v62, %v2923_v21 }
 0x573   :  { %v3063_v12 = vsel %vm2864_vm2, %v3031_v45, 0.0  ;;  %v2847_v34 = vmul.f32 %v11680_v3, %v2787_v46  ;;  %v2956_v55 = vmul.f32 %v2939_v8, %v2787_v46  ;;  %v2770_v54 = vmul.f32 2.0, %v2753_v10  ;;  %v11684_v17 = vpop.eup %11683 }
 0x574   :  { %v3064_v50 = vadd.f32 %v3063_v12, %v3062_v53  ;;  %v2625_v16 = vpop.f32.mrf.mxu1  ;;  %11697 = vrcp.f32 %v14146_v9  ;;  %v16330_v53 = vld [vmem:[#allocation85_spill] sm:$0xff] }
 0x575   :  { %v2880_v5 = vsel %vm2864_vm2, %v2847_v34, 0.0  ;;  %v3033_v57 = vmul.f32 %v11682_v28, %v2956_v55  ;;  %v2788_v32 = vadd.f32 %v13947_v47, %v2770_v54  ;;  %v2754_v60 = vsub.f32 %v2625_v16, %v16329_v26  ;;  %v11686_v4 = vpop.eup %11685  ;;  %v16331_v26 = vld [vmem:[#allocation87_spill] sm:$0xff] }
 0x576   :  { %v2881_v27 = vadd.f32 %v2880_v5, %v2879_v43  ;;  %v2627_v22 = vpop.f32.mrf.mxu1  ;;  %v2924_v40 = vmul.f32 2.0, %v16330_v53  ;;  %11699 = vrcp.f32 %v14155_v7  ;;  %v2925_v21 = vmul.f32 2.0, %v16331_v26 }
 0x577   :  { %v3065_v6 = vsel %vm2864_vm2, %v3033_v57, 0.0  ;;  %v2849_v8 = vmul.f32 %v11684_v17, %v2788_v32  ;;  %v2957_v24 = vmul.f32 %v2940_v44, %v2788_v32  ;;  %v2771_v1 = vmul.f32 2.0, %v2754_v60  ;;  %v11688_v45 = vpop.eup %11687 }
 0x578   :  { %v3066_v3 = vadd.f32 %v3065_v6, %v3064_v50  ;;  %v2630_v35 = vpop.f32.mrf.mxu1  ;;  %11701 = vrcp.f32 %v14160_v61  ;;  %v2942_v44 = vadd.f32 %v13949_v62, %v2924_v40 }
 0x579   :  { %v2882_v46 = vsel %vm2864_vm2, %v2849_v8, 0.0  ;;  %v3035_v9 = vmul.f32 %v11686_v4, %v2957_v24  ;;  %v2789_v10 = vadd.f32 %v13947_v47, %v2771_v1  ;;  %v2755_v43 = vsub.f32 %v2630_v35, %v16330_v53  ;;  %v11690_v12 = vpop.eup %11689  ;;  %v16332_v1 = vld [vmem:[#allocation88_spill] sm:$0xff] }
 0x57a   :  { %v2883_v38 = vadd.f32 %v2882_v46, %v2881_v27  ;;  %v2632_v28 = vpop.f32.mrf.mxu1  ;;  %11703 = vrcp.f32 %v14169_v19  ;;  %v2943_v24 = vadd.f32 %v13949_v62, %v2925_v21 }
 0x57b   :  { %v3067_v34 = vsel %vm2864_vm2, %v3035_v9, 0.0  ;;  %v2851_v55 = vmul.f32 %v11688_v45, %v2789_v10  ;;  %v2958_v54 = vmul.f32 %v2941_v33, %v2789_v10  ;;  %v2772_v7 = vmul.f32 2.0, %v2755_v43  ;;  %v11692_v17 = vpop.eup %11691 }
 0x57c   :  { %v3068_v50 = vadd.f32 %v3067_v34, %v3066_v3  ;;  %v2635_v16 = vpop.f32.mrf.mxu1  ;;  %11705 = vrcp.f32 %v14175_v18  ;;  %v2926_v33 = vmul.f32 2.0, %v16332_v1 }
 0x57d   :  { %v2884_v5 = vsel %vm2864_vm2, %v2851_v55, 0.0  ;;  %v3037_v61 = vmul.f32 %v11690_v12, %v2958_v54  ;;  %v2790_v57 = vadd.f32 %v13947_v47, %v2772_v7  ;;  %v2756_v32 = vsub.f32 %v2635_v16, %v16331_v26  ;;  %v11694_v22 = vpop.eup %11693  ;;  %v16333_v55 = vld [vmem:[#allocation91_spill] sm:$0xff] }
 0x57e   :  { %v2885_v60 = vadd.f32 %v2884_v5, %v2883_v38  ;;  %v2637_v27 = vpop.f32.mrf.mxu1  ;;  %11707 = vrcp.f32 %v14185_v48  ;;  %v2944_v34 = vadd.f32 %v13949_v62, %v2926_v33  ;;  %v2927_v54 = vmul.f32 2.0, %v16333_v55 }
 0x57f   :  { %v3069_v4 = vsel %vm2864_vm2, %v3037_v61, 0.0  ;;  %v2853_v6 = vmul.f32 %v11692_v17, %v2790_v57  ;;  %v2959_v8 = vmul.f32 %v2942_v44, %v2790_v57  ;;  %v2773_v19 = vmul.f32 2.0, %v2756_v32  ;;  %v11696_v3 = vpop.eup %11695 }
 0x580   :  { %v3070_v53 = vadd.f32 %v3069_v4, %v3068_v50  ;;  %v2640_v40 = vpop.f32.mrf.mxu1  ;;  %11709 = vrcp.f32 %v14191_v37  ;;  %v2945_v27 = vadd.f32 %v13949_v62, %v2927_v54 }
 0x581   :  { %v2886_v35 = vsel %vm2864_vm2, %v2853_v6, 0.0  ;;  %v3039_v18 = vmul.f32 %v11694_v22, %v2959_v8  ;;  %v2791_v45 = vadd.f32 %v13947_v47, %v2773_v19  ;;  %v2757_v46 = vsub.f32 %v2640_v40, %v16332_v1  ;;  %v11698_v43 = vpop.eup %11697  ;;  %v16334_v22 = vld [vmem:[#allocation94_spill] sm:$0xff] }
 0x582   :  { %v2887_v9 = vadd.f32 %v2886_v35, %v2885_v60  ;;  %v2642_v10 = vpop.f32.mrf.mxu1  ;;  %11711 = vrcp.f32 %v14201_v59  ;;  %v2928_v4 = vmul.f32 2.0, %v16334_v22 }
 0x583   :  { %v3071_v38 = vsel %vm2864_vm2, %v3039_v18, 0.0  ;;  %v2855_v28 = vmul.f32 %v11696_v3, %v2791_v45  ;;  %v2960_v12 = vmul.f32 %v2943_v24, %v2791_v45  ;;  %v2774_v48 = vmul.f32 2.0, %v2757_v46  ;;  %v11700_v26 = vpop.eup %11699  ;;  %v16335_v10 = vld [vmem:[#allocation97_spill] sm:$0xff] }
 0x584   :  { %v3072_v7 = vadd.f32 %v3071_v38, %v3070_v53  ;;  %v2645_v44 = vpop.f32.mrf.mxu1  ;;  %11713 = vrcp.f32 %v14206_v51 }
 0x585   :  { %v2888_v21 = vsel %vm2864_vm2, %v2855_v28, 0.0  ;;  %v3041_v37 = vmul.f32 %v11698_v43, %v2960_v12  ;;  %v2792_v50 = vadd.f32 %v13947_v47, %v2774_v48  ;;  %v2758_v16 = vsub.f32 %v2645_v44, %v16333_v55  ;;  %v11702_v61 = vpop.eup %11701 }
 0x586   :  { %v2647_v17 = vpop.f32.mrf.mxu1  ;;  %v2889_v5 = vadd.f32 %v2888_v21, %v2887_v9  ;;  %v2946_v9 = vadd.f32 %v13949_v62, %v2928_v4  ;;  %v2929_v43 = vmul.f32 2.0, %v16335_v10 }
 0x587   :  { %v3073_v57 = vsel %vm2864_vm2, %v3041_v37, 0.0  ;;  %v2857_v32 = vmul.f32 %v11700_v26, %v2792_v50  ;;  %v2961_v60 = vmul.f32 %v2944_v34, %v2792_v50  ;;  %v2775_v59 = vmul.f32 2.0, %v2758_v16  ;;  %v11704_v19 = vpop.eup %11703 }
 0x588   :  { %v2650_v6 = vpop.f32.mrf.mxu1  ;;  %v3074_v8 = vadd.f32 %v3073_v57, %v3072_v7  ;;  %v2947_v57 = vadd.f32 %v13949_v62, %v2929_v43 }
 0x589   :  { %v3043_v24 = vmul.f32 %v11702_v61, %v2961_v60  ;;  %v2793_v1 = vadd.f32 %v13947_v47, %v2775_v59  ;;  %v2759_v51 = vsub.f32 %v2650_v6, %v16334_v22  ;;  %v2890_v33 = vsel %vm2864_vm2, %v2857_v32, 0.0  ;;  %v11706_v3 = vpop.eup %11705 }
 0x58a   :  { %v2652_v53 = vpop.f32.mrf.mxu1  ;;  %v2891_v40 = vadd.f32 %v2890_v33, %v2889_v5 }
 0x58b   :  { %v2859_v35 = vmul.f32 %v11704_v19, %v2793_v1  ;;  %v2962_v18 = vmul.f32 %v2945_v27, %v2793_v1  ;;  %v2776_v45 = vmul.f32 2.0, %v2759_v51  ;;  %v3075_v46 = vsel %vm2864_vm2, %v3043_v24, 0.0  ;;  %v11708_v12 = vpop.eup %11707 }
 0x58c   :  { %v2655_v38 = vpop.f32.mrf.mxu1  ;;  %v3076_v28 = vadd.f32 %v3075_v46, %v3074_v8 }
 0x58d   :  { %v3045_v48 = vmul.f32 %v11706_v3, %v2962_v18  ;;  %v2794_v34 = vadd.f32 %v13947_v47, %v2776_v45  ;;  %v2760_v55 = vsub.f32 %v2655_v38, %v16335_v10  ;;  %v2892_v54 = vsel %vm2864_vm2, %v2859_v35, 0.0  ;;  %v11710_v26 = vpop.eup %11709 }
 0x58e   :  { %v2657_v7 = vpop.f32.mrf.mxu1  ;;  %v2893_v44 = vadd.f32 %v2892_v54, %v2891_v40 }
 0x58f   :  { %v2963_v21 = vmul.f32 %v2946_v9, %v2794_v34  ;;  %v2777_v37 = vmul.f32 2.0, %v2760_v55  ;;  %v2861_v50 = vmul.f32 %v11708_v12, %v2794_v34  ;;  %v3077_v16 = vsel %vm2864_vm2, %v3045_v48, 0.0  ;;  %v11712_v61 = vpop.eup %11711  ;;  %v14598_v7 = vld [vmem:[#allocation13 + $0x8] sm:$0xff] }
 0x590   :  { %v14579_v17 = vpop.f32.mrf.mxu1  ;;  %v3078_v5 = vadd.f32 %v3077_v16, %v3076_v28  ;;  %10773 = vmatprep.subr.mxu1 %v14598_v7 }
 0x591   :  { %v2795_v32 = vadd.f32 %v13947_v47, %v2777_v37  ;;  %v2894_v60 = vsel %vm2864_vm2, %v2861_v50, 0.0  ;;  %v3047_v59 = vmul.f32 %v11710_v26, %v2963_v21  ;;  %v11714_v4 = vpop.eup %11713  ;;  %10774 = vmatpush3.msra.mxu1 %v14598_v7 }
 0x592   :  { %v14584_v27 = vpop.f32.mrf.mxu1  ;;  %v2895_v22 = vadd.f32 %v2894_v60, %v2893_v44  ;;  %v14600_v44 = vld [vmem:[#allocation13] sm:$0xff] }
 0x593   :  { %v2964_v6 = vmul.f32 %v2947_v57, %v2795_v32  ;;  %v2863_v8 = vmul.f32 %v11712_v61, %v2795_v32  ;;  %v3079_v19 = vsel %vm2864_vm2, %v3047_v59, 0.0  ;;  %10775 = vmatprep.subr.mxu1 %v14600_v44  ;;  %vm8558_vm2 = vcmask 97280  }
 0x594   :  { %v14587_v24 = vpop.f32.mrf.mxu1  ;;  %v3080_v1 = vadd.f32 %v3079_v19, %v3078_v5  ;;  %10776 = vmatpush3.msra.mxu1 %v14600_v44 }
 0x595   :  { %v2897_v51 = vsel %vm2896_vm3, %v2863_v8, 0.0  ;;  %v3049_v33 = vmul.f32 %v11714_v4, %v2964_v6  ;;  %10795 = vmatprep.subr.mxu1 %v16051_v58 }
 0x596   :  { %v14589_v62 = vpop.f32.mrf.mxu1  ;;  %v2898_v47 = vadd.f32 %v2897_v51, %v2895_v22 }
 0x597   :  { %v3081_v53 = vsel %vm2896_vm3, %v3049_v33, 0.0 }
 0x598   :  { %v10745_v40 = vpop.f32.mrf.mxu1  ;;  %2899 = vadd.xlane.f32.xlu1 %v2898_v47  ;;  %v3082_v3 = vadd.f32 %v3081_v53, %v3080_v1 }
 0x59a   :  { %v3557_v35 = vpop.f32.mrf.mxu1 }
 0x59c   :  { %v10748_v18 = vpop.f32.mrf.mxu1  ;;  %3083 = vadd.xlane.f32.xlu1 %v3082_v3 }
 0x59e   :  { %v3567_v45 = vpop.f32.mrf.mxu1 }
 0x5a0   :  { %v10751_v46 = vpop.f32.mrf.mxu1 }
 0x5a2   :  { %v3577_v9 = vpop.f32.mrf.mxu1  ;;  %v14592_v34 = vpop.f32.mrf.mxu0 }
 0x5a3   :  { %10777 = vmatprep.mubr.msk.f32.mxu1 %vm3788_vm4, %v14592_v34 }
 0x5a4   :  { %v10754_v10 = vpop.f32.mrf.mxu1  ;;  %v3414_v55 = vpop.f32.mrf.mxu0 }
 0x5a6   :  { %v3587_v43 = vpop.f32.mrf.mxu1  ;;  %v14602_v26 = vpop.f32.mrf.mxu0 }
 0x5a7   :  { %10778 = vmatmul.mubr.msk.f32.vlgmr.msra.gmra.mxu1 %vm3788_vm4, %v14602_v26 }
 0x5a8   :  { %v10757_v38 = vpop.f32.mrf.mxu1  ;;  %v3419_v21 = vpop.f32.mrf.mxu0 }
 0x5aa   :  { %v3597_v28 = vpop.f32.mrf.mxu1  ;;  %v14612_v50 = vpop.f32.mrf.mxu0 }
 0x5ab   :  { %10780 = vmatprep.mubr.msk.f32.mxu1 %vm3788_vm4, %v14612_v50 }
 0x5ac   :  { %v10760_v12 = vpop.f32.mrf.mxu1  ;;  %v3424_v16 = vpop.f32.mrf.mxu0 }
 0x5ad   :  { %3657 = vmatpush1.msra.mxu0 %v10760_v12  ;;  %v3821_v16 = vsel %vm3788_vm4, %v14592_v34, inf }
 0x5ae   :  { %v3607_v48 = vpop.f32.mrf.mxu1  ;;  %3658 = vmatprep.subr.mxu0 %v16051_v58  ;;  %v14623_v61 = vpop.f32.mrf.mxu0 }
 0x5af   :  { %3659 = vmatpush1.msra.mxu0 %v3607_v48  ;;  %10781 = vmatmul.mubr.msk.f32.gmra.mxu1 %vm3788_vm4, %v14623_v61 }
 0x5b0   :  { %3660 = vmatprep.subr.mxu0 %v16051_v58  ;;  %v14596_v54 = vpop.f32.mrf.mxu1  ;;  %v3429_v57 = vpop.f32.mrf.mxu0 }
 0x5b1   :  { %3661 = vmatpush1.msra.mxu0 %v10757_v38  ;;  %v3824_v57 = vsel %vm3788_vm4, %v14623_v61, inf }
 0x5b2   :  { %3662 = vmatprep.subr.mxu0 %v16051_v58  ;;  %v14609_v37 = vpop.f32.mrf.mxu1  ;;  %v14629_v60 = vpop.f32.mrf.mxu0 }
 0x5b3   :  { %3663 = vmatpush1.msra.mxu0 %v3597_v28  ;;  %10783 = vmatprep.mubr.msk.f32.mxu1 %vm3788_vm4, %v14629_v60 }
 0x5b4   :  { %3664 = vmatprep.subr.mxu0 %v16051_v58  ;;  %v10766_v5 = vpop.f32.mrf.mxu1  ;;  %v3434_v59 = vpop.f32.mrf.mxu0 }
 0x5b5   :  { %3665 = vmatpush1.msra.mxu0 %v10754_v10 }
 0x5b6   :  { %3666 = vmatprep.subr.mxu0 %v16051_v58  ;;  %v3627_v32 = vpop.f32.mrf.mxu1  ;;  %v14635_v4 = vpop.f32.mrf.mxu0 }
 0x5b7   :  { %3667 = vmatpush1.msra.mxu0 %v3587_v43  ;;  %10784 = vmatmul.mubr.msk.f32.gmra.mxu1 %vm3788_vm4, %v14635_v4 }
 0x5b8   :  { %3668 = vmatprep.subr.mxu0 %v16051_v58  ;;  %v10769_v22 = vpop.f32.mrf.mxu1  ;;  %v3439_v6 = vpop.f32.mrf.mxu0 }
 0x5b9   :  { %3669 = vmatpush1.msra.mxu0 %v10751_v46  ;;  %v3827_v6 = vsel %vm3788_vm4, %v14635_v4, inf }
 0x5ba   :  { %3670 = vmatprep.subr.mxu0 %v16051_v58  ;;  %v3637_v8 = vpop.f32.mrf.mxu1  ;;  %v14643_v19 = vpop.f32.mrf.mxu0 }
 0x5bb   :  { %3671 = vmatpush1.msra.mxu0 %v3577_v9  ;;  %10786 = vmatprep.mubr.msk.f32.mxu1 %vm3788_vm4, %v14643_v19 }
 0x5bc   :  { %3672 = vmatprep.subr.mxu0 %v16051_v58  ;;  %v3444_v1 = vpop.f32.mrf.mxu0  ;;  %v10772_v51 = vpop.f32.mrf.mxu1 }
 0x5bd   :  { %3673 = vmatpush1.msra.mxu0 %v10748_v18 }
 0x5be   :  { %3674 = vmatprep.subr.mxu0 %v16051_v58 }
 0x5bf   :  { %3675 = vmatpush1.msra.mxu0 %v3567_v45  ;;  %v3793_v45 = vsel %vm3788_vm4, %v14629_v60, -inf }
 0x5c0   :  { %3676 = vmatprep.subr.mxu0 %v16051_v58 }
 0x5c1   :  { %3677 = vmatpush1.msra.mxu0 %v10745_v40 }
 0x5c2   :  { %3678 = vmatprep.subr.mxu0 %v16051_v58 }
 0x5c3   :  { %3679 = vmatpush1.msra.mxu0 %v3557_v35 }
 0x5c4   :  { %3680 = vmatprep.subr.mxu0 %v16051_v58 }
 0x5c5   :  { %3681 = vmatpush1.msra.mxu0 %v14587_v24  ;;  %v14651_v24 = vpop.f32.mrf.mxu0 }
 0x5c6   :  { %3682 = vmatprep.subr.mxu0 %v16051_v58  ;;  %10787 = vmatmul.mubr.msk.f32.gmra.mxu1 %vm3788_vm4, %v14651_v24  ;;  %v3799_v46 = vsel %vm3788_vm4, %v14651_v24, -inf }
 0x5c7   :  { %3683 = vmatpush1.msra.mxu0 %v14589_v62  ;;  %v3449_v33 = vpop.f32.mrf.mxu0  ;;  %v3647_v62 = vpop.f32.mrf.mxu1 }
 0x5c8   :  { %3684 = vmatprep.subr.mxu0 %v16051_v58  ;;  %v3831_v33 = vsel %vm3788_vm4, %v14651_v24, inf }
 0x5c9   :  { %3685 = vmatpush1.msra.mxu0 %v14579_v17  ;;  %v14657_v17 = vpop.f32.mrf.mxu0 }
 0x5ca   :  { %3686 = vmatprep.subr.mxu0 %v16051_v58  ;;  %10789 = vmatprep.mubr.msk.f32.mxu1 %vm3788_vm4, %v14657_v17  ;;  %v3801_v28 = vsel %vm3788_vm4, %v14657_v17, -inf }
 0x5cb   :  { %3687 = vmatpush1.msra.mxu0 %v14584_v27  ;;  %v3454_v27 = vpop.f32.mrf.mxu0 }
 0x5cc   :  { %3704 = vmatprep.subr.mxu0 %v16051_v58  ;;  %v3832_v27 = vmin.f32 %v3824_v57, %v3831_v33 }
 0x5cd   :  { %3705 = vmatpush2.msra.mxu0 %v10772_v51  ;;  %v14663_v47 = vpop.f32.mrf.mxu0  ;;  %v3829_v51 = vsel %vm3788_vm4, %v14643_v19, inf }
 0x5ce   :  { %3706 = vmatprep.subr.mxu0 %v16051_v58  ;;  %10790 = vmatmul.mubr.msk.f32.gmra.mxu1 %vm3788_vm4, %v14663_v47  ;;  %v3803_v12 = vsel %vm3788_vm4, %v14663_v47, -inf }
 0x5cf   :  { %3707 = vmatpush2.msra.mxu0 %v3647_v62  ;;  %v3459_v53 = vpop.f32.mrf.mxu0 }
 0x5d0   :  { %3708 = vmatprep.subr.mxu0 %v16051_v58  ;;  %v3833_v53 = vsel %vm3788_vm4, %v14657_v17, inf }
 0x5d1   :  { %3709 = vmatpush2.msra.mxu0 %v10769_v22  ;;  %v14669_v40 = vpop.f32.mrf.mxu0  ;;  %v3825_v22 = vsel %vm3788_vm4, %v14629_v60, inf }
 0x5d2   :  { %3710 = vmatprep.subr.mxu0 %v16051_v58  ;;  %10792 = vmatprep.mubr.msk.f32.mxu1 %vm3788_vm4, %v14669_v40  ;;  %v3805_v48 = vsel %vm3788_vm4, %v14669_v40, -inf }
 0x5d3   :  { %3711 = vmatpush2.msra.mxu0 %v3637_v8  ;;  %v3464_v3 = vpop.f32.mrf.mxu0  ;;  %v3826_v8 = vmin.f32 %v3821_v16, %v3825_v22 }
 0x5d4   :  { %3712 = vmatprep.subr.mxu0 %v16051_v58 }
 0x5d5   :  { %3713 = vmatpush2.msra.mxu0 %v10766_v5  ;;  %v14677_v35 = vpop.f32.mrf.mxu0  ;;  %v3823_v5 = vsel %vm3788_vm4, %v14612_v50, inf  ;;  %v3834_v3 = vmin.f32 %v3826_v8, %v3833_v53 }
 0x5d6   :  { %3714 = vmatprep.subr.mxu0 %v16051_v58  ;;  %10793 = vmatmul.mubr.msk.f32.gmra.mxu1 %vm3788_vm4, %v14677_v35  ;;  %v3807_v55 = vsel %vm3788_vm4, %v14677_v35, -inf  ;;  %v3830_v62 = vmin.f32 %v3823_v5, %v3829_v51 }
 0x5d7   :  { %3715 = vmatpush2.msra.mxu0 %v3627_v32  ;;  %v3469_v18 = vpop.f32.mrf.mxu0  ;;  %10819 = vmatprep.mubr.msk.f32.mxu1 %vm12241_vm6, %v16051_v58 }
 0x5d8   :  { %3716 = vmatprep.subr.mxu0 %v16051_v58  ;;  %v3835_v18 = vsel %vm3788_vm4, %v14663_v47, inf }
 0x5d9   :  { %3717 = vmatpush2.msra.mxu0 %v14596_v54 }
 0x5da   :  { %3718 = vmatprep.subr.mxu0 %v16051_v58 }
 0x5db   :  { %3719 = vmatpush2.msra.mxu0 %v14609_v37 }
 0x5dc   :  { %3721 = vmatmul.mubr.f32.vlgmr.msra.gmra.mxu0 %v14353_v2  ;;  %10834 = vmatprep.subr.mxu0 %v14598_v7  ;;  %v3789_v2 = vsel %vm3788_vm4, %v14592_v34, -inf }
 0x5dd   :  { %9613 = vmatprep.mubr.msk.f32.mxu0 %vm757_vm1, %v14361_v56  ;;  %10835 = vmatpush3.msra.mxu0 %v14598_v7  ;;  %v3790_v56 = vsel %vm3788_vm4, %v14602_v26, -inf  ;;  %v3794_v9 = vmax.f32 %v3789_v2, %v3793_v45  ;;  %v3839_v2 = vsel %vm3788_vm4, %v14677_v35, inf }
 0x5de   :  { %10836 = vmatprep.subr.mxu0 %v14600_v44 }
 0x5df   :  { %10837 = vmatpush3.msra.mxu0 %v14600_v44 }
 0x5e0   :  { %3726 = vmatmul.mubr.f32.gmra.mxu0 %v14365_v36  ;;  %10895 = vmatprep.subr.mxu0 %v14598_v7  ;;  %v3791_v36 = vsel %vm3788_vm4, %v14612_v50, -inf }
 0x5e1   :  { %9614 = vmatprep.mubr.msk.f32.mxu0 %vm757_vm1, %v14372_v0  ;;  %v3792_v0 = vsel %vm3788_vm4, %v14623_v61, -inf }
 0x5e2   :  { %v3800_v38 = vmax.f32 %v3792_v0, %v3799_v46  ;;  %v3840_v0 = vmin.f32 %v3832_v27, %v3839_v2 }
 0x5e4   :  { %3731 = vmatmul.mubr.f32.gmra.mxu0 %v14376_v13  ;;  %v3795_v13 = vsel %vm3788_vm4, %v14635_v4, -inf  ;;  %v3808_v37 = vmax.f32 %v3800_v38, %v3807_v55 }
 0x5e5   :  { %9615 = vmatprep.mubr.msk.f32.mxu0 %vm757_vm1, %v14383_v29  ;;  %v3797_v29 = vsel %vm3788_vm4, %v14643_v19, -inf  ;;  %v3796_v10 = vmax.f32 %v3790_v56, %v3795_v13 }
 0x5e6   :  { %v3798_v43 = vmax.f32 %v3791_v36, %v3797_v29 }
 0x5e7   :  { %v3804_v54 = vmax.f32 %v3796_v10, %v3803_v12 }
 0x5e8   :  { %3736 = vmatmul.mubr.f32.gmra.mxu0 %v14387_v49  ;;  %v3802_v49 = vmax.f32 %v3794_v9, %v3801_v28  ;;  %v3806_v21 = vmax.f32 %v3798_v43, %v3805_v48 }
 0x5e9   :  { %9616 = vmatprep.mubr.msk.f32.mxu0 %vm757_vm1, %v14392_v14  ;;  %v3822_v14 = vsel %vm3788_vm4, %v14602_v26, inf }
 0x5ea   :  { %v3809_v32 = vmax.f32 %v3802_v49, %v3804_v54  ;;  %v3810_v59 = vmax.f32 %v3806_v21, %v3808_v37  ;;  %v3828_v1 = vmin.f32 %v3822_v14, %v3827_v6 }
 0x5ec   :  { %3741 = vmatmul.mubr.f32.gmra.mxu0 %v14396_v63  ;;  %v3811_v63 = vmax.f32 %v3809_v32, %v3810_v59  ;;  %v3836_v56 = vmin.f32 %v3828_v1, %v3835_v18 }
 0x5ed   :  { %9617 = vmatprep.mubr.msk.f32.mxu0 %vm757_vm1, %v14399_v20  ;;  %v3837_v20 = vsel %vm3788_vm4, %v14669_v40, inf }
 0x5ee   :  { %3812 = vmax.xlane.f32.xlu0 %v3811_v63  ;;  %v3838_v36 = vmin.f32 %v3830_v62, %v3837_v20  ;;  %v3841_v45 = vmin.f32 %v3834_v3, %v3836_v56 }
 0x5f0   :  { %3746 = vmatmul.mubr.f32.gmra.mxu0 %v14403_v25  ;;  %v3842_v13 = vmin.f32 %v3838_v36, %v3840_v0  ;;  %v16336_v25 = vld [vmem:[#allocation56_spill] sm:$0xff] }
 0x5f1   :  { %9618 = vmatprep.mubr.msk.f32.mxu0 %vm757_vm1, %v14406_v39  ;;  %v16337_v39 = vld [vmem:[#allocation58_spill] sm:$0xff] }
 0x5f2   :  { %v3843_v29 = vmin.f32 %v3841_v45, %v3842_v13 }
 0x5f4   :  { %3751 = vmatmul.mubr.f32.gmra.mxu0 %v14410_v52  ;;  %3844 = vmin.xlane.f32.xlu1 %v3843_v29  ;;  %v16338_v52 = vld [vmem:[#allocation60_spill] sm:$0xff] }
 0x5f5   :  { %9619 = vmatprep.mubr.msk.f32.mxu0 %vm757_vm1, %v14413_v23 }
 0x5f8   :  { %3756 = vmatmul.mubr.f32.gmra.mxu0 %v14417_v11 }
 0x5f9   :  { %9620 = vmatprep.mubr.msk.f32.mxu0 %vm757_vm1, %v14420_v15 }
 0x5fc   :  { %3761 = vmatmul.mubr.f32.gmra.mxu0 %v14424_v30 }
 0x5fd   :  { %9621 = vmatprep.mubr.msk.f32.mxu0 %vm757_vm1, %v14427_v31 }
 0x600   :  { %3766 = vmatmul.mubr.f32.gmra.mxu0 %v14431_v42 }
 0x601   :  { %9622 = vmatprep.mubr.msk.f32.mxu0 %vm757_vm1, %v14434_v41 }
 0x604   :  { %3771 = vmatmul.mubr.f32.gmra.mxu0 %v16336_v25 }
 0x605   :  { %9623 = vmatprep.mubr.msk.f32.mxu0 %vm757_vm1, %v16337_v39  ;;  %vm8479_vm1 = vcmask 1041408  }
 0x608   :  { %3776 = vmatmul.mubr.f32.gmra.mxu0 %v16338_v52 }
 0x621   :  { %v2900_v23 = vpop.xlane.xlu1 %2899 }
 0x622   :  { %v2901_v11 = vrot.slane %v2900_v23, 4 }
 0x624   :  { %v2902_v15 = vadd.f32 %v2901_v11, %v2900_v23 }
 0x625   :  { %v3084_v46 = vpop.xlane.xlu1 %3083 }
 0x626   :  { %v2903_v30 = vrot.slane %v2902_v15, 2  ;;  %v3085_v9 = vrot.slane %v3084_v46, 4 }
 0x628   :  { %v3086_v10 = vadd.f32 %v3085_v9, %v3084_v46  ;;  %v2904_v31 = vadd.f32 %v2903_v30, %v2902_v15 }
 0x62a   :  { %v3087_v43 = vrot.slane %v3086_v10, 2  ;;  %v2905_v42 = vrot.slane %v2904_v31, 1 }
 0x62c   :  { %v2906_v38 = vadd.f32 %v2905_v42, %v2904_v31  ;;  %v3088_v28 = vadd.f32 %v3087_v43, %v3086_v10 }
 0x62e   :  { %11586 = vpush %v2906_v38  ;;  %v3089_v41 = vrot.slane %v3088_v28, 1 }
 0x630   :  { %v3090_v12 = vadd.f32 %v3089_v41, %v3088_v28 }
 0x632   :  { %11588 = vpush %v3090_v12 }
 0x65f   :  { %s11587_s5 = spop %11586 }
 0x660   :  { %s2910_s20 = smul.f32 0.00034435262, %s11587_s5 }
 0x662   :  { %2912 = sst [smem:[#allocation30]] %s2910_s20 }
 0x663   :  { %s11589_s9 = spop %11588 }
 0x664   :  { %s3094_s27 = smul.f32 0.00034435262, %s11589_s9 }
 0x666   :  { %3096 = sst [smem:[#allocation29]] %s3094_s27 }
 0x667   :  { %v10779_v22 = vpop.f32.mrf.mxu1 }
 0x669   :  { %v3969_v8 = vpop.f32.mrf.mxu1 }
 0x66f   :  { %v10782_v51 = vpop.f32.mrf.mxu1 }
 0x671   :  { %v3979_v33 = vpop.f32.mrf.mxu1 }
 0x677   :  { %v3813_v48 = vpop.xlane.xlu0 %3812  ;;  %v10785_v63 = vpop.f32.mrf.mxu1 }
 0x678   :  { %v3814_v55 = vrot.slane %v3813_v48, 4 }
 0x679   :  { %v3989_v62 = vpop.f32.mrf.mxu1 }
 0x67a   :  { %v3815_v49 = vmax.f32 %v3813_v48, %v3814_v55  ;;  %v4385_v48 = vmul.f32 %v14592_v34, %v14592_v34 }
 0x67c   :  { %v3816_v54 = vrot.slane %v3815_v49, 2 }
 0x67d   :  { %v3845_v21 = vpop.xlane.xlu1 %3844 }
 0x67e   :  { %v3846_v37 = vrot.slane %v3845_v21, 4  ;;  %v3817_v16 = vmax.f32 %v3815_v49, %v3816_v54  ;;  %v4386_v49 = vmul.f32 %v14602_v26, %v14602_v26  ;;  %v4387_v54 = vmul.f32 %v14612_v50, %v14612_v50 }
 0x680   :  { %v3847_v14 = vmin.f32 %v3845_v21, %v3846_v37  ;;  %v3818_v5 = vrot.slane %v3817_v16, 1  ;;  %v4388_v21 = vmul.f32 %v14623_v61, %v14623_v61  ;;  %v4389_v37 = vmul.f32 %v14629_v60, %v14629_v60 }
 0x682   :  { %v3848_v57 = vrot.slane %v3847_v14, 2  ;;  %v3819_v32 = vmax.f32 %v3817_v16, %v3818_v5  ;;  %v4390_v16 = vmul.f32 %v14635_v4, %v14635_v4  ;;  %v4392_v5 = vmul.f32 %v14651_v24, %v14651_v24 }
 0x684   :  { %11590 = vpush %v3819_v32  ;;  %v3849_v59 = vmin.f32 %v3847_v14, %v3848_v57  ;;  %v4391_v14 = vmul.f32 %v14643_v19, %v14643_v19  ;;  %v4393_v57 = vmul.f32 %v14657_v17, %v14657_v17  ;;  %v4394_v32 = vmul.f32 %v14663_v47, %v14663_v47 }
 0x686   :  { %v3850_v6 = vrot.slane %v3849_v59, 1  ;;  %v10788_v27 = vpop.f32.mrf.mxu1 }
 0x688   :  { %v3851_v1 = vmin.f32 %v3849_v59, %v3850_v6  ;;  %v3999_v53 = vpop.f32.mrf.mxu1  ;;  %v4395_v59 = vmul.f32 %v14669_v40, %v14669_v40 }
 0x68a   :  { %11592 = vpush %v3851_v1 }
 0x68e   :  { %v10791_v3 = vpop.f32.mrf.mxu1 }
 0x690   :  { %v4009_v18 = vpop.f32.mrf.mxu1 }
 0x696   :  { %v10794_v2 = vpop.f32.mrf.mxu1 }
 0x697   :  { %10796 = vmatpush3.msra.mxu1 %v10794_v2 }
 0x698   :  { %v4019_v36 = vpop.f32.mrf.mxu1  ;;  %10797 = vmatprep.subr.mxu1 %v16051_v58 }
 0x699   :  { %10798 = vmatpush3.msra.mxu1 %v4019_v36 }
 0x69a   :  { %10799 = vmatprep.subr.mxu1 %v16051_v58 }
 0x69b   :  { %10800 = vmatpush3.msra.mxu1 %v10791_v3 }
 0x69c   :  { %v14768_v20 = vpop.f32.mrf.mxu0  ;;  %10801 = vmatprep.subr.mxu1 %v16051_v58 }
 0x69d   :  { %10838 = vmatprep.mubr.msk.f32.mxu0 %vm3788_vm4, %v14768_v20  ;;  %10802 = vmatpush3.msra.mxu1 %v4009_v18  ;;  %v4648_v6 = vmul.f32 %v14768_v20, %v14768_v20  ;;  %v4911_v2 = vmul.f32 %v14768_v20, %v14592_v34 }
 0x69e   :  { %v3724_v56 = vpop.f32.mrf.mxu0  ;;  %10803 = vmatprep.subr.mxu1 %v16051_v58 }
 0x69f   :  { %10804 = vmatpush3.msra.mxu1 %v10788_v27 }
 0x6a0   :  { %v14773_v0 = vpop.f32.mrf.mxu0  ;;  %10805 = vmatprep.subr.mxu1 %v16051_v58 }
 0x6a1   :  { %10839 = vmatmul.mubr.msk.f32.vlgmr.msra.gmra.mxu0 %vm3788_vm4, %v14773_v0  ;;  %10806 = vmatpush3.msra.mxu1 %v3999_v53  ;;  %v4912_v56 = vmul.f32 %v14773_v0, %v14602_v26 }
 0x6a2   :  { %v3729_v45 = vpop.f32.mrf.mxu0  ;;  %10896 = vmatpush3.msra.mxu0 %v14598_v7  ;;  %10807 = vmatprep.subr.mxu1 %v16051_v58 }
 0x6a3   :  { %10897 = vmatprep.subr.mxu0 %v14600_v44  ;;  %10808 = vmatpush3.msra.mxu1 %v10785_v63  ;;  %v5324_v45 = vld [vmem:[#allocation16] sm:$0xff] }
 0x6a4   :  { %v14781_v13 = vpop.f32.mrf.mxu0  ;;  %10898 = vmatpush3.msra.mxu0 %v14600_v44  ;;  %10809 = vmatprep.subr.mxu1 %v16051_v58 }
 0x6a5   :  { %10841 = vmatprep.mubr.msk.f32.mxu0 %vm3788_vm4, %v14781_v13  ;;  %10956 = vmatprep.subr.mxu0 %v14598_v7  ;;  %v4650_v1 = vmul.f32 %v14781_v13, %v14781_v13  ;;  %v4913_v36 = vmul.f32 %v14781_v13, %v14612_v50 }
 0x6a6   :  { %v3734_v29 = vpop.f32.mrf.mxu0  ;;  %10810 = vmatpush3.msra.mxu1 %v3989_v62 }
 0x6a7   :  { %10811 = vmatprep.subr.mxu1 %v16051_v58 }
 0x6a8   :  { %v14789_v25 = vpop.f32.mrf.mxu0  ;;  %10812 = vmatpush3.msra.mxu1 %v10782_v51  ;;  %v14882_v51 = vld [vmem:[#allocation16 + $0x8] sm:$0xff] }
 0x6a9   :  { %10842 = vmatmul.mubr.msk.f32.gmra.mxu0 %vm3788_vm4, %v14789_v25  ;;  %10813 = vmatprep.subr.mxu1 %v16051_v58  ;;  %v4914_v29 = vmul.f32 %v14789_v25, %v14623_v61 }
 0x6aa   :  { %v3739_v39 = vpop.f32.mrf.mxu0  ;;  %10814 = vmatpush3.msra.mxu1 %v3979_v33  ;;  %v4651_v33 = vmul.f32 %v14789_v25, %v14789_v25 }
 0x6ab   :  { %10815 = vmatprep.subr.mxu1 %v16051_v58 }
 0x6ac   :  { %v14795_v52 = vpop.f32.mrf.mxu0  ;;  %10816 = vmatpush3.msra.mxu1 %v10779_v22  ;;  %v4396_v22 = vmul.f32 %v14677_v35, %v14677_v35 }
 0x6ad   :  { %10844 = vmatprep.mubr.msk.f32.mxu0 %vm3788_vm4, %v14795_v52  ;;  %10817 = vmatprep.subr.mxu1 %v16051_v58  ;;  %v4652_v63 = vmul.f32 %v14795_v52, %v14795_v52  ;;  %v4915_v39 = vmul.f32 %v14795_v52, %v14629_v60 }
 0x6ae   :  { %v3744_v23 = vpop.f32.mrf.mxu0  ;;  %10818 = vmatpush3.msra.mxu1 %v3969_v8  ;;  %v4649_v8 = vmul.f32 %v14773_v0, %v14773_v0 }
 0x6af   :  { %10856 = vmatprep.subr.mxu1 %v16051_v58 }
 0x6b0   :  { %v14801_v11 = vpop.f32.mrf.mxu0 }
 0x6b1   :  { %10845 = vmatmul.mubr.msk.f32.gmra.mxu0 %vm3788_vm4, %v14801_v11  ;;  %v4916_v23 = vmul.f32 %v14801_v11, %v14635_v4 }
 0x6b2   :  { %v3749_v15 = vpop.f32.mrf.mxu0 }
 0x6b3   :  { %v14933_v15 = vld [vmem:[#allocation14] sm:$0xff] }
 0x6b4   :  { %v14807_v46 = vpop.f32.mrf.mxu0  ;;  %10820 = vmatmul.mubr.msk.f32.vlgmr.msra.gmra.mxu1 %vm4028_vm5, %v14933_v15 }
 0x6b5   :  { %10847 = vmatprep.mubr.msk.f32.mxu0 %vm3788_vm4, %v14807_v46  ;;  %v4654_v62 = vmul.f32 %v14807_v46, %v14807_v46  ;;  %10822 = vmatprep.mubr.msk.f32.mxu1 %vm12241_vm6, %v16051_v58  ;;  %s11591_s8 = spop %11590 }
 0x6b6   :  { %v3754_v30 = vpop.f32.mrf.mxu0  ;;  %p3853_p3 = scmp.gt.f32.partialorder %s11591_s8, 128.0 }
 0x6b7   :  { %v4917_v30 = vmul.f32 %v14807_v46, %v14643_v19 }
 0x6b8   :  { %v14812_v9 = vpop.f32.mrf.mxu0  ;;  %s3854_s11 = scalar_select %p3853_p3, 1, 0 }
 0x6b9   :  { %10848 = vmatmul.mubr.msk.f32.gmra.mxu0 %vm3788_vm4, %v14812_v9  ;;  %v4655_v27 = vmul.f32 %v14812_v9, %v14812_v9 }
 0x6ba   :  { %v3759_v10 = vpop.f32.mrf.mxu0  ;;  %s3855_s10 = scvt.s32.f32 %s3854_s11 }
 0x6bb   :  { %v4918_v10 = vmul.f32 %v14812_v9, %v14651_v24  ;;  %s11593_s1 = spop %11592 }
 0x6bc   :  { %v14816_v31 = vpop.f32.mrf.mxu0  ;;  %p3858_p4 = scmp.lt.f32.partialorder %s11593_s1, -0.5  ;;  %s3856_s2 = smul.f32 254.0, %s3855_s10 }
 0x6bd   :  { %10850 = vmatprep.mubr.msk.f32.mxu0 %vm3788_vm4, %v14816_v31 }
 0x6be   :  { %v3764_v43 = vpop.f32.mrf.mxu0  ;;  %s3859_s24 = scalar_select %p3858_p4, 1, 0 }
 0x6bf   :  { %v4919_v43 = vmul.f32 %v14816_v31, %v14657_v17  ;;  %s3857_s22 = sadd.f32 1.0, %s3856_s2 }
 0x6c0   :  { %v14820_v42 = vpop.f32.mrf.mxu0  ;;  %s3860_s26 = scvt.s32.f32 %s3859_s24 }
 0x6c1   :  { %10851 = vmatmul.mubr.msk.f32.gmra.mxu0 %vm3788_vm4, %v14820_v42  ;;  %v4657_v53 = vmul.f32 %v14820_v42, %v14820_v42 }
 0x6c2   :  { %v3769_v38 = vpop.f32.mrf.mxu0  ;;  %s3861_s12 = smul.f32 -1.0, %s3860_s26 }
 0x6c3   :  { %v4920_v38 = vmul.f32 %v14820_v42, %v14663_v47 }
 0x6c4   :  { %v14824_v28 = vpop.f32.mrf.mxu0  ;;  %s3862_s23 = ssub.f32 %s3857_s22, %s3861_s12 }
 0x6c5   :  { %10853 = vmatprep.mubr.msk.f32.mxu0 %vm3788_vm4, %v14824_v28  ;;  %v4658_v3 = vmul.f32 %v14824_v28, %v14824_v28 }
 0x6c6   :  { %v3774_v41 = vpop.f32.mrf.mxu0  ;;  %s3865_s15 = smul.f32 0.03, %s3862_s23 }
 0x6c7   :  { %v4921_v41 = vmul.f32 %v14824_v28, %v14669_v40  ;;  %s3863_s17 = smul.f32 0.01, %s3862_s23 }
 0x6c8   :  { %v14828_v12 = vpop.f32.mrf.mxu0  ;;  %s3866_s28 = smul.f32 %s3865_s15, %s3865_s15 }
 0x6c9   :  { %10854 = vmatmul.mubr.msk.f32.gmra.mxu0 %vm3788_vm4, %v14828_v12  ;;  %v4659_v18 = vmul.f32 %v14828_v12, %v14828_v12  ;;  %s3864_s29 = smul.f32 %s3863_s17, %s3863_s17 }
 0x6ca   :  { %v3779_v55 = vpop.f32.mrf.mxu0  ;;  %10899 = vmatprep.mubr.msk.f32.mxu0 %vm3788_vm4, %v4385_v48  ;;  %v4922_v48 = vmul.f32 %v14828_v12, %v14677_v35 }
 0x6cb   :  { %v14959_v55 = vld [vmem:[#allocation14 + $0x8] sm:$0xff] }
 0x6cc   :  { %10823 = vmatmul.mubr.msk.f32.gmra.mxu1 %vm4028_vm5, %v14959_v55 }
 0x6cd   :  { %10900 = vmatmul.mubr.msk.f32.vlgmr.msra.gmra.mxu0 %vm3788_vm4, %v4386_v49  ;;  %10825 = vmatprep.mubr.msk.f32.mxu1 %vm12241_vm6, %v16051_v58  ;;  %v14968_v49 = vld [vmem:[#allocation14 + $0x10] sm:$0xff] }
 0x6ce   :  { %10902 = vmatprep.mubr.msk.f32.mxu0 %vm3788_vm4, %v4387_v54  ;;  %10957 = vmatpush3.msra.mxu0 %v14598_v7 }
 0x6cf   :  { %10958 = vmatprep.subr.mxu0 %v14600_v44 }
 0x6d0   :  { %10959 = vmatpush3.msra.mxu0 %v14600_v44  ;;  %10826 = vmatmul.mubr.msk.f32.gmra.mxu1 %vm4028_vm5, %v14968_v49 }
 0x6d1   :  { %10903 = vmatmul.mubr.msk.f32.gmra.mxu0 %vm3788_vm4, %v4388_v21  ;;  %11017 = vmatprep.subr.mxu0 %v14598_v7 }
 0x6d2   :  { %10905 = vmatprep.mubr.msk.f32.mxu0 %vm3788_vm4, %v4389_v37  ;;  %10828 = vmatprep.mubr.msk.f32.mxu1 %vm12241_vm6, %v16051_v58 }
 0x6d5   :  { %10906 = vmatmul.mubr.msk.f32.gmra.mxu0 %vm3788_vm4, %v4390_v16 }
 0x6d6   :  { %10908 = vmatprep.mubr.msk.f32.mxu0 %vm3788_vm4, %v4391_v14 }
 0x6d9   :  { %10909 = vmatmul.mubr.msk.f32.gmra.mxu0 %vm3788_vm4, %v4392_v5 }
 0x6da   :  { %10911 = vmatprep.mubr.msk.f32.mxu0 %vm3788_vm4, %v4393_v57 }
 0x6dd   :  { %10912 = vmatmul.mubr.msk.f32.gmra.mxu0 %vm3788_vm4, %v4394_v32 }
 0x6de   :  { %10914 = vmatprep.mubr.msk.f32.mxu0 %vm3788_vm4, %v4395_v59 }
 0x6e1   :  { %10915 = vmatmul.mubr.msk.f32.gmra.mxu0 %vm3788_vm4, %v4396_v22 }
 0x6e2   :  { %10960 = vmatprep.mubr.msk.f32.mxu0 %vm3788_vm4, %v4648_v6 }
 0x6e5   :  { %10961 = vmatmul.mubr.msk.f32.vlgmr.msra.gmra.mxu0 %vm3788_vm4, %v4649_v8 }
 0x6e6   :  { %10963 = vmatprep.mubr.msk.f32.mxu0 %vm3788_vm4, %v4650_v1  ;;  %11018 = vmatpush3.msra.mxu0 %v14598_v7  ;;  %v4653_v7 = vmul.f32 %v14801_v11, %v14801_v11 }
 0x6e7   :  { %11019 = vmatprep.subr.mxu0 %v14600_v44 }
 0x6e8   :  { %11020 = vmatpush3.msra.mxu0 %v14600_v44  ;;  %v4656_v44 = vmul.f32 %v14816_v31, %v14816_v31 }
 0x6e9   :  { %10964 = vmatmul.mubr.msk.f32.gmra.mxu0 %vm3788_vm4, %v4651_v33  ;;  %11078 = vmatprep.subr.mxu0 %v14882_v51 }
 0x6ea   :  { %10966 = vmatprep.mubr.msk.f32.mxu0 %vm3788_vm4, %v4652_v63 }
 0x6ed   :  { %10967 = vmatmul.mubr.msk.f32.gmra.mxu0 %vm3788_vm4, %v4653_v7 }
 0x6ee   :  { %10969 = vmatprep.mubr.msk.f32.mxu0 %vm3788_vm4, %v4654_v62 }
 0x6f1   :  { %10970 = vmatmul.mubr.msk.f32.gmra.mxu0 %vm3788_vm4, %v4655_v27 }
 0x6f2   :  { %10972 = vmatprep.mubr.msk.f32.mxu0 %vm3788_vm4, %v4656_v44 }
 0x6f5   :  { %10973 = vmatmul.mubr.msk.f32.gmra.mxu0 %vm3788_vm4, %v4657_v53 }
 0x6f6   :  { %10975 = vmatprep.mubr.msk.f32.mxu0 %vm3788_vm4, %v4658_v3 }
 0x6f9   :  { %10976 = vmatmul.mubr.msk.f32.gmra.mxu0 %vm3788_vm4, %v4659_v18 }
 0x6fa   :  { %11021 = vmatprep.mubr.msk.f32.mxu0 %vm3788_vm4, %v4911_v2 }
 0x6fd   :  { %11022 = vmatmul.mubr.msk.f32.vlgmr.msra.gmra.mxu0 %vm3788_vm4, %v4912_v56 }
 0x6fe   :  { %11024 = vmatprep.mubr.msk.f32.mxu0 %vm3788_vm4, %v4913_v36  ;;  %11079 = vmatpush3.msra.mxu0 %v14882_v51 }
 0x6ff   :  { %11080 = vmatprep.subr.mxu0 %v5324_v45 }
 0x700   :  { %11081 = vmatpush3.msra.mxu0 %v5324_v45 }
 0x701   :  { %11025 = vmatmul.mubr.msk.f32.gmra.mxu0 %vm3788_vm4, %v4914_v29  ;;  %11133 = vmatprep.subr.mxu0 %v14882_v51 }
 0x702   :  { %11027 = vmatprep.mubr.msk.f32.mxu0 %vm3788_vm4, %v4915_v39 }
 0x705   :  { %11028 = vmatmul.mubr.msk.f32.gmra.mxu0 %vm3788_vm4, %v4916_v23 }
 0x706   :  { %11030 = vmatprep.mubr.msk.f32.mxu0 %vm3788_vm4, %v4917_v30 }
 0x709   :  { %11031 = vmatmul.mubr.msk.f32.gmra.mxu0 %vm3788_vm4, %v4918_v10 }
 0x70a   :  { %11033 = vmatprep.mubr.msk.f32.mxu0 %vm3788_vm4, %v4919_v43 }
 0x70d   :  { %11034 = vmatmul.mubr.msk.f32.gmra.mxu0 %vm3788_vm4, %v4920_v38 }
 0x70e   :  { %11036 = vmatprep.mubr.msk.f32.mxu0 %vm3788_vm4, %v4921_v41 }
 0x711   :  { %11037 = vmatmul.mubr.msk.f32.gmra.mxu0 %vm3788_vm4, %v4922_v48 }
 0x712   :  { %11082 = vmatprep.mubr.msk.f32.mxu0 %vm3788_vm4, %v14592_v34  ;;  %v14979_v34 = vld [vmem:[#allocation14 + $0x18] sm:$0xff] }
 0x713   :  { %10829 = vmatmul.mubr.msk.f32.gmra.mxu1 %vm4028_vm5, %v14979_v34 }
 0x714   :  { %10831 = vmatprep.mubr.msk.f32.mxu1 %vm12241_vm6, %v16051_v58 }
 0x715   :  { %11083 = vmatmul.mubr.msk.f32.vlgmr.msra.gmra.mxu0 %vm3788_vm4, %v14602_v26  ;;  %v14989_v26 = vld [vmem:[#allocation14 + $0x20] sm:$0xf] }
 0x716   :  { %11085 = vmatprep.mubr.msk.f32.mxu0 %vm3788_vm4, %v14612_v50  ;;  %11134 = vmatpush3.msra.mxu0 %v14882_v51 }
 0x717   :  { %11135 = vmatprep.subr.mxu0 %v5324_v45  ;;  %10832 = vmatmul.mubr.msk.f32.gmra.mxu1 %vm4028_vm5, %v14989_v26 }
 0x718   :  { %11136 = vmatpush3.msra.mxu0 %v5324_v45  ;;  %10880 = vmatprep.mubr.msk.f32.mxu1 %vm12241_vm6, %v16051_v58 }
 0x719   :  { %11086 = vmatmul.mubr.msk.f32.gmra.mxu0 %vm3788_vm4, %v14623_v61 }
 0x71a   :  { %11088 = vmatprep.mubr.msk.f32.mxu0 %vm3788_vm4, %v14629_v60 }
 0x71d   :  { %11089 = vmatmul.mubr.msk.f32.gmra.mxu0 %vm3788_vm4, %v14635_v4 }
 0x71e   :  { %11091 = vmatprep.mubr.msk.f32.mxu0 %vm3788_vm4, %v14643_v19 }
 0x721   :  { %11092 = vmatmul.mubr.msk.f32.gmra.mxu0 %vm3788_vm4, %v14651_v24 }
 0x722   :  { %11094 = vmatprep.mubr.msk.f32.mxu0 %vm3788_vm4, %v14657_v17 }
 0x725   :  { %11095 = vmatmul.mubr.msk.f32.gmra.mxu0 %vm3788_vm4, %v14663_v47 }
 0x726   :  { %11097 = vmatprep.mubr.msk.f32.mxu0 %vm3788_vm4, %v14669_v40 }
 0x729   :  { %11098 = vmatmul.mubr.msk.f32.gmra.mxu0 %vm3788_vm4, %v14677_v35 }
 0x72a   :  { %11137 = vmatprep.mubr.msk.f32.mxu0 %vm3788_vm4, %v14768_v20 }
 0x72d   :  { %11138 = vmatmul.mubr.msk.f32.vlgmr.msra.gmra.mxu0 %vm3788_vm4, %v14773_v0 }
 0x72e   :  { %11140 = vmatprep.mubr.msk.f32.mxu0 %vm3788_vm4, %v14781_v13 }
 0x731   :  { %11141 = vmatmul.mubr.msk.f32.gmra.mxu0 %vm3788_vm4, %v14789_v25 }
 0x732   :  { %11143 = vmatprep.mubr.msk.f32.mxu0 %vm3788_vm4, %v14795_v52 }
 0x735   :  { %11144 = vmatmul.mubr.msk.f32.gmra.mxu0 %vm3788_vm4, %v14801_v11 }
 0x736   :  { %11146 = vmatprep.mubr.msk.f32.mxu0 %vm3788_vm4, %v14807_v46 }
 0x739   :  { %11147 = vmatmul.mubr.msk.f32.gmra.mxu0 %vm3788_vm4, %v14812_v9 }
 0x73a   :  { %11149 = vmatprep.mubr.msk.f32.mxu0 %vm3788_vm4, %v14816_v31 }
 0x73d   :  { %11150 = vmatmul.mubr.msk.f32.gmra.mxu0 %vm3788_vm4, %v14820_v42 }
 0x73e   :  { %11152 = vmatprep.mubr.msk.f32.mxu0 %vm3788_vm4, %v14824_v28 }
 0x741   :  { %11153 = vmatmul.mubr.msk.f32.gmra.mxu0 %vm3788_vm4, %v14828_v12 }
 0x761   :  { %v10840_v50 = vpop.f32.mrf.mxu0 }
 0x763   :  { %v4236_v61 = vpop.f32.mrf.mxu0 }
 0x769   :  { %v10843_v60 = vpop.f32.mrf.mxu0 }
 0x76b   :  { %v4246_v4 = vpop.f32.mrf.mxu0 }
 0x771   :  { %v10846_v19 = vpop.f32.mrf.mxu0 }
 0x773   :  { %v4256_v24 = vpop.f32.mrf.mxu0 }
 0x774   :  { %v15119_v44 = vpop.f32.mrf.mxu1 }
 0x776   :  { %v10821_v3 = vpop.f32.mrf.mxu1 }
 0x779   :  { %v10849_v17 = vpop.f32.mrf.mxu0 }
 0x77b   :  { %v4266_v47 = vpop.f32.mrf.mxu0 }
 0x781   :  { %v10852_v40 = vpop.f32.mrf.mxu0 }
 0x783   :  { %v4276_v35 = vpop.f32.mrf.mxu0 }
 0x789   :  { %v10855_v20 = vpop.f32.mrf.mxu0 }
 0x78a   :  { %10857 = vmatpush3.msra.mxu1 %v10855_v20 }
 0x78b   :  { %v4286_v0 = vpop.f32.mrf.mxu0  ;;  %10858 = vmatprep.subr.mxu1 %v16051_v58 }
 0x78c   :  { %10859 = vmatpush3.msra.mxu1 %v4286_v0  ;;  %v15139_v29 = vpop.f32.mrf.mxu1 }
 0x78d   :  { %10860 = vmatprep.subr.mxu1 %v16051_v58  ;;  %v15035_v13 = vpop.f32.mrf.mxu0 }
 0x78e   :  { %10861 = vmatpush3.msra.mxu1 %v10852_v40  ;;  %v10824_v23 = vpop.f32.mrf.mxu1 }
 0x78f   :  { %10862 = vmatprep.subr.mxu1 %v16051_v58  ;;  %v15038_v25 = vpop.f32.mrf.mxu0  ;;  %v5174_v23 = vmul.f32 %v15119_v44, %v15119_v44 }
 0x790   :  { %10863 = vmatpush3.msra.mxu1 %v4276_v35  ;;  %v15149_v10 = vpop.f32.mrf.mxu1 }
 0x791   :  { %10864 = vmatprep.subr.mxu1 %v16051_v58  ;;  %v10904_v52 = vpop.f32.mrf.mxu0 }
 0x792   :  { %10865 = vmatpush3.msra.mxu1 %v10849_v17  ;;  %v10827_v38 = vpop.f32.mrf.mxu1 }
 0x793   :  { %10866 = vmatprep.subr.mxu1 %v16051_v58  ;;  %v4509_v11 = vpop.f32.mrf.mxu0 }
 0x794   :  { %10867 = vmatpush3.msra.mxu1 %v4266_v47 }
 0x795   :  { %10868 = vmatprep.subr.mxu1 %v16051_v58  ;;  %v10907_v46 = vpop.f32.mrf.mxu0 }
 0x796   :  { %10869 = vmatpush3.msra.mxu1 %v10846_v19 }
 0x797   :  { %10870 = vmatprep.subr.mxu1 %v16051_v58  ;;  %v4519_v9 = vpop.f32.mrf.mxu0 }
 0x798   :  { %10871 = vmatpush3.msra.mxu1 %v4256_v24 }
 0x799   :  { %10872 = vmatprep.subr.mxu1 %v16051_v58  ;;  %v10910_v31 = vpop.f32.mrf.mxu0 }
 0x79a   :  { %10873 = vmatpush3.msra.mxu1 %v10843_v60 }
 0x79b   :  { %10874 = vmatprep.subr.mxu1 %v16051_v58  ;;  %v4529_v42 = vpop.f32.mrf.mxu0 }
 0x79c   :  { %10875 = vmatpush3.msra.mxu1 %v4246_v4 }
 0x79d   :  { %10876 = vmatprep.subr.mxu1 %v16051_v58  ;;  %v10913_v28 = vpop.f32.mrf.mxu0 }
 0x79e   :  { %10877 = vmatpush3.msra.mxu1 %v10840_v50 }
 0x79f   :  { %10878 = vmatprep.subr.mxu1 %v16051_v58  ;;  %v4539_v12 = vpop.f32.mrf.mxu0 }
 0x7a0   :  { %10879 = vmatpush3.msra.mxu1 %v4236_v61 }
 0x7a1   :  { %10881 = vmatmul.mubr.msk.f32.vlgmr.msra.gmra.mxu1 %vm4028_vm5, %v14933_v15  ;;  %v10916_v54 = vpop.f32.mrf.mxu0  ;;  %10917 = vmatprep.subr.mxu1 %v16051_v58 }
 0x7a2   :  { %10918 = vmatpush3.msra.mxu1 %v10916_v54  ;;  %10883 = vmatprep.mubr.msk.f32.mxu1 %vm12241_vm6, %v16051_v58  ;;  %v5329_v54 = vld [vmem:[#allocation17 + $0x18] sm:$0xff] }
 0x7a3   :  { %v4549_v21 = vpop.f32.mrf.mxu0  ;;  %10919 = vmatprep.subr.mxu1 %v16051_v58 }
 0x7a4   :  { %10920 = vmatpush3.msra.mxu1 %v4549_v21  ;;  %v5330_v21 = vld [vmem:[#allocation17 + $0x20] sm:$0xff] }
 0x7a5   :  { %10884 = vmatmul.mubr.msk.f32.gmra.mxu1 %vm4028_vm5, %v14959_v55  ;;  %10921 = vmatprep.subr.mxu1 %v16051_v58  ;;  %v15057_v37 = vpop.f32.mrf.mxu0 }
 0x7a6   :  { %10922 = vmatpush3.msra.mxu1 %v10913_v28  ;;  %10886 = vmatprep.mubr.msk.f32.mxu1 %vm12241_vm6, %v16051_v58  ;;  %v5328_v28 = vld [vmem:[#allocation17 + $0x10] sm:$0xff] }
 0x7a7   :  { %10923 = vmatprep.subr.mxu1 %v16051_v58  ;;  %v15062_v16 = vpop.f32.mrf.mxu0 }
 0x7a8   :  { %10924 = vmatpush3.msra.mxu1 %v4539_v12 }
 0x7a9   :  { %10887 = vmatmul.mubr.msk.f32.gmra.mxu1 %vm4028_vm5, %v14968_v49  ;;  %10925 = vmatprep.subr.mxu1 %v16051_v58  ;;  %v15067_v14 = vpop.f32.mrf.mxu0 }
 0x7aa   :  { %10926 = vmatpush3.msra.mxu1 %v10910_v31  ;;  %10889 = vmatprep.mubr.msk.f32.mxu1 %vm12241_vm6, %v16051_v58 }
 0x7ab   :  { %10927 = vmatprep.subr.mxu1 %v16051_v58  ;;  %v15072_v5 = vpop.f32.mrf.mxu0 }
 0x7ac   :  { %10928 = vmatpush3.msra.mxu1 %v4529_v42 }
 0x7ad   :  { %10890 = vmatmul.mubr.msk.f32.gmra.mxu1 %vm4028_vm5, %v14979_v34  ;;  %10929 = vmatprep.subr.mxu1 %v16051_v58  ;;  %v10968_v57 = vpop.f32.mrf.mxu0 }
 0x7ae   :  { %10930 = vmatpush3.msra.mxu1 %v10907_v46  ;;  %10892 = vmatprep.mubr.msk.f32.mxu1 %vm12241_vm6, %v16051_v58 }
 0x7af   :  { %10931 = vmatprep.subr.mxu1 %v16051_v58  ;;  %v4782_v32 = vpop.f32.mrf.mxu0 }
 0x7b0   :  { %10932 = vmatpush3.msra.mxu1 %v4519_v9 }
 0x7b1   :  { %10893 = vmatmul.mubr.msk.f32.gmra.mxu1 %vm4028_vm5, %v14989_v26  ;;  %10933 = vmatprep.subr.mxu1 %v16051_v58  ;;  %v10971_v59 = vpop.f32.mrf.mxu0 }
 0x7b2   :  { %10934 = vmatpush3.msra.mxu1 %v10904_v52  ;;  %10941 = vmatprep.mubr.msk.f32.mxu1 %vm12241_vm6, %v16051_v58 }
 0x7b3   :  { %10935 = vmatprep.subr.mxu1 %v16051_v58  ;;  %v4792_v22 = vpop.f32.mrf.mxu0 }
 0x7b4   :  { %10936 = vmatpush3.msra.mxu1 %v4509_v11 }
 0x7b5   :  { %10937 = vmatprep.subr.mxu1 %v16051_v58  ;;  %v10974_v6 = vpop.f32.mrf.mxu0 }
 0x7b6   :  { %10938 = vmatpush3.msra.mxu1 %v15035_v13 }
 0x7b7   :  { %10939 = vmatprep.subr.mxu1 %v16051_v58  ;;  %v4802_v8 = vpop.f32.mrf.mxu0 }
 0x7b8   :  { %10940 = vmatpush3.msra.mxu1 %v15038_v25 }
 0x7b9   :  { %10942 = vmatmul.mubr.msk.f32.vlgmr.msra.gmra.mxu1 %vm4028_vm5, %v14933_v15  ;;  %v10977_v1 = vpop.f32.mrf.mxu0  ;;  %10978 = vmatprep.subr.mxu1 %v16051_v58 }
 0x7ba   :  { %10979 = vmatpush3.msra.mxu1 %v10977_v1  ;;  %10944 = vmatprep.mubr.msk.f32.mxu1 %vm12241_vm6, %v16051_v58 }
 0x7bb   :  { %v4812_v51 = vpop.f32.mrf.mxu0  ;;  %10980 = vmatprep.subr.mxu1 %v16051_v58 }
 0x7bc   :  { %10981 = vmatpush3.msra.mxu1 %v4812_v51 }
 0x7bd   :  { %10945 = vmatmul.mubr.msk.f32.gmra.mxu1 %vm4028_vm5, %v14959_v55  ;;  %10982 = vmatprep.subr.mxu1 %v16051_v58  ;;  %v15099_v33 = vpop.f32.mrf.mxu0 }
 0x7be   :  { %10983 = vmatpush3.msra.mxu1 %v10974_v6  ;;  %10947 = vmatprep.mubr.msk.f32.mxu1 %vm12241_vm6, %v16051_v58 }
 0x7bf   :  { %10984 = vmatprep.subr.mxu1 %v16051_v58  ;;  %v15104_v63 = vpop.f32.mrf.mxu0 }
 0x7c0   :  { %10985 = vmatpush3.msra.mxu1 %v4802_v8 }
 0x7c1   :  { %10948 = vmatmul.mubr.msk.f32.gmra.mxu1 %vm4028_vm5, %v14968_v49  ;;  %10986 = vmatprep.subr.mxu1 %v16051_v58  ;;  %v15109_v7 = vpop.f32.mrf.mxu0 }
 0x7c2   :  { %10987 = vmatpush3.msra.mxu1 %v10971_v59  ;;  %10950 = vmatprep.mubr.msk.f32.mxu1 %vm12241_vm6, %v16051_v58 }
 0x7c3   :  { %10988 = vmatprep.subr.mxu1 %v16051_v58  ;;  %v15114_v62 = vpop.f32.mrf.mxu0 }
 0x7c4   :  { %10989 = vmatpush3.msra.mxu1 %v4792_v22 }
 0x7c5   :  { %10951 = vmatmul.mubr.msk.f32.gmra.mxu1 %vm4028_vm5, %v14979_v34  ;;  %10990 = vmatprep.subr.mxu1 %v16051_v58  ;;  %v11029_v27 = vpop.f32.mrf.mxu0 }
 0x7c6   :  { %10991 = vmatpush3.msra.mxu1 %v10968_v57  ;;  %10953 = vmatprep.mubr.msk.f32.mxu1 %vm12241_vm6, %v16051_v58 }
 0x7c7   :  { %10992 = vmatprep.subr.mxu1 %v16051_v58  ;;  %v5045_v53 = vpop.f32.mrf.mxu0 }
 0x7c8   :  { %10993 = vmatpush3.msra.mxu1 %v4782_v32 }
 0x7c9   :  { %10954 = vmatmul.mubr.msk.f32.gmra.mxu1 %vm4028_vm5, %v14989_v26  ;;  %10994 = vmatprep.subr.mxu1 %v16051_v58  ;;  %v11032_v18 = vpop.f32.mrf.mxu0 }
 0x7ca   :  { %10995 = vmatpush3.msra.mxu1 %v15067_v14  ;;  %11002 = vmatprep.mubr.msk.f32.mxu1 %vm12241_vm6, %v16051_v58 }
 0x7cb   :  { %10996 = vmatprep.subr.mxu1 %v16051_v58  ;;  %v5055_v2 = vpop.f32.mrf.mxu0 }
 0x7cc   :  { %10997 = vmatpush3.msra.mxu1 %v15072_v5 }
 0x7cd   :  { %10998 = vmatprep.subr.mxu1 %v16051_v58  ;;  %v11035_v56 = vpop.f32.mrf.mxu0 }
 0x7ce   :  { %10999 = vmatpush3.msra.mxu1 %v15057_v37  ;;  %v5331_v37 = vld [vmem:[#allocation17 + $0x28] sm:$0xff] }
 0x7cf   :  { %11000 = vmatprep.subr.mxu1 %v16051_v58  ;;  %v5065_v36 = vpop.f32.mrf.mxu0 }
 0x7d0   :  { %11001 = vmatpush3.msra.mxu1 %v15062_v16  ;;  %v15237_v16 = vld [vmem:[#allocation19] sm:$0xff] }
 0x7d1   :  { %11003 = vmatmul.mubr.msk.f32.vlgmr.msra.gmra.mxu1 %vm4028_vm5, %v14933_v15  ;;  %v11038_v45 = vpop.f32.mrf.mxu0  ;;  %11039 = vmatprep.subr.mxu1 %v16051_v58 }
 0x7d2   :  { %11040 = vmatpush3.msra.mxu1 %v11038_v45  ;;  %11005 = vmatprep.mubr.msk.f32.mxu1 %vm12241_vm6, %v16051_v58 }
 0x7d3   :  { %v5075_v39 = vpop.f32.mrf.mxu0  ;;  %11041 = vmatprep.subr.mxu1 %v16051_v58  ;;  %v15161_v48 = vpop.f32.mrf.mxu1  ;;  %11188 = vmatprep.subr.mxu0 %v15237_v16 }
 0x7d4   :  { %11042 = vmatpush3.msra.mxu1 %v5075_v39  ;;  %11189 = vmatpush3.msra.mxu0 %v15237_v16 }
 0x7d5   :  { %11006 = vmatmul.mubr.msk.f32.gmra.mxu1 %vm4028_vm5, %v14959_v55  ;;  %11043 = vmatprep.subr.mxu1 %v16051_v58  ;;  %v15147_v30 = vpop.f32.mrf.mxu0  ;;  %v10830_v61 = vpop.f32.mrf.mxu1 }
 0x7d6   :  { %11044 = vmatpush3.msra.mxu1 %v11035_v56  ;;  %11008 = vmatprep.mubr.msk.f32.mxu1 %vm12241_vm6, %v16051_v58  ;;  %v5175_v61 = vmul.f32 %v15139_v29, %v15139_v29 }
 0x7d7   :  { %11045 = vmatprep.subr.mxu1 %v16051_v58  ;;  %v15154_v43 = vpop.f32.mrf.mxu0  ;;  %v15171_v4 = vpop.f32.mrf.mxu1  ;;  %11225 = vmatprep.subr.mxu0 %v16051_v58 }
 0x7d8   :  { %11046 = vmatpush3.msra.mxu1 %v5065_v36 }
 0x7d9   :  { %11009 = vmatmul.mubr.msk.f32.gmra.mxu1 %vm4028_vm5, %v14968_v49  ;;  %11047 = vmatprep.subr.mxu1 %v16051_v58  ;;  %v15159_v41 = vpop.f32.mrf.mxu0  ;;  %v10833_v24 = vpop.f32.mrf.mxu1 }
 0x7da   :  { %11048 = vmatpush3.msra.mxu1 %v11032_v18  ;;  %11011 = vmatprep.mubr.msk.f32.mxu1 %vm12241_vm6, %v16051_v58 }
 0x7db   :  { %11049 = vmatprep.subr.mxu1 %v16051_v58  ;;  %v15166_v50 = vpop.f32.mrf.mxu0 }
 0x7dc   :  { %11050 = vmatpush3.msra.mxu1 %v5055_v2 }
 0x7dd   :  { %11012 = vmatmul.mubr.msk.f32.gmra.mxu1 %vm4028_vm5, %v14979_v34  ;;  %11051 = vmatprep.subr.mxu1 %v16051_v58  ;;  %v11090_v60 = vpop.f32.mrf.mxu0 }
 0x7de   :  { %11052 = vmatpush3.msra.mxu1 %v11029_v27  ;;  %11014 = vmatprep.mubr.msk.f32.mxu1 %vm12241_vm6, %v16051_v58 }
 0x7df   :  { %11053 = vmatprep.subr.mxu1 %v16051_v58  ;;  %v5418_v19 = vpop.f32.mrf.mxu0 }
 0x7e0   :  { %11054 = vmatpush3.msra.mxu1 %v5045_v53 }
 0x7e1   :  { %11015 = vmatmul.mubr.msk.f32.gmra.mxu1 %vm4028_vm5, %v14989_v26  ;;  %11055 = vmatprep.subr.mxu1 %v16051_v58  ;;  %v11093_v17 = vpop.f32.mrf.mxu0 }
 0x7e2   :  { %11056 = vmatpush3.msra.mxu1 %v15109_v7  ;;  %11063 = vmatprep.mubr.msk.f32.mxu1 %vm12241_vm6, %v16051_v58 }
 0x7e3   :  { %11057 = vmatprep.subr.mxu1 %v16051_v58  ;;  %v5428_v47 = vpop.f32.mrf.mxu0 }
 0x7e4   :  { %11058 = vmatpush3.msra.mxu1 %v15114_v62 }
 0x7e5   :  { %11059 = vmatprep.subr.mxu1 %v16051_v58  ;;  %v11096_v40 = vpop.f32.mrf.mxu0 }
 0x7e6   :  { %11060 = vmatpush3.msra.mxu1 %v15099_v33 }
 0x7e7   :  { %11061 = vmatprep.subr.mxu1 %v16051_v58  ;;  %v5438_v35 = vpop.f32.mrf.mxu0 }
 0x7e8   :  { %11062 = vmatpush3.msra.mxu1 %v15104_v63 }
 0x7e9   :  { %11064 = vmatmul.mubr.msk.f32.vlgmr.msra.gmra.mxu1 %vm4028_vm5, %v14933_v15  ;;  %v11099_v20 = vpop.f32.mrf.mxu0 }
 0x7ea   :  { %11100 = vmatprep.subr.mxu1 %v11099_v20  ;;  %11066 = vmatprep.mubr.msk.f32.mxu1 %vm12241_vm6, %v16051_v58 }
 0x7eb   :  { %v5448_v0 = vpop.f32.mrf.mxu0  ;;  %11101 = vmatpush3.msra.mxu1 %v11099_v20  ;;  %v15264_v20 = vstv %s3866_s28 }
 0x7ec   :  { %11102 = vmatprep.subr.mxu1 %v5448_v0 }
 0x7ed   :  { %11067 = vmatmul.mubr.msk.f32.gmra.mxu1 %vm4028_vm5, %v14959_v55  ;;  %v15194_v13 = vpop.f32.mrf.mxu0 }
 0x7ee   :  { %11103 = vmatpush3.msra.mxu1 %v5448_v0  ;;  %11069 = vmatprep.mubr.msk.f32.mxu1 %vm12241_vm6, %v16051_v58  ;;  %v5176_v0 = vmul.f32 %v15149_v10, %v15149_v10 }
 0x7ef   :  { %11104 = vmatprep.subr.mxu1 %v11096_v40  ;;  %v15198_v25 = vpop.f32.mrf.mxu0 }
 0x7f0   :  { %11105 = vmatpush3.msra.mxu1 %v11096_v40 }
 0x7f1   :  { %11106 = vmatprep.subr.mxu1 %v5438_v35  ;;  %11070 = vmatmul.mubr.msk.f32.gmra.mxu1 %vm4028_vm5, %v14968_v49  ;;  %v11142_v15 = vpop.f32.mrf.mxu0  ;;  %v5326_v49 = vld [vmem:[#allocation17] sm:$0xff] }
 0x7f2   :  { %11107 = vmatpush3.msra.mxu1 %v5438_v35  ;;  %11072 = vmatprep.mubr.msk.f32.mxu1 %vm12241_vm6, %v16051_v58 }
 0x7f3   :  { %11108 = vmatprep.subr.mxu1 %v11093_v17  ;;  %v5646_v55 = vpop.f32.mrf.mxu0 }
 0x7f4   :  { %11109 = vmatpush3.msra.mxu1 %v11093_v17 }
 0x7f5   :  { %11110 = vmatprep.subr.mxu1 %v5428_v47  ;;  %11073 = vmatmul.mubr.msk.f32.gmra.mxu1 %vm4028_vm5, %v14979_v34  ;;  %v11145_v52 = vpop.f32.mrf.mxu0 }
 0x7f6   :  { %11111 = vmatpush3.msra.mxu1 %v5428_v47  ;;  %11075 = vmatprep.mubr.msk.f32.mxu1 %vm12241_vm6, %v16051_v58 }
 0x7f7   :  { %11112 = vmatprep.subr.mxu1 %v11090_v60  ;;  %v5656_v11 = vpop.f32.mrf.mxu0 }
 0x7f8   :  { %11113 = vmatpush3.msra.mxu1 %v11090_v60 }
 0x7f9   :  { %11114 = vmatprep.subr.mxu1 %v5418_v19  ;;  %11076 = vmatmul.mubr.msk.f32.gmra.mxu1 %vm4028_vm5, %v14989_v26  ;;  %v11148_v46 = vpop.f32.mrf.mxu0  ;;  %v5327_v26 = vld [vmem:[#allocation17 + $0x8] sm:$0xff] }
 0x7fa   :  { %11115 = vmatpush3.msra.mxu1 %v5418_v19  ;;  %11124 = vmatprep.mubr.msk.f32.mxu1 %vm4028_vm5, %v5326_v49 }
 0x7fb   :  { %11116 = vmatprep.subr.mxu1 %v15159_v41  ;;  %v5666_v34 = vpop.f32.mrf.mxu0 }
 0x7fc   :  { %11117 = vmatpush3.msra.mxu1 %v15159_v41 }
 0x7fd   :  { %11118 = vmatprep.subr.mxu1 %v15166_v50  ;;  %v11151_v9 = vpop.f32.mrf.mxu0 }
 0x7fe   :  { %11119 = vmatpush3.msra.mxu1 %v15166_v50 }
 0x7ff   :  { %11120 = vmatprep.subr.mxu1 %v15147_v30  ;;  %v5676_v31 = vpop.f32.mrf.mxu0 }
 0x800   :  { %11121 = vmatpush3.msra.mxu1 %v15147_v30 }
 0x801   :  { %11122 = vmatprep.subr.mxu1 %v15154_v43  ;;  %v11154_v42 = vpop.f32.mrf.mxu0 }
 0x802   :  { %11123 = vmatpush3.msra.mxu1 %v15154_v43 }
 0x803   :  { %11125 = vmatmul.mubr.msk.f32.vlgmr.msra.gmra.mxu1 %vm4028_vm5, %v5327_v26  ;;  %11155 = vmatprep.subr.mxu1 %v11154_v42  ;;  %v5686_v12 = vpop.f32.mrf.mxu0 }
 0x804   :  { %11156 = vmatpush3.msra.mxu1 %v11154_v42  ;;  %11127 = vmatprep.mubr.msk.f32.mxu1 %vm4028_vm5, %v5328_v28 }
 0x805   :  { %11157 = vmatprep.subr.mxu1 %v5686_v12 }
 0x806   :  { %11158 = vmatpush3.msra.mxu1 %v5686_v12 }
 0x807   :  { %11128 = vmatmul.mubr.msk.f32.gmra.mxu1 %vm4028_vm5, %v5329_v54  ;;  %11159 = vmatprep.subr.mxu1 %v11151_v9 }
 0x808   :  { %11160 = vmatpush3.msra.mxu1 %v11151_v9  ;;  %11130 = vmatprep.mubr.msk.f32.mxu1 %vm4028_vm5, %v5330_v21 }
 0x809   :  { %11161 = vmatprep.subr.mxu1 %v5676_v31 }
 0x80a   :  { %11162 = vmatpush3.msra.mxu1 %v5676_v31  ;;  %v5177_v31 = vmul.f32 %v15161_v48, %v15161_v48 }
 0x80b   :  { %11131 = vmatmul.mubr.msk.f32.gmra.mxu1 %vm4028_vm5, %v5331_v37  ;;  %11163 = vmatprep.subr.mxu1 %v11148_v46 }
 0x80c   :  { %11164 = vmatpush3.msra.mxu1 %v11148_v46  ;;  %11179 = vmatprep.mubr.msk.f32.mxu1 %vm4028_vm5, %v5326_v49 }
 0x80d   :  { %11165 = vmatprep.subr.mxu1 %v5666_v34 }
 0x80e   :  { %11166 = vmatpush3.msra.mxu1 %v5666_v34 }
 0x80f   :  { %11167 = vmatprep.subr.mxu1 %v11145_v52 }
 0x810   :  { %11168 = vmatpush3.msra.mxu1 %v11145_v52  ;;  %v15269_v52 = vstv %s3864_s29 }
 0x811   :  { %11169 = vmatprep.subr.mxu1 %v5656_v11 }
 0x812   :  { %11170 = vmatpush3.msra.mxu1 %v5656_v11 }
 0x813   :  { %11171 = vmatprep.subr.mxu1 %v11142_v15 }
 0x814   :  { %11172 = vmatpush3.msra.mxu1 %v11142_v15 }
 0x815   :  { %11173 = vmatprep.subr.mxu1 %v5646_v55 }
 0x816   :  { %11174 = vmatpush3.msra.mxu1 %v5646_v55 }
 0x817   :  { %11175 = vmatprep.subr.mxu1 %v15194_v13 }
 0x818   :  { %11176 = vmatpush3.msra.mxu1 %v15194_v13 }
 0x819   :  { %11177 = vmatprep.subr.mxu1 %v15198_v25 }
 0x81a   :  { %11178 = vmatpush3.msra.mxu1 %v15198_v25 }
 0x81b   :  { %11180 = vmatmul.mubr.msk.f32.vlgmr.msra.gmra.mxu1 %vm4028_vm5, %v5327_v26  ;;  %11199 = vmatprep.subr.mxu1 %v16051_v58 }
 0x81c   :  { %11182 = vmatprep.mubr.msk.f32.mxu1 %vm4028_vm5, %v5328_v28 }
 0x81f   :  { %11183 = vmatmul.mubr.msk.f32.gmra.mxu1 %vm4028_vm5, %v5329_v54 }
 0x820   :  { %11185 = vmatprep.mubr.msk.f32.mxu1 %vm4028_vm5, %v5330_v21 }
 0x823   :  { %11186 = vmatmul.mubr.msk.f32.gmra.mxu1 %vm4028_vm5, %v5331_v37 }
 0x824   :  { %11211 = vmatprep.mubr.msk.f32.mxu1 %vm12241_vm6, %v16051_v58 }
 0x861   :  { %v15242_v14 = vpop.f32.mrf.mxu1 }
 0x862   :  { %v5179_v45 = vmul.f32 %v15242_v14, %v15242_v14 }
 0x863   :  { %v10882_v5 = vpop.f32.mrf.mxu1 }
 0x864   :  { %v5276_v40 = vadd.f32 %v5179_v45, %v5174_v23 }
 0x865   :  { %v15244_v57 = vpop.f32.mrf.mxu1 }
 0x866   :  { %v5180_v38 = vmul.f32 %v15244_v57, %v15244_v57  ;;  %v5281_v34 = vadd.f32 %v5276_v40, %v15269_v52 }
 0x867   :  { %v10885_v32 = vpop.f32.mrf.mxu1 }
 0x868   :  { %v5277_v11 = vadd.f32 %v5180_v38, %v5175_v61 }
 0x869   :  { %v15246_v59 = vpop.f32.mrf.mxu1 }
 0x86a   :  { %v5181_v17 = vmul.f32 %v15246_v59, %v15246_v59  ;;  %v5282_v21 = vadd.f32 %v5277_v11, %v15269_v52 }
 0x86b   :  { %v10888_v22 = vpop.f32.mrf.mxu1 }
 0x86c   :  { %v5278_v37 = vadd.f32 %v5181_v17, %v5176_v0  ;;  %v5178_v22 = vmul.f32 %v15171_v4, %v15171_v4 }
 0x86d   :  { %v15248_v6 = vpop.f32.mrf.mxu1 }
 0x86e   :  { %v5182_v49 = vmul.f32 %v15248_v6, %v15248_v6 }
 0x86f   :  { %v10891_v8 = vpop.f32.mrf.mxu1 }
 0x871   :  { %v15250_v1 = vpop.f32.mrf.mxu1 }
 0x872   :  { %v5183_v5 = vmul.f32 %v15250_v1, %v15250_v1 }
 0x873   :  { %v10894_v51 = vpop.f32.mrf.mxu1 }
 0x879   :  { %v4624_v33 = vpop.f32.mrf.mxu1 }
 0x87a   :  { %v5189_v41 = vsub.f32 %v4624_v33, %v5174_v23 }
 0x87b   :  { %v10943_v63 = vpop.f32.mrf.mxu1 }
 0x87d   :  { %v4629_v7 = vpop.f32.mrf.mxu1 }
 0x87e   :  { %v5190_v47 = vsub.f32 %v4629_v7, %v5175_v61 }
 0x87f   :  { %v10946_v62 = vpop.f32.mrf.mxu1 }
 0x880   :  { %v5184_v62 = vmul.f32 %v15242_v14, %v15119_v44  ;;  %v5280_v44 = vadd.f32 %v5183_v5, %v5178_v22 }
 0x881   :  { %v4634_v27 = vpop.f32.mrf.mxu1 }
 0x882   :  { %v5191_v46 = vsub.f32 %v4634_v27, %v5176_v0  ;;  %v5283_v27 = vadd.f32 %v5278_v37, %v15269_v52 }
 0x883   :  { %v10949_v53 = vpop.f32.mrf.mxu1 }
 0x884   :  { %v5279_v53 = vadd.f32 %v5182_v49, %v5177_v31 }
 0x885   :  { %v4639_v3 = vpop.f32.mrf.mxu1 }
 0x886   :  { %v5192_v32 = vsub.f32 %v4639_v3, %v5177_v31 }
 0x887   :  { %v10952_v18 = vpop.f32.mrf.mxu1 }
 0x889   :  { %v15252_v2 = vpop.f32.mrf.mxu1 }
 0x88a   :  { %v5193_v18 = vsub.f32 %v15252_v2, %v5178_v22 }
 0x88b   :  { %v10955_v56 = vpop.f32.mrf.mxu1 }
 0x891   :  { %v4887_v36 = vpop.f32.mrf.mxu1 }
 0x892   :  { %v5194_v30 = vsub.f32 %v4887_v36, %v5179_v45  ;;  %v5260_v45 = vmul.f32 2.0, %v5184_v62 }
 0x893   :  { %v11004_v39 = vpop.f32.mrf.mxu1 }
 0x894   :  { %v5215_v19 = vadd.f32 %v5194_v30, %v5189_v41  ;;  %v5185_v39 = vmul.f32 %v15244_v57, %v15139_v29  ;;  %v5284_v30 = vadd.f32 %v5279_v53, %v15269_v52  ;;  %v5285_v29 = vadd.f32 %v5280_v44, %v15269_v52 }
 0x895   :  { %v4892_v43 = vpop.f32.mrf.mxu1 }
 0x896   :  { %v5195_v60 = vsub.f32 %v4892_v43, %v5180_v38  ;;  %v5220_v15 = vadd.f32 %v5215_v19, %v15264_v20  ;;  %v5261_v61 = vmul.f32 2.0, %v5185_v39 }
 0x897   :  { %v11007_v50 = vpop.f32.mrf.mxu1 }
 0x898   :  { %v5216_v13 = vadd.f32 %v5195_v60, %v5190_v47  ;;  %v5286_v12 = vmul.f32 %v5281_v34, %v5220_v15  ;;  %11715 = vrcp.f32 %v5220_v15  ;;  %v5266_v50 = vadd.f32 %v15269_v52, %v5260_v45 }
 0x899   :  { %v4897_v24 = vpop.f32.mrf.mxu1  ;;  %v5186_v60 = vmul.f32 %v15246_v59, %v15149_v10 }
 0x89a   :  { %v5196_v25 = vsub.f32 %v4897_v24, %v5181_v17  ;;  %v5221_v26 = vadd.f32 %v5216_v13, %v15264_v20  ;;  %11717 = vrcp.f32 %v5286_v12  ;;  %v5188_v12 = vmul.f32 %v15250_v1, %v15171_v4 }
 0x89b   :  { %v11010_v35 = vpop.f32.mrf.mxu1  ;;  %v5262_v13 = vmul.f32 2.0, %v5186_v60 }
 0x89c   :  { %v5217_v42 = vadd.f32 %v5196_v25, %v5191_v46  ;;  %v5287_v51 = vmul.f32 %v5282_v21, %v5221_v26  ;;  %11719 = vrcp.f32 %v5221_v26  ;;  %v5187_v25 = vmul.f32 %v15248_v6, %v15161_v48 }
 0x89d   :  { %v4902_v55 = vpop.f32.mrf.mxu1  ;;  %v5268_v48 = vadd.f32 %v15269_v52, %v5262_v13 }
 0x89e   :  { %v5197_v28 = vsub.f32 %v4902_v55, %v5182_v49  ;;  %v5222_v33 = vadd.f32 %v5217_v42, %v15264_v20  ;;  %11721 = vrcp.f32 %v5287_v51  ;;  %v5267_v55 = vadd.f32 %v15269_v52, %v5261_v61 }
 0x89f   :  { %v11013_v9 = vpop.f32.mrf.mxu1  ;;  %v5263_v6 = vmul.f32 2.0, %v5187_v25 }
 0x8a0   :  { %v5218_v63 = vadd.f32 %v5197_v28, %v5192_v32  ;;  %v5288_v3 = vmul.f32 %v5283_v27, %v5222_v33  ;;  %11723 = vrcp.f32 %v5222_v33 }
 0x8a1   :  { %v4907_v54 = vpop.f32.mrf.mxu1  ;;  %v5269_v1 = vadd.f32 %v15269_v52, %v5263_v6 }
 0x8a2   :  { %v5198_v7 = vsub.f32 %v4907_v54, %v5183_v5  ;;  %v5223_v56 = vadd.f32 %v5218_v63, %v15264_v20  ;;  %11725 = vrcp.f32 %v5288_v3 }
 0x8a3   :  { %v11016_v8 = vpop.f32.mrf.mxu1 }
 0x8a4   :  { %v5219_v36 = vadd.f32 %v5198_v7, %v5193_v18  ;;  %v5289_v38 = vmul.f32 %v5284_v30, %v5223_v56  ;;  %11727 = vrcp.f32 %v5223_v56  ;;  %v5264_v18 = vmul.f32 2.0, %v5188_v12 }
 0x8a5   :  { %v11716_v47 = vpop.eup %11715 }
 0x8a6   :  { %v5224_v2 = vadd.f32 %v5219_v36, %v15264_v20  ;;  %11729 = vrcp.f32 %v5289_v38 }
 0x8a7   :  { %v11718_v59 = vpop.eup %11717 }
 0x8a8   :  { %v5290_v40 = vmul.f32 %v5285_v29, %v5224_v2  ;;  %11731 = vrcp.f32 %v5224_v2 }
 0x8a9   :  { %v5150_v23 = vpop.f32.mrf.mxu1  ;;  %v11720_v46 = vpop.eup %11719 }
 0x8aa   :  { %v5199_v14 = vsub.f32 %v5150_v23, %v5184_v62  ;;  %11733 = vrcp.f32 %v5290_v40 }
 0x8ab   :  { %v11065_v43 = vpop.f32.mrf.mxu1  ;;  %v11722_v28 = vpop.eup %11721 }
 0x8ac   :  { %v5204_v41 = vmul.f32 2.0, %v5199_v14 }
 0x8ad   :  { %v5155_v19 = vpop.f32.mrf.mxu1  ;;  %v11724_v8 = vpop.eup %11723 }
 0x8ae   :  { %v5210_v57 = vadd.f32 %v15264_v20, %v5204_v41  ;;  %v5200_v24 = vsub.f32 %v5155_v19, %v5185_v39 }
 0x8af   :  { %v11068_v17 = vpop.f32.mrf.mxu1  ;;  %v11726_v4 = vpop.eup %11725 }
 0x8b0   :  { %v5271_v35 = vmul.f32 %v5266_v50, %v5210_v57  ;;  %v5205_v0 = vmul.f32 2.0, %v5200_v24  ;;  %v5226_v15 = vmul.f32 %v11716_v47, %v5210_v57 }
 0x8b1   :  { %v5160_v10 = vpop.f32.mrf.mxu1  ;;  %v11728_v30 = vpop.eup %11727 }
 0x8b2   :  { %v5211_v11 = vadd.f32 %v15264_v20, %v5205_v0  ;;  %v5201_v49 = vsub.f32 %v5160_v10, %v5186_v60  ;;  %v5292_v34 = vmul.f32 %v11718_v59, %v5271_v35  ;;  %v5236_v54 = vsel %vm5235_vm7, %v5226_v15, 0.0 }
 0x8b3   :  { %v11071_v9 = vpop.f32.mrf.mxu1  ;;  %v11730_v50 = vpop.eup %11729  ;;  %v5270_v60 = vadd.f32 %v15269_v52, %v5264_v18 }
 0x8b4   :  { %v5228_v31 = vmul.f32 %v11720_v46, %v5211_v11  ;;  %v5272_v26 = vmul.f32 %v5267_v55, %v5211_v11  ;;  %v5206_v42 = vmul.f32 2.0, %v5201_v49  ;;  %v5301_v63 = vsel %vm5235_vm7, %v5292_v34, 0.0 }
 0x8b5   :  { %v5165_v21 = vpop.f32.mrf.mxu1  ;;  %v11732_v24 = vpop.eup %11731 }
 0x8b6   :  { %v5237_v37 = vsel %vm5235_vm7, %v5228_v31, 0.0  ;;  %v5294_v5 = vmul.f32 %v11722_v28, %v5272_v26  ;;  %v5212_v32 = vadd.f32 %v15264_v20, %v5206_v42  ;;  %v5202_v22 = vsub.f32 %v5165_v21, %v5187_v25 }
 0x8b7   :  { %v11074_v51 = vpop.f32.mrf.mxu1  ;;  %v5238_v33 = vadd.f32 %v5237_v37, %v5236_v54  ;;  %v11734_v0 = vpop.eup %11733 }
 0x8b8   :  { %v5230_v7 = vmul.f32 %v11724_v8, %v5212_v32  ;;  %v5273_v62 = vmul.f32 %v5268_v48, %v5212_v32  ;;  %v5207_v27 = vmul.f32 2.0, %v5202_v22  ;;  %v5302_v53 = vsel %vm5235_vm7, %v5294_v5, 0.0 }
 0x8b9   :  { %v5170_v3 = vpop.f32.mrf.mxu1  ;;  %v5303_v56 = vadd.f32 %v5302_v53, %v5301_v63 }
 0x8ba   :  { %v5296_v36 = vmul.f32 %v11726_v4, %v5273_v62  ;;  %v5213_v45 = vadd.f32 %v15264_v20, %v5207_v27  ;;  %v5203_v39 = vsub.f32 %v5170_v3, %v5188_v12  ;;  %v5239_v23 = vsel %vm5235_vm7, %v5230_v7, 0.0 }
 0x8bb   :  { %v11077_v44 = vpop.f32.mrf.mxu1  ;;  %v5240_v14 = vadd.f32 %v5239_v23, %v5238_v33 }
 0x8bc   :  { %v5232_v43 = vmul.f32 %v11728_v30, %v5213_v45  ;;  %v5274_v38 = vmul.f32 %v5269_v1, %v5213_v45  ;;  %v5208_v2 = vmul.f32 2.0, %v5203_v39  ;;  %v5304_v41 = vsel %vm5235_vm7, %v5296_v36, 0.0 }
 0x8bd   :  { %v5305_v61 = vadd.f32 %v5304_v41, %v5303_v56 }
 0x8be   :  { %v5214_v19 = vadd.f32 %v15264_v20, %v5208_v2  ;;  %v5241_v29 = vsel %vm5235_vm7, %v5232_v43, 0.0  ;;  %v5298_v57 = vmul.f32 %v11730_v50, %v5274_v38 }
 0x8bf   :  { %v5242_v17 = vadd.f32 %v5241_v29, %v5240_v14 }
 0x8c0   :  { %v5275_v47 = vmul.f32 %v5270_v60, %v5214_v19  ;;  %v5234_v40 = vmul.f32 %v11732_v24, %v5214_v19  ;;  %v5306_v35 = vsel %vm5235_vm7, %v5298_v57, 0.0 }
 0x8c1   :  { %v5307_v13 = vadd.f32 %v5306_v35, %v5305_v61 }
 0x8c2   :  { %v5244_v25 = vsel %vm5243_vm8, %v5234_v40, 0.0  ;;  %v5300_v15 = vmul.f32 %v11734_v0, %v5275_v47 }
 0x8c3   :  { %v15317_v10 = vpop.f32.mrf.mxu1  ;;  %v5245_v59 = vadd.f32 %v5244_v25, %v5242_v17 }
 0x8c4   :  { %v5308_v52 = vsel %vm5243_vm8, %v5300_v15, 0.0  ;;  %v5794_v42 = vsel %vm5792_vm9, %v15317_v10, -inf  ;;  %v5814_v48 = vsel %vm5792_vm9, %v15317_v10, inf }
 0x8c5   :  { %v15319_v55 = vpop.f32.mrf.mxu1  ;;  %5246 = vadd.xlane.f32.xlu0 %v5245_v59  ;;  %v5309_v20 = vadd.f32 %v5308_v52, %v5307_v13 }
 0x8c6   :  { %11190 = vmatprep.mubr.msk.f32.mxu0 %vm5792_vm9, %v15319_v55  ;;  %v5793_v26 = vsel %vm5792_vm9, %v15319_v55, -inf  ;;  %v5813_v28 = vsel %vm5792_vm9, %v15319_v55, inf }
 0x8c7   :  { %v15323_v11 = vpop.f32.mrf.mxu1  ;;  %11191 = vmatmul.mubr.msk.f32.vlgmr.msra.gmra.mxu0 %vm5792_vm9, %v15317_v10  ;;  %5310 = vadd.xlane.f32.xlu1 %v5309_v20 }
 0x8c8   :  { %v5796_v8 = vsel %vm5792_vm9, %v15323_v11, -inf  ;;  %v5816_v51 = vsel %vm5792_vm9, %v15323_v11, inf }
 0x8c9   :  { %v15327_v49 = vpop.f32.mrf.mxu1 }
 0x8ca   :  { %11193 = vmatprep.mubr.msk.f32.mxu0 %vm5792_vm9, %v15327_v49  ;;  %v5795_v6 = vsel %vm5792_vm9, %v15327_v49, -inf  ;;  %v5815_v54 = vsel %vm5792_vm9, %v15327_v49, inf }
 0x8cb   :  { %v15331_v46 = vpop.f32.mrf.mxu1  ;;  %11194 = vmatmul.mubr.msk.f32.gmra.mxu0 %vm5792_vm9, %v15323_v11  ;;  %v5802_v63 = vmax.f32 %v5795_v6, %v5796_v8  ;;  %v5822_v62 = vmin.f32 %v5815_v54, %v5816_v51  ;;  %v6217_v51 = vmul.f32 %v15319_v55, %v15319_v55 }
 0x8cc   :  { %v5799_v34 = vsel %vm5792_vm9, %v15331_v46, -inf  ;;  %v5819_v9 = vsel %vm5792_vm9, %v15331_v46, inf }
 0x8cd   :  { %v15339_v31 = vpop.f32.mrf.mxu1  ;;  %v5800_v5 = vmax.f32 %v5794_v42, %v5799_v34  ;;  %v5820_v22 = vmin.f32 %v5814_v48, %v5819_v9  ;;  %v15377_v42 = vld [vmem:[#allocation20] sm:$0x3f] }
 0x8ce   :  { %11196 = vmatprep.mubr.msk.f32.mxu0 %vm5792_vm9, %v15339_v31  ;;  %v5797_v12 = vsel %vm5792_vm9, %v15339_v31, -inf  ;;  %v5817_v21 = vsel %vm5792_vm9, %v15339_v31, inf }
 0x8cf   :  { %11197 = vmatmul.mubr.msk.f32.gmra.mxu0 %vm5792_vm9, %v15331_v46  ;;  %v5798_v37 = vmax.f32 %v5793_v26, %v5797_v12  ;;  %v5818_v32 = vmin.f32 %v5813_v28, %v5817_v21 }
 0x8d0   :  { %11237 = vmatprep.mubr.msk.f32.mxu0 %vm12241_vm6, %v16051_v58 }
 0x8d1   :  { %v5801_v33 = vmax.f32 %v5798_v37, %v5800_v5  ;;  %v5821_v7 = vmin.f32 %v5818_v32, %v5820_v22 }
 0x8d3   :  { %v5803_v27 = vmax.f32 %v5801_v33, %v5802_v63  ;;  %v5823_v53 = vmin.f32 %v5821_v7, %v5822_v62  ;;  %v6218_v33 = vmul.f32 %v15317_v10, %v15317_v10  ;;  %v6219_v63 = vmul.f32 %v15327_v49, %v15327_v49 }
 0x8d4   :  { %v6220_v7 = vmul.f32 %v15323_v11, %v15323_v11  ;;  %v6221_v62 = vmul.f32 %v15339_v31, %v15339_v31 }
 0x8d5   :  { %5804 = vmax.xlane.f32.xlu0 %v5803_v27  ;;  %5824 = vmin.xlane.f32.xlu1 %v5823_v53  ;;  %v6222_v27 = vmul.f32 %v15331_v46, %v15331_v46 }
 0x8db   :  { %v15367_v52 = vpop.f32.mrf.mxu1 }
 0x8dd   :  { %v15370_v9 = vpop.f32.mrf.mxu1 }
 0x8df   :  { %v15374_v26 = vpop.f32.mrf.mxu1 }
 0x8e1   :  { %v15380_v28 = vpop.f32.mrf.mxu1 }
 0x8e3   :  { %v15389_v48 = vpop.f32.mrf.mxu1 }
 0x8e5   :  { %v15395_v6 = vpop.f32.mrf.mxu1 }
 0x94e   :  { %v5247_v4 = vpop.xlane.xlu0 %5246 }
 0x94f   :  { %v5248_v1 = vrot.slane %v5247_v4, 4 }
 0x950   :  { %v5311_v18 = vpop.xlane.xlu1 %5310 }
 0x951   :  { %v5249_v3 = vadd.f32 %v5248_v1, %v5247_v4  ;;  %v5312_v56 = vrot.slane %v5311_v18, 4 }
 0x953   :  { %v5250_v36 = vrot.slane %v5249_v3, 2  ;;  %v5313_v45 = vadd.f32 %v5312_v56, %v5311_v18 }
 0x955   :  { %v5314_v39 = vrot.slane %v5313_v45, 2  ;;  %v5251_v23 = vadd.f32 %v5250_v36, %v5249_v3 }
 0x957   :  { %v5252_v30 = vrot.slane %v5251_v23, 1  ;;  %v5315_v44 = vadd.f32 %v5314_v39, %v5313_v45  ;;  %v6406_v39 = vmul.f32 %v15370_v9, %v15370_v9 }
 0x959   :  { %v5253_v14 = vadd.f32 %v5252_v30, %v5251_v23  ;;  %v5316_v43 = vrot.slane %v5315_v44, 1  ;;  %v6407_v23 = vmul.f32 %v15367_v52, %v15367_v52  ;;  %v6408_v30 = vmul.f32 %v15380_v28, %v15380_v28 }
 0x95b   :  { %11594 = vpush %v5253_v14  ;;  %v5317_v38 = vadd.f32 %v5316_v43, %v5315_v44  ;;  %v6409_v44 = vmul.f32 %v15374_v26, %v15374_v26  ;;  %v6410_v14 = vmul.f32 %v15395_v6, %v15395_v6  ;;  %v6411_v43 = vmul.f32 %v15389_v48, %v15389_v48 }
 0x95d   :  { %11596 = vpush %v5317_v38 }
 0x95e   :  { %v5805_v2 = vpop.xlane.xlu0 %5804  ;;  %v5825_v41 = vpop.xlane.xlu1 %5824 }
 0x95f   :  { %v5806_v50 = vrot.slane %v5805_v2, 4  ;;  %v5826_v61 = vrot.slane %v5825_v41, 4 }
 0x961   :  { %v5807_v60 = vmax.f32 %v5805_v2, %v5806_v50  ;;  %v5827_v19 = vmin.f32 %v5825_v41, %v5826_v61 }
 0x963   :  { %v5808_v29 = vrot.slane %v5807_v60, 2  ;;  %v5828_v57 = vrot.slane %v5827_v19, 2 }
 0x965   :  { %v5809_v24 = vmax.f32 %v5807_v60, %v5808_v29  ;;  %v5829_v17 = vmin.f32 %v5827_v19, %v5828_v57  ;;  %v6595_v57 = vmul.f32 %v15370_v9, %v15319_v55 }
 0x967   :  { %v5810_v47 = vrot.slane %v5809_v24, 1  ;;  %v5830_v40 = vrot.slane %v5829_v17, 1 }
 0x969   :  { %v5811_v35 = vmax.f32 %v5809_v24, %v5810_v47  ;;  %v5831_v0 = vmin.f32 %v5829_v17, %v5830_v40  ;;  %v6596_v24 = vmul.f32 %v15367_v52, %v15317_v10  ;;  %v6597_v17 = vmul.f32 %v15380_v28, %v15327_v49 }
 0x96a   :  { %v6598_v47 = vmul.f32 %v15374_v26, %v15323_v11  ;;  %v6599_v40 = vmul.f32 %v15395_v6, %v15339_v31 }
 0x96b   :  { %11598 = vpush %v5811_v35 }
 0x96c   :  { %11600 = vpush %v5831_v0 }
 0x987   :  { %v11192_v13 = vpop.f32.mrf.mxu0 }
 0x989   :  { %v5931_v25 = vpop.f32.mrf.mxu0 }
 0x98b   :  { %v11195_v15 = vpop.f32.mrf.mxu0 }
 0x98c   :  { %s11595_s3 = spop %11594 }
 0x98d   :  { %s5257_s14 = smul.f32 0.0046296297, %s11595_s3  ;;  %v5941_v59 = vpop.f32.mrf.mxu0 }
 0x98e   :  { %s11597_s7 = spop %11596 }
 0x98f   :  { %5259 = sst [smem:[#allocation30 + $0x1]] %s5257_s14  ;;  %s5321_s21 = smul.f32 0.0046296297, %s11597_s7  ;;  %v11198_v20 = vpop.f32.mrf.mxu0 }
 0x990   :  { %11200 = vmatpush3.msra.mxu1 %v11198_v20 }
 0x991   :  { %5323 = sst [smem:[#allocation29 + $0x1]] %s5321_s21  ;;  %v5951_v34 = vpop.f32.mrf.mxu0  ;;  %11201 = vmatprep.subr.mxu1 %v16051_v58 }
 0x992   :  { %11202 = vmatpush3.msra.mxu1 %v5951_v34 }
 0x993   :  { %11203 = vmatprep.subr.mxu1 %v16051_v58 }
 0x994   :  { %11204 = vmatpush3.msra.mxu1 %v11195_v15 }
 0x995   :  { %11205 = vmatprep.subr.mxu1 %v16051_v58 }
 0x996   :  { %11206 = vmatpush3.msra.mxu1 %v5941_v59 }
 0x997   :  { %11207 = vmatprep.subr.mxu1 %v16051_v58 }
 0x998   :  { %11208 = vmatpush3.msra.mxu1 %v11192_v13 }
 0x999   :  { %11209 = vmatprep.subr.mxu1 %v16051_v58 }
 0x99a   :  { %11210 = vmatpush3.msra.mxu1 %v5931_v25 }
 0x99b   :  { %11212 = vmatmul.mubr.msk.f32.vlgmr.msra.gmra.mxu1 %vm5960_vm10, %v15377_v42  ;;  %11214 = vmatprep.subr.mxu1 %v15237_v16 }
 0x99c   :  { %11216 = vmatprep.mubr.msk.f32.mxu1 %vm5792_vm9, %v15370_v9  ;;  %11215 = vmatpush3.msra.mxu1 %v15237_v16  ;;  %s11599_s16 = spop %11598 }
 0x99d   :  { %11251 = vmatprep.subr.mxu1 %v16051_v58  ;;  %p5833_p5 = scmp.gt.f32.partialorder %s11599_s16, 128.0  ;;  %s11601_s25 = spop %11600 }
 0x99e   :  { %p5838_p6 = scmp.lt.f32.partialorder %s11601_s25, -0.5 }
 0x99f   :  { %11217 = vmatmul.mubr.msk.f32.vlgmr.msra.gmra.mxu1 %vm5792_vm9, %v15367_v52  ;;  %s5834_s6 = scalar_select %p5833_p5, 1, 0 }
 0x9a0   :  { %11219 = vmatprep.mubr.msk.f32.mxu1 %vm5792_vm9, %v15380_v28  ;;  %s5839_s4 = scalar_select %p5838_p6, 1, 0 }
 0x9a1   :  { %s5835_s0 = scvt.s32.f32 %s5834_s6 }
 0x9a2   :  { %s5840_s5 = scvt.s32.f32 %s5839_s4 }
 0x9a3   :  { %11220 = vmatmul.mubr.msk.f32.gmra.mxu1 %vm5792_vm9, %v15374_v26  ;;  %s5836_s30 = smul.f32 254.0, %s5835_s0 }
 0x9a4   :  { %11222 = vmatprep.mubr.msk.f32.mxu1 %vm5792_vm9, %v15395_v6  ;;  %s5841_s9 = smul.f32 -1.0, %s5840_s5 }
 0x9a5   :  { %s5837_s20 = sadd.f32 1.0, %s5836_s30 }
 0x9a7   :  { %11223 = vmatmul.mubr.msk.f32.gmra.mxu1 %vm5792_vm9, %v15389_v48  ;;  %s5842_s27 = ssub.f32 %s5837_s20, %s5841_s9 }
 0x9a8   :  { %11263 = vmatprep.mubr.msk.f32.mxu1 %vm12241_vm6, %v16051_v58 }
 0x9a9   :  { %s5843_s8 = smul.f32 0.01, %s5842_s27 }
 0x9aa   :  { %s5845_s1 = smul.f32 0.03, %s5842_s27 }
 0x9ab   :  { %s15501_s11 = smul.f32 %s5843_s8, %s5843_s8 }
 0x9ac   :  { %s15505_s10 = smul.f32 %s5845_s1, %s5845_s1 }
 0xa5b   :  { %v15405_v12 = vpop.f32.mrf.mxu1 }
 0xa5c   :  { %v6784_v0 = vmul.f32 %v15405_v12, %v15405_v12 }
 0xa5d   :  { %v11213_v54 = vpop.f32.mrf.mxu1 }
 0xa5e   :  { %v6814_v54 = vstv %s15501_s11 }
 0xa5f   :  { %v11218_v21 = vpop.f32.mrf.mxu1 }
 0xa61   :  { %v6118_v37 = vpop.f32.mrf.mxu1 }
 0xa63   :  { %v11221_v5 = vpop.f32.mrf.mxu1 }
 0xa65   :  { %v6128_v32 = vpop.f32.mrf.mxu1 }
 0xa67   :  { %v11224_v22 = vpop.f32.mrf.mxu1 }
 0xa68   :  { %11226 = vmatpush3.msra.mxu0 %v11224_v22 }
 0xa69   :  { %v6138_v8 = vpop.f32.mrf.mxu1  ;;  %11227 = vmatprep.subr.mxu0 %v16051_v58 }
 0xa6a   :  { %11228 = vmatpush3.msra.mxu0 %v6138_v8 }
 0xa6b   :  { %11229 = vmatprep.subr.mxu0 %v16051_v58 }
 0xa6c   :  { %11230 = vmatpush3.msra.mxu0 %v11221_v5 }
 0xa6d   :  { %11231 = vmatprep.subr.mxu0 %v16051_v58 }
 0xa6e   :  { %11232 = vmatpush3.msra.mxu0 %v6128_v32 }
 0xa6f   :  { %11233 = vmatprep.subr.mxu0 %v16051_v58 }
 0xa70   :  { %11234 = vmatpush3.msra.mxu0 %v11218_v21 }
 0xa71   :  { %11235 = vmatprep.subr.mxu0 %v16051_v58 }
 0xa72   :  { %11236 = vmatpush3.msra.mxu0 %v6118_v37  ;;  %v6791_v37 = vstv %s15505_s10 }
 0xa73   :  { %11238 = vmatmul.mubr.msk.f32.vlgmr.msra.gmra.mxu0 %vm5960_vm10, %v15377_v42  ;;  %11240 = vmatprep.subr.mxu0 %v15237_v16 }
 0xa74   :  { %11242 = vmatprep.mubr.msk.f32.mxu0 %vm5792_vm9, %v6217_v51  ;;  %11241 = vmatpush3.msra.mxu0 %v15237_v16 }
 0xa75   :  { %11277 = vmatprep.subr.mxu0 %v16051_v58 }
 0xa77   :  { %11243 = vmatmul.mubr.msk.f32.vlgmr.msra.gmra.mxu0 %vm5792_vm9, %v6218_v33 }
 0xa78   :  { %11245 = vmatprep.mubr.msk.f32.mxu0 %vm5792_vm9, %v6219_v63 }
 0xa7b   :  { %11246 = vmatmul.mubr.msk.f32.gmra.mxu0 %vm5792_vm9, %v6220_v7 }
 0xa7c   :  { %11248 = vmatprep.mubr.msk.f32.mxu0 %vm5792_vm9, %v6221_v62  ;;  %v6837_v62 = vld [vmem:[#allocation22] sm:$0xff] }
 0xa7f   :  { %11249 = vmatmul.mubr.msk.f32.gmra.mxu0 %vm5792_vm9, %v6222_v27 }
 0xa80   :  { %11289 = vmatprep.mubr.msk.f32.mxu0 %vm12241_vm6, %v16051_v58 }
 0xb33   :  { %v15437_v53 = vpop.f32.mrf.mxu0 }
 0xb34   :  { %v6785_v35 = vmul.f32 %v15437_v53, %v15437_v53 }
 0xb35   :  { %v11239_v4 = vpop.f32.mrf.mxu0 }
 0xb36   :  { %v6817_v25 = vadd.f32 %v6785_v35, %v6784_v0 }
 0xb37   :  { %v11244_v1 = vpop.f32.mrf.mxu0 }
 0xb38   :  { %v6818_v5 = vadd.f32 %v6817_v25, %v6814_v54 }
 0xb39   :  { %v6307_v18 = vpop.f32.mrf.mxu0 }
 0xb3b   :  { %v11247_v3 = vpop.f32.mrf.mxu0 }
 0xb3d   :  { %v6317_v56 = vpop.f32.mrf.mxu0 }
 0xb3f   :  { %v11250_v36 = vpop.f32.mrf.mxu0 }
 0xb40   :  { %11252 = vmatpush3.msra.mxu1 %v11250_v36 }
 0xb41   :  { %v6327_v45 = vpop.f32.mrf.mxu0  ;;  %11253 = vmatprep.subr.mxu1 %v16051_v58 }
 0xb42   :  { %11254 = vmatpush3.msra.mxu1 %v6327_v45 }
 0xb43   :  { %11255 = vmatprep.subr.mxu1 %v16051_v58 }
 0xb44   :  { %11256 = vmatpush3.msra.mxu1 %v11247_v3 }
 0xb45   :  { %11257 = vmatprep.subr.mxu1 %v16051_v58 }
 0xb46   :  { %11258 = vmatpush3.msra.mxu1 %v6317_v56 }
 0xb47   :  { %11259 = vmatprep.subr.mxu1 %v16051_v58 }
 0xb48   :  { %11260 = vmatpush3.msra.mxu1 %v11244_v1 }
 0xb49   :  { %11261 = vmatprep.subr.mxu1 %v16051_v58 }
 0xb4a   :  { %11262 = vmatpush3.msra.mxu1 %v6307_v18 }
 0xb4b   :  { %11264 = vmatmul.mubr.msk.f32.vlgmr.msra.gmra.mxu1 %vm5960_vm10, %v15377_v42  ;;  %11266 = vmatprep.subr.mxu1 %v15237_v16 }
 0xb4c   :  { %11268 = vmatprep.mubr.msk.f32.mxu1 %vm5792_vm9, %v6406_v39  ;;  %11267 = vmatpush3.msra.mxu1 %v15237_v16 }
 0xb4d   :  { %11303 = vmatprep.subr.mxu1 %v16051_v58 }
 0xb4f   :  { %11269 = vmatmul.mubr.msk.f32.vlgmr.msra.gmra.mxu1 %vm5792_vm9, %v6407_v23  ;;  %v6838_v23 = vld [vmem:[%s15872_s13] sm:$0xff] }
 0xb50   :  { %11271 = vmatprep.mubr.msk.f32.mxu1 %vm5792_vm9, %v6408_v30 }
 0xb53   :  { %11272 = vmatmul.mubr.msk.f32.gmra.mxu1 %vm5792_vm9, %v6409_v44 }
 0xb54   :  { %11274 = vmatprep.mubr.msk.f32.mxu1 %vm5792_vm9, %v6410_v14  ;;  %v6839_v14 = vld [vmem:[%s15872_s13 + $0x8] sm:$0xff] }
 0xb57   :  { %11275 = vmatmul.mubr.msk.f32.gmra.mxu1 %vm5792_vm9, %v6411_v43 }
 0xb58   :  { %11315 = vmatprep.mubr.msk.f32.mxu1 %vm12241_vm6, %v16051_v58 }
 0xc0b   :  { %v6402_v38 = vpop.f32.mrf.mxu1 }
 0xc0c   :  { %v6787_v15 = vsub.f32 %v6402_v38, %v6784_v0  ;;  %v6840_v38 = vld [vmem:[%s15872_s13 + $0x10] sm:$0xff] }
 0xc0d   :  { %v11265_v2 = vpop.f32.mrf.mxu1 }
 0xc0e   :  { %v15586_v2 = vld [vmem:[#allocation23] sm:$0xf] }
 0xc0f   :  { %v11270_v41 = vpop.f32.mrf.mxu1 }
 0xc11   :  { %v6496_v50 = vpop.f32.mrf.mxu1 }
 0xc13   :  { %v11273_v61 = vpop.f32.mrf.mxu1 }
 0xc15   :  { %v6506_v60 = vpop.f32.mrf.mxu1 }
 0xc17   :  { %v11276_v19 = vpop.f32.mrf.mxu1 }
 0xc18   :  { %11278 = vmatpush3.msra.mxu0 %v11276_v19 }
 0xc19   :  { %v6516_v29 = vpop.f32.mrf.mxu1  ;;  %11279 = vmatprep.subr.mxu0 %v16051_v58 }
 0xc1a   :  { %11280 = vmatpush3.msra.mxu0 %v6516_v29 }
 0xc1b   :  { %11281 = vmatprep.subr.mxu0 %v16051_v58 }
 0xc1c   :  { %11282 = vmatpush3.msra.mxu0 %v11273_v61 }
 0xc1d   :  { %11283 = vmatprep.subr.mxu0 %v16051_v58 }
 0xc1e   :  { %11284 = vmatpush3.msra.mxu0 %v6506_v60 }
 0xc1f   :  { %11285 = vmatprep.subr.mxu0 %v16051_v58 }
 0xc20   :  { %11286 = vmatpush3.msra.mxu0 %v11270_v41 }
 0xc21   :  { %11287 = vmatprep.subr.mxu0 %v16051_v58 }
 0xc22   :  { %11288 = vmatpush3.msra.mxu0 %v6496_v50 }
 0xc23   :  { %11290 = vmatmul.mubr.msk.f32.vlgmr.msra.gmra.mxu0 %vm5960_vm10, %v15377_v42  ;;  %11292 = vmatprep.subr.mxu0 %v15237_v16 }
 0xc24   :  { %11294 = vmatprep.mubr.msk.f32.mxu0 %vm5792_vm9, %v6595_v57  ;;  %11293 = vmatpush3.msra.mxu0 %v15237_v16  ;;  %v6600_v16 = vmul.f32 %v15389_v48, %v15331_v46 }
 0xc25   :  { %11329 = vmatprep.subr.mxu0 %v16051_v58 }
 0xc27   :  { %11295 = vmatmul.mubr.msk.f32.vlgmr.msra.gmra.mxu0 %vm5792_vm9, %v6596_v24 }
 0xc28   :  { %11297 = vmatprep.mubr.msk.f32.mxu0 %vm5792_vm9, %v6597_v17 }
 0xc2b   :  { %11298 = vmatmul.mubr.msk.f32.gmra.mxu0 %vm5792_vm9, %v6598_v47 }
 0xc2c   :  { %11300 = vmatprep.mubr.msk.f32.mxu0 %vm5792_vm9, %v6599_v40 }
 0xc2f   :  { %11301 = vmatmul.mubr.msk.f32.gmra.mxu0 %vm5792_vm9, %v6600_v16 }
 0xc30   :  { %11341 = vmatprep.mubr.msk.f32.mxu0 %vm12241_vm6, %v16051_v58 }
 0xce3   :  { %v6591_v13 = vpop.f32.mrf.mxu0 }
 0xce4   :  { %v6788_v59 = vsub.f32 %v6591_v13, %v6785_v35 }
 0xce5   :  { %v11291_v20 = vpop.f32.mrf.mxu0 }
 0xce6   :  { %v6793_v34 = vadd.f32 %v6788_v59, %v6787_v15 }
 0xce7   :  { %v11296_v21 = vpop.f32.mrf.mxu0 }
 0xce8   :  { %v6794_v32 = vadd.f32 %v6793_v34, %v6791_v37 }
 0xce9   :  { %v6685_v22 = vpop.f32.mrf.mxu0 }
 0xcea   :  { %v6819_v8 = vmul.f32 %v6818_v5, %v6794_v32  ;;  %11735 = vrcp.f32 %v6794_v32 }
 0xceb   :  { %v11299_v51 = vpop.f32.mrf.mxu0 }
 0xcec   :  { %11737 = vrcp.f32 %v6819_v8 }
 0xced   :  { %v6695_v33 = vpop.f32.mrf.mxu0 }
 0xcef   :  { %v11302_v63 = vpop.f32.mrf.mxu0 }
 0xcf0   :  { %11304 = vmatpush3.msra.mxu1 %v11302_v63 }
 0xcf1   :  { %v6705_v7 = vpop.f32.mrf.mxu0  ;;  %11305 = vmatprep.subr.mxu1 %v16051_v58 }
 0xcf2   :  { %11306 = vmatpush3.msra.mxu1 %v6705_v7 }
 0xcf3   :  { %11307 = vmatprep.subr.mxu1 %v16051_v58 }
 0xcf4   :  { %11308 = vmatpush3.msra.mxu1 %v11299_v51 }
 0xcf5   :  { %11309 = vmatprep.subr.mxu1 %v16051_v58 }
 0xcf6   :  { %11310 = vmatpush3.msra.mxu1 %v6695_v33 }
 0xcf7   :  { %11311 = vmatprep.subr.mxu1 %v16051_v58 }
 0xcf8   :  { %11312 = vmatpush3.msra.mxu1 %v11296_v21 }
 0xcf9   :  { %11313 = vmatprep.subr.mxu1 %v16051_v58 }
 0xcfa   :  { %11314 = vmatpush3.msra.mxu1 %v6685_v22 }
 0xcfb   :  { %11316 = vmatmul.mubr.msk.f32.vlgmr.msra.gmra.mxu1 %vm5960_vm10, %v15377_v42  ;;  %11318 = vmatprep.subr.mxu1 %v6837_v62  ;;  %v11736_v42 = vpop.eup %11735 }
 0xcfc   :  { %11320 = vmatprep.mubr.msk.f32.mxu1 %vm5792_vm9, %v15319_v55  ;;  %11319 = vmatpush3.msra.mxu1 %v6837_v62  ;;  %v11738_v27 = vpop.eup %11737 }
 0xcfd   :  { %11350 = vmatprep.subr.mxu1 %v6837_v62 }
 0xcff   :  { %11321 = vmatmul.mubr.msk.f32.vlgmr.msra.gmra.mxu1 %vm5792_vm9, %v15317_v10  ;;  %v6786_v10 = vmul.f32 %v15437_v53, %v15405_v12 }
 0xd00   :  { %11323 = vmatprep.mubr.msk.f32.mxu1 %vm5792_vm9, %v15327_v49  ;;  %11351 = vmatpush3.msra.mxu1 %v6837_v62 }
 0xd01   :  { %11382 = vmatprep.subr.mxu1 %v16051_v58 }
 0xd03   :  { %11324 = vmatmul.mubr.msk.f32.gmra.mxu1 %vm5792_vm9, %v15323_v11  ;;  %v6813_v11 = vmul.f32 2.0, %v6786_v10 }
 0xd04   :  { %11326 = vmatprep.mubr.msk.f32.mxu1 %vm5792_vm9, %v15339_v31 }
 0xd07   :  { %11327 = vmatmul.mubr.msk.f32.gmra.mxu1 %vm5792_vm9, %v15331_v46 }
 0xd08   :  { %11352 = vmatprep.mubr.msk.f32.mxu1 %vm5792_vm9, %v15370_v9  ;;  %v6815_v9 = vadd.f32 %v6814_v54, %v6813_v11 }
 0xd0b   :  { %11353 = vmatmul.mubr.msk.f32.vlgmr.msra.gmra.mxu1 %vm5792_vm9, %v15367_v52 }
 0xd0c   :  { %11355 = vmatprep.mubr.msk.f32.mxu1 %vm5792_vm9, %v15380_v28  ;;  %11383 = vmatpush3.msk.msra.mxu1 %vm7254_vm12, %v15586_v2 }
 0xd0d   :  { %11413 = vmatprep.subr.mxu1 %v16051_v58 }
 0xd0f   :  { %11356 = vmatmul.mubr.msk.f32.gmra.mxu1 %vm5792_vm9, %v15374_v26 }
 0xd10   :  { %11358 = vmatprep.mubr.msk.f32.mxu1 %vm5792_vm9, %v15395_v6 }
 0xd13   :  { %11359 = vmatmul.mubr.msk.f32.gmra.mxu1 %vm5792_vm9, %v15389_v48 }
 0xd14   :  { %11384 = vmatprep.mubr.msk.f32.mxu1 %vm12241_vm6, %v16051_v58 }
 0xdbb   :  { %v6780_v55 = vpop.f32.mrf.mxu1 }
 0xdbc   :  { %v6789_v49 = vsub.f32 %v6780_v55, %v6786_v10 }
 0xdbd   :  { %v11317_v46 = vpop.f32.mrf.mxu1 }
 0xdbe   :  { %v6790_v31 = vmul.f32 2.0, %v6789_v49 }
 0xdbf   :  { %v11322_v52 = vpop.f32.mrf.mxu1 }
 0xdc0   :  { %v6792_v26 = vadd.f32 %v6791_v37, %v6790_v31 }
 0xdc1   :  { %v6907_v28 = vpop.f32.mrf.mxu1 }
 0xdc2   :  { %v6796_v48 = vmul.f32 %v11736_v42, %v6792_v26  ;;  %v6816_v6 = vmul.f32 %v6815_v9, %v6792_v26 }
 0xdc3   :  { %v11325_v4 = vpop.f32.mrf.mxu1 }
 0xdc4   :  { %v6798_v1 = vsel %vm6797_vm11, %v6796_v48, 0.0  ;;  %v6821_v18 = vmul.f32 %v11738_v27, %v6816_v6 }
 0xdc5   :  { %v6917_v3 = vpop.f32.mrf.mxu1  ;;  %6799 = vadd.xlane.f32.xlu0 %v6798_v1 }
 0xdc6   :  { %v6822_v12 = vsel %vm6797_vm11, %v6821_v18, 0.0 }
 0xdc7   :  { %v11328_v53 = vpop.f32.mrf.mxu1  ;;  %6823 = vadd.xlane.f32.xlu1 %v6822_v12 }
 0xdc8   :  { %11330 = vmatpush3.msra.mxu0 %v11328_v53 }
 0xdc9   :  { %v6927_v56 = vpop.f32.mrf.mxu1  ;;  %11331 = vmatprep.subr.mxu0 %v16051_v58 }
 0xdca   :  { %11332 = vmatpush3.msra.mxu0 %v6927_v56 }
 0xdcb   :  { %11333 = vmatprep.subr.mxu0 %v16051_v58  ;;  %v11354_v36 = vpop.f32.mrf.mxu1 }
 0xdcc   :  { %11334 = vmatpush3.msra.mxu0 %v11325_v4 }
 0xdcd   :  { %11335 = vmatprep.subr.mxu0 %v16051_v58  ;;  %v7091_v45 = vpop.f32.mrf.mxu1 }
 0xdce   :  { %11336 = vmatpush3.msra.mxu0 %v6917_v3 }
 0xdcf   :  { %11337 = vmatprep.subr.mxu0 %v16051_v58  ;;  %v11357_v39 = vpop.f32.mrf.mxu1 }
 0xdd0   :  { %11338 = vmatpush3.msra.mxu0 %v11322_v52 }
 0xdd1   :  { %11339 = vmatprep.subr.mxu0 %v16051_v58  ;;  %v7101_v30 = vpop.f32.mrf.mxu1 }
 0xdd2   :  { %11340 = vmatpush3.msra.mxu0 %v6907_v28 }
 0xdd3   :  { %11342 = vmatmul.mubr.msk.f32.vlgmr.msra.gmra.mxu0 %vm5960_vm10, %v6838_v23  ;;  %v11360_v44 = vpop.f32.mrf.mxu1  ;;  %11361 = vmatprep.subr.mxu0 %v16051_v58 }
 0xdd4   :  { %11362 = vmatpush3.msra.mxu0 %v11360_v44  ;;  %11344 = vmatprep.mubr.msk.f32.mxu0 %vm12241_vm6, %v16051_v58 }
 0xdd5   :  { %v7111_v43 = vpop.f32.mrf.mxu1  ;;  %11363 = vmatprep.subr.mxu0 %v16051_v58 }
 0xdd6   :  { %11364 = vmatpush3.msra.mxu0 %v7111_v43 }
 0xdd7   :  { %11345 = vmatmul.mubr.msk.f32.gmra.mxu0 %vm5960_vm10, %v6839_v14  ;;  %11365 = vmatprep.subr.mxu0 %v16051_v58 }
 0xdd8   :  { %11366 = vmatpush3.msra.mxu0 %v11357_v39  ;;  %11347 = vmatprep.mubr.msk.f32.mxu0 %vm12241_vm6, %v16051_v58 }
 0xdd9   :  { %11367 = vmatprep.subr.mxu0 %v16051_v58 }
 0xdda   :  { %11368 = vmatpush3.msra.mxu0 %v7101_v30 }
 0xddb   :  { %11348 = vmatmul.mubr.msk.f32.gmra.mxu0 %vm5960_vm10, %v6840_v38  ;;  %11369 = vmatprep.subr.mxu0 %v16051_v58 }
 0xddc   :  { %11370 = vmatpush3.msra.mxu0 %v11354_v36  ;;  %11373 = vmatprep.mubr.msk.f32.mxu0 %vm12241_vm6, %v16051_v58 }
 0xddd   :  { %11371 = vmatprep.subr.mxu0 %v16051_v58 }
 0xdde   :  { %11372 = vmatpush3.msra.mxu0 %v7091_v45 }
 0xddf   :  { %11374 = vmatmul.mubr.msk.f32.vlgmr.msra.gmra.mxu0 %vm5960_vm10, %v6838_v23  ;;  %11393 = vmatprep.subr.mxu0 %v16051_v58  ;;  %v15628_v23 = vld [vmem:[#allocation25] sm:$0x3f] }
 0xde0   :  { %11376 = vmatprep.mubr.msk.f32.mxu0 %vm12241_vm6, %v16051_v58 }
 0xde3   :  { %11377 = vmatmul.mubr.msk.f32.gmra.mxu0 %vm5960_vm10, %v6839_v14 }
 0xde4   :  { %11379 = vmatprep.mubr.msk.f32.mxu0 %vm12241_vm6, %v16051_v58 }
 0xde7   :  { %11380 = vmatmul.mubr.msk.f32.gmra.mxu0 %vm5960_vm10, %v6840_v38 }
 0xde8   :  { %11399 = vmatprep.mubr.msk.f32.mxu0 %vm12241_vm6, %v16051_v58 }
 0xe4e   :  { %v6800_v41 = vpop.xlane.xlu0 %6799 }
 0xe4f   :  { %v6801_v50 = vrot.slane %v6800_v41, 4 }
 0xe50   :  { %v6824_v61 = vpop.xlane.xlu1 %6823 }
 0xe51   :  { %v6802_v60 = vadd.f32 %v6801_v50, %v6800_v41  ;;  %v6825_v19 = vrot.slane %v6824_v61, 4 }
 0xe53   :  { %v6803_v29 = vrot.slane %v6802_v60, 2  ;;  %v6826_v57 = vadd.f32 %v6825_v19, %v6824_v61 }
 0xe55   :  { %v6827_v24 = vrot.slane %v6826_v57, 2  ;;  %v6804_v17 = vadd.f32 %v6803_v29, %v6802_v60 }
 0xe57   :  { %v6805_v47 = vrot.slane %v6804_v17, 1  ;;  %v6828_v40 = vadd.f32 %v6827_v24, %v6826_v57 }
 0xe59   :  { %v6806_v16 = vadd.f32 %v6805_v47, %v6804_v17  ;;  %v6829_v35 = vrot.slane %v6828_v40, 1 }
 0xe5b   :  { %11602 = vpush %v6806_v16  ;;  %v6830_v0 = vadd.f32 %v6829_v35, %v6828_v40 }
 0xe5d   :  { %11604 = vpush %v6830_v0 }
 0xe8c   :  { %s11603_s13 = spop %11602 }
 0xe8d   :  { %s6810_s15 = smul.f32 0.16666667, %s11603_s13 }
 0xe8e   :  { %s11605_s17 = spop %11604 }
 0xe8f   :  { %6812 = sst [smem:[#allocation30 + $0x2]] %s6810_s15  ;;  %s6834_s28 = smul.f32 0.16666667, %s11605_s17 }
 0xe91   :  { %6836 = sst [smem:[#allocation29 + $0x2]] %s6834_s28 }
 0xe93   :  { %v15591_v13 = vpop.f32.mrf.mxu0 }
 0xe94   :  { %11385 = vmatmul.mubr.msk.f32.vlgmr.msra.gmra.mxu1 %vm7202_vm13, %v15591_v13  ;;  %v7203_v54 = vsel %vm7202_vm13, %v15591_v13, -inf  ;;  %v7217_v21 = vsel %vm7202_vm13, %v15591_v13, inf  ;;  %v7571_v60 = vmul.f32 %v15591_v13, %v15591_v13 }
 0xe95   :  { %v11343_v25 = vpop.f32.mrf.mxu0  ;;  %11387 = vmatprep.mubr.msk.f32.mxu1 %vm12241_vm6, %v16051_v58 }
 0xe97   :  { %v15597_v15 = vpop.f32.mrf.mxu0 }
 0xe98   :  { %11388 = vmatmul.mubr.msk.f32.gmra.mxu1 %vm7202_vm13, %v15597_v15  ;;  %v7204_v59 = vsel %vm7202_vm13, %v15597_v15, -inf  ;;  %v7218_v20 = vsel %vm7202_vm13, %v15597_v15, inf  ;;  %v7572_v19 = vmul.f32 %v15597_v15, %v15597_v15 }
 0xe99   :  { %v11346_v34 = vpop.f32.mrf.mxu0  ;;  %11390 = vmatprep.mubr.msk.f32.mxu1 %vm12241_vm6, %v16051_v58  ;;  %v7206_v5 = vmax.f32 %v7203_v54, %v7204_v59  ;;  %v7220_v32 = vmin.f32 %v7217_v21, %v7218_v20 }
 0xe9b   :  { %v15611_v37 = vpop.f32.mrf.mxu0 }
 0xe9c   :  { %11391 = vmatmul.mubr.msk.f32.gmra.mxu1 %vm7202_vm13, %v15611_v37  ;;  %v7205_v22 = vsel %vm7202_vm13, %v15611_v37, -inf  ;;  %v7219_v8 = vsel %vm7202_vm13, %v15611_v37, inf  ;;  %v7573_v29 = vmul.f32 %v15611_v37, %v15611_v37 }
 0xe9d   :  { %v11349_v51 = vpop.f32.mrf.mxu0  ;;  %v7207_v33 = vmax.f32 %v7206_v5, %v7205_v22  ;;  %v7221_v63 = vmin.f32 %v7220_v32, %v7219_v8  ;;  %11419 = vmatprep.mubr.msk.f32.mxu1 %vm12241_vm6, %v16051_v58 }
 0xe9f   :  { %v15621_v7 = vpop.f32.mrf.mxu0  ;;  %7208 = vmax.xlane.f32.xlu0 %v7207_v33  ;;  %7222 = vmin.xlane.f32.xlu1 %v7221_v63 }
 0xea0   :  { %v7733_v25 = vmul.f32 %v15621_v7, %v15621_v7  ;;  %v7895_v33 = vmul.f32 %v15621_v7, %v15591_v13 }
 0xea1   :  { %v11375_v62 = vpop.f32.mrf.mxu0 }
 0xea3   :  { %v15623_v10 = vpop.f32.mrf.mxu0 }
 0xea4   :  { %v7734_v59 = vmul.f32 %v15623_v10, %v15623_v10  ;;  %v7896_v63 = vmul.f32 %v15623_v10, %v15597_v15 }
 0xea5   :  { %v11378_v55 = vpop.f32.mrf.mxu0 }
 0xea7   :  { %v15625_v11 = vpop.f32.mrf.mxu0 }
 0xea8   :  { %v7735_v20 = vmul.f32 %v15625_v11, %v15625_v11 }
 0xea9   :  { %v11381_v49 = vpop.f32.mrf.mxu0 }
 0xf28   :  { %v7209_v46 = vpop.xlane.xlu0 %7208  ;;  %v7223_v31 = vpop.xlane.xlu1 %7222 }
 0xf29   :  { %v7210_v52 = vrot.slane %v7209_v46, 4  ;;  %v7224_v9 = vrot.slane %v7223_v31, 4 }
 0xf2b   :  { %v7211_v26 = vmax.f32 %v7209_v46, %v7210_v52  ;;  %v7225_v42 = vmin.f32 %v7223_v31, %v7224_v9 }
 0xf2d   :  { %v7212_v28 = vrot.slane %v7211_v26, 2  ;;  %v7226_v48 = vrot.slane %v7225_v42, 2 }
 0xf2f   :  { %v7213_v6 = vmax.f32 %v7211_v26, %v7212_v28  ;;  %v7227_v27 = vmin.f32 %v7225_v42, %v7226_v48 }
 0xf31   :  { %v7214_v4 = vrot.slane %v7213_v6, 1  ;;  %v7228_v1 = vrot.slane %v7227_v27, 1 }
 0xf33   :  { %v7215_v18 = vmax.f32 %v7213_v6, %v7214_v4  ;;  %v7229_v3 = vmin.f32 %v7227_v27, %v7228_v1 }
 0xf35   :  { %11606 = vpush %v7215_v18 }
 0xf36   :  { %11608 = vpush %v7229_v3 }
 0xf54   :  { %v7324_v12 = vpop.f32.mrf.mxu1 }
 0xf56   :  { %v11386_v53 = vpop.f32.mrf.mxu1 }
 0xf58   :  { %v7329_v56 = vpop.f32.mrf.mxu1 }
 0xf5a   :  { %v11389_v36 = vpop.f32.mrf.mxu1 }
 0xf5b   :  { %v8110_v36 = vld [vmem:[#allocation28] sm:$0xff] }
 0xf5c   :  { %v7334_v45 = vpop.f32.mrf.mxu1 }
 0xf5d   :  { %11394 = vmatpush3.msra.mxu0 %v7334_v45 }
 0xf5e   :  { %v11392_v39 = vpop.f32.mrf.mxu1  ;;  %11395 = vmatprep.subr.mxu0 %v16051_v58 }
 0xf5f   :  { %11396 = vmatpush3.msra.mxu0 %v7329_v56  ;;  %v8109_v56 = vld [vmem:[#allocation26] sm:$0xf] }
 0xf60   :  { %11397 = vmatprep.subr.mxu0 %v16051_v58 }
 0xf61   :  { %11398 = vmatpush3.msra.mxu0 %v7324_v12 }
 0xf62   :  { %11400 = vmatmul.mubr.msk.f32.vlgmr.msra.gmra.mxu0 %vm7338_vm14, %v15628_v23  ;;  %11402 = vmatprep.subr.mxu0 %v16051_v58 }
 0xf63   :  { %11403 = vmatpush3.msk.msra.mxu0 %vm7254_vm12, %v15586_v2  ;;  %11404 = vmatprep.mubr.msk.f32.mxu0 %vm12241_vm6, %v16051_v58 }
 0xf64   :  { %11433 = vmatprep.subr.mxu0 %v16051_v58 }
 0xf66   :  { %11405 = vmatmul.mubr.msk.f32.vlgmr.msra.gmra.mxu0 %vm7202_vm13, %v15621_v7  ;;  %s11607_s29 = spop %11606 }
 0xf67   :  { %11407 = vmatprep.mubr.msk.f32.mxu0 %vm12241_vm6, %v16051_v58  ;;  %p7231_p7 = scmp.gt.f32.partialorder %s11607_s29, 128.0  ;;  %s11609_s3 = spop %11608 }
 0xf68   :  { %p7236_p8 = scmp.lt.f32.partialorder %s11609_s3, -0.5 }
 0xf69   :  { %s7232_s14 = scalar_select %p7231_p7, 1, 0 }
 0xf6a   :  { %11408 = vmatmul.mubr.msk.f32.gmra.mxu0 %vm7202_vm13, %v15623_v10  ;;  %s7237_s21 = scalar_select %p7236_p8, 1, 0 }
 0xf6b   :  { %11410 = vmatprep.mubr.msk.f32.mxu0 %vm12241_vm6, %v16051_v58  ;;  %s7233_s7 = scvt.s32.f32 %s7232_s14 }
 0xf6c   :  { %s7238_s25 = scvt.s32.f32 %s7237_s21 }
 0xf6d   :  { %s7234_s16 = smul.f32 254.0, %s7233_s7 }
 0xf6e   :  { %11411 = vmatmul.mubr.msk.f32.gmra.mxu0 %vm7202_vm13, %v15625_v11  ;;  %s7239_s0 = smul.f32 -1.0, %s7238_s25 }
 0xf6f   :  { %11439 = vmatprep.mubr.msk.f32.mxu0 %vm12241_vm6, %v16051_v58  ;;  %s7235_s6 = sadd.f32 1.0, %s7234_s16 }
 0xf71   :  { %s7240_s4 = ssub.f32 %s7235_s6, %s7239_s0 }
 0xf72   :  { %s16339_s6 = sld [smem:[#allocation154_spill]] }
 0xf73   :  { %s7241_s30 = smul.f32 0.01, %s7240_s4 }
 0xf74   :  { %s7243_s5 = smul.f32 0.03, %s7240_s4 }
 0xf75   :  { %s15729_s20 = smul.f32 %s7241_s30, %s7241_s30 }
 0xf76   :  { %s15733_s9 = smul.f32 %s7243_s5, %s7243_s5  ;;  %s16340_s5 = sld [smem:[#allocation153_spill]] }
 0xf77   :  { %v8086_v42 = vstv %s15729_s20 }
 0xf78   :  { %v8064_v48 = vstv %s15733_s9  ;;  %s9325_s0 = sshll.u32 %s16339_s6, 4  ;;  %s9326_s0 = int_to_ptr.vmem [resolvable:$true] %s9325_s0 }
 0xf79   :  { %p12178_p12 = scmp.lt.s32.totalorder %s9326_s0, %s9326_s0 }
 0xf7c   :  { %s9315_s20 = sshll.u32 %s16340_s5, 4  ;;  %s9316_s20 = int_to_ptr.vmem [resolvable:$true] %s9315_s20 }
0x1022   :  { %v15651_v30 = vpop.f32.mrf.mxu0 }
0x1023   :  { %v8057_v55 = vmul.f32 %v15651_v30, %v15651_v30 }
0x1024   :  { %v11401_v44 = vpop.f32.mrf.mxu0 }
0x1026   :  { %v7487_v14 = vpop.f32.mrf.mxu0 }
0x1028   :  { %v11406_v43 = vpop.f32.mrf.mxu0 }
0x102a   :  { %v7492_v38 = vpop.f32.mrf.mxu0 }
0x102c   :  { %v11409_v41 = vpop.f32.mrf.mxu0 }
0x102e   :  { %v7497_v50 = vpop.f32.mrf.mxu0 }
0x102f   :  { %11414 = vmatpush3.msra.mxu1 %v7497_v50 }
0x1030   :  { %v11412_v61 = vpop.f32.mrf.mxu0  ;;  %11415 = vmatprep.subr.mxu1 %v16051_v58 }
0x1031   :  { %11416 = vmatpush3.msra.mxu1 %v7492_v38 }
0x1032   :  { %11417 = vmatprep.subr.mxu1 %v16051_v58 }
0x1033   :  { %11418 = vmatpush3.msra.mxu1 %v7487_v14 }
0x1034   :  { %11420 = vmatmul.mubr.msk.f32.vlgmr.msra.gmra.mxu1 %vm7338_vm14, %v15628_v23  ;;  %11422 = vmatprep.subr.mxu1 %v16051_v58 }
0x1035   :  { %11423 = vmatpush3.msk.msra.mxu1 %vm7254_vm12, %v15586_v2  ;;  %11424 = vmatprep.mubr.msk.f32.mxu1 %vm12241_vm6, %v16051_v58 }
0x1036   :  { %11453 = vmatprep.subr.mxu1 %v16051_v58 }
0x1038   :  { %11425 = vmatmul.mubr.msk.f32.vlgmr.msra.gmra.mxu1 %vm7202_vm13, %v7571_v60 }
0x1039   :  { %11427 = vmatprep.mubr.msk.f32.mxu1 %vm12241_vm6, %v16051_v58 }
0x103c   :  { %11428 = vmatmul.mubr.msk.f32.gmra.mxu1 %vm7202_vm13, %v7572_v19 }
0x103d   :  { %11430 = vmatprep.mubr.msk.f32.mxu1 %vm12241_vm6, %v16051_v58 }
0x1040   :  { %11431 = vmatmul.mubr.msk.f32.gmra.mxu1 %vm7202_vm13, %v7573_v29 }
0x1041   :  { %11459 = vmatprep.mubr.msk.f32.mxu1 %vm12241_vm6, %v16051_v58 }
0x10f4   :  { %v15678_v57 = vpop.f32.mrf.mxu1 }
0x10f5   :  { %v8058_v62 = vmul.f32 %v15678_v57, %v15678_v57 }
0x10f6   :  { %v11421_v24 = vpop.f32.mrf.mxu1 }
0x10f7   :  { %v8089_v46 = vadd.f32 %v8058_v62, %v8057_v55 }
0x10f8   :  { %v7649_v17 = vpop.f32.mrf.mxu1 }
0x10f9   :  { %v8090_v6 = vadd.f32 %v8089_v46, %v8086_v42 }
0x10fa   :  { %v11426_v47 = vpop.f32.mrf.mxu1 }
0x10fc   :  { %v7654_v40 = vpop.f32.mrf.mxu1 }
0x10fe   :  { %v11429_v16 = vpop.f32.mrf.mxu1 }
0x1100   :  { %v7659_v35 = vpop.f32.mrf.mxu1 }
0x1101   :  { %11434 = vmatpush3.msra.mxu0 %v7659_v35 }
0x1102   :  { %v11432_v0 = vpop.f32.mrf.mxu1  ;;  %11435 = vmatprep.subr.mxu0 %v16051_v58 }
0x1103   :  { %11436 = vmatpush3.msra.mxu0 %v7654_v40  ;;  %v8111_v40 = vld [vmem:[#allocation28 + $0x8] sm:$0xf] }
0x1104   :  { %11437 = vmatprep.subr.mxu0 %v16051_v58 }
0x1105   :  { %11438 = vmatpush3.msra.mxu0 %v7649_v17 }
0x1106   :  { %11440 = vmatmul.mubr.msk.f32.vlgmr.msra.gmra.mxu0 %vm7338_vm14, %v15628_v23  ;;  %11442 = vmatprep.subr.mxu0 %v16051_v58 }
0x1107   :  { %11443 = vmatpush3.msk.msra.mxu0 %vm7254_vm12, %v15586_v2  ;;  %11444 = vmatprep.mubr.msk.f32.mxu0 %vm12241_vm6, %v16051_v58 }
0x1108   :  { %11473 = vmatprep.subr.mxu0 %v16051_v58 }
0x110a   :  { %11445 = vmatmul.mubr.msk.f32.vlgmr.msra.gmra.mxu0 %vm7202_vm13, %v7733_v25 }
0x110b   :  { %11447 = vmatprep.mubr.msk.f32.mxu0 %vm12241_vm6, %v16051_v58 }
0x110e   :  { %11448 = vmatmul.mubr.msk.f32.gmra.mxu0 %vm7202_vm13, %v7734_v59 }
0x110f   :  { %11450 = vmatprep.mubr.msk.f32.mxu0 %vm12241_vm6, %v16051_v58 }
0x1112   :  { %11451 = vmatmul.mubr.msk.f32.gmra.mxu0 %vm7202_vm13, %v7735_v20 }
0x1113   :  { %11479 = vmatprep.mubr.msk.f32.mxu0 %vm12241_vm6, %v16051_v58 }
0x11c6   :  { %v7729_v34 = vpop.f32.mrf.mxu0 }
0x11c7   :  { %v8060_v31 = vsub.f32 %v7729_v34, %v8057_v55 }
0x11c8   :  { %v11441_v54 = vpop.f32.mrf.mxu0 }
0x11ca   :  { %v7811_v21 = vpop.f32.mrf.mxu0 }
0x11cc   :  { %v11446_v5 = vpop.f32.mrf.mxu0 }
0x11ce   :  { %v7816_v32 = vpop.f32.mrf.mxu0 }
0x11d0   :  { %v11449_v22 = vpop.f32.mrf.mxu0 }
0x11d2   :  { %v7821_v8 = vpop.f32.mrf.mxu0 }
0x11d3   :  { %11454 = vmatpush3.msra.mxu1 %v7821_v8 }
0x11d4   :  { %v11452_v51 = vpop.f32.mrf.mxu0  ;;  %11455 = vmatprep.subr.mxu1 %v16051_v58 }
0x11d5   :  { %11456 = vmatpush3.msra.mxu1 %v7816_v32 }
0x11d6   :  { %11457 = vmatprep.subr.mxu1 %v16051_v58 }
0x11d7   :  { %11458 = vmatpush3.msra.mxu1 %v7811_v21 }
0x11d8   :  { %11460 = vmatmul.mubr.msk.f32.vlgmr.msra.gmra.mxu1 %vm7338_vm14, %v15628_v23  ;;  %11462 = vmatprep.subr.mxu1 %v16051_v58 }
0x11d9   :  { %11463 = vmatpush3.msk.msra.mxu1 %vm7254_vm12, %v15586_v2  ;;  %11464 = vmatprep.mubr.msk.f32.mxu1 %vm12241_vm6, %v16051_v58  ;;  %v7897_v2 = vmul.f32 %v15625_v11, %v15611_v37 }
0x11dc   :  { %11465 = vmatmul.mubr.msk.f32.vlgmr.msra.gmra.mxu1 %vm7202_vm13, %v7895_v33 }
0x11dd   :  { %11467 = vmatprep.mubr.msk.f32.mxu1 %vm12241_vm6, %v16051_v58 }
0x11e0   :  { %11468 = vmatmul.mubr.msk.f32.gmra.mxu1 %vm7202_vm13, %v7896_v63 }
0x11e1   :  { %11470 = vmatprep.mubr.msk.f32.mxu1 %vm12241_vm6, %v16051_v58 }
0x11e4   :  { %11471 = vmatmul.mubr.msk.f32.gmra.mxu1 %vm7202_vm13, %v7897_v2 }
0x11e5   :  { %11499 = vmatprep.mubr.msk.f32.mxu1 %vm7338_vm14, %v8110_v36 }
0x1298   :  { %v7891_v49 = vpop.f32.mrf.mxu1 }
0x1299   :  { %v8061_v52 = vsub.f32 %v7891_v49, %v8058_v62 }
0x129a   :  { %v11461_v9 = vpop.f32.mrf.mxu1 }
0x129b   :  { %v8066_v26 = vadd.f32 %v8061_v52, %v8060_v31 }
0x129c   :  { %v7973_v28 = vpop.f32.mrf.mxu1 }
0x129d   :  { %v8067_v27 = vadd.f32 %v8066_v26, %v8064_v48 }
0x129e   :  { %v11466_v4 = vpop.f32.mrf.mxu1 }
0x129f   :  { %v8091_v1 = vmul.f32 %v8090_v6, %v8067_v27  ;;  %11739 = vrcp.f32 %v8067_v27 }
0x12a0   :  { %v7978_v18 = vpop.f32.mrf.mxu1 }
0x12a1   :  { %11741 = vrcp.f32 %v8091_v1 }
0x12a2   :  { %v11469_v3 = vpop.f32.mrf.mxu1 }
0x12a4   :  { %v7983_v12 = vpop.f32.mrf.mxu1 }
0x12a5   :  { %11474 = vmatpush3.msra.mxu0 %v7983_v12 }
0x12a6   :  { %v11472_v53 = vpop.f32.mrf.mxu1  ;;  %11475 = vmatprep.subr.mxu0 %v16051_v58 }
0x12a7   :  { %11476 = vmatpush3.msra.mxu0 %v7978_v18 }
0x12a8   :  { %11477 = vmatprep.subr.mxu0 %v16051_v58 }
0x12a9   :  { %11478 = vmatpush3.msra.mxu0 %v7973_v28 }
0x12aa   :  { %11480 = vmatmul.mubr.msk.f32.vlgmr.msra.gmra.mxu0 %vm7338_vm14, %v15628_v23  ;;  %11482 = vmatprep.subr.mxu0 %v16051_v58 }
0x12ab   :  { %11483 = vmatpush3.msk.msra.mxu0 %vm7254_vm12, %v8109_v56  ;;  %11484 = vmatprep.mubr.msk.f32.mxu0 %vm12241_vm6, %v16051_v58 }
0x12ac   :  { %v11740_v41 = vpop.eup %11739 }
0x12ae   :  { %11485 = vmatmul.mubr.msk.f32.vlgmr.msra.gmra.mxu0 %vm7202_vm13, %v15591_v13  ;;  %v8059_v13 = vmul.f32 %v15678_v57, %v15651_v30  ;;  %v11742_v60 = vpop.eup %11741 }
0x12af   :  { %11487 = vmatprep.mubr.msk.f32.mxu0 %vm12241_vm6, %v16051_v58 }
0x12b0   :  { %v8085_v39 = vmul.f32 2.0, %v8059_v13 }
0x12b2   :  { %11488 = vmatmul.mubr.msk.f32.gmra.mxu0 %vm7202_vm13, %v15597_v15  ;;  %v8087_v43 = vadd.f32 %v8086_v42, %v8085_v39  ;;  %v8431_v42 = vld [vmem:[%s15877_s18] sm:$0x3] }
0x12b3   :  { %11490 = vmatprep.mubr.msk.f32.mxu0 %vm12241_vm6, %v16051_v58 }
0x12b6   :  { %11491 = vmatmul.mubr.msk.f32.gmra.mxu0 %vm7202_vm13, %v15611_v37 }
0x12b7   :  { %11519 = vmatprep.mubr.msk.f32.mxu0 %vm7338_vm14, %v8110_v36 }
0x136a   :  { %v8053_v45 = vpop.f32.mrf.mxu0 }
0x136b   :  { %v8062_v23 = vsub.f32 %v8053_v45, %v8059_v13 }
0x136c   :  { %v11481_v15 = vpop.f32.mrf.mxu0 }
0x136d   :  { %v8063_v44 = vmul.f32 2.0, %v8062_v23 }
0x136e   :  { %v8181_v14 = vpop.f32.mrf.mxu0 }
0x136f   :  { %v8065_v38 = vadd.f32 %v8064_v48, %v8063_v44 }
0x1370   :  { %v11486_v37 = vpop.f32.mrf.mxu0 }
0x1371   :  { %v8069_v50 = vmul.f32 %v11740_v41, %v8065_v38  ;;  %v8088_v61 = vmul.f32 %v8087_v43, %v8065_v38 }
0x1372   :  { %v8186_v19 = vpop.f32.mrf.mxu0 }
0x1373   :  { %v8070_v29 = vsel %vm6797_vm11, %v8069_v50, 0.0  ;;  %v8093_v24 = vmul.f32 %v11742_v60, %v8088_v61 }
0x1374   :  { %v11489_v17 = vpop.f32.mrf.mxu0  ;;  %8071 = vadd.xlane.f32.xlu0 %v8070_v29 }
0x1375   :  { %v8094_v30 = vsel %vm6797_vm11, %v8093_v24, 0.0 }
0x1376   :  { %v8191_v57 = vpop.f32.mrf.mxu0  ;;  %8095 = vadd.xlane.f32.xlu1 %v8094_v30 }
0x1377   :  { %11493 = vmatprep.subr.mxu1 %v8191_v57 }
0x1378   :  { %v11492_v47 = vpop.f32.mrf.mxu0  ;;  %11494 = vmatpush3.msra.mxu1 %v8191_v57 }
0x1379   :  { %11495 = vmatprep.subr.mxu1 %v8186_v19 }
0x137a   :  { %11496 = vmatpush3.msra.mxu1 %v8186_v19 }
0x137b   :  { %11497 = vmatprep.subr.mxu1 %v8181_v14 }
0x137c   :  { %11498 = vmatpush3.msra.mxu1 %v8181_v14  ;;  %v8432_v14 = vld [vmem:[%s15878_s19] sm:$0x3f] }
0x137d   :  { %11500 = vmatmul.mubr.msk.f32.vlgmr.msra.gmra.mxu1 %vm7338_vm14, %v8111_v40  ;;  %11502 = vmatprep.subr.mxu1 %v16051_v58 }
0x137e   :  { %11503 = vmatpush3.msk.msra.mxu1 %vm7254_vm12, %v8109_v56  ;;  %11504 = vmatprep.mubr.msk.f32.mxu1 %vm12241_vm6, %v16051_v58 }
0x137f   :  { %11527 = vmatprep.subr.mxu1 %v16051_v58 }
0x1381   :  { %11505 = vmatmul.mubr.msk.f32.vlgmr.msra.gmra.mxu1 %vm7202_vm13, %v15621_v7 }
0x1382   :  { %11507 = vmatprep.mubr.msk.f32.mxu1 %vm12241_vm6, %v16051_v58 }
0x1385   :  { %11508 = vmatmul.mubr.msk.f32.gmra.mxu1 %vm7202_vm13, %v15623_v10 }
0x1386   :  { %11510 = vmatprep.mubr.msk.f32.mxu1 %vm12241_vm6, %v16051_v58 }
0x1389   :  { %11511 = vmatmul.mubr.msk.f32.gmra.mxu1 %vm7202_vm13, %v15625_v11 }
0x138a   :  { %11531 = vmatprep.mubr.msk.f32.mxu1 %vm12241_vm6, %v16051_v58 }
0x13fd   :  { %v8072_v16 = vpop.xlane.xlu0 %8071 }
0x13fe   :  { %v8073_v35 = vrot.slane %v8072_v16, 4 }
0x13ff   :  { %v8096_v0 = vpop.xlane.xlu1 %8095 }
0x1400   :  { %v8074_v25 = vadd.f32 %v8073_v35, %v8072_v16  ;;  %v8097_v7 = vrot.slane %v8096_v0, 4 }
0x1402   :  { %v8075_v59 = vrot.slane %v8074_v25, 2  ;;  %v8098_v20 = vadd.f32 %v8097_v7, %v8096_v0 }
0x1404   :  { %v8099_v34 = vrot.slane %v8098_v20, 2  ;;  %v8076_v54 = vadd.f32 %v8075_v59, %v8074_v25 }
0x1406   :  { %v8077_v21 = vrot.slane %v8076_v54, 1  ;;  %v8100_v10 = vadd.f32 %v8099_v34, %v8098_v20 }
0x1408   :  { %v8078_v5 = vadd.f32 %v8077_v21, %v8076_v54  ;;  %v8101_v32 = vrot.slane %v8100_v10, 1 }
0x140a   :  { %11610 = vpush %v8078_v5  ;;  %v8102_v22 = vadd.f32 %v8101_v32, %v8100_v10 }
0x140c   :  { %11612 = vpush %v8102_v22 }
0x143b   :  { %s11611_s27 = spop %11610 }
0x143c   :  { %s8082_s8 = smul.f32 0.16666667, %s11611_s27 }
0x143d   :  { %s11613_s1 = spop %11612  ;;  %v15779_v11 = vpop.f32.mrf.mxu1 }
0x143e   :  { %8084 = sst [smem:[#allocation30 + $0x3]] %s8082_s8  ;;  %s8106_s11 = smul.f32 0.16666667, %s11613_s1  ;;  %v8436_v33 = vsel %vm8435_vm0, %v15779_v11, -inf  ;;  %v8448_v2 = vsel %vm8435_vm0, %v15779_v11, inf  ;;  %v8790_v43 = vmul.f32 %v15779_v11, %v15779_v11 }
0x143f   :  { %v15781_v8 = vpop.f32.mrf.mxu1 }
0x1440   :  { %8108 = sst [smem:[#allocation29 + $0x3]] %s8106_s11  ;;  %v8434_v51 = vsel %vm8433_vm15, %v15781_v8, -inf  ;;  %v8447_v63 = vsel %vm8433_vm15, %v15781_v8, inf  ;;  %v8789_v15 = vmul.f32 %v15781_v8, %v15781_v8  ;;  %s12173_s11 = scalar_lea.vmem %s9326_s0, 16 }
0x1441   :  { %v8342_v62 = vpop.f32.mrf.mxu1  ;;  %v8437_v55 = vmax.f32 %v8434_v51, %v8436_v33  ;;  %v8449_v49 = vmin.f32 %v8447_v63, %v8448_v2  ;;  %p12174_p11 = scmp.ne.s32.totalorder %s9326_s0, %s12173_s11  ;;  %p12179_p13 = scmp.lt.s32.totalorder %s12173_s11, %s12173_s11 }
0x1443   :  { %v11506_v46 = vpop.f32.mrf.mxu1  ;;  %8438 = vmax.xlane.f32.xlu0 %v8437_v55  ;;  %8450 = vmin.xlane.f32.xlu1 %v8449_v49  ;;  %p12180_p0 = por %p12179_p13, %p12178_p12 }
0x1445   :  { %v8347_v31 = vpop.f32.mrf.mxu1  ;;  %p12181_p1 = pnand %p12180_p0, %p12174_p11 }
0x1447   :  { %v11509_v52 = vpop.f32.mrf.mxu1 }
0x1449   :  { %v8352_v9 = vpop.f32.mrf.mxu1 }
0x144a   :  { %11513 = vmatprep.subr.mxu0 %v8352_v9 }
0x144b   :  { %v11512_v26 = vpop.f32.mrf.mxu1  ;;  %11514 = vmatpush3.msra.mxu0 %v8352_v9 }
0x144c   :  { %11515 = vmatprep.subr.mxu0 %v8347_v31 }
0x144d   :  { %11516 = vmatpush3.msra.mxu0 %v8347_v31 }
0x144e   :  { %11517 = vmatprep.subr.mxu0 %v8342_v62 }
0x144f   :  { %11518 = vmatpush3.msra.mxu0 %v8342_v62 }
0x1450   :  { %11520 = vmatmul.mubr.msk.f32.vlgmr.msra.gmra.mxu0 %vm7338_vm14, %v8111_v40  ;;  %11522 = vmatprep.subr.msk.mxu0 %vm8479_vm1, %v8431_v42 }
0x1451   :  { %11524 = vmatprep.mubr.msk.f32.mxu0 %vm8433_vm15, %v15781_v8  ;;  %11523 = vmatpush3.msk.msra.mxu0 %vm8479_vm1, %v8431_v42 }
0x1452   :  { %11534 = vmatprep.subr.msk.mxu0 %vm8479_vm1, %v8431_v42 }
0x1454   :  { %11525 = vmatmul.mubr.msk.f32.vlgmr.msra.gmra.mxu0 %vm8433_vm15, %v15779_v11 }
0x1455   :  { %11535 = vmatpush3.msk.msra.mxu0 %vm8479_vm1, %v8431_v42 }
0x1456   :  { %11546 = vmatprep.subr.msk.mxu0 %vm8479_vm1, %v8431_v42 }
0x14cc   :  { %v8439_v28 = vpop.xlane.xlu0 %8438  ;;  %v8451_v48 = vpop.xlane.xlu1 %8450 }
0x14cd   :  { %v8440_v6 = vrot.slane %v8439_v28, 4  ;;  %v8452_v27 = vrot.slane %v8451_v48, 4 }
0x14cf   :  { %v8441_v4 = vmax.f32 %v8439_v28, %v8440_v6  ;;  %v8453_v1 = vmin.f32 %v8451_v48, %v8452_v27 }
0x14d1   :  { %v8442_v18 = vrot.slane %v8441_v4, 2  ;;  %v8454_v3 = vrot.slane %v8453_v1, 2 }
0x14d3   :  { %v8443_v12 = vmax.f32 %v8441_v4, %v8442_v18  ;;  %v8455_v53 = vmin.f32 %v8453_v1, %v8454_v3 }
0x14d5   :  { %v8444_v56 = vrot.slane %v8443_v12, 1  ;;  %v8456_v36 = vrot.slane %v8455_v53, 1 }
0x14d7   :  { %v8445_v13 = vmax.f32 %v8443_v12, %v8444_v56  ;;  %v8457_v45 = vmin.f32 %v8455_v53, %v8456_v36 }
0x14d9   :  { %11614 = vpush %v8445_v13 }
0x14da   :  { %11616 = vpush %v8457_v45 }
0x150a   :  { %s11615_s19 = spop %11614 }
0x150b   :  { %p8459_p9 = scmp.gt.f32.partialorder %s11615_s19, 128.0  ;;  %s11617_s26 = spop %11616 }
0x150c   :  { %p8464_p10 = scmp.lt.f32.partialorder %s11617_s26, -0.5 }
0x150d   :  { %s8460_s22 = scalar_select %p8459_p9, 1, 0 }
0x150e   :  { %s8465_s23 = scalar_select %p8464_p10, 1, 0 }
0x150f   :  { %s8461_s12 = scvt.s32.f32 %s8460_s22 }
0x1510   :  { %v11521_v39 = vpop.f32.mrf.mxu0  ;;  %s8466_s15 = scvt.s32.f32 %s8465_s23 }
0x1511   :  { %v8946_v37 = vmul.f32 %v11521_v39, %v11521_v39  ;;  %v9102_v61 = vmul.f32 %v11521_v39, %v15779_v11  ;;  %s8462_s13 = smul.f32 254.0, %s8461_s12 }
0x1512   :  { %v8422_v23 = vpop.f32.mrf.mxu0  ;;  %s8467_s28 = smul.f32 -1.0, %s8466_s15 }
0x1513   :  { %11536 = vmatprep.mubr.msk.f32.mxu0 %vm8433_vm15, %v8422_v23  ;;  %v8945_v41 = vmul.f32 %v8422_v23, %v8422_v23  ;;  %v9101_v50 = vmul.f32 %v8422_v23, %v15781_v8  ;;  %s8463_s17 = sadd.f32 1.0, %s8462_s13 }
0x1514   :  { %v11526_v44 = vpop.f32.mrf.mxu0  ;;  %11537 = vmatmul.mubr.msk.f32.vlgmr.msra.gmra.mxu0 %vm8433_vm15, %v11521_v39 }
0x1515   :  { %11528 = vmatpush3.msk.msra.mxu1 %vm7254_vm12, %v11526_v44  ;;  %11548 = vmatprep.mubr.msk.f32.mxu0 %vm8433_vm15, %v8789_v15  ;;  %s8468_s29 = ssub.f32 %s8463_s17, %s8467_s28 }
0x1516   :  { %v8549_v38 = vpop.f32.mrf.mxu0  ;;  %11529 = vmatprep.subr.mxu1 %v16051_v58  ;;  %11547 = vmatpush3.msk.msra.mxu0 %vm8479_vm1, %v8431_v42 }
0x1517   :  { %11530 = vmatpush3.msra.mxu1 %v8549_v38  ;;  %11558 = vmatprep.subr.msk.mxu0 %vm8479_vm1, %v8431_v42  ;;  %s8469_s3 = smul.f32 0.01, %s8468_s29 }
0x1518   :  { %11549 = vmatmul.mubr.msk.f32.vlgmr.msra.gmra.mxu0 %vm8433_vm15, %v8790_v43  ;;  %11532 = vmatmul.mubr.msk.f32.vlgmr.msra.gmra.mxu1 %vm8558_vm2, %v8432_v14  ;;  %s8471_s14 = smul.f32 0.03, %s8468_s29 }
0x1519   :  { %11560 = vmatprep.mubr.msk.f32.mxu0 %vm8433_vm15, %v8945_v41  ;;  %11559 = vmatpush3.msk.msra.mxu0 %vm8479_vm1, %v8431_v42  ;;  %s8470_s7 = smul.f32 %s8469_s3, %s8469_s3 }
0x151a   :  { %11570 = vmatprep.subr.msk.mxu0 %vm8479_vm1, %v8431_v42  ;;  %11539 = vmatprep.subr.mxu1 %v16051_v58  ;;  %s8472_s21 = smul.f32 %s8471_s14, %s8471_s14 }
0x151b   :  { %11543 = vmatprep.mubr.msk.f32.mxu1 %vm12241_vm6, %v16051_v58  ;;  %v9286_v32 = vstv %s8470_s7 }
0x151c   :  { %11561 = vmatmul.mubr.msk.f32.vlgmr.msra.gmra.mxu0 %vm8433_vm15, %v8946_v37  ;;  %v9264_v11 = vstv %s8472_s21 }
0x151d   :  { %11572 = vmatprep.mubr.msk.f32.mxu0 %vm8433_vm15, %v9101_v50  ;;  %11571 = vmatpush3.msk.msra.mxu0 %vm8479_vm1, %v8431_v42 }
0x1520   :  { %11573 = vmatmul.mubr.msk.f32.vlgmr.msra.gmra.mxu0 %vm8433_vm15, %v9102_v61 }
0x15d4   :  { %v11538_v60 = vpop.f32.mrf.mxu0 }
0x15d5   :  { %11540 = vmatpush3.msk.msra.mxu1 %vm7254_vm12, %v11538_v60 }
0x15d6   :  { %v8707_v19 = vpop.f32.mrf.mxu0  ;;  %11541 = vmatprep.subr.mxu1 %v16051_v58 }
0x15d7   :  { %11542 = vmatpush3.msra.mxu1 %v8707_v19 }
0x15d8   :  { %11544 = vmatmul.mubr.msk.f32.vlgmr.msra.gmra.mxu1 %vm8558_vm2, %v8432_v14  ;;  %v11550_v29 = vpop.f32.mrf.mxu0  ;;  %11551 = vmatprep.subr.mxu1 %v16051_v58  ;;  %v8631_v24 = vpop.f32.mrf.mxu1 }
0x15d9   :  { %11552 = vmatpush3.msk.msra.mxu1 %vm7254_vm12, %v11550_v29  ;;  %11555 = vmatprep.mubr.msk.f32.mxu1 %vm12241_vm6, %v16051_v58  ;;  %v9257_v59 = vmul.f32 %v8631_v24, %v8631_v24 }
0x15da   :  { %v8863_v17 = vpop.f32.mrf.mxu0  ;;  %11553 = vmatprep.subr.mxu1 %v16051_v58  ;;  %v11533_v30 = vpop.f32.mrf.mxu1 }
0x15db   :  { %11554 = vmatpush3.msra.mxu1 %v8863_v17 }
0x15dc   :  { %11556 = vmatmul.mubr.msk.f32.vlgmr.msra.gmra.mxu1 %vm8558_vm2, %v8432_v14  ;;  %v11562_v57 = vpop.f32.mrf.mxu0  ;;  %11563 = vmatprep.subr.mxu1 %v16051_v58 }
0x15dd   :  { %11564 = vmatpush3.msk.msra.mxu1 %vm7254_vm12, %v11562_v57  ;;  %11567 = vmatprep.mubr.msk.f32.mxu1 %vm12241_vm6, %v16051_v58 }
0x15de   :  { %v9019_v47 = vpop.f32.mrf.mxu0  ;;  %11565 = vmatprep.subr.mxu1 %v16051_v58 }
0x15df   :  { %11566 = vmatpush3.msra.mxu1 %v9019_v47 }
0x15e0   :  { %11568 = vmatmul.mubr.msk.f32.vlgmr.msra.gmra.mxu1 %vm8558_vm2, %v8432_v14  ;;  %v11574_v40 = vpop.f32.mrf.mxu0  ;;  %11575 = vmatprep.subr.mxu1 %v16051_v58 }
0x15e1   :  { %11576 = vmatpush3.msk.msra.mxu1 %vm7254_vm12, %v11574_v40  ;;  %11579 = vmatprep.mubr.msk.f32.mxu1 %vm12241_vm6, %v16051_v58 }
0x15e2   :  { %v9175_v16 = vpop.f32.mrf.mxu0  ;;  %11577 = vmatprep.subr.mxu1 %v16051_v58 }
0x15e3   :  { %11578 = vmatpush3.msra.mxu1 %v9175_v16 }
0x15e4   :  { %11580 = vmatmul.mubr.msk.f32.vlgmr.msra.gmra.mxu1 %vm8558_vm2, %v8432_v14 }
0x1698   :  { %v8785_v35 = vpop.f32.mrf.mxu1 }
0x1699   :  { %v9258_v58 = vmul.f32 %v8785_v35, %v8785_v35  ;;  %v9259_v63 = vmul.f32 %v8785_v35, %v8631_v24 }
0x169a   :  { %v11545_v0 = vpop.f32.mrf.mxu1 }
0x169b   :  { %v9289_v34 = vadd.f32 %v9258_v58, %v9257_v59  ;;  %v9285_v49 = vmul.f32 2.0, %v9259_v63 }
0x169c   :  { %v8941_v25 = vpop.f32.mrf.mxu1 }
0x169d   :  { %v9260_v54 = vsub.f32 %v8941_v25, %v9257_v59  ;;  %v9290_v8 = vadd.f32 %v9289_v34, %v9286_v32  ;;  %v9287_v31 = vadd.f32 %v9286_v32, %v9285_v49 }
0x169e   :  { %v11557_v7 = vpop.f32.mrf.mxu1 }
0x16a0   :  { %v9097_v20 = vpop.f32.mrf.mxu1 }
0x16a1   :  { %v9261_v21 = vsub.f32 %v9097_v20, %v9258_v58 }
0x16a2   :  { %v11569_v10 = vpop.f32.mrf.mxu1 }
0x16a3   :  { %v9266_v5 = vadd.f32 %v9261_v21, %v9260_v54 }
0x16a4   :  { %v9253_v22 = vpop.f32.mrf.mxu1 }
0x16a5   :  { %v9267_v51 = vadd.f32 %v9266_v5, %v9264_v11  ;;  %v9262_v62 = vsub.f32 %v9253_v22, %v9259_v63 }
0x16a6   :  { %v11581_v33 = vpop.f32.mrf.mxu1 }
0x16a7   :  { %11743 = vrcp.f32 %v9267_v51  ;;  %v9291_v2 = vmul.f32 %v9290_v8, %v9267_v51  ;;  %v9263_v55 = vmul.f32 2.0, %v9262_v62 }
0x16a9   :  { %11745 = vrcp.f32 %v9291_v2  ;;  %v9265_v46 = vadd.f32 %v9264_v11, %v9263_v55 }
0x16ab   :  { %v9288_v26 = vmul.f32 %v9287_v31, %v9265_v46 }
0x16b4   :  { %v11744_v52 = vpop.eup %11743 }
0x16b5   :  { %v9269_v9 = vmul.f32 %v11744_v52, %v9265_v46 }
0x16b6   :  { %v11746_v42 = vpop.eup %11745 }
0x16b7   :  { %v9270_v28 = vsel %vm6797_vm11, %v9269_v9, 0.0  ;;  %v9293_v48 = vmul.f32 %v11746_v42, %v9288_v26 }
0x16b8   :  { %9271 = vadd.xlane.f32.xlu0 %v9270_v28 }
0x16b9   :  { %v9294_v6 = vsel %vm6797_vm11, %v9293_v48, 0.0 }
0x16ba   :  { %9295 = vadd.xlane.f32.xlu1 %v9294_v6 }
0x1741   :  { %v9272_v27 = vpop.xlane.xlu0 %9271 }
0x1742   :  { %v9273_v4 = vrot.slane %v9272_v27, 4 }
0x1743   :  { %v9296_v1 = vpop.xlane.xlu1 %9295 }
0x1744   :  { %v9274_v18 = vadd.f32 %v9273_v4, %v9272_v27  ;;  %v9297_v3 = vrot.slane %v9296_v1, 4 }
0x1746   :  { %v9275_v12 = vrot.slane %v9274_v18, 2  ;;  %v9298_v53 = vadd.f32 %v9297_v3, %v9296_v1 }
0x1748   :  { %v9276_v56 = vadd.f32 %v9275_v12, %v9274_v18  ;;  %v9299_v36 = vrot.slane %v9298_v53, 2 }
0x174a   :  { %v9300_v13 = vadd.f32 %v9299_v36, %v9298_v53  ;;  %v9277_v45 = vrot.slane %v9276_v56, 1 }
0x174c   :  { %v9278_v39 = vadd.f32 %v9277_v45, %v9276_v56  ;;  %v9301_v23 = vrot.slane %v9300_v13, 1 }
0x174e   :  { %11618 = vpush %v9278_v39  ;;  %v9302_v15 = vadd.f32 %v9301_v23, %v9300_v13 }
0x1750   :  { %11620 = vpush %v9302_v15 }
0x177f   :  { %s11619_s9 = spop %11618 }
0x1780   :  { %s9282_s27 = smul.f32 0.16666667, %s11619_s9 }
0x1781   :  { %s11621_s8 = spop %11620 }
0x1782   :  { %9284 = sst [smem:[#allocation30 + $0x4]] %s9282_s27  ;;  %s9306_s1 = smul.f32 0.16666667, %s11621_s8 }
0x1783   :  { %12184 = shalt.err (!%p12181_p1)
}
0x1784   :  { %s12242_s10 = smov [#allocation30]   ;;  %9308 = sst [smem:[#allocation29 + $0x4]] %s9306_s1 }
0x1785   :  { %9328 = dma.smem_to_vmem %s12242_s10, 16, %s9326_s0, [#allocation31]  }
0x1786   :  { %s12185_s24 = scalar_lea.vmem %s9316_s20, 16  ;;  %p12190_p3 = scmp.lt.s32.totalorder %s9316_s20, %s9316_s20 }
0x1787   :  { %p12186_p2 = scmp.ne.s32.totalorder %s9316_s20, %s12185_s24  ;;  %p12191_p4 = scmp.lt.s32.totalorder %s12185_s24, %s12185_s24 }
0x1789   :  { %p12192_p5 = por %p12191_p4, %p12190_p3 }
0x178b   :  { %p12193_p6 = pnand %p12192_p5, %p12186_p2 }
0x178d   :  { %12196 = shalt.err (!%p12193_p6)
}
0x178e   :  { %s12243_s18 = smov [#allocation29]  }
0x178f   :  { %9318 = dma.smem_to_vmem %s12243_s18, 16, %s9316_s20, [#allocation4]  }
0x1790   :  { %12215 = dma.done.wait [#allocation4], 16  }
0x1791   :  { %12216 = vsyncadd [#allocation4], 4294967280 }
0x1792   :  { %12217 = dma.done.wait [#allocation31], 16  }
0x1793   :  { %12218 = vsyncadd [#allocation31], 4294967280 }
0x1794   :  { %9335 = sfence }
0x1795   :  { %9336 = vsyncpa [#allocation3], 1 }
0x1796   :  { %9337 = vsyncpa [#allocation6], 1 }
0x1797   :  { %9338 = vsyncpa [#allocation9], 1 }
0x1798   :  { %9339 = vsyncpa [#allocation12], 1 }
0x1799   :  { %9340 = vsyncpa [#allocation15], 1 }
0x179a   :  { %9341 = vsyncpa [#allocation18], 1 }
0x179b   :  { %9342 = vsyncpa [#allocation21], 1 }
0x179c   :  { %9343 = vsyncpa [#allocation24], 1 }
0x179d   :  { %9344 = vsyncpa [#allocation27], 1 }
0x179e   :  { %9345 = vsyncpa [#allocation4], 1 }
0x179f   :  { %9346 = vsyncpa [#allocation31], 1 }

</bundles_post_ra>
